<compile_context>
chip_gen: v6e
topology: v6e:2x2x1
jax: 0.10.0
libtpu: 0.0.40
codegen_flags: <defaults>
</compile_context>

<pallas_src>
import functools

import jax
import jax.numpy as jnp
from jax import lax
from jax.experimental import pallas as pl
from jax.experimental.pallas import tpu as pltpu


# ----------------------------------------------------------------------------
# Model configuration (fixed by the PyTorch module definition).
# ----------------------------------------------------------------------------
IN_DIM = 220          # input feature dim (first 40 = MFCC, last 100 = i-vector)
MFCC_DIM = 40
IVEC_DIM = 100
HID = 1536            # hidden / out_dim of every FTDNN layer
SORTH_OUT = 160       # semi-orthogonal bottleneck dim
OUT_DIM = 256         # layer18 output dim
BN_EPS = 1e-3
MIX_ALPHA = 0.75
# time offsets of layers 02..17 (layer05 has no temporal context)
TIME_OFFSETS = (1, 1, 1, 0, 3, 3, 3, 3, 3, 3, 3, 3, 3, 3, 3, 3)

_MXU_DTYPE = jnp.bfloat16   # MXU operand dtype; accumulation is always f32


def _rep_spec(shape):
    """BlockSpec for an operand that is fully resident (same block every grid step)."""
    n = len(shape)
    return pl.BlockSpec(shape, lambda b, n=n: (0,) * n)


def _cparams():
    return pltpu.CompilerParams(dimension_semantics=("parallel",))


def _mean_bt(v):
    """Mean over batch and time axes (0, 1), keeping dims. Shared by kernel & reference."""
    return jnp.mean(jnp.mean(v, axis=1, keepdims=True), axis=0, keepdims=True)


# ----------------------------------------------------------------------------
# Kernels
# ----------------------------------------------------------------------------
def _input_pre_kernel(m_ref, iv_ref, w_cf_ref, w_m_ref, w_cl_ref, w_iv_ref,
                      b_lda_ref, w_k_ref, b_k_ref, o_ref):
    """InputLayer up to (and including) the ReLU; BatchNorm is a separate pass."""
    m32 = m_ref[0]                          # (T, 40)  MFCC frames, f32
    iv = iv_ref[0].astype(_MXU_DTYPE)       # (T, 100) i-vectors
    T = m32.shape[0]

    # context_first / context_last: previous / next frame with edge replication.
    cf = jnp.concatenate([m32[0:1], m32[:T - 1]], axis=0).astype(_MXU_DTYPE)
    cl = jnp.concatenate([m32[1:], m32[T - 1:T]], axis=0).astype(_MXU_DTYPE)
    m = m32.astype(_MXU_DTYPE)

    # LDA: cat([cf, m, cl, iv], -1) @ W_lda  ==  sum of split matmuls (no lane concat).
    lda = (jnp.dot(cf, w_cf_ref[...], preferred_element_type=jnp.float32)
           + jnp.dot(m, w_m_ref[...], preferred_element_type=jnp.float32)
           + jnp.dot(cl, w_cl_ref[...], preferred_element_type=jnp.float32)
           + jnp.dot(iv, w_iv_ref[...], preferred_element_type=jnp.float32)
           + b_lda_ref[...])

    h = (jnp.dot(lda.astype(_MXU_DTYPE), w_k_ref[...],
                 preferred_element_type=jnp.float32) + b_k_ref[...])
    o_ref[0] = jnp.maximum(h, 0.0).astype(o_ref.dtype)


def _ftdnn_pre_kernel(*refs, time_offset):
    """FTDNNLayer up to (and including) the ReLU; BatchNorm + residual mix is separate.

    Channel concats are folded into split matmuls; the time shifts are applied to the
    small (T, 160) intermediates (shifting commutes with the per-frame matmul).
    """
    t = time_offset
    if t > 0:
        x_ref, ws_a_ref, ws_b_ref, wa_a_ref, wa_b_ref, b_ref, o_ref = refs
    else:
        x_ref, ws_b_ref, wa_a_ref, b_ref, o_ref = refs

    y = x_ref[0].astype(_MXU_DTYPE)         # (T, 1536)
    T = y.shape[0]

    # semi-orthogonal linear on cat([shift_right_t(x), x], -1)
    h = jnp.dot(y, ws_b_ref[...], preferred_element_type=jnp.float32)       # (T, 160)
    if t > 0:
        p = jnp.dot(y, ws_a_ref[...], preferred_element_type=jnp.float32)   # (T, 160)
        # shift right by t frames, replicating the first frame (edge padding)
        p = jnp.concatenate(
            [jnp.broadcast_to(p[0:1], (t,) + p.shape[1:]), p[:T - t]], axis=0)
        h = h + p

    # affine on cat([h, shift_left_t_with_zeros(h)], -1)
    a = jnp.dot(h.astype(_MXU_DTYPE), wa_a_ref[...],
                preferred_element_type=jnp.float32)                          # (T, 1536)
    if t > 0:
        hs = jnp.concatenate([h[t:], jnp.zeros((t,) + h.shape[1:], h.dtype)], axis=0)
        a = a + jnp.dot(hs.astype(_MXU_DTYPE), wa_b_ref[...],
                        preferred_element_type=jnp.float32)
    a = a + b_ref[...]
    o_ref[0] = jnp.maximum(a, 0.0).astype(o_ref.dtype)


def _bn_kernel(a_ref, o_ref, *, eps):
    """BatchNorm1d(affine=False) with batch statistics over (B, T), per channel tile."""
    a = a_ref[...]                           # (B, T, Ct) f32
    mu = _mean_bt(a)
    var = _mean_bt(jnp.square(a - mu))
    o_ref[...] = ((a - mu) * lax.rsqrt(var + eps)).astype(o_ref.dtype)


def _bn_mix_kernel(a_ref, c_ref, o_ref, *, eps, alpha):
    """BatchNorm fused with the residual mix: out = alpha * carry + BN(a)."""
    a = a_ref[...]
    mu = _mean_bt(a)
    var = _mean_bt(jnp.square(a - mu))
    xhat = (a - mu) * lax.rsqrt(var + eps)
    o_ref[...] = (alpha * c_ref[...] + xhat).astype(o_ref.dtype)


def _final_linear_kernel(x_ref, w_ref, o_ref):
    o_ref[0] = jnp.dot(x_ref[0].astype(_MXU_DTYPE), w_ref[...],
                       preferred_element_type=jnp.float32).astype(o_ref.dtype)


# ----------------------------------------------------------------------------
# pallas_call wrappers
# ----------------------------------------------------------------------------
def input_layer_pre(mfcc, ivec, p):
    B, T, _ = mfcc.shape
    c_out = p["w_k"].shape[1]
    weights = (p["w_cf"], p["w_m"], p["w_cl"], p["w_iv"], p["b_lda"], p["w_k"], p["b_k"])
    in_specs = ([pl.BlockSpec((1, T, mfcc.shape[2]), lambda b: (b, 0, 0)),
                 pl.BlockSpec((1, T, ivec.shape[2]), lambda b: (b, 0, 0))]
                + [_rep_spec(w.shape) for w in weights])
    return pl.pallas_call(
        _input_pre_kernel,
        out_shape=jax.ShapeDtypeStruct((B, T, c_out), jnp.float32),
        grid=(B,),
        in_specs=in_specs,
        out_specs=pl.BlockSpec((1, T, c_out), lambda b: (b, 0, 0)),
        compiler_params=_cparams(),
    )(mfcc, ivec, *weights)


def ftdnn_layer_pre(x, lp, time_offset):
    B, T, C = x.shape
    c_out = lp["b"].shape[1]
    if time_offset > 0:
        weights = (lp["ws_a"], lp["ws_b"], lp["wa_a"], lp["wa_b"], lp["b"])
    else:
        weights = (lp["ws"], lp["wa"], lp["b"])
    in_specs = ([pl.BlockSpec((1, T, C), lambda b: (b, 0, 0))]
                + [_rep_spec(w.shape) for w in weights])
    return pl.pallas_call(
        functools.partial(_ftdnn_pre_kernel, time_offset=time_offset),
        out_shape=jax.ShapeDtypeStruct((B, T, c_out), jnp.float32),
        grid=(B,),
        in_specs=in_specs,
        out_specs=pl.BlockSpec((1, T, c_out), lambda b: (b, 0, 0)),
        compiler_params=_cparams(),
    )(x, *weights)


def batchnorm(a, *, eps=BN_EPS, tile_c=512):
    B, T, C = a.shape
    tc = tile_c if C % tile_c == 0 else C
    return pl.pallas_call(
        functools.partial(_bn_kernel, eps=eps),
        out_shape=jax.ShapeDtypeStruct((B, T, C), jnp.float32),
        grid=(C // tc,),
        in_specs=[pl.BlockSpec((B, T, tc), lambda c: (0, 0, c))],
        out_specs=pl.BlockSpec((B, T, tc), lambda c: (0, 0, c)),
        compiler_params=_cparams(),
    )(a)


def batchnorm_mix(a, carry, *, alpha=MIX_ALPHA, eps=BN_EPS, tile_c=512):
    B, T, C = a.shape
    tc = tile_c if C % tile_c == 0 else C
    return pl.pallas_call(
        functools.partial(_bn_mix_kernel, eps=eps, alpha=alpha),
        out_shape=jax.ShapeDtypeStruct((B, T, C), jnp.float32),
        grid=(C // tc,),
        in_specs=[pl.BlockSpec((B, T, tc), lambda c: (0, 0, c)),
                  pl.BlockSpec((B, T, tc), lambda c: (0, 0, c))],
        out_specs=pl.BlockSpec((B, T, tc), lambda c: (0, 0, c)),
        compiler_params=_cparams(),
    )(a, carry)


def final_linear(x, w):
    B, T, C = x.shape
    c_out = w.shape[1]
    return pl.pallas_call(
        _final_linear_kernel,
        out_shape=jax.ShapeDtypeStruct((B, T, c_out), jnp.float32),
        grid=(B,),
        in_specs=[pl.BlockSpec((1, T, C), lambda b: (b, 0, 0)), _rep_spec(w.shape)],
        out_specs=pl.BlockSpec((1, T, c_out), lambda b: (b, 0, 0)),
        compiler_params=_cparams(),
    )(x, w)


def ftdnn_forward(x, kparams, *, time_offsets):
    """Pallas forward pass of FTDNN. x: (B, T, 220) float32 -> (B, T, 256) float32."""
    mfcc = x[:, :, :MFCC_DIM]
    ivec = x[:, :, x.shape[2] - IVEC_DIM:]
    a = input_layer_pre(mfcc, ivec, kparams["layer01"])
    carry = batchnorm(a)                                  # layer01 output
    for lp, t in zip(kparams["layers"], time_offsets):
        a = ftdnn_layer_pre(carry, lp, t)                 # layerXX pre-BN activations
        carry = batchnorm_mix(a, carry)                   # x3 = 0.75 * x + BN(a)
    return final_linear(carry, kparams["w18"])            # layer18(x3)


# ----------------------------------------------------------------------------
# Parameters (f32, (in, out) layout == transpose of torch.nn.Linear.weight)
# ----------------------------------------------------------------------------
def init_params(key):
    def dense(k, fan_in, fan_out):
        return jax.random.normal(k, (fan_in, fan_out), jnp.float32) * (fan_in ** -0.5)

    keys = iter(jax.random.split(key, 64))
    params = {
        "layer01": {
            "w_lda": dense(next(keys), IN_DIM, IN_DIM),
            "b_lda": 0.1 * jax.random.normal(next(keys), (1, IN_DIM), jnp.float32),
            "w_k": dense(next(keys), IN_DIM, HID),
            "b_k": 0.1 * jax.random.normal(next(keys), (1, HID), jnp.float32),
        },
        "layers": [],
        "w18": dense(next(keys), HID, OUT_DIM),
    }
    for t in TIME_OFFSETS:
        semi_in = 2 * HID if t > 0 else HID
        aff_in = 2 * SORTH_OUT if t > 0 else SORTH_OUT
        params["layers"].append({
            "w_sorth": dense(next(keys), semi_in, SORTH_OUT),
            "w_aff": dense(next(keys), aff_in, HID),
            "b_aff": 0.1 * jax.random.normal(next(keys), (1, HID), jnp.float32),
        })
    return params


def prepare_kernel_params(params):
    """Split the channel-concat weights into per-source halves and pre-cast to bf16."""
    bf = _MXU_DTYPE
    p01 = params["layer01"]
    w_lda = p01["w_lda"].astype(bf)
    kp = {
        "layer01": {
            # rows of W_lda for [context_first, mfcc, context_last, ivector]
            "w_cf": w_lda[:MFCC_DIM],
            "w_m": w_lda[MFCC_DIM:2 * MFCC_DIM],
            "w_cl": w_lda[2 * MFCC_DIM:3 * MFCC_DIM],
            "w_iv": w_lda[3 * MFCC_DIM:],
            "b_lda": p01["b_lda"],
            "w_k": p01["w_k"].astype(bf),
            "b_k": p01["b_k"],
        },
        "layers": [],
        "w18": params["w18"].astype(bf),
    }
    for lp, t in zip(params["layers"], TIME_OFFSETS):
        ws = lp["w_sorth"].astype(bf)
        wa = lp["w_aff"].astype(bf)
        if t > 0:
            kp["layers"].append({
                "ws_a": ws[:HID], "ws_b": ws[HID:],              # [shifted, current]
                "wa_a": wa[:SORTH_OUT], "wa_b": wa[SORTH_OUT:],  # [current, shifted]
                "b": lp["b_aff"],
            })
        else:
            kp["layers"].append({"ws": ws, "wa": wa, "b": lp["b_aff"]})
    return kp


# ----------------------------------------------------------------------------
# Pure-JAX reference mirroring the PyTorch forward (same bf16-operand policy)
# ----------------------------------------------------------------------------
def _linear_ref(x, w, b=None):
    y = jnp.dot(x.astype(_MXU_DTYPE), w.astype(_MXU_DTYPE),
                preferred_element_type=jnp.float32)
    return y if b is None else y + b


def _bn_ref(x, eps=BN_EPS):
    mu = _mean_bt(x)
    var = _mean_bt(jnp.square(x - mu))
    return (x - mu) * lax.rsqrt(var + eps)


def _input_layer_ref(x, p):
    m = x[:, :, :MFCC_DIM]
    iv = x[:, :, x.shape[2] - IVEC_DIM:]
    cf = jnp.concatenate([m[:, :1], m[:, :-1]], axis=1)
    cl = jnp.concatenate([m[:, 1:], m[:, -1:]], axis=1)
    h = jnp.concatenate([cf, m, cl, iv], axis=2)
    h = _linear_ref(h, p["w_lda"], p["b_lda"])
    h = _linear_ref(h, p["w_k"], p["b_k"])
    return _bn_ref(jnp.maximum(h, 0.0))


def _ftdnn_layer_ref(x, p, t):
    if t > 0:
        pad = jnp.repeat(x[:, :1], t, axis=1)
        xd = jnp.concatenate([pad, x], axis=1)[:, :-t]
        x = jnp.concatenate([xd, x], axis=2)
    x = _linear_ref(x, p["w_sorth"])
    if t > 0:
        zpad = jnp.zeros((x.shape[0], t, x.shape[2]), x.dtype)
        xd = jnp.concatenate([x, zpad], axis=1)[:, t:]
        x = jnp.concatenate([x, xd], axis=2)
    x = _linear_ref(x, p["w_aff"], p["b_aff"])
    return _bn_ref(jnp.maximum(x, 0.0))


def ftdnn_reference(x, params):
    carry = _input_layer_ref(x, params["layer01"])
    for lp, t in zip(params["layers"], TIME_OFFSETS):
        carry = MIX_ALPHA * carry + _ftdnn_layer_ref(carry, lp, t)
    return _linear_ref(carry, params["w18"])


# ----------------------------------------------------------------------------
# Demo
# ----------------------------------------------------------------------------
if __name__ == "__main__":
    # Batch / sequence are the only free shapes; feature dims are fixed by the module.
    B, T = 2, 16
    key = jax.random.PRNGKey(0)
    pkey, xkey = jax.random.split(key)
    params = init_params(pkey)
    x = jax.random.normal(xkey, (B, T, IN_DIM), jnp.float32)

    kparams = prepare_kernel_params(params)
    fwd = jax.jit(functools.partial(ftdnn_forward, time_offsets=TIME_OFFSETS))
    out = jax.block_until_ready(fwd(x, kparams))

    ref = ftdnn_reference(x, params)
    assert out.shape == (B, T, OUT_DIM), out.shape
    rel_err = float(jnp.linalg.norm(out - ref) / (jnp.linalg.norm(ref) + 1e-12))
    # bf16 MXU-operand rounding compounds over the 16 residual layers; a couple of
    # percent aggregate deviation is the expected ceiling, well below this bound.
    assert rel_err < 5e-2, f"relative error vs reference too large: {rel_err}"
    print("KERNEL_OK")
</pallas_src>

<mosaic_0001>
module attributes {stable_mosaic.version = 11 : i64} {
  func.func @_input_pre_kernel(%arg0: i32, %arg1: memref<1x16x40xf32, #tpu.memory_space<vmem>>, %arg2: memref<1x16x100xf32, #tpu.memory_space<vmem>>, %arg3: memref<40x220xbf16, #tpu.memory_space<vmem>>, %arg4: memref<40x220xbf16, #tpu.memory_space<vmem>>, %arg5: memref<40x220xbf16, #tpu.memory_space<vmem>>, %arg6: memref<100x220xbf16, #tpu.memory_space<vmem>>, %arg7: memref<1x220xf32, #tpu.memory_space<vmem>>, %arg8: memref<220x1536xbf16, #tpu.memory_space<vmem>>, %arg9: memref<1x1536xf32, #tpu.memory_space<vmem>>, %arg10: memref<1x16x1536xf32, #tpu.memory_space<vmem>>) attributes {dimension_semantics = [#tpu.dimension_semantics<parallel>], iteration_bounds = array<i64: 2>, scalar_prefetch = 0 : i64, scratch_operands = 0 : i64, tpu.core_type = #tpu.core_type<tc>, window_params = [{transform_indices = @transform_0, window_bounds = array<i64: 1, 16, 40>}, {transform_indices = @transform_1, window_bounds = array<i64: 1, 16, 100>}, {pipeline_mode = #tpu.pipeline_mode<synchronous>, transform_indices = @transform_2, window_bounds = array<i64: 40, 220>}, {pipeline_mode = #tpu.pipeline_mode<synchronous>, transform_indices = @transform_3, window_bounds = array<i64: 40, 220>}, {pipeline_mode = #tpu.pipeline_mode<synchronous>, transform_indices = @transform_4, window_bounds = array<i64: 40, 220>}, {pipeline_mode = #tpu.pipeline_mode<synchronous>, transform_indices = @transform_5, window_bounds = array<i64: 100, 220>}, {pipeline_mode = #tpu.pipeline_mode<synchronous>, transform_indices = @transform_6, window_bounds = array<i64: 1, 220>}, {pipeline_mode = #tpu.pipeline_mode<synchronous>, transform_indices = @transform_7, window_bounds = array<i64: 220, 1536>}, {pipeline_mode = #tpu.pipeline_mode<synchronous>, transform_indices = @transform_8, window_bounds = array<i64: 1, 1536>}, {transform_indices = @transform_9, window_bounds = array<i64: 1, 16, 1536>}]} {
    %c0 = arith.constant 0 : index
    %c0_0 = arith.constant 0 : index
    %c0_1 = arith.constant 0 : index
    %0 = vector.load %arg1[%c0, %c0_0, %c0_1] : memref<1x16x40xf32, #tpu.memory_space<vmem>>, vector<1x16x40xf32>
    %1 = vector.shape_cast %0 : vector<1x16x40xf32> to vector<16x40xf32>
    %c0_2 = arith.constant 0 : index
    %c0_3 = arith.constant 0 : index
    %c0_4 = arith.constant 0 : index
    %2 = vector.load %arg2[%c0_2, %c0_3, %c0_4] : memref<1x16x100xf32, #tpu.memory_space<vmem>>, vector<1x16x100xf32>
    %3 = vector.shape_cast %2 : vector<1x16x100xf32> to vector<16x100xf32>
    %4 = arith.truncf %3 : vector<16x100xf32> to vector<16x100xbf16>
    %5 = vector.extract_strided_slice %1 {offsets = [0, 0], sizes = [1, 40], strides = [1, 1]} : vector<16x40xf32> to vector<1x40xf32>
    %6 = vector.extract_strided_slice %1 {offsets = [0, 0], sizes = [15, 40], strides = [1, 1]} : vector<16x40xf32> to vector<15x40xf32>
    %7 = tpu.concatenate %5, %6 in 0 : vector<1x40xf32>, vector<15x40xf32> -> vector<16x40xf32>
    %8 = arith.truncf %7 : vector<16x40xf32> to vector<16x40xbf16>
    %9 = vector.extract_strided_slice %1 {offsets = [1, 0], sizes = [15, 40], strides = [1, 1]} : vector<16x40xf32> to vector<15x40xf32>
    %10 = vector.extract_strided_slice %1 {offsets = [15, 0], sizes = [1, 40], strides = [1, 1]} : vector<16x40xf32> to vector<1x40xf32>
    %11 = tpu.concatenate %9, %10 in 0 : vector<15x40xf32>, vector<1x40xf32> -> vector<16x40xf32>
    %12 = arith.truncf %11 : vector<16x40xf32> to vector<16x40xbf16>
    %13 = arith.truncf %1 : vector<16x40xf32> to vector<16x40xbf16>
    %c0_5 = arith.constant 0 : index
    %c0_6 = arith.constant 0 : index
    %14 = vector.load %arg3[%c0_5, %c0_6] : memref<40x220xbf16, #tpu.memory_space<vmem>>, vector<40x220xbf16>
    %cst = arith.constant dense<0.000000e+00> : vector<16x220xf32>
    %15 = tpu.matmul %8, %14, %cst {dimension_numbers = #tpu.dot_dimension_numbers<[1], [0], [0], [1], [0, 0, 1, 1], [], []>} : vector<16x40xbf16>, vector<40x220xbf16>, vector<16x220xf32> -> vector<16x220xf32>
    %c0_7 = arith.constant 0 : index
    %c0_8 = arith.constant 0 : index
    %16 = vector.load %arg4[%c0_7, %c0_8] : memref<40x220xbf16, #tpu.memory_space<vmem>>, vector<40x220xbf16>
    %cst_9 = arith.constant dense<0.000000e+00> : vector<16x220xf32>
    %17 = tpu.matmul %13, %16, %cst_9 {dimension_numbers = #tpu.dot_dimension_numbers<[1], [0], [0], [1], [0, 0, 1, 1], [], []>} : vector<16x40xbf16>, vector<40x220xbf16>, vector<16x220xf32> -> vector<16x220xf32>
    %18 = arith.addf %15, %17 : vector<16x220xf32>
    %c0_10 = arith.constant 0 : index
    %c0_11 = arith.constant 0 : index
    %19 = vector.load %arg5[%c0_10, %c0_11] : memref<40x220xbf16, #tpu.memory_space<vmem>>, vector<40x220xbf16>
    %cst_12 = arith.constant dense<0.000000e+00> : vector<16x220xf32>
    %20 = tpu.matmul %12, %19, %cst_12 {dimension_numbers = #tpu.dot_dimension_numbers<[1], [0], [0], [1], [0, 0, 1, 1], [], []>} : vector<16x40xbf16>, vector<40x220xbf16>, vector<16x220xf32> -> vector<16x220xf32>
    %21 = arith.addf %18, %20 : vector<16x220xf32>
    %c0_13 = arith.constant 0 : index
    %c0_14 = arith.constant 0 : index
    %22 = vector.load %arg6[%c0_13, %c0_14] : memref<100x220xbf16, #tpu.memory_space<vmem>>, vector<100x220xbf16>
    %cst_15 = arith.constant dense<0.000000e+00> : vector<16x220xf32>
    %23 = tpu.matmul %4, %22, %cst_15 {dimension_numbers = #tpu.dot_dimension_numbers<[1], [0], [0], [1], [0, 0, 1, 1], [], []>} : vector<16x100xbf16>, vector<100x220xbf16>, vector<16x220xf32> -> vector<16x220xf32>
    %24 = arith.addf %21, %23 : vector<16x220xf32>
    %c0_16 = arith.constant 0 : index
    %c0_17 = arith.constant 0 : index
    %25 = vector.load %arg7[%c0_16, %c0_17] : memref<1x220xf32, #tpu.memory_space<vmem>>, vector<1x220xf32>
    %26 = vector.broadcast %25 : vector<1x220xf32> to vector<16x220xf32>
    %27 = arith.addf %24, %26 : vector<16x220xf32>
    %28 = arith.truncf %27 : vector<16x220xf32> to vector<16x220xbf16>
    %c0_18 = arith.constant 0 : index
    %c0_19 = arith.constant 0 : index
    %29 = vector.load %arg8[%c0_18, %c0_19] : memref<220x1536xbf16, #tpu.memory_space<vmem>>, vector<220x1536xbf16>
    %cst_20 = arith.constant dense<0.000000e+00> : vector<16x1536xf32>
    %30 = tpu.matmul %28, %29, %cst_20 {dimension_numbers = #tpu.dot_dimension_numbers<[1], [0], [0], [1], [0, 0, 1, 1], [], []>} : vector<16x220xbf16>, vector<220x1536xbf16>, vector<16x1536xf32> -> vector<16x1536xf32>
    %c0_21 = arith.constant 0 : index
    %c0_22 = arith.constant 0 : index
    %31 = vector.load %arg9[%c0_21, %c0_22] : memref<1x1536xf32, #tpu.memory_space<vmem>>, vector<1x1536xf32>
    %32 = vector.broadcast %31 : vector<1x1536xf32> to vector<16x1536xf32>
    %33 = arith.addf %30, %32 : vector<16x1536xf32>
    %cst_23 = arith.constant 0.000000e+00 : f32
    %34 = vector.broadcast %cst_23 : f32 to vector<16x1536xf32>
    %35 = arith.maximumf %33, %34 : vector<16x1536xf32>
    %c0_24 = arith.constant 0 : index
    %c0_25 = arith.constant 0 : index
    %c0_26 = arith.constant 0 : index
    %36 = vector.load %arg10[%c0_24, %c0_25, %c0_26] : memref<1x16x1536xf32, #tpu.memory_space<vmem>>, vector<1x16x1536xf32>
    %37 = vector.shape_cast %36 : vector<1x16x1536xf32> to vector<16x1536xf32>
    %38 = vector.shape_cast %35 : vector<16x1536xf32> to vector<1x16x1536xf32>
    tpu.vector_store %arg10[%c0_24, %c0_25, %c0_26], %38 {strides = array<i32>} : memref<1x16x1536xf32, #tpu.memory_space<vmem>>, vector<1x16x1536xf32>,
    return
  }
  func.func @transform_0(%arg0: i32) -> (i32, i32, i32) {
    %c0_i32 = arith.constant 0 : i32
    %c0_i32_0 = arith.constant 0 : i32
    %c0_i32_1 = arith.constant 0 : i32
    return %arg0, %c0_i32, %c0_i32_0 : i32, i32, i32
  }
  func.func @transform_1(%arg0: i32) -> (i32, i32, i32) {
    %c0_i32 = arith.constant 0 : i32
    %c0_i32_0 = arith.constant 0 : i32
    %c0_i32_1 = arith.constant 0 : i32
    return %arg0, %c0_i32, %c0_i32_0 : i32, i32, i32
  }
  func.func @transform_2(%arg0: i32) -> (i32, i32) {
    %c0_i32 = arith.constant 0 : i32
    %c0_i32_0 = arith.constant 0 : i32
    %c0_i32_1 = arith.constant 0 : i32
    return %c0_i32, %c0_i32_0 : i32, i32
  }
  func.func @transform_3(%arg0: i32) -> (i32, i32) {
    %c0_i32 = arith.constant 0 : i32
    %c0_i32_0 = arith.constant 0 : i32
    %c0_i32_1 = arith.constant 0 : i32
    return %c0_i32, %c0_i32_0 : i32, i32
  }
  func.func @transform_4(%arg0: i32) -> (i32, i32) {
    %c0_i32 = arith.constant 0 : i32
    %c0_i32_0 = arith.constant 0 : i32
    %c0_i32_1 = arith.constant 0 : i32
    return %c0_i32, %c0_i32_0 : i32, i32
  }
  func.func @transform_5(%arg0: i32) -> (i32, i32) {
    %c0_i32 = arith.constant 0 : i32
    %c0_i32_0 = arith.constant 0 : i32
    %c0_i32_1 = arith.constant 0 : i32
    return %c0_i32, %c0_i32_0 : i32, i32
  }
  func.func @transform_6(%arg0: i32) -> (i32, i32) {
    %c0_i32 = arith.constant 0 : i32
    %c0_i32_0 = arith.constant 0 : i32
    %c0_i32_1 = arith.constant 0 : i32
    return %c0_i32, %c0_i32_0 : i32, i32
  }
  func.func @transform_7(%arg0: i32) -> (i32, i32) {
    %c0_i32 = arith.constant 0 : i32
    %c0_i32_0 = arith.constant 0 : i32
    %c0_i32_1 = arith.constant 0 : i32
    return %c0_i32, %c0_i32_0 : i32, i32
  }
  func.func @transform_8(%arg0: i32) -> (i32, i32) {
    %c0_i32 = arith.constant 0 : i32
    %c0_i32_0 = arith.constant 0 : i32
    %c0_i32_1 = arith.constant 0 : i32
    return %c0_i32, %c0_i32_0 : i32, i32
  }
  func.func @transform_9(%arg0: i32) -> (i32, i32, i32) {
    %c0_i32 = arith.constant 0 : i32
    %c0_i32_0 = arith.constant 0 : i32
    %c0_i32_1 = arith.constant 0 : i32
    return %arg0, %c0_i32, %c0_i32_0 : i32, i32, i32
  }
}

module attributes {stable_mosaic.version = 11 : i64} {
  func.func @_bn_kernel(%arg0: i32, %arg1: memref<2x16x512xf32, #tpu.memory_space<vmem>>, %arg2: memref<2x16x512xf32, #tpu.memory_space<vmem>>) attributes {dimension_semantics = [#tpu.dimension_semantics<parallel>], iteration_bounds = array<i64: 3>, scalar_prefetch = 0 : i64, scratch_operands = 0 : i64, tpu.core_type = #tpu.core_type<tc>, window_params = [{transform_indices = @transform_0, window_bounds = array<i64: 2, 16, 512>}, {transform_indices = @transform_1, window_bounds = array<i64: 2, 16, 512>}]} {
    %c0 = arith.constant 0 : index
    %c0_0 = arith.constant 0 : index
    %c0_1 = arith.constant 0 : index
    %0 = vector.load %arg1[%c0, %c0_0, %c0_1] : memref<2x16x512xf32, #tpu.memory_space<vmem>>, vector<2x16x512xf32>
    %cst = arith.constant dense<0.000000e+00> : vector<2x512xf32>
    %1 = vector.multi_reduction <add>, %0, %cst [1] : vector<2x16x512xf32> to vector<2x512xf32>
    %2 = vector.shape_cast %1 : vector<2x512xf32> to vector<2x1x512xf32>
    %cst_2 = arith.constant 1.600000e+01 : f32
    %3 = vector.broadcast %cst_2 : f32 to vector<2x1x512xf32>
    %4 = arith.divf %2, %3 : vector<2x1x512xf32>
    %cst_3 = arith.constant dense<0.000000e+00> : vector<1x512xf32>
    %5 = vector.multi_reduction <add>, %4, %cst_3 [0] : vector<2x1x512xf32> to vector<1x512xf32>
    %6 = vector.shape_cast %5 : vector<1x512xf32> to vector<1x1x512xf32>
    %cst_4 = arith.constant 2.000000e+00 : f32
    %7 = vector.broadcast %cst_4 : f32 to vector<1x1x512xf32>
    %8 = arith.divf %6, %7 : vector<1x1x512xf32>
    %9 = vector.broadcast %8 : vector<1x1x512xf32> to vector<2x16x512xf32>
    %10 = arith.subf %0, %9 : vector<2x16x512xf32>
    %11 = arith.mulf %10, %10 : vector<2x16x512xf32>
    %cst_5 = arith.constant dense<0.000000e+00> : vector<2x512xf32>
    %12 = vector.multi_reduction <add>, %11, %cst_5 [1] : vector<2x16x512xf32> to vector<2x512xf32>
    %13 = vector.shape_cast %12 : vector<2x512xf32> to vector<2x1x512xf32>
    %cst_6 = arith.constant 1.600000e+01 : f32
    %14 = vector.broadcast %cst_6 : f32 to vector<2x1x512xf32>
    %15 = arith.divf %13, %14 : vector<2x1x512xf32>
    %cst_7 = arith.constant dense<0.000000e+00> : vector<1x512xf32>
    %16 = vector.multi_reduction <add>, %15, %cst_7 [0] : vector<2x1x512xf32> to vector<1x512xf32>
    %17 = vector.shape_cast %16 : vector<1x512xf32> to vector<1x1x512xf32>
    %cst_8 = arith.constant 2.000000e+00 : f32
    %18 = vector.broadcast %cst_8 : f32 to vector<1x1x512xf32>
    %19 = arith.divf %17, %18 : vector<1x1x512xf32>
    %20 = vector.broadcast %8 : vector<1x1x512xf32> to vector<2x16x512xf32>
    %21 = arith.subf %0, %20 : vector<2x16x512xf32>
    %cst_9 = arith.constant 1.000000e-03 : f32
    %22 = vector.broadcast %cst_9 : f32 to vector<1x1x512xf32>
    %23 = arith.addf %19, %22 : vector<1x1x512xf32>
    %24 = math.rsqrt %23 : vector<1x1x512xf32>
    %25 = vector.broadcast %24 : vector<1x1x512xf32> to vector<2x16x512xf32>
    %26 = arith.mulf %21, %25 : vector<2x16x512xf32>
    %c0_10 = arith.constant 0 : index
    %c0_11 = arith.constant 0 : index
    %c0_12 = arith.constant 0 : index
    %27 = vector.load %arg2[%c0_10, %c0_11, %c0_12] : memref<2x16x512xf32, #tpu.memory_space<vmem>>, vector<2x16x512xf32>
    tpu.vector_store %arg2[%c0_10, %c0_11, %c0_12], %26 {strides = array<i32>} : memref<2x16x512xf32, #tpu.memory_space<vmem>>, vector<2x16x512xf32>,
    return
  }
  func.func @transform_0(%arg0: i32) -> (i32, i32, i32) {
    %c0_i32 = arith.constant 0 : i32
    %c0_i32_0 = arith.constant 0 : i32
    %c0_i32_1 = arith.constant 0 : i32
    return %c0_i32, %c0_i32_0, %arg0 : i32, i32, i32
  }
  func.func @transform_1(%arg0: i32) -> (i32, i32, i32) {
    %c0_i32 = arith.constant 0 : i32
    %c0_i32_0 = arith.constant 0 : i32
    %c0_i32_1 = arith.constant 0 : i32
    return %c0_i32, %c0_i32_0, %arg0 : i32, i32, i32
  }
}

module attributes {stable_mosaic.version = 11 : i64} {
  func.func @_ftdnn_pre_kernel(%arg0: i32, %arg1: memref<1x16x1536xf32, #tpu.memory_space<vmem>>, %arg2: memref<1536x160xbf16, #tpu.memory_space<vmem>>, %arg3: memref<1536x160xbf16, #tpu.memory_space<vmem>>, %arg4: memref<160x1536xbf16, #tpu.memory_space<vmem>>, %arg5: memref<160x1536xbf16, #tpu.memory_space<vmem>>, %arg6: memref<1x1536xf32, #tpu.memory_space<vmem>>, %arg7: memref<1x16x1536xf32, #tpu.memory_space<vmem>>) attributes {dimension_semantics = [#tpu.dimension_semantics<parallel>], iteration_bounds = array<i64: 2>, scalar_prefetch = 0 : i64, scratch_operands = 0 : i64, tpu.core_type = #tpu.core_type<tc>, window_params = [{transform_indices = @transform_0, window_bounds = array<i64: 1, 16, 1536>}, {pipeline_mode = #tpu.pipeline_mode<synchronous>, transform_indices = @transform_1, window_bounds = array<i64: 1536, 160>}, {pipeline_mode = #tpu.pipeline_mode<synchronous>, transform_indices = @transform_2, window_bounds = array<i64: 1536, 160>}, {pipeline_mode = #tpu.pipeline_mode<synchronous>, transform_indices = @transform_3, window_bounds = array<i64: 160, 1536>}, {pipeline_mode = #tpu.pipeline_mode<synchronous>, transform_indices = @transform_4, window_bounds = array<i64: 160, 1536>}, {pipeline_mode = #tpu.pipeline_mode<synchronous>, transform_indices = @transform_5, window_bounds = array<i64: 1, 1536>}, {transform_indices = @transform_6, window_bounds = array<i64: 1, 16, 1536>}]} {
    %c0 = arith.constant 0 : index
    %c0_0 = arith.constant 0 : index
    %c0_1 = arith.constant 0 : index
    %0 = vector.load %arg1[%c0, %c0_0, %c0_1] : memref<1x16x1536xf32, #tpu.memory_space<vmem>>, vector<1x16x1536xf32>
    %1 = vector.shape_cast %0 : vector<1x16x1536xf32> to vector<16x1536xf32>
    %2 = arith.truncf %1 : vector<16x1536xf32> to vector<16x1536xbf16>
    %c0_2 = arith.constant 0 : index
    %c0_3 = arith.constant 0 : index
    %3 = vector.load %arg3[%c0_2, %c0_3] : memref<1536x160xbf16, #tpu.memory_space<vmem>>, vector<1536x160xbf16>
    %cst = arith.constant dense<0.000000e+00> : vector<16x160xf32>
    %4 = tpu.matmul %2, %3, %cst {dimension_numbers = #tpu.dot_dimension_numbers<[1], [0], [0], [1], [0, 0, 1, 1], [], []>} : vector<16x1536xbf16>, vector<1536x160xbf16>, vector<16x160xf32> -> vector<16x160xf32>
    %c0_4 = arith.constant 0 : index
    %c0_5 = arith.constant 0 : index
    %5 = vector.load %arg2[%c0_4, %c0_5] : memref<1536x160xbf16, #tpu.memory_space<vmem>>, vector<1536x160xbf16>
    %cst_6 = arith.constant dense<0.000000e+00> : vector<16x160xf32>
    %6 = tpu.matmul %2, %5, %cst_6 {dimension_numbers = #tpu.dot_dimension_numbers<[1], [0], [0], [1], [0, 0, 1, 1], [], []>} : vector<16x1536xbf16>, vector<1536x160xbf16>, vector<16x160xf32> -> vector<16x160xf32>
    %7 = vector.extract_strided_slice %6 {offsets = [0, 0], sizes = [1, 160], strides = [1, 1]} : vector<16x160xf32> to vector<1x160xf32>
    %8 = vector.extract_strided_slice %6 {offsets = [0, 0], sizes = [15, 160], strides = [1, 1]} : vector<16x160xf32> to vector<15x160xf32>
    %9 = tpu.concatenate %7, %8 in 0 : vector<1x160xf32>, vector<15x160xf32> -> vector<16x160xf32>
    %10 = arith.addf %4, %9 : vector<16x160xf32>
    %11 = arith.truncf %10 : vector<16x160xf32> to vector<16x160xbf16>
    %c0_7 = arith.constant 0 : index
    %c0_8 = arith.constant 0 : index
    %12 = vector.load %arg4[%c0_7, %c0_8] : memref<160x1536xbf16, #tpu.memory_space<vmem>>, vector<160x1536xbf16>
    %cst_9 = arith.constant dense<0.000000e+00> : vector<16x1536xf32>
    %13 = tpu.matmul %11, %12, %cst_9 {dimension_numbers = #tpu.dot_dimension_numbers<[1], [0], [0], [1], [0, 0, 1, 1], [], []>} : vector<16x160xbf16>, vector<160x1536xbf16>, vector<16x1536xf32> -> vector<16x1536xf32>
    %14 = vector.extract_strided_slice %10 {offsets = [1, 0], sizes = [15, 160], strides = [1, 1]} : vector<16x160xf32> to vector<15x160xf32>
    %cst_10 = arith.constant 0.000000e+00 : f32
    %15 = vector.broadcast %cst_10 : f32 to vector<1x160xf32>
    %16 = tpu.concatenate %14, %15 in 0 : vector<15x160xf32>, vector<1x160xf32> -> vector<16x160xf32>
    %17 = arith.truncf %16 : vector<16x160xf32> to vector<16x160xbf16>
    %c0_11 = arith.constant 0 : index
    %c0_12 = arith.constant 0 : index
    %18 = vector.load %arg5[%c0_11, %c0_12] : memref<160x1536xbf16, #tpu.memory_space<vmem>>, vector<160x1536xbf16>
    %cst_13 = arith.constant dense<0.000000e+00> : vector<16x1536xf32>
    %19 = tpu.matmul %17, %18, %cst_13 {dimension_numbers = #tpu.dot_dimension_numbers<[1], [0], [0], [1], [0, 0, 1, 1], [], []>} : vector<16x160xbf16>, vector<160x1536xbf16>, vector<16x1536xf32> -> vector<16x1536xf32>
    %20 = arith.addf %13, %19 : vector<16x1536xf32>
    %c0_14 = arith.constant 0 : index
    %c0_15 = arith.constant 0 : index
    %21 = vector.load %arg6[%c0_14, %c0_15] : memref<1x1536xf32, #tpu.memory_space<vmem>>, vector<1x1536xf32>
    %22 = vector.broadcast %21 : vector<1x1536xf32> to vector<16x1536xf32>
    %23 = arith.addf %20, %22 : vector<16x1536xf32>
    %cst_16 = arith.constant 0.000000e+00 : f32
    %24 = vector.broadcast %cst_16 : f32 to vector<16x1536xf32>
    %25 = arith.maximumf %23, %24 : vector<16x1536xf32>
    %c0_17 = arith.constant 0 : index
    %c0_18 = arith.constant 0 : index
    %c0_19 = arith.constant 0 : index
    %26 = vector.load %arg7[%c0_17, %c0_18, %c0_19] : memref<1x16x1536xf32, #tpu.memory_space<vmem>>, vector<1x16x1536xf32>
    %27 = vector.shape_cast %26 : vector<1x16x1536xf32> to vector<16x1536xf32>
    %28 = vector.shape_cast %25 : vector<16x1536xf32> to vector<1x16x1536xf32>
    tpu.vector_store %arg7[%c0_17, %c0_18, %c0_19], %28 {strides = array<i32>} : memref<1x16x1536xf32, #tpu.memory_space<vmem>>, vector<1x16x1536xf32>,
    return
  }
  func.func @transform_0(%arg0: i32) -> (i32, i32, i32) {
    %c0_i32 = arith.constant 0 : i32
    %c0_i32_0 = arith.constant 0 : i32
    %c0_i32_1 = arith.constant 0 : i32
    return %arg0, %c0_i32, %c0_i32_0 : i32, i32, i32
  }
  func.func @transform_1(%arg0: i32) -> (i32, i32) {
    %c0_i32 = arith.constant 0 : i32
    %c0_i32_0 = arith.constant 0 : i32
    %c0_i32_1 = arith.constant 0 : i32
    return %c0_i32, %c0_i32_0 : i32, i32
  }
  func.func @transform_2(%arg0: i32) -> (i32, i32) {
    %c0_i32 = arith.constant 0 : i32
    %c0_i32_0 = arith.constant 0 : i32
    %c0_i32_1 = arith.constant 0 : i32
    return %c0_i32, %c0_i32_0 : i32, i32
  }
  func.func @transform_3(%arg0: i32) -> (i32, i32) {
    %c0_i32 = arith.constant 0 : i32
    %c0_i32_0 = arith.constant 0 : i32
    %c0_i32_1 = arith.constant 0 : i32
    return %c0_i32, %c0_i32_0 : i32, i32
  }
  func.func @transform_4(%arg0: i32) -> (i32, i32) {
    %c0_i32 = arith.constant 0 : i32
    %c0_i32_0 = arith.constant 0 : i32
    %c0_i32_1 = arith.constant 0 : i32
    return %c0_i32, %c0_i32_0 : i32, i32
  }
  func.func @transform_5(%arg0: i32) -> (i32, i32) {
    %c0_i32 = arith.constant 0 : i32
    %c0_i32_0 = arith.constant 0 : i32
    %c0_i32_1 = arith.constant 0 : i32
    return %c0_i32, %c0_i32_0 : i32, i32
  }
  func.func @transform_6(%arg0: i32) -> (i32, i32, i32) {
    %c0_i32 = arith.constant 0 : i32
    %c0_i32_0 = arith.constant 0 : i32
    %c0_i32_1 = arith.constant 0 : i32
    return %arg0, %c0_i32, %c0_i32_0 : i32, i32, i32
  }
}

module attributes {stable_mosaic.version = 11 : i64} {
  func.func @_bn_mix_kernel(%arg0: i32, %arg1: memref<2x16x512xf32, #tpu.memory_space<vmem>>, %arg2: memref<2x16x512xf32, #tpu.memory_space<vmem>>, %arg3: memref<2x16x512xf32, #tpu.memory_space<vmem>>) attributes {dimension_semantics = [#tpu.dimension_semantics<parallel>], iteration_bounds = array<i64: 3>, scalar_prefetch = 0 : i64, scratch_operands = 0 : i64, tpu.core_type = #tpu.core_type<tc>, window_params = [{transform_indices = @transform_0, window_bounds = array<i64: 2, 16, 512>}, {transform_indices = @transform_1, window_bounds = array<i64: 2, 16, 512>}, {transform_indices = @transform_2, window_bounds = array<i64: 2, 16, 512>}]} {
    %c0 = arith.constant 0 : index
    %c0_0 = arith.constant 0 : index
    %c0_1 = arith.constant 0 : index
    %0 = vector.load %arg1[%c0, %c0_0, %c0_1] : memref<2x16x512xf32, #tpu.memory_space<vmem>>, vector<2x16x512xf32>
    %cst = arith.constant dense<0.000000e+00> : vector<2x512xf32>
    %1 = vector.multi_reduction <add>, %0, %cst [1] : vector<2x16x512xf32> to vector<2x512xf32>
    %2 = vector.shape_cast %1 : vector<2x512xf32> to vector<2x1x512xf32>
    %cst_2 = arith.constant 1.600000e+01 : f32
    %3 = vector.broadcast %cst_2 : f32 to vector<2x1x512xf32>
    %4 = arith.divf %2, %3 : vector<2x1x512xf32>
    %cst_3 = arith.constant dense<0.000000e+00> : vector<1x512xf32>
    %5 = vector.multi_reduction <add>, %4, %cst_3 [0] : vector<2x1x512xf32> to vector<1x512xf32>
    %6 = vector.shape_cast %5 : vector<1x512xf32> to vector<1x1x512xf32>
    %cst_4 = arith.constant 2.000000e+00 : f32
    %7 = vector.broadcast %cst_4 : f32 to vector<1x1x512xf32>
    %8 = arith.divf %6, %7 : vector<1x1x512xf32>
    %9 = vector.broadcast %8 : vector<1x1x512xf32> to vector<2x16x512xf32>
    %10 = arith.subf %0, %9 : vector<2x16x512xf32>
    %11 = arith.mulf %10, %10 : vector<2x16x512xf32>
    %cst_5 = arith.constant dense<0.000000e+00> : vector<2x512xf32>
    %12 = vector.multi_reduction <add>, %11, %cst_5 [1] : vector<2x16x512xf32> to vector<2x512xf32>
    %13 = vector.shape_cast %12 : vector<2x512xf32> to vector<2x1x512xf32>
    %cst_6 = arith.constant 1.600000e+01 : f32
    %14 = vector.broadcast %cst_6 : f32 to vector<2x1x512xf32>
    %15 = arith.divf %13, %14 : vector<2x1x512xf32>
    %cst_7 = arith.constant dense<0.000000e+00> : vector<1x512xf32>
    %16 = vector.multi_reduction <add>, %15, %cst_7 [0] : vector<2x1x512xf32> to vector<1x512xf32>
    %17 = vector.shape_cast %16 : vector<1x512xf32> to vector<1x1x512xf32>
    %cst_8 = arith.constant 2.000000e+00 : f32
    %18 = vector.broadcast %cst_8 : f32 to vector<1x1x512xf32>
    %19 = arith.divf %17, %18 : vector<1x1x512xf32>
    %20 = vector.broadcast %8 : vector<1x1x512xf32> to vector<2x16x512xf32>
    %21 = arith.subf %0, %20 : vector<2x16x512xf32>
    %cst_9 = arith.constant 1.000000e-03 : f32
    %22 = vector.broadcast %cst_9 : f32 to vector<1x1x512xf32>
    %23 = arith.addf %19, %22 : vector<1x1x512xf32>
    %24 = math.rsqrt %23 : vector<1x1x512xf32>
    %25 = vector.broadcast %24 : vector<1x1x512xf32> to vector<2x16x512xf32>
    %26 = arith.mulf %21, %25 : vector<2x16x512xf32>
    %c0_10 = arith.constant 0 : index
    %c0_11 = arith.constant 0 : index
    %c0_12 = arith.constant 0 : index
    %27 = vector.load %arg2[%c0_10, %c0_11, %c0_12] : memref<2x16x512xf32, #tpu.memory_space<vmem>>, vector<2x16x512xf32>
    %cst_13 = arith.constant 7.500000e-01 : f32
    %28 = vector.broadcast %cst_13 : f32 to vector<2x16x512xf32>
    %29 = arith.mulf %28, %27 : vector<2x16x512xf32>
    %30 = arith.addf %29, %26 : vector<2x16x512xf32>
    %c0_14 = arith.constant 0 : index
    %c0_15 = arith.constant 0 : index
    %c0_16 = arith.constant 0 : index
    %31 = vector.load %arg3[%c0_14, %c0_15, %c0_16] : memref<2x16x512xf32, #tpu.memory_space<vmem>>, vector<2x16x512xf32>
    tpu.vector_store %arg3[%c0_14, %c0_15, %c0_16], %30 {strides = array<i32>} : memref<2x16x512xf32, #tpu.memory_space<vmem>>, vector<2x16x512xf32>,
    return
  }
  func.func @transform_0(%arg0: i32) -> (i32, i32, i32) {
    %c0_i32 = arith.constant 0 : i32
    %c0_i32_0 = arith.constant 0 : i32
    %c0_i32_1 = arith.constant 0 : i32
    return %c0_i32, %c0_i32_0, %arg0 : i32, i32, i32
  }
  func.func @transform_1(%arg0: i32) -> (i32, i32, i32) {
    %c0_i32 = arith.constant 0 : i32
    %c0_i32_0 = arith.constant 0 : i32
    %c0_i32_1 = arith.constant 0 : i32
    return %c0_i32, %c0_i32_0, %arg0 : i32, i32, i32
  }
  func.func @transform_2(%arg0: i32) -> (i32, i32, i32) {
    %c0_i32 = arith.constant 0 : i32
    %c0_i32_0 = arith.constant 0 : i32
    %c0_i32_1 = arith.constant 0 : i32
    return %c0_i32, %c0_i32_0, %arg0 : i32, i32, i32
  }
}

module attributes {stable_mosaic.version = 11 : i64} {
  func.func @_ftdnn_pre_kernel(%arg0: i32, %arg1: memref<1x16x1536xf32, #tpu.memory_space<vmem>>, %arg2: memref<1536x160xbf16, #tpu.memory_space<vmem>>, %arg3: memref<160x1536xbf16, #tpu.memory_space<vmem>>, %arg4: memref<1x1536xf32, #tpu.memory_space<vmem>>, %arg5: memref<1x16x1536xf32, #tpu.memory_space<vmem>>) attributes {dimension_semantics = [#tpu.dimension_semantics<parallel>], iteration_bounds = array<i64: 2>, scalar_prefetch = 0 : i64, scratch_operands = 0 : i64, tpu.core_type = #tpu.core_type<tc>, window_params = [{transform_indices = @transform_0, window_bounds = array<i64: 1, 16, 1536>}, {pipeline_mode = #tpu.pipeline_mode<synchronous>, transform_indices = @transform_1, window_bounds = array<i64: 1536, 160>}, {pipeline_mode = #tpu.pipeline_mode<synchronous>, transform_indices = @transform_2, window_bounds = array<i64: 160, 1536>}, {pipeline_mode = #tpu.pipeline_mode<synchronous>, transform_indices = @transform_3, window_bounds = array<i64: 1, 1536>}, {transform_indices = @transform_4, window_bounds = array<i64: 1, 16, 1536>}]} {
    %c0 = arith.constant 0 : index
    %c0_0 = arith.constant 0 : index
    %c0_1 = arith.constant 0 : index
    %0 = vector.load %arg1[%c0, %c0_0, %c0_1] : memref<1x16x1536xf32, #tpu.memory_space<vmem>>, vector<1x16x1536xf32>
    %1 = vector.shape_cast %0 : vector<1x16x1536xf32> to vector<16x1536xf32>
    %2 = arith.truncf %1 : vector<16x1536xf32> to vector<16x1536xbf16>
    %c0_2 = arith.constant 0 : index
    %c0_3 = arith.constant 0 : index
    %3 = vector.load %arg2[%c0_2, %c0_3] : memref<1536x160xbf16, #tpu.memory_space<vmem>>, vector<1536x160xbf16>
    %cst = arith.constant dense<0.000000e+00> : vector<16x160xf32>
    %4 = tpu.matmul %2, %3, %cst {dimension_numbers = #tpu.dot_dimension_numbers<[1], [0], [0], [1], [0, 0, 1, 1], [], []>} : vector<16x1536xbf16>, vector<1536x160xbf16>, vector<16x160xf32> -> vector<16x160xf32>
    %5 = arith.truncf %4 : vector<16x160xf32> to vector<16x160xbf16>
    %c0_4 = arith.constant 0 : index
    %c0_5 = arith.constant 0 : index
    %6 = vector.load %arg3[%c0_4, %c0_5] : memref<160x1536xbf16, #tpu.memory_space<vmem>>, vector<160x1536xbf16>
    %cst_6 = arith.constant dense<0.000000e+00> : vector<16x1536xf32>
    %7 = tpu.matmul %5, %6, %cst_6 {dimension_numbers = #tpu.dot_dimension_numbers<[1], [0], [0], [1], [0, 0, 1, 1], [], []>} : vector<16x160xbf16>, vector<160x1536xbf16>, vector<16x1536xf32> -> vector<16x1536xf32>
    %c0_7 = arith.constant 0 : index
    %c0_8 = arith.constant 0 : index
    %8 = vector.load %arg4[%c0_7, %c0_8] : memref<1x1536xf32, #tpu.memory_space<vmem>>, vector<1x1536xf32>
    %9 = vector.broadcast %8 : vector<1x1536xf32> to vector<16x1536xf32>
    %10 = arith.addf %7, %9 : vector<16x1536xf32>
    %cst_9 = arith.constant 0.000000e+00 : f32
    %11 = vector.broadcast %cst_9 : f32 to vector<16x1536xf32>
    %12 = arith.maximumf %10, %11 : vector<16x1536xf32>
    %c0_10 = arith.constant 0 : index
    %c0_11 = arith.constant 0 : index
    %c0_12 = arith.constant 0 : index
    %13 = vector.load %arg5[%c0_10, %c0_11, %c0_12] : memref<1x16x1536xf32, #tpu.memory_space<vmem>>, vector<1x16x1536xf32>
    %14 = vector.shape_cast %13 : vector<1x16x1536xf32> to vector<16x1536xf32>
    %15 = vector.shape_cast %12 : vector<16x1536xf32> to vector<1x16x1536xf32>
    tpu.vector_store %arg5[%c0_10, %c0_11, %c0_12], %15 {strides = array<i32>} : memref<1x16x1536xf32, #tpu.memory_space<vmem>>, vector<1x16x1536xf32>,
    return
  }
  func.func @transform_0(%arg0: i32) -> (i32, i32, i32) {
    %c0_i32 = arith.constant 0 : i32
    %c0_i32_0 = arith.constant 0 : i32
    %c0_i32_1 = arith.constant 0 : i32
    return %arg0, %c0_i32, %c0_i32_0 : i32, i32, i32
  }
  func.func @transform_1(%arg0: i32) -> (i32, i32) {
    %c0_i32 = arith.constant 0 : i32
    %c0_i32_0 = arith.constant 0 : i32
    %c0_i32_1 = arith.constant 0 : i32
    return %c0_i32, %c0_i32_0 : i32, i32
  }
  func.func @transform_2(%arg0: i32) -> (i32, i32) {
    %c0_i32 = arith.constant 0 : i32
    %c0_i32_0 = arith.constant 0 : i32
    %c0_i32_1 = arith.constant 0 : i32
    return %c0_i32, %c0_i32_0 : i32, i32
  }
  func.func @transform_3(%arg0: i32) -> (i32, i32) {
    %c0_i32 = arith.constant 0 : i32
    %c0_i32_0 = arith.constant 0 : i32
    %c0_i32_1 = arith.constant 0 : i32
    return %c0_i32, %c0_i32_0 : i32, i32
  }
  func.func @transform_4(%arg0: i32) -> (i32, i32, i32) {
    %c0_i32 = arith.constant 0 : i32
    %c0_i32_0 = arith.constant 0 : i32
    %c0_i32_1 = arith.constant 0 : i32
    return %arg0, %c0_i32, %c0_i32_0 : i32, i32, i32
  }
}

module attributes {stable_mosaic.version = 11 : i64} {
  func.func @_final_linear_kernel(%arg0: i32, %arg1: memref<1x16x1536xf32, #tpu.memory_space<vmem>>, %arg2: memref<1536x256xbf16, #tpu.memory_space<vmem>>, %arg3: memref<1x16x256xf32, #tpu.memory_space<vmem>>) attributes {dimension_semantics = [#tpu.dimension_semantics<parallel>], iteration_bounds = array<i64: 2>, scalar_prefetch = 0 : i64, scratch_operands = 0 : i64, tpu.core_type = #tpu.core_type<tc>, window_params = [{transform_indices = @transform_0, window_bounds = array<i64: 1, 16, 1536>}, {pipeline_mode = #tpu.pipeline_mode<synchronous>, transform_indices = @transform_1, window_bounds = array<i64: 1536, 256>}, {transform_indices = @transform_2, window_bounds = array<i64: 1, 16, 256>}]} {
    %c0 = arith.constant 0 : index
    %c0_0 = arith.constant 0 : index
    %c0_1 = arith.constant 0 : index
    %0 = vector.load %arg1[%c0, %c0_0, %c0_1] : memref<1x16x1536xf32, #tpu.memory_space<vmem>>, vector<1x16x1536xf32>
    %1 = vector.shape_cast %0 : vector<1x16x1536xf32> to vector<16x1536xf32>
    %2 = arith.truncf %1 : vector<16x1536xf32> to vector<16x1536xbf16>
    %c0_2 = arith.constant 0 : index
    %c0_3 = arith.constant 0 : index
    %3 = vector.load %arg2[%c0_2, %c0_3] : memref<1536x256xbf16, #tpu.memory_space<vmem>>, vector<1536x256xbf16>
    %cst = arith.constant dense<0.000000e+00> : vector<16x256xf32>
    %4 = tpu.matmul %2, %3, %cst {dimension_numbers = #tpu.dot_dimension_numbers<[1], [0], [0], [1], [0, 0, 1, 1], [], []>} : vector<16x1536xbf16>, vector<1536x256xbf16>, vector<16x256xf32> -> vector<16x256xf32>
    %c0_4 = arith.constant 0 : index
    %c0_5 = arith.constant 0 : index
    %c0_6 = arith.constant 0 : index
    %5 = vector.load %arg3[%c0_4, %c0_5, %c0_6] : memref<1x16x256xf32, #tpu.memory_space<vmem>>, vector<1x16x256xf32>
    %6 = vector.shape_cast %5 : vector<1x16x256xf32> to vector<16x256xf32>
    %7 = vector.shape_cast %4 : vector<16x256xf32> to vector<1x16x256xf32>
    tpu.vector_store %arg3[%c0_4, %c0_5, %c0_6], %7 {strides = array<i32>} : memref<1x16x256xf32, #tpu.memory_space<vmem>>, vector<1x16x256xf32>,
    return
  }
  func.func @transform_0(%arg0: i32) -> (i32, i32, i32) {
    %c0_i32 = arith.constant 0 : i32
    %c0_i32_0 = arith.constant 0 : i32
    %c0_i32_1 = arith.constant 0 : i32
    return %arg0, %c0_i32, %c0_i32_0 : i32, i32, i32
  }
  func.func @transform_1(%arg0: i32) -> (i32, i32) {
    %c0_i32 = arith.constant 0 : i32
    %c0_i32_0 = arith.constant 0 : i32
    %c0_i32_1 = arith.constant 0 : i32
    return %c0_i32, %c0_i32_0 : i32, i32
  }
  func.func @transform_2(%arg0: i32) -> (i32, i32, i32) {
    %c0_i32 = arith.constant 0 : i32
    %c0_i32_0 = arith.constant 0 : i32
    %c0_i32_1 = arith.constant 0 : i32
    return %arg0, %c0_i32, %c0_i32_0 : i32, i32, i32
  }
}

module attributes {stable_mosaic.version = 11 : i64} {
  func.func @_ftdnn_pre_kernel(%arg0: i32, %arg1: memref<1x16x1536xf32, #tpu.memory_space<vmem>>, %arg2: memref<1536x160xbf16, #tpu.memory_space<vmem>>, %arg3: memref<1536x160xbf16, #tpu.memory_space<vmem>>, %arg4: memref<160x1536xbf16, #tpu.memory_space<vmem>>, %arg5: memref<160x1536xbf16, #tpu.memory_space<vmem>>, %arg6: memref<1x1536xf32, #tpu.memory_space<vmem>>, %arg7: memref<1x16x1536xf32, #tpu.memory_space<vmem>>) attributes {dimension_semantics = [#tpu.dimension_semantics<parallel>], iteration_bounds = array<i64: 2>, scalar_prefetch = 0 : i64, scratch_operands = 0 : i64, tpu.core_type = #tpu.core_type<tc>, window_params = [{transform_indices = @transform_0, window_bounds = array<i64: 1, 16, 1536>}, {pipeline_mode = #tpu.pipeline_mode<synchronous>, transform_indices = @transform_1, window_bounds = array<i64: 1536, 160>}, {pipeline_mode = #tpu.pipeline_mode<synchronous>, transform_indices = @transform_2, window_bounds = array<i64: 1536, 160>}, {pipeline_mode = #tpu.pipeline_mode<synchronous>, transform_indices = @transform_3, window_bounds = array<i64: 160, 1536>}, {pipeline_mode = #tpu.pipeline_mode<synchronous>, transform_indices = @transform_4, window_bounds = array<i64: 160, 1536>}, {pipeline_mode = #tpu.pipeline_mode<synchronous>, transform_indices = @transform_5, window_bounds = array<i64: 1, 1536>}, {transform_indices = @transform_6, window_bounds = array<i64: 1, 16, 1536>}]} {
    %c0 = arith.constant 0 : index
    %c0_0 = arith.constant 0 : index
    %c0_1 = arith.constant 0 : index
    %0 = vector.load %arg1[%c0, %c0_0, %c0_1] : memref<1x16x1536xf32, #tpu.memory_space<vmem>>, vector<1x16x1536xf32>
    %1 = vector.shape_cast %0 : vector<1x16x1536xf32> to vector<16x1536xf32>
    %2 = arith.truncf %1 : vector<16x1536xf32> to vector<16x1536xbf16>
    %c0_2 = arith.constant 0 : index
    %c0_3 = arith.constant 0 : index
    %3 = vector.load %arg3[%c0_2, %c0_3] : memref<1536x160xbf16, #tpu.memory_space<vmem>>, vector<1536x160xbf16>
    %cst = arith.constant dense<0.000000e+00> : vector<16x160xf32>
    %4 = tpu.matmul %2, %3, %cst {dimension_numbers = #tpu.dot_dimension_numbers<[1], [0], [0], [1], [0, 0, 1, 1], [], []>} : vector<16x1536xbf16>, vector<1536x160xbf16>, vector<16x160xf32> -> vector<16x160xf32>
    %c0_4 = arith.constant 0 : index
    %c0_5 = arith.constant 0 : index
    %5 = vector.load %arg2[%c0_4, %c0_5] : memref<1536x160xbf16, #tpu.memory_space<vmem>>, vector<1536x160xbf16>
    %cst_6 = arith.constant dense<0.000000e+00> : vector<16x160xf32>
    %6 = tpu.matmul %2, %5, %cst_6 {dimension_numbers = #tpu.dot_dimension_numbers<[1], [0], [0], [1], [0, 0, 1, 1], [], []>} : vector<16x1536xbf16>, vector<1536x160xbf16>, vector<16x160xf32> -> vector<16x160xf32>
    %7 = vector.extract_strided_slice %6 {offsets = [0, 0], sizes = [1, 160], strides = [1, 1]} : vector<16x160xf32> to vector<1x160xf32>
    %8 = vector.shape_cast %7 : vector<1x160xf32> to vector<1x160xf32>
    %9 = vector.broadcast %8 : vector<1x160xf32> to vector<3x160xf32>
    %10 = vector.extract_strided_slice %6 {offsets = [0, 0], sizes = [13, 160], strides = [1, 1]} : vector<16x160xf32> to vector<13x160xf32>
    %11 = tpu.concatenate %9, %10 in 0 : vector<3x160xf32>, vector<13x160xf32> -> vector<16x160xf32>
    %12 = arith.addf %4, %11 : vector<16x160xf32>
    %13 = arith.truncf %12 : vector<16x160xf32> to vector<16x160xbf16>
    %c0_7 = arith.constant 0 : index
    %c0_8 = arith.constant 0 : index
    %14 = vector.load %arg4[%c0_7, %c0_8] : memref<160x1536xbf16, #tpu.memory_space<vmem>>, vector<160x1536xbf16>
    %cst_9 = arith.constant dense<0.000000e+00> : vector<16x1536xf32>
    %15 = tpu.matmul %13, %14, %cst_9 {dimension_numbers = #tpu.dot_dimension_numbers<[1], [0], [0], [1], [0, 0, 1, 1], [], []>} : vector<16x160xbf16>, vector<160x1536xbf16>, vector<16x1536xf32> -> vector<16x1536xf32>
    %16 = vector.extract_strided_slice %12 {offsets = [3, 0], sizes = [13, 160], strides = [1, 1]} : vector<16x160xf32> to vector<13x160xf32>
    %cst_10 = arith.constant 0.000000e+00 : f32
    %17 = vector.broadcast %cst_10 : f32 to vector<3x160xf32>
    %18 = tpu.concatenate %16, %17 in 0 : vector<13x160xf32>, vector<3x160xf32> -> vector<16x160xf32>
    %19 = arith.truncf %18 : vector<16x160xf32> to vector<16x160xbf16>
    %c0_11 = arith.constant 0 : index
    %c0_12 = arith.constant 0 : index
    %20 = vector.load %arg5[%c0_11, %c0_12] : memref<160x1536xbf16, #tpu.memory_space<vmem>>, vector<160x1536xbf16>
    %cst_13 = arith.constant dense<0.000000e+00> : vector<16x1536xf32>
    %21 = tpu.matmul %19, %20, %cst_13 {dimension_numbers = #tpu.dot_dimension_numbers<[1], [0], [0], [1], [0, 0, 1, 1], [], []>} : vector<16x160xbf16>, vector<160x1536xbf16>, vector<16x1536xf32> -> vector<16x1536xf32>
    %22 = arith.addf %15, %21 : vector<16x1536xf32>
    %c0_14 = arith.constant 0 : index
    %c0_15 = arith.constant 0 : index
    %23 = vector.load %arg6[%c0_14, %c0_15] : memref<1x1536xf32, #tpu.memory_space<vmem>>, vector<1x1536xf32>
    %24 = vector.broadcast %23 : vector<1x1536xf32> to vector<16x1536xf32>
    %25 = arith.addf %22, %24 : vector<16x1536xf32>
    %cst_16 = arith.constant 0.000000e+00 : f32
    %26 = vector.broadcast %cst_16 : f32 to vector<16x1536xf32>
    %27 = arith.maximumf %25, %26 : vector<16x1536xf32>
    %c0_17 = arith.constant 0 : index
    %c0_18 = arith.constant 0 : index
    %c0_19 = arith.constant 0 : index
    %28 = vector.load %arg7[%c0_17, %c0_18, %c0_19] : memref<1x16x1536xf32, #tpu.memory_space<vmem>>, vector<1x16x1536xf32>
    %29 = vector.shape_cast %28 : vector<1x16x1536xf32> to vector<16x1536xf32>
    %30 = vector.shape_cast %27 : vector<16x1536xf32> to vector<1x16x1536xf32>
    tpu.vector_store %arg7[%c0_17, %c0_18, %c0_19], %30 {strides = array<i32>} : memref<1x16x1536xf32, #tpu.memory_space<vmem>>, vector<1x16x1536xf32>,
    return
  }
  func.func @transform_0(%arg0: i32) -> (i32, i32, i32) {
    %c0_i32 = arith.constant 0 : i32
    %c0_i32_0 = arith.constant 0 : i32
    %c0_i32_1 = arith.constant 0 : i32
    return %arg0, %c0_i32, %c0_i32_0 : i32, i32, i32
  }
  func.func @transform_1(%arg0: i32) -> (i32, i32) {
    %c0_i32 = arith.constant 0 : i32
    %c0_i32_0 = arith.constant 0 : i32
    %c0_i32_1 = arith.constant 0 : i32
    return %c0_i32, %c0_i32_0 : i32, i32
  }
  func.func @transform_2(%arg0: i32) -> (i32, i32) {
    %c0_i32 = arith.constant 0 : i32
    %c0_i32_0 = arith.constant 0 : i32
    %c0_i32_1 = arith.constant 0 : i32
    return %c0_i32, %c0_i32_0 : i32, i32
  }
  func.func @transform_3(%arg0: i32) -> (i32, i32) {
    %c0_i32 = arith.constant 0 : i32
    %c0_i32_0 = arith.constant 0 : i32
    %c0_i32_1 = arith.constant 0 : i32
    return %c0_i32, %c0_i32_0 : i32, i32
  }
  func.func @transform_4(%arg0: i32) -> (i32, i32) {
    %c0_i32 = arith.constant 0 : i32
    %c0_i32_0 = arith.constant 0 : i32
    %c0_i32_1 = arith.constant 0 : i32
    return %c0_i32, %c0_i32_0 : i32, i32
  }
  func.func @transform_5(%arg0: i32) -> (i32, i32) {
    %c0_i32 = arith.constant 0 : i32
    %c0_i32_0 = arith.constant 0 : i32
    %c0_i32_1 = arith.constant 0 : i32
    return %c0_i32, %c0_i32_0 : i32, i32
  }
  func.func @transform_6(%arg0: i32) -> (i32, i32, i32) {
    %c0_i32 = arith.constant 0 : i32
    %c0_i32_0 = arith.constant 0 : i32
    %c0_i32_1 = arith.constant 0 : i32
    return %arg0, %c0_i32, %c0_i32_0 : i32, i32, i32
  }
}

</mosaic_0001>

<bundles_post_ra>
// kernel: ftdnn_forward.36
= control target key start
LH: loop header
LB: loop body
LE: loop exit
PB: predicated region body
PF: predicated region fallthrough
CT: control target
= control target key end

     0   :  { %s593_s6 = smov 0   ;;  %s595_s7 = smov 0   ;;  %s853_s0 = inlined_call_operand.vmem [shape: f32[2,16,1536], index: 0, kind: input, shape index: {}]   ;;  %s854_s1 = inlined_call_operand.vmem [shape: f32[2,16,1536], index: 1, kind: output, shape index: {}]  }
   0x1   :  { %s597_s8 = smov 0  }
   0x2 LB: > { %s510_s9 = sadd.s32 4294967295, %s581_s8   ;;  %s610_s10 = sadd.s32 1, %s581_s8   ;;  %s581_s8 = sphi %s597_s8, %s858_s8   ;;  %s577_s7 = sphi %s595_s7, %s857_s7   ;;  %s573_s6 = sphi %s593_s6, %s856_s6  }
   0x3   : > { %s15_s11 = ssub.s32 %s581_s8, %s610_s10  ;;  %s18_s12 = sadd.s32 1, %s577_s7 }
   0x4   : > { %p16_p0 = scmp.eq.s32.totalorder %s15_s11, 0  ;;  %p25_p1 = scmp.ne.s32.totalorder %s577_s7, %s573_s6 }
   0x5   : > { %p26_p2 = scmp.eq.s32.totalorder %s581_s8, 0  ;;  %p55_p3 = scmp.eq.s32.totalorder %s510_s9, 2 }
   0x6   : > { %s621_s13 = scalar_select %p16_p0, %s577_s7, %s18_s12  }
   0x7   : > { %p27_p4 = por %p26_p2, %p25_p1  ;;  %p623_p5 = por %p55_p3, %p25_p1 }
   0x8   : > { %p513_p6 = scmp.ge.s32.totalorder %s581_s8, 3 }
   0xa   : > { %77 = sbr.rel (%p513_p6) target bundleno = 27 (0x1b), region = 16 }
   0xf   : > { %80 = sbr.rel (!%p27_p4) target bundleno = 27 (0x1b), region = 20  ;;  %s82_s15 = sand.u32 (%p27_p4), 1, %s577_s7  }
  0x10   : > { %s525_s16 = sshll.u32 (%p27_p4), %s581_s8, 5  ;;  %s514_s17 = sshll.u32 (%p27_p4), %s82_s15, 7 }
  0x11   : > { %s633_s20 = scalar_lea.vmem (%p27_p4), %s853_s0, %s525_s16  ;;  %s84_s21 = scalar_lea.vmem (%p27_p4), [#allocation2], %s514_s17 }
  0x12   : > { %v100_v0 = vld [vmem:[%s633_s20] sm:$0xff] (%p27_p4)  ;;  %v102_v1 = vld [vmem:[%s633_s20 + $0x8] sm:$0xff] (%p27_p4)  ;;  %v104_v2 = vld [vmem:[%s633_s20 + $0x10] sm:$0xff] (%p27_p4) }
  0x13   : > { %101 = vst [vmem:[%s84_s21] sm:$0xff] (%p27_p4), %v100_v0  ;;  %103 = vst [vmem:[%s84_s21 + $0x8] sm:$0xff] (%p27_p4), %v102_v1  ;;  %v106_v3 = vld [vmem:[%s633_s20 + $0x18] sm:$0xff] (%p27_p4)  ;;  %v108_v4 = vld [vmem:[%s633_s20 + $0x60] sm:$0xff] (%p27_p4) }
  0x14   : > { %105 = vst [vmem:[%s84_s21 + $0x10] sm:$0xff] %v104_v2  ;;  %v110_v5 = vld [vmem:[%s633_s20 + $0x68] sm:$0xff]  ;;  %107 = vst [vmem:[%s84_s21 + $0x18] sm:$0xff] %v106_v3  ;;  %v112_v6 = vld [vmem:[%s633_s20 + $0x70] sm:$0xff] }
  0x15   : > { %109 = vst [vmem:[%s84_s21 + $0x20] sm:$0xff] %v108_v4  ;;  %111 = vst [vmem:[%s84_s21 + $0x28] sm:$0xff] %v110_v5  ;;  %v114_v7 = vld [vmem:[%s633_s20 + $0x78] sm:$0xff]  ;;  %v116_v8 = vld [vmem:[%s633_s20 + $0xc0] sm:$0xff] }
  0x16   : > { %113 = vst [vmem:[%s84_s21 + $0x30] sm:$0xff] %v112_v6  ;;  %115 = vst [vmem:[%s84_s21 + $0x38] sm:$0xff] %v114_v7  ;;  %v118_v9 = vld [vmem:[%s633_s20 + $0xc8] sm:$0xff]  ;;  %v120_v10 = vld [vmem:[%s633_s20 + $0xd0] sm:$0xff] }
  0x17   : > { %117 = vst [vmem:[%s84_s21 + $0x40] sm:$0xff] %v116_v8  ;;  %v122_v11 = vld [vmem:[%s633_s20 + $0xd8] sm:$0xff]  ;;  %119 = vst [vmem:[%s84_s21 + $0x48] sm:$0xff] %v118_v9  ;;  %v124_v12 = vld [vmem:[%s633_s20 + $0x120] sm:$0xff] }
  0x18   : > { %121 = vst [vmem:[%s84_s21 + $0x50] sm:$0xff] %v120_v10  ;;  %123 = vst [vmem:[%s84_s21 + $0x58] sm:$0xff] %v122_v11  ;;  %v126_v13 = vld [vmem:[%s633_s20 + $0x128] sm:$0xff]  ;;  %v128_v14 = vld [vmem:[%s633_s20 + $0x130] sm:$0xff] }
  0x19   : > { %125 = vst [vmem:[%s84_s21 + $0x60] sm:$0xff] %v124_v12  ;;  %127 = vst [vmem:[%s84_s21 + $0x68] sm:$0xff] %v126_v13  ;;  %v130_v15 = vld [vmem:[%s633_s20 + $0x138] sm:$0xff] }
  0x1a   : > { %129 = vst [vmem:[%s84_s21 + $0x70] sm:$0xff] %v128_v14  ;;  %131 = vst [vmem:[%s84_s21 + $0x78] sm:$0xff] %v130_v15 }
  0x1b PF: > { %p517_p7 = scmp.ge.s32.totalorder %s581_s8, 1  ;;  %p136_p8 = scmp.lt.s32.totalorder %s581_s8, 4 }
  0x1d   : > { %p137_p9 = pnand %p517_p7, %p136_p8 }
  0x1e   : > { %s143_s22 = sand.u32 (!%p137_p9), 1, %s573_s6  }
  0x1f   : > { %140 = sbr.rel (%p137_p9) target bundleno = 130 (0x82), region = 43  ;;  %s654_s23 = sshll.u32 (!%p137_p9), %s143_s22, 7 }
  0x20   : > { %s145_s24 = scalar_lea.vmem (!%p137_p9), [#allocation2], %s654_s23  ;;  %s793_s25 = scalar_lea.vmem (!%p137_p9), [#allocation3], %s654_s23 }
  0x24   : > { %v657_v16 = vld [vmem:[%s145_s24] sm:$0xff]  ;;  %v667_v21 = vld [vmem:[%s145_s24 + $0x8] sm:$0xff]  ;;  %v679_v27 = vld [vmem:[%s145_s24 + $0x10] sm:$0xff]  ;;  %s526_s26 = sshll.u32 (%p623_p5), %s510_s9, 5 }
  0x25   : > { %v659_v17 = vld [vmem:[%s145_s24 + $0x20] sm:$0xff]  ;;  %v669_v22 = vld [vmem:[%s145_s24 + $0x28] sm:$0xff]  ;;  %v683_v30 = vld [vmem:[%s145_s24 + $0x30] sm:$0xff]  ;;  %s406_s29 = scalar_lea.vmem (%p623_p5), %s854_s1, %s526_s26 }
  0x26   : > { %v661_v18 = vld [vmem:[%s145_s24 + $0x40] sm:$0xff]  ;;  %v179_v20 = vadd.f32 %v659_v17, %v657_v16  ;;  %v673_v24 = vld [vmem:[%s145_s24 + $0x48] sm:$0xff]  ;;  %v186_v26 = vadd.f32 %v669_v22, %v667_v21  ;;  %v685_v31 = vld [vmem:[%s145_s24 + $0x50] sm:$0xff]  ;;  %v193_v35 = vadd.f32 %v683_v30, %v679_v27 }
  0x27   : > { %v663_v19 = vld [vmem:[%s145_s24 + $0x60] sm:$0xff]  ;;  %v675_v25 = vld [vmem:[%s145_s24 + $0x68] sm:$0xff]  ;;  %v687_v32 = vld [vmem:[%s145_s24 + $0x70] sm:$0xff] }
  0x28   : > { %v207_v23 = vadd.f32 %v663_v19, %v661_v18  ;;  %v180_v28 = vrot.slane %v179_v20, 4  ;;  %v214_v29 = vadd.f32 %v675_v25, %v673_v24  ;;  %v187_v34 = vrot.slane %v186_v26, 4  ;;  %v693_v37 = vld [vmem:[%s145_s24 + $0x18] sm:$0xff] }
  0x29   : > { %v221_v36 = vadd.f32 %v687_v32, %v685_v31  ;;  %v695_v38 = vld [vmem:[%s145_s24 + $0x38] sm:$0xff]  ;;  %v194_v46 = vrot.slane %v193_v35, 4 }
  0x2a   : > { %v208_v33 = vrot.slane %v207_v23, 4  ;;  %v697_v39 = vld [vmem:[%s145_s24 + $0x58] sm:$0xff]  ;;  %v181_v40 = vadd.f32 %v180_v28, %v179_v20  ;;  %v215_v41 = vrot.slane %v214_v29, 4  ;;  %v200_v43 = vadd.f32 %v695_v38, %v693_v37 }
  0x2b   : > { %v699_v42 = vld [vmem:[%s145_s24 + $0x78] sm:$0xff]  ;;  %v188_v45 = vadd.f32 %v187_v34, %v186_v26  ;;  %v222_v47 = vrot.slane %v221_v36, 4  ;;  %v195_v54 = vadd.f32 %v194_v46, %v193_v35 }
  0x2c   : > { %v209_v44 = vadd.f32 %v208_v33, %v207_v23  ;;  %v182_v48 = vrot.slane %v181_v40, 2  ;;  %v216_v49 = vadd.f32 %v215_v41, %v214_v29  ;;  %v201_v50 = vrot.slane %v200_v43, 4 }
  0x2d   : > { %v228_v51 = vadd.f32 %v699_v42, %v697_v39  ;;  %v189_v53 = vrot.slane %v188_v45, 2  ;;  %v223_v55 = vadd.f32 %v222_v47, %v221_v36  ;;  %v196_v62 = vrot.slane %v195_v54, 2 }
  0x2e   : > { %v210_v52 = vrot.slane %v209_v44, 2  ;;  %v183_v56 = vadd.f32 %v182_v48, %v181_v40  ;;  %v217_v57 = vrot.slane %v216_v49, 2  ;;  %v202_v58 = vadd.f32 %v201_v50, %v200_v43 }
  0x2f   : > { %v229_v59 = vrot.slane %v228_v51, 4  ;;  %v190_v61 = vadd.f32 %v189_v53, %v188_v45  ;;  %v224_v63 = vrot.slane %v223_v55, 2  ;;  %v197_v6 = vadd.f32 %v196_v62, %v195_v54 }
  0x30   : > { %v211_v60 = vadd.f32 %v210_v52, %v209_v44  ;;  %v184_v0 = vrot.slane %v183_v56, 1  ;;  %v218_v1 = vadd.f32 %v217_v57, %v216_v49  ;;  %v203_v2 = vrot.slane %v202_v58, 2 }
  0x31   : > { %v230_v3 = vadd.f32 %v229_v59, %v228_v51  ;;  %v191_v5 = vrot.slane %v190_v61, 1  ;;  %v225_v7 = vadd.f32 %v224_v63, %v223_v55  ;;  %v198_v14 = vrot.slane %v197_v6, 1 }
  0x32   : > { %v212_v4 = vrot.slane %v211_v60, 1  ;;  %v185_v8 = vadd.f32 %v184_v0, %v183_v56  ;;  %v219_v9 = vrot.slane %v218_v1, 1  ;;  %v204_v10 = vadd.f32 %v203_v2, %v202_v58 }
  0x33   : > { %v231_v11 = vrot.slane %v230_v3, 2  ;;  %v192_v13 = vadd.f32 %v191_v5, %v190_v61  ;;  %v226_v15 = vrot.slane %v225_v7, 1  ;;  %v199_v34 = vadd.f32 %v198_v14, %v197_v6 }
  0x34   : > { %v213_v12 = vadd.f32 %v212_v4, %v211_v60  ;;  %v236_v20 = vmul.f32 0.0625, %v185_v8  ;;  %v220_v23 = vadd.f32 %v219_v9, %v218_v1  ;;  %v205_v26 = vrot.slane %v204_v10, 1 }
  0x35   : > { %v232_v28 = vadd.f32 %v231_v11, %v230_v3  ;;  %v237_v33 = vmul.f32 0.0625, %v192_v13  ;;  %v227_v35 = vadd.f32 %v226_v15, %v225_v7  ;;  %v238_v44 = vmul.f32 0.0625, %v199_v34 }
  0x36   : > { %v240_v29 = vmul.f32 0.0625, %v213_v12  ;;  %v241_v36 = vmul.f32 0.0625, %v220_v23  ;;  %v206_v40 = vadd.f32 %v205_v26, %v204_v10 }
  0x37   : > { %v233_v41 = vrot.slane %v232_v28, 1  ;;  %v242_v45 = vmul.f32 0.0625, %v227_v35 }
  0x38   : > { %v244_v43 = vadd.f32 %v240_v29, %v236_v20  ;;  %v245_v46 = vadd.f32 %v241_v36, %v237_v33  ;;  %v239_v51 = vmul.f32 0.0625, %v206_v40 }
  0x39   : > { %v234_v47 = vadd.f32 %v233_v41, %v232_v28  ;;  %v246_v50 = vadd.f32 %v242_v45, %v238_v44 }
  0x3a   : > { %v249_v48 = vmul.f32 0.5, %v244_v43  ;;  %v250_v49 = vmul.f32 0.5, %v245_v46 }
  0x3b   : > { %v243_v52 = vmul.f32 0.0625, %v234_v47  ;;  %v251_v63 = vmul.f32 0.5, %v246_v50 }
  0x3c   : > { %v706_v53 = vsub.f32 %v657_v16, %v249_v48  ;;  %v709_v54 = vsub.f32 %v659_v17, %v249_v48  ;;  %v712_v55 = vsub.f32 %v661_v18, %v249_v48  ;;  %v715_v56 = vsub.f32 %v663_v19, %v249_v48 }
  0x3d   : > { %v718_v57 = vsub.f32 %v667_v21, %v250_v49  ;;  %v721_v58 = vsub.f32 %v669_v22, %v250_v49  ;;  %v724_v59 = vsub.f32 %v673_v24, %v250_v49  ;;  %v727_v16 = vsub.f32 %v675_v25, %v250_v49 }
  0x3e   : > { %v269_v17 = vmul.f32 %v706_v53, %v706_v53  ;;  %v273_v18 = vmul.f32 %v709_v54, %v709_v54  ;;  %v277_v19 = vmul.f32 %v712_v55, %v712_v55  ;;  %v281_v21 = vmul.f32 %v715_v56, %v715_v56 }
  0x3f   : > { %v270_v22 = vmul.f32 %v718_v57, %v718_v57  ;;  %v274_v24 = vmul.f32 %v721_v58, %v721_v58  ;;  %v278_v25 = vmul.f32 %v724_v59, %v724_v59  ;;  %v282_v60 = vmul.f32 %v727_v16, %v727_v16 }
  0x40   : > { %v285_v61 = vadd.f32 %v273_v18, %v269_v17  ;;  %v313_v62 = vadd.f32 %v281_v21, %v277_v19  ;;  %v247_v2 = vadd.f32 %v243_v52, %v239_v51  ;;  %v746_v5 = vsub.f32 %v679_v27, %v251_v63 }
  0x41   : > { %v292_v0 = vadd.f32 %v274_v24, %v270_v22  ;;  %v320_v1 = vadd.f32 %v282_v60, %v278_v25  ;;  %v749_v6 = vsub.f32 %v683_v30, %v251_v63  ;;  %v752_v9 = vsub.f32 %v685_v31, %v251_v63 }
  0x42   : > { %v286_v3 = vrot.slane %v285_v61, 4  ;;  %v314_v4 = vrot.slane %v313_v62, 4  ;;  %v755_v10 = vsub.f32 %v687_v32, %v251_v63  ;;  %v271_v13 = vmul.f32 %v746_v5, %v746_v5 }
  0x43   : > { %v293_v7 = vrot.slane %v292_v0, 4  ;;  %v321_v8 = vrot.slane %v320_v1, 4  ;;  %v275_v27 = vmul.f32 %v749_v6, %v749_v6  ;;  %v279_v30 = vmul.f32 %v752_v9, %v752_v9 }
  0x44   : > { %v287_v11 = vadd.f32 %v286_v3, %v285_v61  ;;  %v315_v12 = vadd.f32 %v314_v4, %v313_v62  ;;  %v283_v31 = vmul.f32 %v755_v10, %v755_v10  ;;  %v252_v26 = vmul.f32 0.5, %v247_v2 }
  0x45   : > { %v294_v14 = vadd.f32 %v293_v7, %v292_v0  ;;  %v322_v15 = vadd.f32 %v321_v8, %v320_v1  ;;  %v299_v32 = vadd.f32 %v275_v27, %v271_v13 }
  0x46   : > { %v288_v20 = vrot.slane %v287_v11, 2  ;;  %v316_v23 = vrot.slane %v315_v12, 2  ;;  %v327_v33 = vadd.f32 %v283_v31, %v279_v30  ;;  %v766_v40 = vsub.f32 %v693_v37, %v252_v26 }
  0x47   : > { %v295_v28 = vrot.slane %v294_v14, 2  ;;  %v323_v29 = vrot.slane %v322_v15, 2  ;;  %v300_v36 = vrot.slane %v299_v32, 4  ;;  %v769_v45 = vsub.f32 %v695_v38, %v252_v26 }
  0x48   : > { %v289_v34 = vadd.f32 %v288_v20, %v287_v11  ;;  %v317_v35 = vadd.f32 %v316_v23, %v315_v12  ;;  %v328_v44 = vrot.slane %v327_v33, 4  ;;  %v772_v49 = vsub.f32 %v697_v39, %v252_v26 }
  0x49   : > { %v296_v41 = vadd.f32 %v295_v28, %v294_v14  ;;  %v324_v43 = vadd.f32 %v323_v29, %v322_v15  ;;  %v301_v48 = vadd.f32 %v300_v36, %v299_v32  ;;  %v775_v17 = vsub.f32 %v699_v42, %v252_v26 }
  0x4a   : > { %v290_v46 = vrot.slane %v289_v34, 1  ;;  %v318_v47 = vrot.slane %v317_v35, 1  ;;  %v329_v52 = vadd.f32 %v328_v44, %v327_v33  ;;  %v272_v21 = vmul.f32 %v766_v40, %v766_v40 }
  0x4b   : > { %v297_v50 = vrot.slane %v296_v41, 1  ;;  %v325_v51 = vrot.slane %v324_v43, 1  ;;  %v302_v19 = vrot.slane %v301_v48, 2  ;;  %v276_v25 = vmul.f32 %v769_v45, %v769_v45 }
  0x4c   : > { %v291_v37 = vadd.f32 %v290_v46, %v289_v34  ;;  %v319_v18 = vadd.f32 %v318_v47, %v317_v35  ;;  %v330_v24 = vrot.slane %v329_v52, 2  ;;  %v280_v62 = vmul.f32 %v772_v49, %v772_v49 }
  0x4d   : > { %v298_v38 = vadd.f32 %v297_v50, %v296_v41  ;;  %v326_v22 = vadd.f32 %v325_v51, %v324_v43  ;;  %v303_v61 = vadd.f32 %v302_v19, %v301_v48  ;;  %v284_v1 = vmul.f32 %v775_v17, %v775_v17 }
  0x4e   : > { %v341_v39 = vmul.f32 0.0625, %v291_v37  ;;  %v345_v60 = vmul.f32 0.0625, %v319_v18  ;;  %v331_v0 = vadd.f32 %v330_v24, %v329_v52  ;;  %v306_v4 = vadd.f32 %v276_v25, %v272_v21 }
  0x4f   : > { %v342_v42 = vmul.f32 0.0625, %v298_v38  ;;  %v346_v63 = vmul.f32 0.0625, %v326_v22  ;;  %v304_v3 = vrot.slane %v303_v61, 1  ;;  %v334_v11 = vadd.f32 %v284_v1, %v280_v62 }
  0x50   : > { %v349_v2 = vadd.f32 %v345_v60, %v341_v39  ;;  %v332_v8 = vrot.slane %v331_v0, 1  ;;  %v307_v27 = vrot.slane %v306_v4, 4 }
  0x51   : > { %v350_v7 = vadd.f32 %v346_v63, %v342_v42  ;;  %v305_v13 = vadd.f32 %v304_v3, %v303_v61  ;;  %v335_v30 = vrot.slane %v334_v11, 4 }
  0x52   : > { %v353_v12 = vmul.f32 0.5, %v349_v2  ;;  %v333_v15 = vadd.f32 %v332_v8, %v331_v0  ;;  %v308_v23 = vadd.f32 %v307_v27, %v306_v4 }
  0x53   : > { %v354_v14 = vmul.f32 0.5, %v350_v7  ;;  %v343_v20 = vmul.f32 0.0625, %v305_v13  ;;  %v336_v28 = vadd.f32 %v335_v30, %v334_v11 }
  0x54   : > { %v357_v31 = vadd.f32 0.001, %v353_v12  ;;  %v347_v26 = vmul.f32 0.0625, %v333_v15  ;;  %v309_v29 = vrot.slane %v308_v23, 2 }
  0x55   : > { %v358_v32 = vadd.f32 0.001, %v354_v14  ;;  %v337_v34 = vrot.slane %v336_v28, 2 }
  0x56   : > { %551 = vrsqrt.f32 %v357_v31  ;;  %v351_v33 = vadd.f32 %v347_v26, %v343_v20  ;;  %v310_v35 = vadd.f32 %v309_v29, %v308_v23 }
  0x57   : > { %553 = vrsqrt.f32 %v358_v32  ;;  %v338_v41 = vadd.f32 %v337_v34, %v336_v28 }
  0x58   : > { %v355_v36 = vmul.f32 0.5, %v351_v33  ;;  %v311_v43 = vrot.slane %v310_v35, 1 }
  0x59   : > { %v339_v46 = vrot.slane %v338_v41, 1 }
  0x5a   : > { %v359_v44 = vadd.f32 0.001, %v355_v36  ;;  %v312_v47 = vadd.f32 %v311_v43, %v310_v35 }
  0x5b   : > { %v340_v48 = vadd.f32 %v339_v46, %v338_v41 }
  0x5c   : > { %555 = vrsqrt.f32 %v359_v44  ;;  %v344_v50 = vmul.f32 0.0625, %v312_v47 }
  0x5d   : > { %v348_v51 = vmul.f32 0.0625, %v340_v48 }
  0x5f   : > { %v352_v52 = vadd.f32 %v348_v51, %v344_v50 }
  0x61   : > { %v356_v18 = vmul.f32 0.5, %v352_v52 }
  0x63   : > { %v552_v37 = vpop.eup %551  ;;  %v360_v39 = vadd.f32 0.001, %v356_v18 }
  0x64   : > { %v554_v19 = vpop.eup %553  ;;  %v365_v21 = vmul.f32 %v552_v37, %v706_v53  ;;  %v369_v38 = vmul.f32 %v552_v37, %v709_v54  ;;  %v373_v22 = vmul.f32 %v552_v37, %v712_v55  ;;  %v377_v24 = vmul.f32 %v552_v37, %v715_v56 }
  0x65   : > { %v366_v25 = vmul.f32 %v554_v19, %v718_v57  ;;  %v370_v60 = vmul.f32 %v554_v19, %v721_v58  ;;  %v374_v61 = vmul.f32 %v554_v19, %v724_v59  ;;  %v378_v53 = vmul.f32 %v554_v19, %v727_v16 }
  0x66   : > { %381 = vst [vmem:[%s793_s25] sm:$0xff] %v365_v21  ;;  %385 = vst [vmem:[%s793_s25 + $0x20] sm:$0xff] %v369_v38  ;;  %557 = vrsqrt.f32 %v360_v39 }
  0x67   : > { %389 = vst [vmem:[%s793_s25 + $0x40] sm:$0xff] %v373_v22  ;;  %393 = vst [vmem:[%s793_s25 + $0x60] sm:$0xff] %v377_v24 }
  0x68   : > { %382 = vst [vmem:[%s793_s25 + $0x8] sm:$0xff] %v366_v25  ;;  %386 = vst [vmem:[%s793_s25 + $0x28] sm:$0xff] %v370_v60 }
  0x69   : > { %390 = vst [vmem:[%s793_s25 + $0x48] sm:$0xff] %v374_v61  ;;  %394 = vst [vmem:[%s793_s25 + $0x68] sm:$0xff] %v378_v53  ;;  %v556_v54 = vpop.eup %555 }
  0x6a   : > { %v367_v55 = vmul.f32 %v556_v54, %v746_v5  ;;  %v371_v56 = vmul.f32 %v556_v54, %v749_v6  ;;  %v375_v57 = vmul.f32 %v556_v54, %v752_v9  ;;  %v379_v58 = vmul.f32 %v556_v54, %v755_v10 }
  0x6c   : > { %383 = vst [vmem:[%s793_s25 + $0x10] sm:$0xff] %v367_v55  ;;  %387 = vst [vmem:[%s793_s25 + $0x30] sm:$0xff] %v371_v56 }
  0x6d   : > { %391 = vst [vmem:[%s793_s25 + $0x50] sm:$0xff] %v375_v57  ;;  %395 = vst [vmem:[%s793_s25 + $0x70] sm:$0xff] %v379_v58  ;;  %v419_v6 = vld [vmem:[%s793_s25] sm:$0xff] (%p623_p5) }
  0x6e   : > { %420 = vst [vmem:[%s406_s29] sm:$0xff] (%p623_p5), %v419_v6  ;;  %v435_v0 = vld [vmem:[%s793_s25 + $0x40] sm:$0xff] (%p623_p5) }
  0x6f   : > { %v421_v9 = vld [vmem:[%s793_s25 + $0x8] sm:$0xff] (%p623_p5)  ;;  %436 = vst [vmem:[%s406_s29 + $0xc0] sm:$0xff] (%p623_p5), %v435_v0  ;;  %v443_v4 = vld [vmem:[%s793_s25 + $0x60] sm:$0xff] (%p623_p5) }
  0x70   : > { %422 = vst [vmem:[%s406_s29 + $0x8] sm:$0xff] (%p623_p5), %v421_v9  ;;  %v437_v1 = vld [vmem:[%s793_s25 + $0x48] sm:$0xff] (%p623_p5)  ;;  %444 = vst [vmem:[%s406_s29 + $0x120] sm:$0xff] (%p623_p5), %v443_v4 }
  0x71   : > { %438 = vst [vmem:[%s406_s29 + $0xc8] sm:$0xff] (%p623_p5), %v437_v1  ;;  %v445_v7 = vld [vmem:[%s793_s25 + $0x68] sm:$0xff] (%p623_p5) }
  0x72   : > { %446 = vst [vmem:[%s406_s29 + $0x128] sm:$0xff] (%p623_p5), %v445_v7 }
  0x73   : > { %v558_v59 = vpop.eup %557  ;;  %403 = sbr.rel (!%p623_p5) target bundleno = 130 (0x82), region = 51  ;;  %v423_v10 = vld [vmem:[%s793_s25 + $0x10] sm:$0xff] (%p623_p5) }
  0x74   : > { %v368_v16 = vmul.f32 %v558_v59, %v766_v40  ;;  %v372_v62 = vmul.f32 %v558_v59, %v769_v45  ;;  %v376_v42 = vmul.f32 %v558_v59, %v772_v49  ;;  %v380_v5 = vmul.f32 %v558_v59, %v775_v17  ;;  %v427_v45 = vld [vmem:[%s793_s25 + $0x20] sm:$0xff] (%p623_p5)  ;;  %v429_v49 = vld [vmem:[%s793_s25 + $0x28] sm:$0xff] (%p623_p5)  ;;  %424 = vst [vmem:[%s406_s29 + $0x10] sm:$0xff] (%p623_p5), %v423_v10  ;;  %v431_v17 = vld [vmem:[%s793_s25 + $0x30] sm:$0xff] (%p623_p5) }
  0x75   : > { %428 = vst [vmem:[%s406_s29 + $0x60] sm:$0xff] (%p623_p5), %v427_v45  ;;  %430 = vst [vmem:[%s406_s29 + $0x68] sm:$0xff] (%p623_p5), %v429_v49  ;;  %v439_v2 = vld [vmem:[%s793_s25 + $0x50] sm:$0xff] (%p623_p5) }
  0x76   : > { %384 = vst [vmem:[%s793_s25 + $0x18] sm:$0xff] %v368_v16  ;;  %388 = vst [vmem:[%s793_s25 + $0x38] sm:$0xff] %v372_v62  ;;  %v447_v8 = vld [vmem:[%s793_s25 + $0x70] sm:$0xff] (%p623_p5) }
  0x77   : > { %392 = vst [vmem:[%s793_s25 + $0x58] sm:$0xff] %v376_v42  ;;  %396 = vst [vmem:[%s793_s25 + $0x78] sm:$0xff] %v380_v5 }
  0x78   : > { %432 = vst [vmem:[%s406_s29 + $0x70] sm:$0xff] %v431_v17  ;;  %440 = vst [vmem:[%s406_s29 + $0xd0] sm:$0xff] %v439_v2 }
  0x79   : > { %448 = vst [vmem:[%s406_s29 + $0x130] sm:$0xff] %v447_v8 }
  0x7d   : > { %v425_v40 = vld [vmem:[%s793_s25 + $0x18] sm:$0xff] }
  0x7e   : > { %426 = vst [vmem:[%s406_s29 + $0x18] sm:$0xff] %v425_v40  ;;  %v433_v63 = vld [vmem:[%s793_s25 + $0x38] sm:$0xff] }
  0x7f   : > { %434 = vst [vmem:[%s406_s29 + $0x78] sm:$0xff] %v433_v63  ;;  %v441_v3 = vld [vmem:[%s793_s25 + $0x58] sm:$0xff] }
  0x80   : > { %442 = vst [vmem:[%s406_s29 + $0xd8] sm:$0xff] %v441_v3  ;;  %v449_v11 = vld [vmem:[%s793_s25 + $0x78] sm:$0xff] }
  0x81   : > { %450 = vst [vmem:[%s406_s29 + $0x138] sm:$0xff] %v449_v11 }
  0x82 PF: > { %p8_p10 = scmp.ge.s32.totalorder %s610_s10, 5   ;;  %s856_s6 = smov %s577_s7 }
  0x83   : > { %s857_s7 = smov %s621_s13  ;;  %s858_s8 = smov %s610_s10 }
  0x84   :  { %10 = sbr.rel (!%p8_p10) target bundleno = 2 (0x2), region = 105 }

// kernel: ftdnn_forward.35
= control target key start
LH: loop header
LB: loop body
LE: loop exit
PB: predicated region body
PF: predicated region fallthrough
CT: control target
= control target key end

     0   :  { %14 = vsyncpa [#allocation3], 0  ;;  %s3313_s0 = inlined_call_operand.vmem [shape: f32[2,16,40], index: 0, kind: input, shape index: {}]   ;;  %s3314_s1 = inlined_call_operand.vmem [shape: f32[2,16,100], index: 1, kind: input, shape index: {}]   ;;  %s3315_s2 = inlined_call_operand.vmem [shape: bf16[40,220], index: 2, kind: input, shape index: {}]   ;;  %s3316_s3 = inlined_call_operand.vmem [shape: bf16[40,220], index: 3, kind: input, shape index: {}]   ;;  %s3317_s4 = inlined_call_operand.hbm [shape: bf16[40,220], index: 4, kind: input, shape index: {}]   ;;  %s3318_s5 = inlined_call_operand.hbm [shape: bf16[100,220], index: 5, kind: input, shape index: {}]   ;;  %s3319_s6 = inlined_call_operand.vmem [shape: f32[1,220], index: 6, kind: input, shape index: {}]   ;;  %s3320_s7 = inlined_call_operand.hbm [shape: bf16[220,1536], index: 7, kind: input, shape index: {}]   ;;  %s3321_s8 = inlined_call_operand.vmem [shape: f32[1,1536], index: 8, kind: input, shape index: {}]   ;;  %s3322_s9 = inlined_call_operand.vmem [shape: f32[2,16,1536], index: 9, kind: output, shape index: {}]  }
   0x1   :  { %15 = vsyncpa [#allocation5], 0  ;;  %s3066_s30 = smov 0  }
   0x2 LB: > { %s3072_s10 = sadd.s32 4294967295, %s3006_s30   ;;  %p2335_p0 = scmp.ge.s32.totalorder %s3006_s30, 1  ;;  %s3006_s30 = sphi %s3066_s30, %s21_s30  }
   0x3   : > { %p251_p1 = scmp.lt.s32.totalorder %s3006_s30, 3  ;;  %p2596_p2 = scmp.eq.s32.totalorder %s3072_s10, 0 }
   0x4   : > { %s3008_s12 = smov [#allocation4]   ;;  %s3009_s14 = smov [#allocation2]  }
   0x5   : > { %p3077_p3 = pnand %p2335_p0, %p251_p1  ;;  %s282_s13 = sshll.u32 %s3008_s12, 4  ;;  %s283_s13 = int_to_ptr.vmem [resolvable:$true] %s282_s13 }
   0x6   : > { %s269_s15 = sshll.u32 %s3009_s14, 4  ;;  %s3010_s17 = smov [#allocation6]   ;;  %s3083_s15 = int_to_ptr.vmem [resolvable:$true] %s269_s15 }
   0x7   : > { %p2586_p4 = pneg %p3077_p3  ;;  %s298_s18 = sshll.u32 %s3010_s17, 4  ;;  %s3091_s18 = int_to_ptr.vmem [resolvable:$true] %s298_s18 }
   0x8   : > { %s2925_s19 = scalar_lea.vmem %s283_s13, 1664  ;;  %p2933_p10 = scmp.lt.s32.totalorder %s283_s13, %s283_s13 }
   0x9   : > { %p3087_p5 = pnand %p2596_p2, %p2586_p4  ;;  %p2926_p7 = scmp.ne.s32.totalorder %s283_s13, %s2925_s19 }
   0xa   : > { %p2934_p11 = scmp.lt.s32.totalorder %s2925_s19, %s2925_s19 }
   0xb   : > { %p2916_p6 = pneg %p3087_p5 }
   0xc   : > { %p2935_p12 = por %p2934_p11, %p2933_p10 }
   0xd   : > { %p2928_p8 = pnand %p2926_p7, %p2916_p6 }
   0xf   : > { %p2929_p9 = pneg %p2928_p8 }
  0x11   : > { %p2936_p13 = pnand %p2935_p12, %p2929_p9 }
  0x13   : > { %2939 = shalt.err (!%p2936_p13)
}
  0x14   : > { %s3011_s20 = smov 128   ;;  %s3012_s21 = smov 8  }
  0x15   : > { %2592 = dma.hbm_to_vmem [thread:$0]  (!%p3087_p5), %s3318_s5, 1664, %s283_s13, [#allocation5], %s3011_s20, %s3011_s20, %s3012_s21  }
  0x16   : > { %s2951_s24 = scalar_lea.vmem %s3083_s15, 640  ;;  %p2959_p7 = scmp.lt.s32.totalorder %s3083_s15, %s3083_s15 }
  0x17   : > { %p2952_p0 = scmp.ne.s32.totalorder %s3083_s15, %s2951_s24  ;;  %p2960_p8 = scmp.lt.s32.totalorder %s2951_s24, %s2951_s24 }
  0x19   : > { %p2954_p1 = pnand %p2952_p0, %p2916_p6  ;;  %p2961_p9 = por %p2960_p8, %p2959_p7 }
  0x1b   : > { %p2955_p4 = pneg %p2954_p1 }
  0x1d   : > { %p2962_p10 = pnand %p2961_p9, %p2955_p4 }
  0x1f   : > { %2965 = shalt.err (!%p2962_p10)
}
  0x20   : > { %2589 = dma.hbm_to_vmem [thread:$0]  (!%p3087_p5), %s3317_s4, 640, %s3083_s15, [#allocation3], %s3011_s20, %s3011_s20, %s3012_s21  }
  0x21   : > { %s2977_s27 = scalar_lea.vmem %s3091_s18, 21504  ;;  %p2985_p0 = scmp.lt.s32.totalorder %s3091_s18, %s3091_s18 }
  0x22   : > { %p2978_p11 = scmp.ne.s32.totalorder %s3091_s18, %s2977_s27  ;;  %p2986_p1 = scmp.lt.s32.totalorder %s2977_s27, %s2977_s27 }
  0x24   : > { %p2980_p12 = pnand %p2978_p11, %p2916_p6  ;;  %p2987_p4 = por %p2986_p1, %p2985_p0 }
  0x26   : > { %p2981_p13 = pneg %p2980_p12 }
  0x28   : > { %p2988_p7 = pnand %p2987_p4, %p2981_p13 }
  0x2a   : > { %2991 = shalt.err (!%p2988_p7)
}
  0x2b   : > { %s3013_s28 = smov 768   ;;  %s3014_s29 = smov 48  }
  0x2c   : > { %2595 = dma.hbm_to_vmem [thread:$0]  (!%p3087_p5), %s3320_s7, 21504, %s3091_s18, [#allocation5], %s3013_s28, %s3013_s28, %s3014_s29  }
  0x2d   : > { %333 = sbr.rel (%p3077_p3) target bundleno = 617 (0x269), region = 56 }
  0x32   : > { %2997 = dma.done.wait (%p2596_p2), [#allocation3], 640  }
  0x33   : > { %2999 = vsyncadd (%p2596_p2), [#allocation3], 4294966656 }
  0x34   : > { %3001 = dma.done.wait (%p2596_p2), [#allocation5], 23168  }
  0x35   : > { %3003 = vsyncadd (%p2596_p2), [#allocation5], 4294944128  ;;  %p382_p6 = scmp.lt.s32.totalorder %s3072_s10, 1  ;;  %v3015_v0 = vmov 0   ;;  %v431_v1 = vld [vmem:[%s3316_s3 + $0x20] sm:$0xff]  ;;  %vm461_vm0 = vcmask 1043456  }
  0x36   : > { %500 = vmatprep.mubr.bf16.mxu0 %v3015_v0  ;;  %795 = vmatprep.mubr.bf16.mxu1 %v3015_v0  ;;  %v2354_v2 = vcombine.high %v431_v1, %v431_v1  ;;  %v2353_v3 = vcombine.low %v431_v1, %v431_v1  ;;  %v2620_v4 = vld [vmem:[%s3316_s3 + $0x14] ss:$8 sps:$4 sm:$0xff]   ;;  %v686_v5 = vld [vmem:[#allocation4 + $0x60] sm:$0x33]  ;;  %vm756_vm1 = vcmask 1041408   ;;  %v426_v14 = vld [vmem:[%s3315_s2 + $0x20] sm:$0xff] }
  0x37   : > { %s3326_s10 = smov (!%p382_p6, %s3072_s10), 1  ;;  %v2386_v6 = vcombine.high %v686_v5, %v686_v5  ;;  %v2385_v7 = vcombine.low %v686_v5, %v686_v5  ;;  %v2627_v9 = vld [vmem:[#allocation4 + $0x54] ss:$8 sps:$4 sm:$0xff]   ;;  %v2623_v10 = vld [vmem:[%s3316_s3 + $0x10] ss:$8 sps:$4 sm:$0xff]   ;;  %v2362_v19 = vcombine.high %v426_v14, %v426_v14  ;;  %v2361_v20 = vcombine.low %v426_v14, %v426_v14 }
  0x38   : > { %s2571_s17 = sshll.u32 %s3326_s10, 4  ;;  %2355 = vmatprep.subr.msk.bf16.mxu0 %vm461_vm0, %v2354_v2  ;;  %v463_v8 = vsel %vm461_vm0, %v2353_v3, 0  ;;  %v2625_v12 = vld [vmem:[%s3316_s3 + $0x4] ss:$8 sps:$4 sm:$0xff]   ;;  %v2630_v13 = vld [vmem:[#allocation4 + $0x50] ss:$8 sps:$4 sm:$0xff]  }
  0x39   : > { %479 = vmatpush1.bf16.msra.mxu0 %v463_v8  ;;  %2387 = vmatprep.subr.msk.bf16.mxu1 %vm756_vm1, %v2386_v6  ;;  %v758_v11 = vsel %vm756_vm1, %v2385_v7, 0  ;;  %s386_s24 = scalar_lea.vmem %s3313_s0, %s2571_s17  ;;  %v2632_v15 = vld [vmem:[#allocation4 + $0x44] ss:$8 sps:$4 sm:$0xff]   ;;  %v2629_v16 = vld [vmem:[%s3316_s3] ss:$8 sps:$4 sm:$0xff]   ;;  %vm457_vm2 = vcmask 326656   ;;  %s391_s21 = scalar_lea.vmem %s3314_s1, %s2571_s17 }
  0x3a   : > { %480 = vmatprep.subr.bf16.mxu0 %v2620_v4  ;;  %766 = vmatpush1.bf16.msra.mxu1 %v758_v11  ;;  %v3171_v17 = vld [vmem:[%s386_s24] sm:$0xff]  ;;  %v3173_v18 = vld [vmem:[%s386_s24 + $0x8] sm:$0xff]  ;;  %v540_v24 = vsel %vm461_vm0, %v2361_v20, 0  ;;  %v2638_v25 = vld [vmem:[%s3315_s2 + $0x14] ss:$8 sps:$4 sm:$0xff]   ;;  %vm405_vm3 = vcmask 1040384  }
  0x3b   : > { %767 = vmatprep.subr.bf16.mxu1 %v2627_v9  ;;  %v2635_v21 = vld [vmem:[#allocation4 + $0x40] ss:$8 sps:$4 sm:$0xff]   ;;  %v2639_v22 = vld [vmem:[#allocation4 + $0x34] ss:$8 sps:$4 sm:$0xff]   ;;  %v421_v23 = vpack.c.bf16 %v3173_v18, %v3171_v17  ;;  %v2641_v26 = vld [vmem:[#allocation4 + $0x30] ss:$8 sps:$4 sm:$0xff]  }
  0x3c   : > { %v2645_v27 = vld [vmem:[#allocation4 + $0x24] ss:$8 sps:$4 sm:$0xff]   ;;  %v406_v28 = vrot.slane %v3171_v17, 7  ;;  %v407_v29 = vrot.slane %v3173_v18, 7  ;;  %v2636_v30 = vld [vmem:[%s3315_s2 + $0x10] ss:$8 sps:$4 sm:$0xff]  }
  0x3d   : > { %481 = vmatpush1.bf16.msra.mxu0 %v2623_v10  ;;  %v2644_v31 = vld [vmem:[%s3315_s2 + $0x4] ss:$8 sps:$4 sm:$0xff]   ;;  %v2647_v32 = vld [vmem:[#allocation4 + $0x20] ss:$8 sps:$4 sm:$0xff]   ;;  %v2652_v40 = vld [vmem:[#allocation4 + $0x10] ss:$8 sps:$4 sm:$0xff]  }
  0x3e   : > { %482 = vmatprep.subr.bf16.mxu0 %v2625_v12  ;;  %768 = vmatpush1.bf16.msra.mxu1 %v2630_v13  ;;  %v592_v33 = vld [vmem:[#allocation2 + $0x20] sm:$0xff]  ;;  %v408_v36 = vsel %vm405_vm3, %v406_v28, %v407_v29  ;;  %v411_v37 = vsel %vm405_vm3, %v3171_v17, %v406_v28  ;;  %v2656_v41 = vld [vmem:[#allocation4 + $0x4] ss:$8 sps:$4 sm:$0xff]   ;;  %v2658_v44 = vld [vmem:[#allocation4] ss:$8 sps:$4 sm:$0xff]   ;;  %v414_v50 = vrot.slane %v3171_v17, 1 }
  0x3f   : > { %769 = vmatprep.subr.bf16.mxu1 %v2632_v15  ;;  %v2649_v34 = vld [vmem:[#allocation4 + $0x14] ss:$8 sps:$4 sm:$0xff]   ;;  %v2642_v35 = vld [vmem:[%s3315_s2] ss:$8 sps:$4 sm:$0xff]   ;;  %v2370_v38 = vcombine.high %v592_v33, %v592_v33  ;;  %v2369_v39 = vcombine.low %v592_v33, %v592_v33  ;;  %v412_v42 = vpack.c.bf16 %v408_v36, %v411_v37  ;;  %v2653_v49 = vld [vmem:[#allocation2 + $0x10] ss:$8 sps:$4 sm:$0xff]  }
  0x40   : > { %v2655_v43 = vld [vmem:[#allocation2 + $0x14] ss:$8 sps:$4 sm:$0xff]   ;;  %v400_v45 = vld [vmem:[%s391_s21] sm:$0xff]  ;;  %v401_v47 = vld [vmem:[%s391_s21 + $0x8] sm:$0xff]  ;;  %v415_v51 = vrot.slane %v3173_v18, 1  ;;  %vm752_vm4 = vcmask 818176  }
  0x41   : > { %483 = vmatpush1.bf16.msra.mxu0 %v2629_v16  ;;  %v622_v46 = vsel %vm461_vm0, %v2369_v39, 0  ;;  %v2667_v48 = vld [vmem:[#allocation6 + $0x2ac] ss:$48 sps:$4 sm:$0xff]   ;;  %v402_v53 = vpack.c.bf16 %v401_v47, %v400_v45  ;;  %vm413_vm5 = vcmask 1046528   ;;  %v2665_v54 = vld [vmem:[#allocation6 + $0x2a8] ss:$48 sps:$4 sm:$0xff]  }
  0x42   : > { %2363 = vmatprep.subr.msk.bf16.mxu0 %vm461_vm0, %v2362_v19  ;;  %770 = vmatpush1.bf16.msra.mxu1 %v2635_v21  ;;  %v2661_v52 = vld [vmem:[#allocation2 + $0x4] ss:$8 sps:$4 sm:$0xff]   ;;  %v2659_v55 = vld [vmem:[#allocation2] ss:$8 sps:$4 sm:$0xff]   ;;  %v416_v59 = vsel %vm413_vm5, %v414_v50, %v415_v51  ;;  %v419_v60 = vsel %vm413_vm5, %v415_v51, %v3173_v18  ;;  %vm1892_vm6 = vcmask 1045504   ;;  %vm1888_vm7 = vcmask 752640  }
  0x43   : > { %771 = vmatprep.subr.bf16.mxu1 %v2639_v22  ;;  %v2673_v56 = vld [vmem:[#allocation6 + $0x24c] ss:$48 sps:$4 sm:$0xff]   ;;  %v2664_v57 = vld [vmem:[#allocation6 + $0x2a4] ss:$48 sps:$4 sm:$0xff]   ;;  %v2671_v58 = vld [vmem:[#allocation6 + $0x248] ss:$48 sps:$4 sm:$0xff]   ;;  %v420_v63 = vpack.c.bf16 %v419_v60, %v416_v59 }
  0x44   : > { %2356 = vmatmul.mubr.msk.bf16.vlgmr.msra.gmra.mxu0 %vm457_vm2, %v421_v23  ;;  %v2679_v61 = vld [vmem:[#allocation6 + $0x1ec] ss:$48 sps:$4 sm:$0xff]   ;;  %v2662_v62 = vld [vmem:[#allocation6 + $0x2a0] ss:$48 sps:$4 sm:$0xff]   ;;  %v2677_v1 = vld [vmem:[#allocation6 + $0x1e8] ss:$48 sps:$4 sm:$0xff]  }
  0x45   : > { %556 = vmatpush1.bf16.msra.mxu0 %v540_v24  ;;  %577 = vmatprep.mubr.bf16.mxu0 %v3015_v0  ;;  %v2685_v2 = vld [vmem:[#allocation6 + $0x18c] ss:$48 sps:$4 sm:$0xff]   ;;  %v2668_v3 = vld [vmem:[#allocation6 + $0x240] ss:$48 sps:$4 sm:$0xff]   ;;  %v2676_v4 = vld [vmem:[#allocation6 + $0x1e4] ss:$48 sps:$4 sm:$0xff]  }
  0x46   : > { %557 = vmatprep.subr.bf16.mxu0 %v2638_v25  ;;  %772 = vmatpush1.bf16.msra.mxu1 %v2641_v26  ;;  %v2683_v5 = vld [vmem:[#allocation6 + $0x188] ss:$48 sps:$4 sm:$0xff]   ;;  %v2691_v6 = vld [vmem:[#allocation6 + $0x12c] ss:$48 sps:$4 sm:$0xff]   ;;  %v2674_v7 = vld [vmem:[#allocation6 + $0x1e0] ss:$48 sps:$4 sm:$0xff]  }
  0x47   : > { %773 = vmatprep.subr.bf16.mxu1 %v2645_v27  ;;  %v2682_v8 = vld [vmem:[#allocation6 + $0x184] ss:$48 sps:$4 sm:$0xff]   ;;  %v2689_v9 = vld [vmem:[#allocation6 + $0x128] ss:$48 sps:$4 sm:$0xff]   ;;  %v2680_v10 = vld [vmem:[#allocation6 + $0x180] ss:$48 sps:$4 sm:$0xff]  }
  0x48   : > { %v2688_v11 = vld [vmem:[#allocation6 + $0x124] ss:$48 sps:$4 sm:$0xff]   ;;  %v2686_v12 = vld [vmem:[#allocation6 + $0x120] ss:$48 sps:$4 sm:$0xff]   ;;  %v2697_v14 = vld [vmem:[#allocation6 + $0xcc] ss:$48 sps:$4 sm:$0xff]  }
  0x49   : > { %558 = vmatpush1.bf16.msra.mxu0 %v2636_v30  ;;  %v2694_v13 = vld [vmem:[#allocation6 + $0xc4] ss:$48 sps:$4 sm:$0xff]   ;;  %v2692_v15 = vld [vmem:[#allocation6 + $0xc0] ss:$48 sps:$4 sm:$0xff]   ;;  %v2695_v16 = vld [vmem:[#allocation6 + $0xc8] ss:$48 sps:$4 sm:$0xff]  }
  0x4a   : > { %559 = vmatprep.subr.bf16.mxu0 %v2644_v31  ;;  %774 = vmatpush1.bf16.msra.mxu1 %v2647_v32  ;;  %v2700_v17 = vld [vmem:[#allocation6 + $0x64] ss:$48 sps:$4 sm:$0xff]   ;;  %v2703_v18 = vld [vmem:[#allocation6 + $0x6c] ss:$48 sps:$4 sm:$0xff]   ;;  %v2698_v19 = vld [vmem:[#allocation6 + $0x60] ss:$48 sps:$4 sm:$0xff]  }
  0x4b   : > { %775 = vmatprep.subr.bf16.mxu1 %v2649_v34  ;;  %v2701_v20 = vld [vmem:[#allocation6 + $0x68] ss:$48 sps:$4 sm:$0xff]   ;;  %v2706_v21 = vld [vmem:[#allocation6 + $0x4] ss:$48 sps:$4 sm:$0xff]   ;;  %v2709_v22 = vld [vmem:[#allocation6 + $0xc] ss:$48 sps:$4 sm:$0xff]  }
  0x4c   : > { %v2704_v23 = vld [vmem:[#allocation6] ss:$48 sps:$4 sm:$0xff]   ;;  %v2707_v24 = vld [vmem:[#allocation6 + $0x8] ss:$48 sps:$4 sm:$0xff]   ;;  %v2718_v31 = vld [vmem:[#allocation6 + $0x484] ss:$48 sps:$4 sm:$0xff]  }
  0x4d   : > { %560 = vmatpush1.bf16.msra.mxu0 %v2642_v35  ;;  %v2710_v25 = vld [vmem:[#allocation6 + $0x4e4] ss:$48 sps:$4 sm:$0x3f]   ;;  %v2712_v26 = vld [vmem:[#allocation6 + $0x4ec] ss:$48 sps:$4 sm:$0x3f]  }
  0x4e   : > { %2371 = vmatprep.subr.msk.bf16.mxu0 %vm461_vm0, %v2370_v38  ;;  %776 = vmatpush1.bf16.msra.mxu1 %v2652_v40  ;;  %v2714_v27 = vld [vmem:[#allocation6 + $0x4e0] ss:$48 sps:$4 sm:$0x3f]   ;;  %v2715_v28 = vld [vmem:[#allocation6 + $0x4e8] ss:$48 sps:$4 sm:$0x3f]  }
  0x4f   : > { %777 = vmatprep.subr.bf16.mxu1 %v2656_v41  ;;  %v1894_v29 = vsel %vm1892_vm6, %v2714_v27, 0  ;;  %v1900_v30 = vsel %vm1892_vm6, %v2715_v28, 0  ;;  %v2721_v32 = vld [vmem:[#allocation6 + $0x48c] ss:$48 sps:$4 sm:$0xff]   ;;  %v2716_v33 = vld [vmem:[#allocation6 + $0x480] ss:$48 sps:$4 sm:$0xff]  }
  0x50   : > { %2364 = vmatmul.mubr.msk.bf16.vlgmr.msra.gmra.mxu0 %vm457_vm2, %v412_v42  ;;  %v2719_v34 = vld [vmem:[#allocation6 + $0x488] ss:$48 sps:$4 sm:$0xff]   ;;  %v2724_v35 = vld [vmem:[#allocation6 + $0x424] ss:$48 sps:$4 sm:$0xff]   ;;  %v2727_v36 = vld [vmem:[#allocation6 + $0x42c] ss:$48 sps:$4 sm:$0xff]  }
  0x51   : > { %638 = vmatpush1.bf16.msra.mxu0 %v622_v46  ;;  %659 = vmatprep.mubr.bf16.mxu0 %v3015_v0  ;;  %v2670_v0 = vld [vmem:[#allocation6 + $0x244] ss:$48 sps:$4 sm:$0xff]   ;;  %v2722_v37 = vld [vmem:[#allocation6 + $0x420] ss:$48 sps:$4 sm:$0xff]   ;;  %v2725_v38 = vld [vmem:[#allocation6 + $0x428] ss:$48 sps:$4 sm:$0xff]  }
  0x52   : > { %639 = vmatprep.subr.bf16.mxu0 %v2655_v43  ;;  %778 = vmatpush1.bf16.msra.mxu1 %v2658_v44  ;;  %v2730_v39 = vld [vmem:[#allocation6 + $0x3c4] ss:$48 sps:$4 sm:$0xff]   ;;  %v2733_v40 = vld [vmem:[#allocation6 + $0x3cc] ss:$48 sps:$4 sm:$0xff]   ;;  %v2728_v41 = vld [vmem:[#allocation6 + $0x3c0] ss:$48 sps:$4 sm:$0xff]  }
  0x53   : > { %1972 = vmatprep.subr.bf16.mxu1 %v2667_v48  ;;  %v2731_v42 = vld [vmem:[#allocation6 + $0x3c8] ss:$48 sps:$4 sm:$0xff]   ;;  %v2736_v43 = vld [vmem:[#allocation6 + $0x364] ss:$48 sps:$4 sm:$0xff]   ;;  %v2739_v44 = vld [vmem:[#allocation6 + $0x36c] ss:$48 sps:$4 sm:$0xff]  }
  0x54   : > { %v2734_v45 = vld [vmem:[#allocation6 + $0x360] ss:$48 sps:$4 sm:$0xff]   ;;  %v2737_v46 = vld [vmem:[#allocation6 + $0x368] ss:$48 sps:$4 sm:$0xff]   ;;  %v2742_v47 = vld [vmem:[#allocation6 + $0x304] ss:$48 sps:$4 sm:$0xff]  }
  0x55   : > { %640 = vmatpush1.bf16.msra.mxu0 %v2653_v49  ;;  %2388 = vmatmul.mubr.msk.bf16.vlgmr.msra.gmra.mxu1 %vm752_vm4, %v402_v53  ;;  %v2745_v48 = vld [vmem:[#allocation6 + $0x30c] ss:$48 sps:$4 sm:$0xff]   ;;  %v2740_v49 = vld [vmem:[#allocation6 + $0x300] ss:$48 sps:$4 sm:$0xff]   ;;  %v2743_v50 = vld [vmem:[#allocation6 + $0x308] ss:$48 sps:$4 sm:$0xff]  }
  0x56   : > { %641 = vmatprep.subr.bf16.mxu0 %v2661_v52  ;;  %1973 = vmatpush1.bf16.msra.mxu1 %v2665_v54  ;;  %v2748_v51 = vld [vmem:[#allocation6 + $0x2b4] ss:$48 sps:$4 sm:$0xff]   ;;  %v2751_v52 = vld [vmem:[#allocation6 + $0x2bc] ss:$48 sps:$4 sm:$0xff]   ;;  %s2573_s25 = smul.u32 192, %s3326_s10 }
  0x57   : > { %1974 = vmatprep.subr.bf16.mxu1 %v2673_v56 }
  0x58   : > { %s3271_s28 = scalar_lea.vmem %s3322_s9, %s2573_s25 }
  0x59   : > { %642 = vmatpush1.bf16.msra.mxu0 %v2659_v55 }
  0x5a   : > { %1929 = vmatprep.subr.bf16.mxu0 %v2664_v57  ;;  %1975 = vmatpush1.bf16.msra.mxu1 %v2671_v58 }
  0x5b   : > { %1976 = vmatprep.subr.bf16.mxu1 %v2679_v61  ;;  %v812_v61 = vlaneseq }
  0x5c   : > { %2372 = vmatmul.mubr.msk.bf16.vlgmr.msra.gmra.mxu0 %vm457_vm2, %v420_v63 }
  0x5d   : > { %1930 = vmatpush1.bf16.msra.mxu0 %v2662_v62 }
  0x5e   : > { %1931 = vmatprep.subr.bf16.mxu0 %v2670_v0  ;;  %1977 = vmatpush1.bf16.msra.mxu1 %v2677_v1  ;;  %v3213_v1 = vshrl.u32 %v812_v61, 7  ;;  %v2796_v61 = vld [vmem:[#allocation6 + $0x4fc] ss:$48 sps:$4 sm:$0x3f]  }
  0x5f   : > { %1978 = vmatprep.subr.bf16.mxu1 %v2685_v2 }
  0x61   : > { %1932 = vmatpush1.bf16.msra.mxu0 %v2668_v3 }
  0x62   : > { %1933 = vmatprep.subr.bf16.mxu0 %v2676_v4  ;;  %1979 = vmatpush1.bf16.msra.mxu1 %v2683_v5 }
  0x63   : > { %1980 = vmatprep.subr.bf16.mxu1 %v2691_v6 }
  0x65   : > { %1934 = vmatpush1.bf16.msra.mxu0 %v2674_v7  ;;  %v3216_v7 = vsub.s32 1, %v3213_v1 }
  0x66   : > { %1935 = vmatprep.subr.bf16.mxu0 %v2682_v8  ;;  %1981 = vmatpush1.bf16.msra.mxu1 %v2689_v9  ;;  %v3219_v9 = vsub.s32 0, %v3213_v1 }
  0x67   : > { %1982 = vmatprep.subr.bf16.mxu1 %v2697_v14 }
  0x69   : > { %1936 = vmatpush1.bf16.msra.mxu0 %v2680_v10 }
  0x6a   : > { %1937 = vmatprep.subr.bf16.mxu0 %v2688_v11  ;;  %1983 = vmatpush1.bf16.msra.mxu1 %v2695_v16 }
  0x6b   : > { %1984 = vmatprep.subr.bf16.mxu1 %v2703_v18 }
  0x6d   : > { %1938 = vmatpush1.bf16.msra.mxu0 %v2686_v12 }
  0x6e   : > { %1939 = vmatprep.subr.bf16.mxu0 %v2694_v13  ;;  %1985 = vmatpush1.bf16.msra.mxu1 %v2701_v20  ;;  %v810_v13 = vld [vmem:[%s3319_s6] sm:$0x3] }
  0x6f   : > { %1986 = vmatprep.subr.bf16.mxu1 %v2709_v22 }
  0x71   : > { %1940 = vmatpush1.bf16.msra.mxu0 %v2692_v15 }
  0x72   : > { %1941 = vmatprep.subr.bf16.mxu0 %v2700_v17  ;;  %1987 = vmatpush1.bf16.msra.mxu1 %v2707_v24  ;;  %v819_v17 = vrot.slane %v810_v13, %v3216_v7 }
  0x73   : > { %2559 = vmatprep.subr.msk.bf16.mxu1 %vm1892_vm6, %v2712_v26 }
  0x75   : > { %1942 = vmatpush1.bf16.msra.mxu0 %v2698_v19 }
  0x76   : > { %1943 = vmatprep.subr.bf16.mxu0 %v2706_v21  ;;  %1993 = vmatpush2.bf16.msra.mxu1 %v1900_v30  ;;  %v815_v21 = vrot.slane %v810_v13, %v3219_v9  ;;  %v2749_v30 = vld [vmem:[#allocation6 + $0x2b8] ss:$48 sps:$4 sm:$0xff]   ;;  %v2814_v13 = vld [vmem:[#allocation6 + $0x3d4] ss:$48 sps:$4 sm:$0xff]  }
  0x77   : > { %1994 = vmatprep.subr.bf16.mxu1 %v2721_v32  ;;  %v2754_v32 = vld [vmem:[#allocation6 + $0x254] ss:$48 sps:$4 sm:$0xff]  }
  0x79   : > { %1944 = vmatpush1.bf16.msra.mxu0 %v2704_v23 }
  0x7a   : > { %2557 = vmatprep.subr.msk.bf16.mxu0 %vm1892_vm6, %v2710_v25  ;;  %1995 = vmatpush2.bf16.msra.mxu1 %v2719_v34  ;;  %v2752_v34 = vld [vmem:[#allocation6 + $0x250] ss:$48 sps:$4 sm:$0xff]  }
  0x7b   : > { %1996 = vmatprep.subr.bf16.mxu1 %v2727_v36  ;;  %v2760_v36 = vld [vmem:[#allocation6 + $0x1f4] ss:$48 sps:$4 sm:$0xff]  }
  0x7d   : > { %1950 = vmatpush2.bf16.msra.mxu0 %v1894_v29  ;;  %v2746_v29 = vld [vmem:[#allocation6 + $0x2b0] ss:$48 sps:$4 sm:$0xff]  }
  0x7e   : > { %1951 = vmatprep.subr.bf16.mxu0 %v2718_v31  ;;  %1997 = vmatpush2.bf16.msra.mxu1 %v2725_v38  ;;  %v2758_v38 = vld [vmem:[#allocation6 + $0x1f0] ss:$48 sps:$4 sm:$0xff]  }
  0x7f   : > { %1998 = vmatprep.subr.bf16.mxu1 %v2733_v40  ;;  %v2766_v40 = vld [vmem:[#allocation6 + $0x194] ss:$48 sps:$4 sm:$0xff]  }
  0x81   : > { %1952 = vmatpush2.bf16.msra.mxu0 %v2716_v33  ;;  %v2757_v33 = vld [vmem:[#allocation6 + $0x25c] ss:$48 sps:$4 sm:$0xff]  }
  0x82   : > { %1953 = vmatprep.subr.bf16.mxu0 %v2724_v35  ;;  %1999 = vmatpush2.bf16.msra.mxu1 %v2731_v42  ;;  %v2755_v35 = vld [vmem:[#allocation6 + $0x258] ss:$48 sps:$4 sm:$0xff]   ;;  %v2764_v42 = vld [vmem:[#allocation6 + $0x190] ss:$48 sps:$4 sm:$0xff]  }
  0x83   : > { %2000 = vmatprep.subr.bf16.mxu1 %v2739_v44  ;;  %v2772_v44 = vld [vmem:[#allocation6 + $0x134] ss:$48 sps:$4 sm:$0xff]  }
  0x85   : > { %1954 = vmatpush2.bf16.msra.mxu0 %v2722_v37  ;;  %v2763_v37 = vld [vmem:[#allocation6 + $0x1fc] ss:$48 sps:$4 sm:$0xff]  }
  0x86   : > { %1955 = vmatprep.subr.bf16.mxu0 %v2730_v39  ;;  %2001 = vmatpush2.bf16.msra.mxu1 %v2737_v46  ;;  %v2761_v39 = vld [vmem:[#allocation6 + $0x1f8] ss:$48 sps:$4 sm:$0xff]   ;;  %v2770_v46 = vld [vmem:[#allocation6 + $0x130] ss:$48 sps:$4 sm:$0xff]  }
  0x87   : > { %2002 = vmatprep.subr.bf16.mxu1 %v2745_v48  ;;  %v2778_v48 = vld [vmem:[#allocation6 + $0xd4] ss:$48 sps:$4 sm:$0xff]  }
  0x89   : > { %1956 = vmatpush2.bf16.msra.mxu0 %v2728_v41  ;;  %v2769_v41 = vld [vmem:[#allocation6 + $0x19c] ss:$48 sps:$4 sm:$0xff]  }
  0x8a   : > { %1957 = vmatprep.subr.bf16.mxu0 %v2736_v43  ;;  %2003 = vmatpush2.bf16.msra.mxu1 %v2743_v50  ;;  %v2767_v43 = vld [vmem:[#allocation6 + $0x198] ss:$48 sps:$4 sm:$0xff]   ;;  %v2776_v50 = vld [vmem:[#allocation6 + $0xd0] ss:$48 sps:$4 sm:$0xff]  }
  0x8b   : > { %2058 = vmatprep.subr.bf16.mxu1 %v2751_v52  ;;  %v2784_v52 = vld [vmem:[#allocation6 + $0x74] ss:$48 sps:$4 sm:$0xff]  }
  0x8d   : > { %1958 = vmatpush2.bf16.msra.mxu0 %v2734_v45  ;;  %v2775_v45 = vld [vmem:[#allocation6 + $0x13c] ss:$48 sps:$4 sm:$0xff]  }
  0x8e   : > { %1959 = vmatprep.subr.bf16.mxu0 %v2742_v47  ;;  %v2773_v47 = vld [vmem:[#allocation6 + $0x138] ss:$48 sps:$4 sm:$0xff]  }
  0x91   : > { %1960 = vmatpush2.bf16.msra.mxu0 %v2740_v49  ;;  %v2781_v49 = vld [vmem:[#allocation6 + $0xdc] ss:$48 sps:$4 sm:$0xff]  }
  0x92   : > { %2015 = vmatprep.subr.bf16.mxu0 %v2748_v51  ;;  %v2779_v51 = vld [vmem:[#allocation6 + $0xd8] ss:$48 sps:$4 sm:$0xff]  }
 0x104   : > { %v502_v53 = vpop.f32.mrf.mxu0 }
 0x106   : > { %v504_v54 = vpop.f32.mrf.mxu0 }
 0x108   : > { %v506_v55 = vpop.f32.mrf.mxu0 }
 0x10a   : > { %v508_v56 = vpop.f32.mrf.mxu0 }
 0x110   : > { %v579_v57 = vpop.f32.mrf.mxu0 }
 0x111   : > { %v580_v3 = vadd.f32 %v579_v57, %v502_v53  ;;  %v2787_v53 = vld [vmem:[#allocation6 + $0x7c] ss:$48 sps:$4 sm:$0xff]  }
 0x112   : > { %v581_v58 = vpop.f32.mrf.mxu0  ;;  %v2793_v57 = vld [vmem:[#allocation6 + $0x1c] ss:$48 sps:$4 sm:$0xff]  }
 0x113   : > { %v582_v2 = vadd.f32 %v581_v58, %v504_v54  ;;  %v2782_v54 = vld [vmem:[#allocation6 + $0x70] ss:$48 sps:$4 sm:$0xff]  }
 0x114   : > { %v583_v59 = vpop.f32.mrf.mxu0  ;;  %v2788_v58 = vld [vmem:[#allocation6 + $0x10] ss:$48 sps:$4 sm:$0xff]  }
 0x115   : > { %v797_v60 = vpop.f32.mrf.mxu1  ;;  %v584_v5 = vadd.f32 %v583_v59, %v506_v55  ;;  %v2785_v55 = vld [vmem:[#allocation6 + $0x78] ss:$48 sps:$4 sm:$0xff]  }
 0x116   : > { %v585_v62 = vpop.f32.mrf.mxu0  ;;  %v2791_v59 = vld [vmem:[#allocation6 + $0x18] ss:$48 sps:$4 sm:$0xff]  }
 0x117   : > { %v799_v63 = vpop.f32.mrf.mxu1  ;;  %v586_v12 = vadd.f32 %v585_v62, %v508_v56  ;;  %v2790_v56 = vld [vmem:[#allocation6 + $0x14] ss:$48 sps:$4 sm:$0xff]   ;;  %v2798_v62 = vld [vmem:[#allocation6 + $0x4f0] ss:$48 sps:$4 sm:$0x3f]  }
 0x119   : > { %v801_v10 = vpop.f32.mrf.mxu1 }
 0x11b   : > { %v803_v22 = vpop.f32.mrf.mxu1 }
 0x11c   : > { %v661_v0 = vpop.f32.mrf.mxu0 }
 0x11d   : > { %v670_v8 = vadd.f32 %v661_v0, %v580_v3  ;;  %v1906_v0 = vsel %vm1892_vm6, %v2798_v62, 0  ;;  %v2802_v3 = vld [vmem:[#allocation6 + $0x494] ss:$48 sps:$4 sm:$0xff]  }
 0x11e   : > { %v663_v4 = vpop.f32.mrf.mxu0 }
 0x11f   : > { %v671_v6 = vadd.f32 %v663_v4, %v582_v2  ;;  %v806_v20 = vadd.f32 %v797_v60, %v670_v8  ;;  %v2794_v60 = vld [vmem:[#allocation6 + $0x4f4] ss:$48 sps:$4 sm:$0x3f]   ;;  %v2805_v4 = vld [vmem:[#allocation6 + $0x49c] ss:$48 sps:$4 sm:$0xff]  }
 0x120   : > { %v665_v11 = vpop.f32.mrf.mxu0  ;;  %v2808_v8 = vld [vmem:[#allocation6 + $0x434] ss:$48 sps:$4 sm:$0xff]  }
 0x121   : > { %v672_v14 = vadd.f32 %v665_v11, %v584_v5  ;;  %v807_v16 = vadd.f32 %v799_v63, %v671_v6  ;;  %v822_v27 = vadd.f32 %v815_v21, %v806_v20  ;;  %v2799_v63 = vld [vmem:[#allocation6 + $0x4f8] ss:$48 sps:$4 sm:$0x3f]   ;;  %v2800_v5 = vld [vmem:[#allocation6 + $0x490] ss:$48 sps:$4 sm:$0xff]  }
 0x122   : > { %v667_v15 = vpop.f32.mrf.mxu0  ;;  %v1912_v2 = vsel %vm1892_vm6, %v2799_v63, 0  ;;  %v2803_v6 = vld [vmem:[#allocation6 + $0x498] ss:$48 sps:$4 sm:$0xff]   ;;  %v2806_v11 = vld [vmem:[#allocation6 + $0x430] ss:$48 sps:$4 sm:$0xff]  }
 0x123   : > { %v808_v18 = vadd.f32 %v801_v10, %v672_v14  ;;  %v673_v19 = vadd.f32 %v667_v15, %v586_v12  ;;  %v823_v25 = vadd.f32 %v819_v17, %v807_v16  ;;  %v2811_v10 = vld [vmem:[#allocation6 + $0x43c] ss:$48 sps:$4 sm:$0xff]   ;;  %v2809_v12 = vld [vmem:[#allocation6 + $0x438] ss:$48 sps:$4 sm:$0xff]   ;;  %v2812_v15 = vld [vmem:[#allocation6 + $0x3d0] ss:$48 sps:$4 sm:$0xff]  }
 0x124   : > { %v2817_v14 = vld [vmem:[#allocation6 + $0x3dc] ss:$48 sps:$4 sm:$0xff]   ;;  %v2815_v16 = vld [vmem:[#allocation6 + $0x3d8] ss:$48 sps:$4 sm:$0xff]   ;;  %v2886_v63 = vld [vmem:[#allocation6 + $0x4a4] ss:$48 sps:$4 sm:$0xff]  }
 0x125   : > { %v809_v23 = vadd.f32 %v803_v22, %v673_v19  ;;  %v824_v24 = vadd.f32 %v815_v21, %v808_v18  ;;  %v2823_v18 = vld [vmem:[#allocation6 + $0x37c] ss:$48 sps:$4 sm:$0xff]   ;;  %v2818_v19 = vld [vmem:[#allocation6 + $0x370] ss:$48 sps:$4 sm:$0xff]   ;;  %v2821_v20 = vld [vmem:[#allocation6 + $0x378] ss:$48 sps:$4 sm:$0xff]  }
 0x126   : > { %v2826_v21 = vld [vmem:[#allocation6 + $0x314] ss:$48 sps:$4 sm:$0xff]   ;;  %v2829_v22 = vld [vmem:[#allocation6 + $0x31c] ss:$48 sps:$4 sm:$0xff]  }
 0x127   : > { %v825_v26 = vadd.f32 %v819_v17, %v809_v23  ;;  %v3228_v31 = vpack.c.bf16 %v824_v24, %v822_v27  ;;  %v2820_v17 = vld [vmem:[#allocation6 + $0x374] ss:$48 sps:$4 sm:$0xff]   ;;  %v2824_v23 = vld [vmem:[#allocation6 + $0x310] ss:$48 sps:$4 sm:$0xff]   ;;  %v2827_v24 = vld [vmem:[#allocation6 + $0x318] ss:$48 sps:$4 sm:$0xff]  }
 0x128   : > { %v2830_v27 = vld [vmem:[#allocation6 + $0x2c0] ss:$48 sps:$4 sm:$0xff]  }
 0x129   : > { %v3226_v28 = vpack.c.bf16 %v825_v26, %v823_v25  ;;  %v2832_v25 = vld [vmem:[#allocation6 + $0x2c4] ss:$48 sps:$4 sm:$0xff]   ;;  %v2835_v26 = vld [vmem:[#allocation6 + $0x2cc] ss:$48 sps:$4 sm:$0xff]  }
 0x12b   : > { %2558 = vmatprep.mubr.msk.bf16.mxu0 %vm1888_vm7, %v3226_v28  ;;  %2560 = vmatprep.mubr.msk.bf16.mxu1 %vm1888_vm7, %v3226_v28 }
 0x12c   : > { %1962 = vmatmul.mubr.bf16.vlgmr.msra.gmra.mxu0 %v3228_v31  ;;  %2005 = vmatmul.mubr.bf16.vlgmr.msra.gmra.mxu1 %v3228_v31 }
 0x12d   : > { %2016 = vmatpush1.bf16.msra.mxu0 %v2746_v29  ;;  %2059 = vmatpush1.bf16.msra.mxu1 %v2749_v30  ;;  %v2833_v29 = vld [vmem:[#allocation6 + $0x2c8] ss:$48 sps:$4 sm:$0xff]   ;;  %v2838_v30 = vld [vmem:[#allocation6 + $0x264] ss:$48 sps:$4 sm:$0xff]  }
 0x12e   : > { %2562 = vmatprep.mubr.msk.bf16.mxu0 %vm1888_vm7, %v3226_v28  ;;  %2564 = vmatprep.mubr.msk.bf16.mxu1 %vm1888_vm7, %v3226_v28 }
 0x12f   : > { %2017 = vmatprep.subr.bf16.mxu0 %v2754_v32  ;;  %2060 = vmatprep.subr.bf16.mxu1 %v2757_v33  ;;  %v2841_v32 = vld [vmem:[#allocation6 + $0x26c] ss:$48 sps:$4 sm:$0xff]   ;;  %v2836_v33 = vld [vmem:[#allocation6 + $0x260] ss:$48 sps:$4 sm:$0xff]  }
 0x131   : > { %2018 = vmatpush1.bf16.msra.mxu0 %v2752_v34  ;;  %2061 = vmatpush1.bf16.msra.mxu1 %v2755_v35  ;;  %v2839_v34 = vld [vmem:[#allocation6 + $0x268] ss:$48 sps:$4 sm:$0xff]   ;;  %v2844_v35 = vld [vmem:[#allocation6 + $0x204] ss:$48 sps:$4 sm:$0xff]  }
 0x132   : > { %2019 = vmatprep.subr.bf16.mxu0 %v2760_v36  ;;  %2062 = vmatprep.subr.bf16.mxu1 %v2763_v37  ;;  %v2847_v36 = vld [vmem:[#allocation6 + $0x20c] ss:$48 sps:$4 sm:$0xff]   ;;  %v2842_v37 = vld [vmem:[#allocation6 + $0x200] ss:$48 sps:$4 sm:$0xff]  }
 0x135   : > { %2020 = vmatpush1.bf16.msra.mxu0 %v2758_v38  ;;  %2063 = vmatpush1.bf16.msra.mxu1 %v2761_v39  ;;  %v2845_v38 = vld [vmem:[#allocation6 + $0x208] ss:$48 sps:$4 sm:$0xff]   ;;  %v2850_v39 = vld [vmem:[#allocation6 + $0x1a4] ss:$48 sps:$4 sm:$0xff]  }
 0x136   : > { %2021 = vmatprep.subr.bf16.mxu0 %v2766_v40  ;;  %2064 = vmatprep.subr.bf16.mxu1 %v2769_v41  ;;  %v2853_v40 = vld [vmem:[#allocation6 + $0x1ac] ss:$48 sps:$4 sm:$0xff]   ;;  %v2848_v41 = vld [vmem:[#allocation6 + $0x1a0] ss:$48 sps:$4 sm:$0xff]  }
 0x139   : > { %2022 = vmatpush1.bf16.msra.mxu0 %v2764_v42  ;;  %2065 = vmatpush1.bf16.msra.mxu1 %v2767_v43  ;;  %v2851_v42 = vld [vmem:[#allocation6 + $0x1a8] ss:$48 sps:$4 sm:$0xff]   ;;  %v2856_v43 = vld [vmem:[#allocation6 + $0x144] ss:$48 sps:$4 sm:$0xff]  }
 0x13a   : > { %2023 = vmatprep.subr.bf16.mxu0 %v2772_v44  ;;  %2066 = vmatprep.subr.bf16.mxu1 %v2775_v45  ;;  %v2854_v44 = vld [vmem:[#allocation6 + $0x140] ss:$48 sps:$4 sm:$0xff]   ;;  %v2857_v45 = vld [vmem:[#allocation6 + $0x148] ss:$48 sps:$4 sm:$0xff]  }
 0x13d   : > { %2024 = vmatpush1.bf16.msra.mxu0 %v2770_v46  ;;  %2067 = vmatpush1.bf16.msra.mxu1 %v2773_v47  ;;  %v2862_v46 = vld [vmem:[#allocation6 + $0xe4] ss:$48 sps:$4 sm:$0xff]   ;;  %v2865_v47 = vld [vmem:[#allocation6 + $0xec] ss:$48 sps:$4 sm:$0xff]  }
 0x13e   : > { %2025 = vmatprep.subr.bf16.mxu0 %v2778_v48  ;;  %2068 = vmatprep.subr.bf16.mxu1 %v2781_v49  ;;  %v2860_v48 = vld [vmem:[#allocation6 + $0xe0] ss:$48 sps:$4 sm:$0xff]   ;;  %v2863_v49 = vld [vmem:[#allocation6 + $0xe8] ss:$48 sps:$4 sm:$0xff]  }
 0x141   : > { %2026 = vmatpush1.bf16.msra.mxu0 %v2776_v50  ;;  %2069 = vmatpush1.bf16.msra.mxu1 %v2779_v51  ;;  %v2868_v50 = vld [vmem:[#allocation6 + $0x84] ss:$48 sps:$4 sm:$0xff]   ;;  %v2871_v51 = vld [vmem:[#allocation6 + $0x8c] ss:$48 sps:$4 sm:$0xff]  }
 0x142   : > { %2027 = vmatprep.subr.bf16.mxu0 %v2784_v52  ;;  %2070 = vmatprep.subr.bf16.mxu1 %v2787_v53  ;;  %v2866_v52 = vld [vmem:[#allocation6 + $0x80] ss:$48 sps:$4 sm:$0xff]   ;;  %v2869_v53 = vld [vmem:[#allocation6 + $0x88] ss:$48 sps:$4 sm:$0xff]  }
 0x145   : > { %2028 = vmatpush1.bf16.msra.mxu0 %v2782_v54  ;;  %2071 = vmatpush1.bf16.msra.mxu1 %v2785_v55  ;;  %v2874_v54 = vld [vmem:[#allocation6 + $0x24] ss:$48 sps:$4 sm:$0xff]   ;;  %v2877_v55 = vld [vmem:[#allocation6 + $0x2c] ss:$48 sps:$4 sm:$0xff]  }
 0x146   : > { %2029 = vmatprep.subr.bf16.mxu0 %v2790_v56  ;;  %2072 = vmatprep.subr.bf16.mxu1 %v2793_v57  ;;  %v2872_v56 = vld [vmem:[#allocation6 + $0x20] ss:$48 sps:$4 sm:$0xff]   ;;  %v2875_v57 = vld [vmem:[#allocation6 + $0x28] ss:$48 sps:$4 sm:$0xff]  }
 0x149   : > { %2030 = vmatpush1.bf16.msra.mxu0 %v2788_v58  ;;  %2073 = vmatpush1.bf16.msra.mxu1 %v2791_v59  ;;  %v2878_v58 = vld [vmem:[#allocation6 + $0x504] ss:$48 sps:$4 sm:$0x3f]   ;;  %v2882_v59 = vld [vmem:[#allocation6 + $0x500] ss:$48 sps:$4 sm:$0x3f]  }
 0x14a   : > { %2561 = vmatprep.subr.msk.bf16.mxu0 %vm1892_vm6, %v2794_v60  ;;  %2563 = vmatprep.subr.msk.bf16.mxu1 %vm1892_vm6, %v2796_v61  ;;  %v2880_v60 = vld [vmem:[#allocation6 + $0x50c] ss:$48 sps:$4 sm:$0x3f]   ;;  %v2883_v61 = vld [vmem:[#allocation6 + $0x508] ss:$48 sps:$4 sm:$0x3f]  }
 0x14b   : > { %v1918_v62 = vsel %vm1892_vm6, %v2882_v59, 0 }
 0x14d   : > { %2036 = vmatpush2.bf16.msra.mxu0 %v1906_v0  ;;  %2079 = vmatpush2.bf16.msra.mxu1 %v1912_v2  ;;  %v1924_v0 = vsel %vm1892_vm6, %v2883_v61, 0  ;;  %v2889_v2 = vld [vmem:[#allocation6 + $0x4ac] ss:$48 sps:$4 sm:$0xff]  }
 0x14e   : > { %2037 = vmatprep.subr.bf16.mxu0 %v2802_v3  ;;  %2080 = vmatprep.subr.bf16.mxu1 %v2805_v4  ;;  %v2884_v3 = vld [vmem:[#allocation6 + $0x4a0] ss:$48 sps:$4 sm:$0xff]   ;;  %v2887_v4 = vld [vmem:[#allocation6 + $0x4a8] ss:$48 sps:$4 sm:$0xff]  }
 0x151   : > { %2038 = vmatpush2.bf16.msra.mxu0 %v2800_v5  ;;  %2081 = vmatpush2.bf16.msra.mxu1 %v2803_v6  ;;  %v2892_v5 = vld [vmem:[#allocation6 + $0x444] ss:$48 sps:$4 sm:$0xff]   ;;  %v2895_v6 = vld [vmem:[#allocation6 + $0x44c] ss:$48 sps:$4 sm:$0xff]  }
 0x152   : > { %2039 = vmatprep.subr.bf16.mxu0 %v2808_v8  ;;  %2082 = vmatprep.subr.bf16.mxu1 %v2811_v10  ;;  %v2890_v8 = vld [vmem:[#allocation6 + $0x440] ss:$48 sps:$4 sm:$0xff]   ;;  %v2893_v10 = vld [vmem:[#allocation6 + $0x448] ss:$48 sps:$4 sm:$0xff]  }
 0x155   : > { %2040 = vmatpush2.bf16.msra.mxu0 %v2806_v11  ;;  %2083 = vmatpush2.bf16.msra.mxu1 %v2809_v12  ;;  %v2898_v11 = vld [vmem:[#allocation6 + $0x3e4] ss:$48 sps:$4 sm:$0xff]   ;;  %v2901_v12 = vld [vmem:[#allocation6 + $0x3ec] ss:$48 sps:$4 sm:$0xff]  }
 0x156   : > { %2041 = vmatprep.subr.bf16.mxu0 %v2814_v13  ;;  %2084 = vmatprep.subr.bf16.mxu1 %v2817_v14  ;;  %v2896_v13 = vld [vmem:[#allocation6 + $0x3e0] ss:$48 sps:$4 sm:$0xff]   ;;  %v2899_v14 = vld [vmem:[#allocation6 + $0x3e8] ss:$48 sps:$4 sm:$0xff]  }
 0x159   : > { %2042 = vmatpush2.bf16.msra.mxu0 %v2812_v15  ;;  %2085 = vmatpush2.bf16.msra.mxu1 %v2815_v16  ;;  %v2904_v15 = vld [vmem:[#allocation6 + $0x384] ss:$48 sps:$4 sm:$0xff]   ;;  %v2907_v16 = vld [vmem:[#allocation6 + $0x38c] ss:$48 sps:$4 sm:$0xff]  }
 0x15a   : > { %2043 = vmatprep.subr.bf16.mxu0 %v2820_v17  ;;  %2086 = vmatprep.subr.bf16.mxu1 %v2823_v18  ;;  %v2902_v17 = vld [vmem:[#allocation6 + $0x380] ss:$48 sps:$4 sm:$0xff]   ;;  %v2905_v18 = vld [vmem:[#allocation6 + $0x388] ss:$48 sps:$4 sm:$0xff]  }
 0x15d   : > { %2044 = vmatpush2.bf16.msra.mxu0 %v2818_v19  ;;  %2087 = vmatpush2.bf16.msra.mxu1 %v2821_v20  ;;  %v2910_v19 = vld [vmem:[#allocation6 + $0x324] ss:$48 sps:$4 sm:$0xff]   ;;  %v2913_v20 = vld [vmem:[#allocation6 + $0x32c] ss:$48 sps:$4 sm:$0xff]  }
 0x15e   : > { %2045 = vmatprep.subr.bf16.mxu0 %v2826_v21  ;;  %2088 = vmatprep.subr.bf16.mxu1 %v2829_v22  ;;  %v2908_v21 = vld [vmem:[#allocation6 + $0x320] ss:$48 sps:$4 sm:$0xff]   ;;  %v2911_v22 = vld [vmem:[#allocation6 + $0x328] ss:$48 sps:$4 sm:$0xff]  }
 0x161   : > { %2046 = vmatpush2.bf16.msra.mxu0 %v2824_v23  ;;  %2089 = vmatpush2.bf16.msra.mxu1 %v2827_v24  ;;  %v1010_v23 = vsub.s32 2, %v3213_v1  ;;  %v996_v24 = vld [vmem:[%s3321_s8] sm:$0xff] }
 0x162   : > { %2101 = vmatprep.subr.bf16.mxu0 %v2832_v25  ;;  %2144 = vmatprep.subr.bf16.mxu1 %v2835_v26  ;;  %v1014_v25 = vsub.s32 3, %v3213_v1  ;;  %v1003_v26 = vrot.slane %v996_v24, %v3219_v9 }
 0x164   : > { %2048 = vmatmul.mubr.bf16.vlgmr.msra.gmra.mxu0 %v3228_v31  ;;  %2091 = vmatmul.mubr.bf16.vlgmr.msra.gmra.mxu1 %v3228_v31 }
 0x165   : > { %2102 = vmatpush1.bf16.msra.mxu0 %v2830_v27  ;;  %2566 = vmatprep.mubr.msk.bf16.mxu0 %vm1888_vm7, %v3226_v28  ;;  %v1011_v27 = vrot.slane %v996_v24, %v1010_v23 }
 0x166   : > { %2145 = vmatpush1.bf16.msra.mxu1 %v2833_v29  ;;  %2568 = vmatprep.mubr.msk.bf16.mxu1 %vm1888_vm7, %v3226_v28  ;;  %v2859_v28 = vld [vmem:[#allocation6 + $0x14c] ss:$48 sps:$4 sm:$0xff]   ;;  %v1007_v29 = vrot.slane %v996_v24, %v3216_v7 }
 0x167   : > { %2103 = vmatprep.subr.bf16.mxu0 %v2838_v30  ;;  %2146 = vmatprep.subr.bf16.mxu1 %v2841_v32  ;;  %v1015_v30 = vrot.slane %v996_v24, %v1014_v25 }
 0x169   : > { %2104 = vmatpush1.bf16.msra.mxu0 %v2836_v33 }
 0x16a   : > { %2147 = vmatpush1.bf16.msra.mxu1 %v2839_v34  ;;  %2105 = vmatprep.subr.bf16.mxu0 %v2844_v35 }
 0x16b   : > { %2148 = vmatprep.subr.bf16.mxu1 %v2847_v36 }
 0x16d   : > { %2106 = vmatpush1.bf16.msra.mxu0 %v2842_v37 }
 0x16e   : > { %2149 = vmatpush1.bf16.msra.mxu1 %v2845_v38  ;;  %2107 = vmatprep.subr.bf16.mxu0 %v2850_v39 }
 0x16f   : > { %2150 = vmatprep.subr.bf16.mxu1 %v2853_v40 }
 0x171   : > { %2108 = vmatpush1.bf16.msra.mxu0 %v2848_v41 }
 0x172   : > { %2151 = vmatpush1.bf16.msra.mxu1 %v2851_v42  ;;  %2109 = vmatprep.subr.bf16.mxu0 %v2856_v43 }
 0x173   : > { %2152 = vmatprep.subr.bf16.mxu1 %v2859_v28 }
 0x175   : > { %2110 = vmatpush1.bf16.msra.mxu0 %v2854_v44 }
 0x176   : > { %2153 = vmatpush1.bf16.msra.mxu1 %v2857_v45  ;;  %2111 = vmatprep.subr.bf16.mxu0 %v2862_v46 }
 0x177   : > { %2154 = vmatprep.subr.bf16.mxu1 %v2865_v47 }
 0x179   : > { %2112 = vmatpush1.bf16.msra.mxu0 %v2860_v48 }
 0x17a   : > { %2155 = vmatpush1.bf16.msra.mxu1 %v2863_v49  ;;  %2113 = vmatprep.subr.bf16.mxu0 %v2868_v50 }
 0x17b   : > { %2156 = vmatprep.subr.bf16.mxu1 %v2871_v51 }
 0x17d   : > { %2114 = vmatpush1.bf16.msra.mxu0 %v2866_v52 }
 0x17e   : > { %2157 = vmatpush1.bf16.msra.mxu1 %v2869_v53  ;;  %2115 = vmatprep.subr.bf16.mxu0 %v2874_v54  ;;  %v1018_v54 = vsub.s32 4, %v3213_v1 }
 0x17f   : > { %2158 = vmatprep.subr.bf16.mxu1 %v2877_v55  ;;  %v1026_v55 = vsub.s32 6, %v3213_v1 }
 0x181   : > { %2116 = vmatpush1.bf16.msra.mxu0 %v2872_v56  ;;  %v1022_v56 = vsub.s32 5, %v3213_v1  ;;  %v1027_v59 = vrot.slane %v996_v24, %v1026_v55 }
 0x182   : > { %2159 = vmatpush1.bf16.msra.mxu1 %v2875_v57  ;;  %2565 = vmatprep.subr.msk.bf16.mxu0 %vm1892_vm6, %v2878_v58  ;;  %v1030_v57 = vsub.s32 7, %v3213_v1  ;;  %v1019_v58 = vrot.slane %v996_v24, %v1018_v54 }
 0x183   : > { %2567 = vmatprep.subr.msk.bf16.mxu1 %vm1892_vm6, %v2880_v60  ;;  %v1023_v60 = vrot.slane %v996_v24, %v1022_v56 }
 0x184   : > { %v1031_v61 = vrot.slane %v996_v24, %v1030_v57 }
 0x185   : > { %2122 = vmatpush2.bf16.msra.mxu0 %v1918_v62 }
 0x186   : > { %2165 = vmatpush2.bf16.msra.mxu1 %v1924_v0  ;;  %2123 = vmatprep.subr.bf16.mxu0 %v2886_v63 }
 0x187   : > { %2166 = vmatprep.subr.bf16.mxu1 %v2889_v2 }
 0x189   : > { %2124 = vmatpush2.bf16.msra.mxu0 %v2884_v3 }
 0x18a   : > { %2167 = vmatpush2.bf16.msra.mxu1 %v2887_v4  ;;  %2125 = vmatprep.subr.bf16.mxu0 %v2892_v5 }
 0x18b   : > { %2168 = vmatprep.subr.bf16.mxu1 %v2895_v6 }
 0x18d   : > { %2126 = vmatpush2.bf16.msra.mxu0 %v2890_v8 }
 0x18e   : > { %2169 = vmatpush2.bf16.msra.mxu1 %v2893_v10  ;;  %2127 = vmatprep.subr.bf16.mxu0 %v2898_v11 }
 0x18f   : > { %2170 = vmatprep.subr.bf16.mxu1 %v2901_v12 }
 0x191   : > { %2128 = vmatpush2.bf16.msra.mxu0 %v2896_v13 }
 0x192   : > { %2171 = vmatpush2.bf16.msra.mxu1 %v2899_v14  ;;  %2129 = vmatprep.subr.bf16.mxu0 %v2904_v15 }
 0x193   : > { %2172 = vmatprep.subr.bf16.mxu1 %v2907_v16 }
 0x195   : > { %2130 = vmatpush2.bf16.msra.mxu0 %v2902_v17 }
 0x196   : > { %2173 = vmatpush2.bf16.msra.mxu1 %v2905_v18  ;;  %2131 = vmatprep.subr.bf16.mxu0 %v2910_v19 }
 0x197   : > { %2174 = vmatprep.subr.bf16.mxu1 %v2913_v20 }
 0x199   : > { %2132 = vmatpush2.bf16.msra.mxu0 %v2908_v21 }
 0x19a   : > { %2175 = vmatpush2.bf16.msra.mxu1 %v2911_v22 }
 0x19c   : > { %2134 = vmatmul.mubr.bf16.vlgmr.msra.gmra.mxu0 %v3228_v31 }
 0x19d   : > { %2177 = vmatmul.mubr.bf16.vlgmr.msra.gmra.mxu1 %v3228_v31 }
 0x1ec   : > { %v1963_v31 = vpop.f32.mrf.mxu0  ;;  %v2006_v32 = vpop.f32.mrf.mxu1 }
 0x1ed   : > { %v1964_v33 = vadd.f32 %v1963_v31, %v1003_v26  ;;  %v2007_v34 = vadd.f32 %v2006_v32, %v1011_v27 }
 0x1ee   : > { %v1965_v35 = vpop.f32.mrf.mxu0  ;;  %v2008_v36 = vpop.f32.mrf.mxu1 }
 0x1ef   : > { %v2187_v37 = vmax.f32 %v1964_v33, 0.0  ;;  %v2189_v38 = vmax.f32 %v2007_v34, 0.0  ;;  %v1966_v39 = vadd.f32 %v1965_v35, %v1007_v29  ;;  %v2009_v40 = vadd.f32 %v2008_v36, %v1015_v30 }
 0x1f0   : > { %v1967_v41 = vpop.f32.mrf.mxu0  ;;  %v2010_v42 = vpop.f32.mrf.mxu1 }
 0x1f1   : > { %2211 = vst [vmem:[%s3271_s28] sm:$0xff] %v2187_v37  ;;  %2213 = vst [vmem:[%s3271_s28 + $0x10] sm:$0xff] %v2189_v38  ;;  %v2188_v43 = vmax.f32 %v1966_v39, 0.0  ;;  %v2190_v28 = vmax.f32 %v2009_v40, 0.0  ;;  %v1968_v44 = vadd.f32 %v1967_v41, %v1003_v26  ;;  %v2011_v45 = vadd.f32 %v2010_v42, %v1011_v27  ;;  %v997_v27 = vld [vmem:[%s3321_s8 + $0x8] sm:$0xf] }
 0x1f2   : > { %v1969_v46 = vpop.f32.mrf.mxu0  ;;  %v2012_v47 = vpop.f32.mrf.mxu1  ;;  %v1039_v31 = vrot.slane %v997_v27, %v3216_v7  ;;  %v1047_v33 = vrot.slane %v997_v27, %v1014_v25 }
 0x1f3   : > { %2212 = vst [vmem:[%s3271_s28 + $0x8] sm:$0xff] %v2188_v43  ;;  %2214 = vst [vmem:[%s3271_s28 + $0x18] sm:$0xff] %v2190_v28  ;;  %v2199_v48 = vmax.f32 %v1968_v44, 0.0  ;;  %v2201_v49 = vmax.f32 %v2011_v45, 0.0  ;;  %v1970_v50 = vadd.f32 %v1969_v46, %v1007_v29  ;;  %v2013_v51 = vadd.f32 %v2012_v47, %v1015_v30 }
 0x1f4   : > { %v1035_v29 = vrot.slane %v997_v27, %v3219_v9  ;;  %v1043_v30 = vrot.slane %v997_v27, %v1010_v23 }
 0x1f5   : > { %2223 = vst [vmem:[%s3271_s28 + $0x60] sm:$0xff] %v2199_v48  ;;  %2225 = vst [vmem:[%s3271_s28 + $0x70] sm:$0xff] %v2201_v49  ;;  %v2200_v52 = vmax.f32 %v1970_v50, 0.0  ;;  %v2202_v53 = vmax.f32 %v2013_v51, 0.0 }
 0x1f7   : > { %2224 = vst [vmem:[%s3271_s28 + $0x68] sm:$0xff] %v2200_v52  ;;  %2226 = vst [vmem:[%s3271_s28 + $0x78] sm:$0xff] %v2202_v53 }
 0x224   : > { %v2049_v62 = vpop.f32.mrf.mxu0  ;;  %v2092_v63 = vpop.f32.mrf.mxu1 }
 0x225   : > { %v2050_v0 = vadd.f32 %v2049_v62, %v1019_v58  ;;  %v2093_v2 = vadd.f32 %v2092_v63, %v1027_v59 }
 0x226   : > { %v2051_v3 = vpop.f32.mrf.mxu0  ;;  %v2094_v4 = vpop.f32.mrf.mxu1 }
 0x227   : > { %v2191_v5 = vmax.f32 %v2050_v0, 0.0  ;;  %v2193_v6 = vmax.f32 %v2093_v2, 0.0  ;;  %v2052_v8 = vadd.f32 %v2051_v3, %v1023_v60  ;;  %v2095_v10 = vadd.f32 %v2094_v4, %v1031_v61 }
 0x228   : > { %v2053_v11 = vpop.f32.mrf.mxu0  ;;  %v2096_v12 = vpop.f32.mrf.mxu1 }
 0x229   : > { %2215 = vst [vmem:[%s3271_s28 + $0x20] sm:$0xff] %v2191_v5  ;;  %2217 = vst [vmem:[%s3271_s28 + $0x30] sm:$0xff] %v2193_v6  ;;  %v2192_v13 = vmax.f32 %v2052_v8, 0.0  ;;  %v2194_v14 = vmax.f32 %v2095_v10, 0.0  ;;  %v2054_v15 = vadd.f32 %v2053_v11, %v1019_v58  ;;  %v2097_v16 = vadd.f32 %v2096_v12, %v1027_v59 }
 0x22a   : > { %v2055_v17 = vpop.f32.mrf.mxu0  ;;  %v2098_v18 = vpop.f32.mrf.mxu1 }
 0x22b   : > { %2216 = vst [vmem:[%s3271_s28 + $0x28] sm:$0xff] %v2192_v13  ;;  %2218 = vst [vmem:[%s3271_s28 + $0x38] sm:$0xff] %v2194_v14  ;;  %v2203_v19 = vmax.f32 %v2054_v15, 0.0  ;;  %v2205_v20 = vmax.f32 %v2097_v16, 0.0  ;;  %v2056_v21 = vadd.f32 %v2055_v17, %v1023_v60  ;;  %v2099_v22 = vadd.f32 %v2098_v18, %v1031_v61 }
 0x22d   : > { %2227 = vst [vmem:[%s3271_s28 + $0x80] sm:$0xff] %v2203_v19  ;;  %2229 = vst [vmem:[%s3271_s28 + $0x90] sm:$0xff] %v2205_v20  ;;  %v2204_v24 = vmax.f32 %v2056_v21, 0.0  ;;  %v2206_v26 = vmax.f32 %v2099_v22, 0.0 }
 0x22f   : > { %2228 = vst [vmem:[%s3271_s28 + $0x88] sm:$0xff] %v2204_v24  ;;  %2230 = vst [vmem:[%s3271_s28 + $0x98] sm:$0xff] %v2206_v26 }
 0x25c   : > { %v2135_v32 = vpop.f32.mrf.mxu0 }
 0x25d   : > { %v2136_v34 = vadd.f32 %v2135_v32, %v1035_v29  ;;  %v2178_v35 = vpop.f32.mrf.mxu1 }
 0x25e   : > { %v2179_v36 = vadd.f32 %v2178_v35, %v1043_v30  ;;  %v2137_v37 = vpop.f32.mrf.mxu0 }
 0x25f   : > { %v2195_v38 = vmax.f32 %v2136_v34, 0.0  ;;  %v2138_v39 = vadd.f32 %v2137_v37, %v1039_v31  ;;  %v2180_v40 = vpop.f32.mrf.mxu1 }
 0x260   : > { %v2197_v9 = vmax.f32 %v2179_v36, 0.0  ;;  %v2181_v41 = vadd.f32 %v2180_v40, %v1047_v33  ;;  %v2139_v42 = vpop.f32.mrf.mxu0 }
 0x261   : > { %2219 = vst [vmem:[%s3271_s28 + $0x40] sm:$0xff] %v2195_v38  ;;  %v2196_v7 = vmax.f32 %v2138_v39, 0.0  ;;  %v2140_v23 = vadd.f32 %v2139_v42, %v1035_v29  ;;  %v2182_v1 = vpop.f32.mrf.mxu1 }
 0x262   : > { %2221 = vst [vmem:[%s3271_s28 + $0x50] sm:$0xff] %v2197_v9  ;;  %v2198_v25 = vmax.f32 %v2181_v41, 0.0  ;;  %v2183_v43 = vadd.f32 %v2182_v1, %v1043_v30  ;;  %v2141_v28 = vpop.f32.mrf.mxu0 }
 0x263   : > { %2220 = vst [vmem:[%s3271_s28 + $0x48] sm:$0xff] %v2196_v7  ;;  %v2207_v44 = vmax.f32 %v2140_v23, 0.0  ;;  %v2142_v45 = vadd.f32 %v2141_v28, %v1039_v31  ;;  %v2184_v46 = vpop.f32.mrf.mxu1 }
 0x264   : > { %2222 = vst [vmem:[%s3271_s28 + $0x58] sm:$0xff] %v2198_v25  ;;  %v2209_v47 = vmax.f32 %v2183_v43, 0.0  ;;  %v2185_v48 = vadd.f32 %v2184_v46, %v1047_v33 }
 0x265   : > { %2231 = vst [vmem:[%s3271_s28 + $0xa0] sm:$0xff] %v2207_v44  ;;  %v2208_v49 = vmax.f32 %v2142_v45, 0.0 }
 0x266   : > { %2233 = vst [vmem:[%s3271_s28 + $0xb0] sm:$0xff] %v2209_v47  ;;  %v2210_v50 = vmax.f32 %v2185_v48, 0.0 }
 0x267   : > { %2232 = vst [vmem:[%s3271_s28 + $0xa8] sm:$0xff] %v2208_v49 }
 0x268   : > { %2234 = vst [vmem:[%s3271_s28 + $0xb8] sm:$0xff] %v2210_v50 }
 0x269 PF: > { %s21_s30 = sadd.s32 1, %s3006_s30  }
 0x26a   : > { %p18_p2 = scmp.ge.s32.totalorder %s21_s30, 4  }
 0x26c   :  { %20 = sbr.rel (!%p18_p2) target bundleno = 2 (0x2), region = 102 }
 0x271   :  { %2256 = vsyncpa [#allocation3], 1 }
 0x272   :  { %2258 = vsyncpa [#allocation3 + $0x1], 1 }
 0x273   :  { %2259 = vsyncpa [#allocation5], 1 }

// kernel: ftdnn_forward.38
= control target key start
LH: loop header
LB: loop body
LE: loop exit
PB: predicated region body
PF: predicated region fallthrough
CT: control target
= control target key end

     0   :  { %s767_s9 = smov 0   ;;  %s769_s10 = smov 0   ;;  %s1077_s0 = inlined_call_operand.vmem [shape: f32[2,16,1536], index: 0, kind: input, shape index: {}]   ;;  %s1078_s1 = inlined_call_operand.vmem [shape: f32[2,16,1536], index: 1, kind: input, shape index: {}]   ;;  %s1079_s2 = inlined_call_operand.vmem [shape: f32[2,16,1536], index: 2, kind: output, shape index: {}]  }
   0x1   :  { %s771_s11 = smov 0  }
   0x2 LB: > { %s674_s12 = sadd.s32 4294967295, %s750_s11   ;;  %s784_s13 = sadd.s32 1, %s750_s11   ;;  %s750_s11 = sphi %s771_s11, %s1084_s11   ;;  %s746_s10 = sphi %s769_s10, %s1083_s10   ;;  %s742_s9 = sphi %s767_s9, %s1082_s9  }
   0x3   : > { %s16_s14 = ssub.s32 %s750_s11, %s784_s13  ;;  %s19_s15 = sadd.s32 1, %s746_s10 }
   0x4   : > { %p17_p0 = scmp.eq.s32.totalorder %s16_s14, 0  ;;  %p26_p1 = scmp.ne.s32.totalorder %s746_s10, %s742_s9 }
   0x5   : > { %p27_p2 = scmp.eq.s32.totalorder %s750_s11, 0  ;;  %p82_p3 = scmp.eq.s32.totalorder %s674_s12, 2 }
   0x6   : > { %s795_s16 = scalar_select %p17_p0, %s746_s10, %s19_s15  }
   0x7   : > { %p797_p4 = por %p27_p2, %p26_p1  ;;  %p801_p5 = por %p82_p3, %p26_p1 }
   0x8   : > { %p677_p6 = scmp.ge.s32.totalorder %s750_s11, 3 }
   0xa   : > { %104 = sbr.rel (%p677_p6) target bundleno = 39 (0x27), region = 16 }
   0xf   : > { %107 = sbr.rel (!%p797_p4) target bundleno = 27 (0x1b), region = 20  ;;  %s109_s19 = sand.u32 (%p797_p4), 1, %s746_s10  }
  0x10   : > { %s693_s20 = sshll.u32 (%p797_p4), %s750_s11, 5  ;;  %s678_s21 = sshll.u32 (%p797_p4), %s109_s19, 7 }
  0x11   : > { %s813_s24 = scalar_lea.vmem (%p797_p4), %s1077_s0, %s693_s20  ;;  %s111_s25 = scalar_lea.vmem (%p797_p4), [#allocation2], %s678_s21 }
  0x12   : > { %v127_v0 = vld [vmem:[%s813_s24] sm:$0xff] (%p797_p4)  ;;  %v129_v1 = vld [vmem:[%s813_s24 + $0x8] sm:$0xff] (%p797_p4)  ;;  %v131_v2 = vld [vmem:[%s813_s24 + $0x10] sm:$0xff] (%p797_p4) }
  0x13   : > { %128 = vst [vmem:[%s111_s25] sm:$0xff] (%p797_p4), %v127_v0  ;;  %130 = vst [vmem:[%s111_s25 + $0x8] sm:$0xff] (%p797_p4), %v129_v1  ;;  %v133_v3 = vld [vmem:[%s813_s24 + $0x18] sm:$0xff] (%p797_p4)  ;;  %v135_v4 = vld [vmem:[%s813_s24 + $0x60] sm:$0xff] (%p797_p4) }
  0x14   : > { %132 = vst [vmem:[%s111_s25 + $0x10] sm:$0xff] %v131_v2  ;;  %v137_v5 = vld [vmem:[%s813_s24 + $0x68] sm:$0xff]  ;;  %134 = vst [vmem:[%s111_s25 + $0x18] sm:$0xff] %v133_v3  ;;  %v139_v6 = vld [vmem:[%s813_s24 + $0x70] sm:$0xff] }
  0x15   : > { %136 = vst [vmem:[%s111_s25 + $0x20] sm:$0xff] %v135_v4  ;;  %138 = vst [vmem:[%s111_s25 + $0x28] sm:$0xff] %v137_v5  ;;  %v141_v7 = vld [vmem:[%s813_s24 + $0x78] sm:$0xff]  ;;  %v143_v8 = vld [vmem:[%s813_s24 + $0xc0] sm:$0xff] }
  0x16   : > { %140 = vst [vmem:[%s111_s25 + $0x30] sm:$0xff] %v139_v6  ;;  %142 = vst [vmem:[%s111_s25 + $0x38] sm:$0xff] %v141_v7  ;;  %v145_v9 = vld [vmem:[%s813_s24 + $0xc8] sm:$0xff]  ;;  %v147_v10 = vld [vmem:[%s813_s24 + $0xd0] sm:$0xff] }
  0x17   : > { %144 = vst [vmem:[%s111_s25 + $0x40] sm:$0xff] %v143_v8  ;;  %v149_v11 = vld [vmem:[%s813_s24 + $0xd8] sm:$0xff]  ;;  %146 = vst [vmem:[%s111_s25 + $0x48] sm:$0xff] %v145_v9  ;;  %v151_v12 = vld [vmem:[%s813_s24 + $0x120] sm:$0xff] }
  0x18   : > { %148 = vst [vmem:[%s111_s25 + $0x50] sm:$0xff] %v147_v10  ;;  %150 = vst [vmem:[%s111_s25 + $0x58] sm:$0xff] %v149_v11  ;;  %v153_v13 = vld [vmem:[%s813_s24 + $0x128] sm:$0xff]  ;;  %v155_v14 = vld [vmem:[%s813_s24 + $0x130] sm:$0xff] }
  0x19   : > { %152 = vst [vmem:[%s111_s25 + $0x60] sm:$0xff] %v151_v12  ;;  %154 = vst [vmem:[%s111_s25 + $0x68] sm:$0xff] %v153_v13  ;;  %v157_v15 = vld [vmem:[%s813_s24 + $0x138] sm:$0xff] }
  0x1a   : > { %156 = vst [vmem:[%s111_s25 + $0x70] sm:$0xff] %v155_v14  ;;  %158 = vst [vmem:[%s111_s25 + $0x78] sm:$0xff] %v157_v15 }
  0x1b PF: > { %164 = sbr.rel (!%p797_p4) target bundleno = 39 (0x27), region = 43  ;;  %s166_s26 = sand.u32 (%p797_p4), 1, %s746_s10  }
  0x1c   : > { %s694_s27 = sshll.u32 (%p797_p4), %s750_s11, 5  ;;  %s681_s28 = sshll.u32 (%p797_p4), %s166_s26, 7 }
  0x1d   : > { %s838_s3 = scalar_lea.vmem (%p797_p4), %s1078_s1, %s694_s27  ;;  %s168_s4 = scalar_lea.vmem (%p797_p4), [#allocation3], %s681_s28 }
  0x1e   : > { %v184_v16 = vld [vmem:[%s838_s3] sm:$0xff] (%p797_p4)  ;;  %v186_v17 = vld [vmem:[%s838_s3 + $0x8] sm:$0xff] (%p797_p4)  ;;  %v188_v18 = vld [vmem:[%s838_s3 + $0x10] sm:$0xff] (%p797_p4) }
  0x1f   : > { %185 = vst [vmem:[%s168_s4] sm:$0xff] (%p797_p4), %v184_v16  ;;  %187 = vst [vmem:[%s168_s4 + $0x8] sm:$0xff] (%p797_p4), %v186_v17  ;;  %v190_v19 = vld [vmem:[%s838_s3 + $0x18] sm:$0xff] (%p797_p4)  ;;  %v192_v20 = vld [vmem:[%s838_s3 + $0x60] sm:$0xff] (%p797_p4) }
  0x20   : > { %189 = vst [vmem:[%s168_s4 + $0x10] sm:$0xff] %v188_v18  ;;  %v194_v21 = vld [vmem:[%s838_s3 + $0x68] sm:$0xff]  ;;  %191 = vst [vmem:[%s168_s4 + $0x18] sm:$0xff] %v190_v19  ;;  %v196_v22 = vld [vmem:[%s838_s3 + $0x70] sm:$0xff] }
  0x21   : > { %193 = vst [vmem:[%s168_s4 + $0x20] sm:$0xff] %v192_v20  ;;  %195 = vst [vmem:[%s168_s4 + $0x28] sm:$0xff] %v194_v21  ;;  %v198_v23 = vld [vmem:[%s838_s3 + $0x78] sm:$0xff]  ;;  %v200_v24 = vld [vmem:[%s838_s3 + $0xc0] sm:$0xff] }
  0x22   : > { %197 = vst [vmem:[%s168_s4 + $0x30] sm:$0xff] %v196_v22  ;;  %199 = vst [vmem:[%s168_s4 + $0x38] sm:$0xff] %v198_v23  ;;  %v202_v25 = vld [vmem:[%s838_s3 + $0xc8] sm:$0xff]  ;;  %v204_v26 = vld [vmem:[%s838_s3 + $0xd0] sm:$0xff] }
  0x23   : > { %201 = vst [vmem:[%s168_s4 + $0x40] sm:$0xff] %v200_v24  ;;  %v206_v27 = vld [vmem:[%s838_s3 + $0xd8] sm:$0xff]  ;;  %203 = vst [vmem:[%s168_s4 + $0x48] sm:$0xff] %v202_v25  ;;  %v208_v28 = vld [vmem:[%s838_s3 + $0x120] sm:$0xff] }
  0x24   : > { %205 = vst [vmem:[%s168_s4 + $0x50] sm:$0xff] %v204_v26  ;;  %207 = vst [vmem:[%s168_s4 + $0x58] sm:$0xff] %v206_v27  ;;  %v210_v29 = vld [vmem:[%s838_s3 + $0x128] sm:$0xff]  ;;  %v212_v30 = vld [vmem:[%s838_s3 + $0x130] sm:$0xff] }
  0x25   : > { %209 = vst [vmem:[%s168_s4 + $0x60] sm:$0xff] %v208_v28  ;;  %211 = vst [vmem:[%s168_s4 + $0x68] sm:$0xff] %v210_v29  ;;  %v214_v31 = vld [vmem:[%s838_s3 + $0x138] sm:$0xff] }
  0x26   : > { %213 = vst [vmem:[%s168_s4 + $0x70] sm:$0xff] %v212_v30  ;;  %215 = vst [vmem:[%s168_s4 + $0x78] sm:$0xff] %v214_v31 }
  0x27 PF: > { %p684_p7 = scmp.ge.s32.totalorder %s750_s11, 1  ;;  %p220_p8 = scmp.lt.s32.totalorder %s750_s11, 4 }
  0x29   : > { %p221_p9 = pnand %p684_p7, %p220_p8 }
  0x2a   : > { %s227_s5 = sand.u32 (!%p221_p9), 1, %s742_s9  }
  0x2b   : > { %224 = sbr.rel (%p221_p9) target bundleno = 145 (0x91), region = 66  ;;  %s859_s6 = sshll.u32 (!%p221_p9), %s227_s5, 7 }
  0x2c   : > { %s229_s7 = scalar_lea.vmem (!%p221_p9), [#allocation2], %s859_s6  ;;  %s991_s8 = scalar_lea.vmem (!%p221_p9), [#allocation3], %s859_s6 }
  0x2d   : > { %s1013_s9 = scalar_lea.vmem (!%p221_p9), [#allocation4], %s859_s6 }
  0x30   : > { %v862_v32 = vld [vmem:[%s229_s7] sm:$0xff]  ;;  %v872_v37 = vld [vmem:[%s229_s7 + $0x8] sm:$0xff]  ;;  %v886_v45 = vld [vmem:[%s229_s7 + $0x10] sm:$0xff]  ;;  %s695_s14 = sshll.u32 (%p801_p5), %s674_s12, 5 }
  0x31   : > { %v864_v33 = vld [vmem:[%s229_s7 + $0x20] sm:$0xff]  ;;  %v876_v39 = vld [vmem:[%s229_s7 + $0x28] sm:$0xff]  ;;  %v888_v46 = vld [vmem:[%s229_s7 + $0x30] sm:$0xff]  ;;  %s552_s18 = scalar_lea.vmem (%p801_p5), %s1079_s2, %s695_s14 }
  0x32   : > { %v866_v34 = vld [vmem:[%s229_s7 + $0x40] sm:$0xff]  ;;  %v277_v36 = vadd.f32 %v864_v33, %v862_v32  ;;  %v878_v40 = vld [vmem:[%s229_s7 + $0x48] sm:$0xff]  ;;  %v284_v43 = vadd.f32 %v876_v39, %v872_v37  ;;  %v890_v48 = vld [vmem:[%s229_s7 + $0x50] sm:$0xff]  ;;  %v291_v50 = vadd.f32 %v888_v46, %v886_v45 }
  0x33   : > { %v868_v35 = vld [vmem:[%s229_s7 + $0x60] sm:$0xff]  ;;  %v880_v41 = vld [vmem:[%s229_s7 + $0x68] sm:$0xff]  ;;  %v892_v49 = vld [vmem:[%s229_s7 + $0x70] sm:$0xff] }
  0x34   : > { %v305_v38 = vadd.f32 %v868_v35, %v866_v34  ;;  %v278_v42 = vrot.slane %v277_v36, 4  ;;  %v312_v44 = vadd.f32 %v880_v41, %v878_v40  ;;  %v285_v52 = vrot.slane %v284_v43, 4  ;;  %v898_v55 = vld [vmem:[%s229_s7 + $0x18] sm:$0xff] }
  0x35   : > { %v319_v54 = vadd.f32 %v892_v49, %v890_v48  ;;  %v900_v56 = vld [vmem:[%s229_s7 + $0x38] sm:$0xff]  ;;  %v292_v59 = vrot.slane %v291_v50, 4 }
  0x36   : > { %v306_v47 = vrot.slane %v305_v38, 4  ;;  %v279_v51 = vadd.f32 %v278_v42, %v277_v36  ;;  %v313_v53 = vrot.slane %v312_v44, 4  ;;  %v902_v57 = vld [vmem:[%s229_s7 + $0x58] sm:$0xff]  ;;  %v298_v61 = vadd.f32 %v900_v56, %v898_v55 }
  0x37   : > { %v904_v60 = vld [vmem:[%s229_s7 + $0x78] sm:$0xff]  ;;  %v286_v63 = vadd.f32 %v285_v52, %v284_v43  ;;  %v320_v1 = vrot.slane %v319_v54, 4  ;;  %v293_v3 = vadd.f32 %v292_v59, %v291_v50 }
  0x38   : > { %v307_v58 = vadd.f32 %v306_v47, %v305_v38  ;;  %v280_v62 = vrot.slane %v279_v51, 2  ;;  %v314_v0 = vadd.f32 %v313_v53, %v312_v44  ;;  %v299_v4 = vrot.slane %v298_v61, 4 }
  0x39   : > { %v326_v5 = vadd.f32 %v904_v60, %v902_v57  ;;  %v287_v7 = vrot.slane %v286_v63, 2  ;;  %v321_v9 = vadd.f32 %v320_v1, %v319_v54  ;;  %v294_v11 = vrot.slane %v293_v3, 2 }
  0x3a   : > { %v308_v2 = vrot.slane %v307_v58, 2  ;;  %v281_v6 = vadd.f32 %v280_v62, %v279_v51  ;;  %v315_v8 = vrot.slane %v314_v0, 2  ;;  %v300_v12 = vadd.f32 %v299_v4, %v298_v61 }
  0x3b   : > { %v327_v13 = vrot.slane %v326_v5, 4  ;;  %v288_v15 = vadd.f32 %v287_v7, %v286_v63  ;;  %v322_v17 = vrot.slane %v321_v9, 2  ;;  %v295_v19 = vadd.f32 %v294_v11, %v293_v3 }
  0x3c   : > { %v309_v10 = vadd.f32 %v308_v2, %v307_v58  ;;  %v282_v14 = vrot.slane %v281_v6, 1  ;;  %v316_v16 = vadd.f32 %v315_v8, %v314_v0  ;;  %v301_v20 = vrot.slane %v300_v12, 2 }
  0x3d   : > { %v328_v21 = vadd.f32 %v327_v13, %v326_v5  ;;  %v289_v23 = vrot.slane %v288_v15, 1  ;;  %v323_v25 = vadd.f32 %v322_v17, %v321_v9  ;;  %v296_v27 = vrot.slane %v295_v19, 1 }
  0x3e   : > { %v310_v18 = vrot.slane %v309_v10, 1  ;;  %v283_v22 = vadd.f32 %v282_v14, %v281_v6  ;;  %v317_v24 = vrot.slane %v316_v16, 1  ;;  %v302_v28 = vadd.f32 %v301_v20, %v300_v12 }
  0x3f   : > { %v329_v29 = vrot.slane %v328_v21, 2  ;;  %v290_v31 = vadd.f32 %v289_v23, %v288_v15  ;;  %v324_v38 = vrot.slane %v323_v25, 1  ;;  %v297_v43 = vadd.f32 %v296_v27, %v295_v19 }
  0x40   : > { %v311_v26 = vadd.f32 %v310_v18, %v309_v10  ;;  %v334_v30 = vmul.f32 0.0625, %v283_v22  ;;  %v318_v36 = vadd.f32 %v317_v24, %v316_v16  ;;  %v303_v52 = vrot.slane %v302_v28, 1 }
  0x41   : > { %v330_v44 = vadd.f32 %v329_v29, %v328_v21  ;;  %v335_v47 = vmul.f32 0.0625, %v290_v31  ;;  %v325_v51 = vadd.f32 %v324_v38, %v323_v25  ;;  %v336_v54 = vmul.f32 0.0625, %v297_v43 }
  0x42   : > { %v338_v42 = vmul.f32 0.0625, %v311_v26  ;;  %v339_v50 = vmul.f32 0.0625, %v318_v36  ;;  %v304_v1 = vadd.f32 %v303_v52, %v302_v28 }
  0x43   : > { %v331_v58 = vrot.slane %v330_v44, 1  ;;  %v340_v61 = vmul.f32 0.0625, %v325_v51 }
  0x44   : > { %v342_v53 = vadd.f32 %v338_v42, %v334_v30  ;;  %v343_v59 = vadd.f32 %v339_v50, %v335_v47  ;;  %v337_v16 = vmul.f32 0.0625, %v304_v1 }
  0x45   : > { %v344_v0 = vadd.f32 %v340_v61, %v336_v54  ;;  %v332_v2 = vadd.f32 %v331_v58, %v330_v44 }
  0x46   : > { %v347_v62 = vmul.f32 0.5, %v342_v53  ;;  %v348_v63 = vmul.f32 0.5, %v343_v59 }
  0x47   : > { %v349_v13 = vmul.f32 0.5, %v344_v0  ;;  %v341_v17 = vmul.f32 0.0625, %v332_v2 }
  0x48   : > { %v911_v3 = vsub.f32 %v862_v32, %v347_v62  ;;  %v914_v4 = vsub.f32 %v864_v33, %v347_v62  ;;  %v917_v5 = vsub.f32 %v866_v34, %v347_v62  ;;  %v920_v6 = vsub.f32 %v868_v35, %v347_v62 }
  0x49   : > { %v923_v7 = vsub.f32 %v872_v37, %v348_v63  ;;  %v926_v8 = vsub.f32 %v876_v39, %v348_v63  ;;  %v929_v9 = vsub.f32 %v878_v40, %v348_v63  ;;  %v932_v32 = vsub.f32 %v880_v41, %v348_v63 }
  0x4a   : > { %v367_v33 = vmul.f32 %v911_v3, %v911_v3  ;;  %v371_v34 = vmul.f32 %v914_v4, %v914_v4  ;;  %v375_v35 = vmul.f32 %v917_v5, %v917_v5  ;;  %v379_v37 = vmul.f32 %v920_v6, %v920_v6 }
  0x4b   : > { %v368_v39 = vmul.f32 %v923_v7, %v923_v7  ;;  %v372_v40 = vmul.f32 %v926_v8, %v926_v8  ;;  %v376_v41 = vmul.f32 %v929_v9, %v929_v9  ;;  %v380_v10 = vmul.f32 %v932_v32, %v932_v32 }
  0x4c   : > { %v383_v11 = vadd.f32 %v371_v34, %v367_v33  ;;  %v411_v12 = vadd.f32 %v379_v37, %v375_v35  ;;  %v951_v20 = vsub.f32 %v886_v45, %v349_v13  ;;  %v954_v21 = vsub.f32 %v888_v46, %v349_v13 }
  0x4d   : > { %v390_v14 = vadd.f32 %v372_v40, %v368_v39  ;;  %v418_v15 = vadd.f32 %v380_v10, %v376_v41  ;;  %v957_v24 = vsub.f32 %v890_v48, %v349_v13  ;;  %v960_v25 = vsub.f32 %v892_v49, %v349_v13 }
  0x4e   : > { %v384_v18 = vrot.slane %v383_v11, 4  ;;  %v412_v19 = vrot.slane %v411_v12, 4  ;;  %v369_v28 = vmul.f32 %v951_v20, %v951_v20  ;;  %v373_v45 = vmul.f32 %v954_v21, %v954_v21 }
  0x4f   : > { %v391_v22 = vrot.slane %v390_v14, 4  ;;  %v419_v23 = vrot.slane %v418_v15, 4  ;;  %v377_v46 = vmul.f32 %v957_v24, %v957_v24  ;;  %v381_v48 = vmul.f32 %v960_v25, %v960_v25 }
  0x50   : > { %v385_v26 = vadd.f32 %v384_v18, %v383_v11  ;;  %v413_v27 = vadd.f32 %v412_v19, %v411_v12  ;;  %v397_v49 = vadd.f32 %v373_v45, %v369_v28  ;;  %v345_v38 = vadd.f32 %v341_v17, %v337_v16 }
  0x51   : > { %v392_v29 = vadd.f32 %v391_v22, %v390_v14  ;;  %v420_v30 = vadd.f32 %v419_v23, %v418_v15  ;;  %v425_v44 = vadd.f32 %v381_v48, %v377_v46 }
  0x52   : > { %v386_v31 = vrot.slane %v385_v26, 2  ;;  %v414_v36 = vrot.slane %v413_v27, 2  ;;  %v398_v51 = vrot.slane %v397_v49, 4  ;;  %v350_v52 = vmul.f32 0.5, %v345_v38 }
  0x53   : > { %v393_v42 = vrot.slane %v392_v29, 2  ;;  %v421_v43 = vrot.slane %v420_v30, 2  ;;  %v426_v58 = vrot.slane %v425_v44, 4 }
  0x54   : > { %v387_v47 = vadd.f32 %v386_v31, %v385_v26  ;;  %v415_v50 = vadd.f32 %v414_v36, %v413_v27  ;;  %v399_v62 = vadd.f32 %v398_v51, %v397_v49  ;;  %v971_v63 = vsub.f32 %v898_v55, %v350_v52 }
  0x55   : > { %v394_v53 = vadd.f32 %v393_v42, %v392_v29  ;;  %v422_v54 = vadd.f32 %v421_v43, %v420_v30  ;;  %v427_v2 = vadd.f32 %v426_v58, %v425_v44  ;;  %v974_v33 = vsub.f32 %v900_v56, %v350_v52 }
  0x56   : > { %v388_v59 = vrot.slane %v387_v47, 1  ;;  %v416_v61 = vrot.slane %v415_v50, 1  ;;  %v400_v37 = vrot.slane %v399_v62, 2  ;;  %v977_v39 = vsub.f32 %v902_v57, %v350_v52 }
  0x57   : > { %v395_v0 = vrot.slane %v394_v53, 1  ;;  %v423_v1 = vrot.slane %v422_v54, 1  ;;  %v428_v10 = vrot.slane %v427_v2, 2  ;;  %v980_v11 = vsub.f32 %v904_v60, %v350_v52 }
  0x58   : > { %v389_v34 = vadd.f32 %v388_v59, %v387_v47  ;;  %v417_v35 = vadd.f32 %v416_v61, %v415_v50  ;;  %v401_v13 = vadd.f32 %v400_v37, %v399_v62  ;;  %v370_v14 = vmul.f32 %v971_v63, %v971_v63  ;;  %v479_v62 = vld [vmem:[%s991_s8] sm:$0xff] }
  0x59   : > { %v396_v40 = vadd.f32 %v395_v0, %v394_v53  ;;  %v424_v41 = vadd.f32 %v423_v1, %v422_v54  ;;  %v429_v16 = vadd.f32 %v428_v10, %v427_v2  ;;  %v374_v17 = vmul.f32 %v974_v33, %v974_v33  ;;  %v480_v0 = vld [vmem:[%s991_s8 + $0x8] sm:$0xff]  ;;  %v487_v37 = vld [vmem:[%s991_s8 + $0x40] sm:$0xff] }
  0x5a   : > { %v439_v55 = vmul.f32 0.0625, %v389_v34  ;;  %v443_v12 = vmul.f32 0.0625, %v417_v35  ;;  %v402_v18 = vrot.slane %v401_v13, 1  ;;  %v378_v19 = vmul.f32 %v977_v39, %v977_v39  ;;  %v483_v34 = vld [vmem:[%s991_s8 + $0x20] sm:$0xff]  ;;  %v484_v35 = vld [vmem:[%s991_s8 + $0x28] sm:$0xff] }
  0x5b   : > { %v440_v56 = vmul.f32 0.0625, %v396_v40  ;;  %v444_v15 = vmul.f32 0.0625, %v424_v41  ;;  %v382_v60 = vmul.f32 %v980_v11, %v980_v11  ;;  %v430_v23 = vrot.slane %v429_v16, 1  ;;  %v488_v41 = vld [vmem:[%s991_s8 + $0x48] sm:$0xff]  ;;  %v491_v10 = vld [vmem:[%s991_s8 + $0x60] sm:$0xff] }
  0x5c   : > { %v447_v57 = vadd.f32 %v443_v12, %v439_v55  ;;  %v404_v26 = vadd.f32 %v374_v17, %v370_v14  ;;  %v403_v28 = vadd.f32 %v402_v18, %v401_v13  ;;  %v492_v55 = vld [vmem:[%s991_s8 + $0x68] sm:$0xff]  ;;  %v495_v12 = vmul.f32 0.75, %v479_v62 }
  0x5d   : > { %v448_v22 = vadd.f32 %v444_v15, %v440_v56  ;;  %v432_v45 = vadd.f32 %v382_v60, %v378_v19  ;;  %v431_v30 = vadd.f32 %v430_v23, %v429_v16  ;;  %v496_v13 = vmul.f32 0.75, %v480_v0  ;;  %v482_v0 = vld [vmem:[%s991_s8 + $0x18] sm:$0xff] }
  0x5e   : > { %v451_v27 = vmul.f32 0.5, %v447_v57  ;;  %v405_v46 = vrot.slane %v404_v26, 4  ;;  %v441_v31 = vmul.f32 0.0625, %v403_v28  ;;  %v499_v56 = vmul.f32 0.75, %v483_v34 }
  0x5f   : > { %v452_v29 = vmul.f32 0.5, %v448_v22  ;;  %v433_v36 = vrot.slane %v432_v45, 4  ;;  %v445_v38 = vmul.f32 0.0625, %v431_v30  ;;  %v503_v15 = vmul.f32 0.75, %v487_v37 }
  0x60   : > { %v455_v48 = vadd.f32 0.001, %v451_v27  ;;  %v406_v42 = vadd.f32 %v405_v46, %v404_v26  ;;  %v500_v17 = vmul.f32 0.75, %v484_v35  ;;  %v504_v57 = vmul.f32 0.75, %v488_v41 }
  0x61   : > { %v456_v49 = vadd.f32 0.001, %v452_v29  ;;  %v434_v43 = vadd.f32 %v433_v36, %v432_v45  ;;  %v449_v44 = vadd.f32 %v445_v38, %v441_v31  ;;  %v507_v18 = vmul.f32 0.75, %v491_v10  ;;  %v481_v45 = vld [vmem:[%s991_s8 + $0x10] sm:$0xff] }
  0x62   : > { %720 = vrsqrt.f32 %v455_v48  ;;  %v407_v47 = vrot.slane %v406_v42, 2  ;;  %v508_v19 = vmul.f32 0.75, %v492_v55  ;;  %v489_v38 = vld [vmem:[%s991_s8 + $0x50] sm:$0xff] }
  0x63   : > { %722 = vrsqrt.f32 %v456_v49  ;;  %v435_v50 = vrot.slane %v434_v43, 2  ;;  %v453_v51 = vmul.f32 0.5, %v449_v44  ;;  %v485_v49 = vld [vmem:[%s991_s8 + $0x30] sm:$0xff] }
  0x64   : > { %v408_v52 = vadd.f32 %v407_v47, %v406_v42  ;;  %v493_v42 = vld [vmem:[%s991_s8 + $0x70] sm:$0xff] }
  0x65   : > { %v436_v53 = vadd.f32 %v435_v50, %v434_v43  ;;  %v457_v54 = vadd.f32 0.001, %v453_v51  ;;  %v509_v47 = vmul.f32 0.75, %v493_v42 }
  0x66   : > { %v409_v58 = vrot.slane %v408_v52, 1 }
  0x67   : > { %v437_v59 = vrot.slane %v436_v53, 1  ;;  %724 = vrsqrt.f32 %v457_v54 }
  0x68   : > { %v410_v61 = vadd.f32 %v409_v58, %v408_v52 }
  0x69   : > { %v438_v1 = vadd.f32 %v437_v59, %v436_v53 }
  0x6a   : > { %v442_v2 = vmul.f32 0.0625, %v410_v61 }
  0x6b   : > { %v446_v40 = vmul.f32 0.0625, %v438_v1  ;;  %v486_v1 = vld [vmem:[%s991_s8 + $0x38] sm:$0xff] }
  0x6d   : > { %v450_v14 = vadd.f32 %v446_v40, %v442_v2  ;;  %v494_v2 = vld [vmem:[%s991_s8 + $0x78] sm:$0xff] }
  0x6e   : > { %v510_v34 = vmul.f32 0.75, %v494_v2 }
  0x6f   : > { %v721_v16 = vpop.eup %720  ;;  %v454_v23 = vmul.f32 0.5, %v450_v14 }
  0x70   : > { %v723_v60 = vpop.eup %722  ;;  %v463_v22 = vmul.f32 %v721_v16, %v911_v3  ;;  %v467_v26 = vmul.f32 %v721_v16, %v914_v4  ;;  %v471_v27 = vmul.f32 %v721_v16, %v917_v5  ;;  %v475_v46 = vmul.f32 %v721_v16, %v920_v6 }
  0x71   : > { %v464_v28 = vmul.f32 %v723_v60, %v923_v7  ;;  %v468_v29 = vmul.f32 %v723_v60, %v926_v8  ;;  %v472_v30 = vmul.f32 %v723_v60, %v929_v9  ;;  %v458_v31 = vadd.f32 0.001, %v454_v23 }
  0x72   : > { %v511_v48 = vadd.f32 %v495_v12, %v463_v22  ;;  %v515_v36 = vadd.f32 %v499_v56, %v467_v26  ;;  %v519_v3 = vadd.f32 %v503_v15, %v471_v27  ;;  %v523_v44 = vadd.f32 %v507_v18, %v475_v46 }
  0x73   : > { %v512_v4 = vadd.f32 %v496_v13, %v464_v28  ;;  %v516_v43 = vadd.f32 %v500_v17, %v468_v29  ;;  %v520_v5 = vadd.f32 %v504_v57, %v472_v30  ;;  %726 = vrsqrt.f32 %v458_v31 }
  0x74   : > { %527 = vst [vmem:[%s1013_s9] sm:$0xff] %v511_v48  ;;  %531 = vst [vmem:[%s1013_s9 + $0x20] sm:$0xff] %v515_v36  ;;  %v476_v6 = vmul.f32 %v723_v60, %v932_v32  ;;  %v497_v7 = vmul.f32 0.75, %v481_v45  ;;  %v501_v8 = vmul.f32 0.75, %v485_v49  ;;  %v505_v9 = vmul.f32 0.75, %v489_v38  ;;  %v725_v50 = vpop.eup %724 }
  0x75   : > { %535 = vst [vmem:[%s1013_s9 + $0x40] sm:$0xff] %v519_v3  ;;  %528 = vst [vmem:[%s1013_s9 + $0x8] sm:$0xff] %v512_v4  ;;  %v465_v52 = vmul.f32 %v725_v50, %v951_v20  ;;  %v469_v32 = vmul.f32 %v725_v50, %v954_v21  ;;  %v473_v53 = vmul.f32 %v725_v50, %v957_v24  ;;  %v490_v20 = vld [vmem:[%s991_s8 + $0x58] sm:$0xff]  ;;  %v498_v21 = vmul.f32 0.75, %v482_v0 }
  0x76   : > { %532 = vst [vmem:[%s1013_s9 + $0x28] sm:$0xff] %v516_v43  ;;  %536 = vst [vmem:[%s1013_s9 + $0x48] sm:$0xff] %v520_v5  ;;  %v524_v51 = vadd.f32 %v508_v19, %v476_v6  ;;  %v477_v54 = vmul.f32 %v725_v50, %v960_v25  ;;  %v502_v24 = vmul.f32 0.75, %v486_v1  ;;  %v506_v25 = vmul.f32 0.75, %v490_v20 }
  0x77   : > { %539 = vst [vmem:[%s1013_s9 + $0x60] sm:$0xff] %v523_v44  ;;  %v513_v58 = vadd.f32 %v497_v7, %v465_v52  ;;  %v517_v59 = vadd.f32 %v501_v8, %v469_v32  ;;  %v521_v61 = vadd.f32 %v505_v9, %v473_v53 }
  0x78   : > { %540 = vst [vmem:[%s1013_s9 + $0x68] sm:$0xff] %v524_v51  ;;  %v525_v62 = vadd.f32 %v509_v47, %v477_v54 }
  0x79   : > { %529 = vst [vmem:[%s1013_s9 + $0x10] sm:$0xff] %v513_v58  ;;  %533 = vst [vmem:[%s1013_s9 + $0x30] sm:$0xff] %v517_v59 }
  0x7a   : > { %537 = vst [vmem:[%s1013_s9 + $0x50] sm:$0xff] %v521_v61  ;;  %541 = vst [vmem:[%s1013_s9 + $0x70] sm:$0xff] %v525_v62 }
  0x7b   : > { %v573_v56 = vld [vmem:[%s1013_s9 + $0x20] sm:$0xff] (%p801_p5) }
  0x7c   : > { %574 = vst [vmem:[%s552_s18 + $0x60] sm:$0xff] (%p801_p5), %v573_v56  ;;  %v581_v57 = vld [vmem:[%s1013_s9 + $0x40] sm:$0xff] (%p801_p5) }
  0x7d   : > { %v575_v15 = vld [vmem:[%s1013_s9 + $0x28] sm:$0xff] (%p801_p5)  ;;  %582 = vst [vmem:[%s552_s18 + $0xc0] sm:$0xff] (%p801_p5), %v581_v57 }
  0x7e   : > { %576 = vst [vmem:[%s552_s18 + $0x68] sm:$0xff] (%p801_p5), %v575_v15  ;;  %v583_v18 = vld [vmem:[%s1013_s9 + $0x48] sm:$0xff] (%p801_p5)  ;;  %v589_v22 = vld [vmem:[%s1013_s9 + $0x60] sm:$0xff] (%p801_p5) }
  0x7f   : > { %584 = vst [vmem:[%s552_s18 + $0xc8] sm:$0xff] (%p801_p5), %v583_v18  ;;  %v591_v23 = vld [vmem:[%s1013_s9 + $0x68] sm:$0xff] (%p801_p5)  ;;  %590 = vst [vmem:[%s552_s18 + $0x120] sm:$0xff] (%p801_p5), %v589_v22 }
  0x80   : > { %v727_v35 = vpop.eup %726  ;;  %v577_v16 = vld [vmem:[%s1013_s9 + $0x30] sm:$0xff] (%p801_p5)  ;;  %592 = vst [vmem:[%s552_s18 + $0x128] sm:$0xff] (%p801_p5), %v591_v23 }
  0x81   : > { %v466_v37 = vmul.f32 %v727_v35, %v971_v63  ;;  %v470_v40 = vmul.f32 %v727_v35, %v974_v33  ;;  %v474_v41 = vmul.f32 %v727_v35, %v977_v39  ;;  %v478_v10 = vmul.f32 %v727_v35, %v980_v11  ;;  %v565_v63 = vld [vmem:[%s1013_s9] sm:$0xff] (%p801_p5)  ;;  %v567_v33 = vld [vmem:[%s1013_s9 + $0x8] sm:$0xff] (%p801_p5)  ;;  %v569_v39 = vld [vmem:[%s1013_s9 + $0x10] sm:$0xff] (%p801_p5)  ;;  %578 = vst [vmem:[%s552_s18 + $0x70] sm:$0xff] (%p801_p5), %v577_v16 }
  0x82   : > { %549 = sbr.rel (!%p801_p5) target bundleno = 145 (0x91), region = 78  ;;  %566 = vst [vmem:[%s552_s18] sm:$0xff] (%p801_p5), %v565_v63  ;;  %568 = vst [vmem:[%s552_s18 + $0x8] sm:$0xff] (%p801_p5), %v567_v33  ;;  %v585_v19 = vld [vmem:[%s1013_s9 + $0x50] sm:$0xff] (%p801_p5) }
  0x83   : > { %v514_v55 = vadd.f32 %v498_v21, %v466_v37  ;;  %v518_v12 = vadd.f32 %v502_v24, %v470_v40  ;;  %v522_v13 = vadd.f32 %v506_v25, %v474_v41  ;;  %v526_v14 = vadd.f32 %v510_v34, %v478_v10  ;;  %570 = vst [vmem:[%s552_s18 + $0x10] sm:$0xff] (%p801_p5), %v569_v39  ;;  %v593_v26 = vld [vmem:[%s1013_s9 + $0x70] sm:$0xff] (%p801_p5) }
  0x84   : > { %586 = vst [vmem:[%s552_s18 + $0xd0] sm:$0xff] (%p801_p5), %v585_v19  ;;  %594 = vst [vmem:[%s552_s18 + $0x130] sm:$0xff] (%p801_p5), %v593_v26 }
  0x85   : > { %530 = vst [vmem:[%s1013_s9 + $0x18] sm:$0xff] %v514_v55  ;;  %534 = vst [vmem:[%s1013_s9 + $0x38] sm:$0xff] %v518_v12 }
  0x86   : > { %538 = vst [vmem:[%s1013_s9 + $0x58] sm:$0xff] %v522_v13  ;;  %542 = vst [vmem:[%s1013_s9 + $0x78] sm:$0xff] %v526_v14 }
  0x8c   : > { %v571_v11 = vld [vmem:[%s1013_s9 + $0x18] sm:$0xff] }
  0x8d   : > { %572 = vst [vmem:[%s552_s18 + $0x18] sm:$0xff] %v571_v11  ;;  %v579_v17 = vld [vmem:[%s1013_s9 + $0x38] sm:$0xff] }
  0x8e   : > { %580 = vst [vmem:[%s552_s18 + $0x78] sm:$0xff] %v579_v17  ;;  %v587_v60 = vld [vmem:[%s1013_s9 + $0x58] sm:$0xff] }
  0x8f   : > { %588 = vst [vmem:[%s552_s18 + $0xd8] sm:$0xff] %v587_v60  ;;  %v595_v27 = vld [vmem:[%s1013_s9 + $0x78] sm:$0xff] }
  0x90   : > { %596 = vst [vmem:[%s552_s18 + $0x138] sm:$0xff] %v595_v27 }
  0x91 PF: > { %p9_p10 = scmp.ge.s32.totalorder %s784_s13, 5   ;;  %s1082_s9 = smov %s746_s10 }
  0x92   : > { %s1083_s10 = smov %s795_s16  ;;  %s1084_s11 = smov %s784_s13 }
  0x93   :  { %11 = sbr.rel (!%p9_p10) target bundleno = 2 (0x2), region = 140 }

// kernel: ftdnn_forward.37
= control target key start
LH: loop header
LB: loop body
LE: loop exit
PB: predicated region body
PF: predicated region fallthrough
CT: control target
= control target key end

     0   :  { %s6954_s21 = smov 0   ;;  %s9108_s0 = inlined_call_operand.vmem [shape: f32[2,16,1536], index: 0, kind: input, shape index: {}]   ;;  %s9109_s1 = inlined_call_operand.vmem [shape: bf16[1536,160], index: 1, kind: input, shape index: {}]   ;;  %s9110_s2 = inlined_call_operand.vmem [shape: bf16[1536,160], index: 2, kind: input, shape index: {}]   ;;  %s9111_s3 = inlined_call_operand.vmem [shape: bf16[160,1536], index: 3, kind: input, shape index: {}]   ;;  %s9112_s4 = inlined_call_operand.vmem [shape: bf16[160,1536], index: 4, kind: input, shape index: {}]   ;;  %s9113_s5 = inlined_call_operand.vmem [shape: f32[1,1536], index: 5, kind: input, shape index: {}]   ;;  %s9114_s6 = inlined_call_operand.vmem [shape: f32[2,16,1536], index: 6, kind: output, shape index: {}]  }
   0x1 LB: > { %s5301_s22 = sadd.s32 4294967295, %s6916_s21   ;;  %p5305_p0 = scmp.ge.s32.totalorder %s6916_s21, 1  ;;  %s6916_s21 = sphi %s6954_s21, %s16_s21  }
   0x2   : > { %p212_p1 = scmp.lt.s32.totalorder %s6916_s21, 3 }
   0x4   : > { %p213_p2 = pnand %p5305_p0, %p212_p1 }
   0x5   : > { %p242_p3 = scmp.lt.s32.totalorder (!%p213_p2), %s5301_s22, 1 }
   0x6   : > { %216 = sbr.rel (%p213_p2) target bundleno = 1012 (0x3f4), region = 44 }
   0xb   : > { %v5974_v0 = vld [vmem:[%s9109_s1 + $0x74] ss:$8 sps:$4 sm:$0xff]   ;;  %v5978_v2 = vld [vmem:[%s9109_s1 + $0x70] ss:$8 sps:$4 sm:$0xff]   ;;  %v5980_v4 = vld [vmem:[%s9109_s1 + $0x64] ss:$8 sps:$4 sm:$0xff]  }
   0xc   : > { %v5976_v1 = vld [vmem:[%s9109_s1 + $0x174] ss:$8 sps:$4 sm:$0xff]   ;;  %1633 = vmatprep.subr.bf16.mxu0 %v5974_v0  ;;  %v5979_v3 = vld [vmem:[%s9109_s1 + $0x170] ss:$8 sps:$4 sm:$0xff]   ;;  %v5982_v5 = vld [vmem:[%s9109_s1 + $0x164] ss:$8 sps:$4 sm:$0xff]  }
   0xd   : > { %1676 = vmatprep.subr.bf16.mxu1 %v5976_v1  ;;  %1634 = vmatpush1.bf16.msra.mxu0 %v5978_v2  ;;  %v5984_v6 = vld [vmem:[%s9109_s1 + $0x60] ss:$8 sps:$4 sm:$0xff]   ;;  %v5986_v8 = vld [vmem:[%s9109_s1 + $0x54] ss:$8 sps:$4 sm:$0xff]   ;;  %v5990_v10 = vld [vmem:[%s9109_s1 + $0x50] ss:$8 sps:$4 sm:$0xff]  }
   0xe   : > { %1677 = vmatpush1.bf16.msra.mxu1 %v5979_v3  ;;  %1635 = vmatprep.subr.bf16.mxu0 %v5980_v4  ;;  %v5985_v7 = vld [vmem:[%s9109_s1 + $0x160] ss:$8 sps:$4 sm:$0xff]   ;;  %v5988_v9 = vld [vmem:[%s9109_s1 + $0x154] ss:$8 sps:$4 sm:$0xff]   ;;  %v5991_v11 = vld [vmem:[%s9109_s1 + $0x150] ss:$8 sps:$4 sm:$0xff]  }
   0xf   : > { %1678 = vmatprep.subr.bf16.mxu1 %v5982_v5  ;;  %v5992_v12 = vld [vmem:[%s9109_s1 + $0x44] ss:$8 sps:$4 sm:$0xff]   ;;  %v5996_v14 = vld [vmem:[%s9109_s1 + $0x40] ss:$8 sps:$4 sm:$0xff]   ;;  %v5998_v16 = vld [vmem:[%s9109_s1 + $0x34] ss:$8 sps:$4 sm:$0xff]  }
  0x10   : > { %v5994_v13 = vld [vmem:[%s9109_s1 + $0x144] ss:$8 sps:$4 sm:$0xff]   ;;  %v5997_v15 = vld [vmem:[%s9109_s1 + $0x140] ss:$8 sps:$4 sm:$0xff]   ;;  %v6000_v17 = vld [vmem:[%s9109_s1 + $0x134] ss:$8 sps:$4 sm:$0xff]  }
  0x11   : > { %1636 = vmatpush1.bf16.msra.mxu0 %v5984_v6  ;;  %v6002_v18 = vld [vmem:[%s9109_s1 + $0x30] ss:$8 sps:$4 sm:$0xff]   ;;  %v6004_v20 = vld [vmem:[%s9109_s1 + $0x24] ss:$8 sps:$4 sm:$0xff]   ;;  %v6008_v22 = vld [vmem:[%s9109_s1 + $0x20] ss:$8 sps:$4 sm:$0xff]  }
  0x12   : > { %1679 = vmatpush1.bf16.msra.mxu1 %v5985_v7  ;;  %1637 = vmatprep.subr.bf16.mxu0 %v5986_v8  ;;  %v6003_v19 = vld [vmem:[%s9109_s1 + $0x130] ss:$8 sps:$4 sm:$0xff]   ;;  %v6006_v21 = vld [vmem:[%s9109_s1 + $0x124] ss:$8 sps:$4 sm:$0xff]   ;;  %v6009_v23 = vld [vmem:[%s9109_s1 + $0x120] ss:$8 sps:$4 sm:$0xff]  }
  0x13   : > { %1680 = vmatprep.subr.bf16.mxu1 %v5988_v9  ;;  %v6010_v24 = vld [vmem:[%s9109_s1 + $0x14] ss:$8 sps:$4 sm:$0xff]   ;;  %v6014_v26 = vld [vmem:[%s9109_s1 + $0x10] ss:$8 sps:$4 sm:$0xff]   ;;  %v6016_v28 = vld [vmem:[%s9109_s1 + $0x4] ss:$8 sps:$4 sm:$0xff]  }
  0x14   : > { %v6012_v25 = vld [vmem:[%s9109_s1 + $0x114] ss:$8 sps:$4 sm:$0xff]   ;;  %v6015_v27 = vld [vmem:[%s9109_s1 + $0x110] ss:$8 sps:$4 sm:$0xff]   ;;  %v6018_v29 = vld [vmem:[%s9109_s1 + $0x104] ss:$8 sps:$4 sm:$0xff]  }
  0x15   : > { %1638 = vmatpush1.bf16.msra.mxu0 %v5990_v10  ;;  %v6020_v30 = vld [vmem:[%s9109_s1] ss:$8 sps:$4 sm:$0xff]   ;;  %v6022_v32 = vld [vmem:[%s9109_s1 + $0xf4] ss:$8 sps:$4 sm:$0xff]   ;;  %v6026_v34 = vld [vmem:[%s9109_s1 + $0xf0] ss:$8 sps:$4 sm:$0xff]  }
  0x16   : > { %1681 = vmatpush1.bf16.msra.mxu1 %v5991_v11  ;;  %1639 = vmatprep.subr.bf16.mxu0 %v5992_v12  ;;  %v6021_v31 = vld [vmem:[%s9109_s1 + $0x100] ss:$8 sps:$4 sm:$0xff]   ;;  %v6024_v33 = vld [vmem:[%s9109_s1 + $0x1f4] ss:$8 sps:$4 sm:$0xff]   ;;  %v6027_v35 = vld [vmem:[%s9109_s1 + $0x1f0] ss:$8 sps:$4 sm:$0xff]  }
  0x17   : > { %1682 = vmatprep.subr.bf16.mxu1 %v5994_v13  ;;  %s9118_s22 = smov (!%p242_p3, %s5301_s22), 1  ;;  %v6028_v36 = vld [vmem:[%s9109_s1 + $0xe4] ss:$8 sps:$4 sm:$0xff]   ;;  %v6032_v38 = vld [vmem:[%s9109_s1 + $0xe0] ss:$8 sps:$4 sm:$0xff]   ;;  %vm1895_vm0 = vcmask 1040384  }
  0x18   : > { %v6030_v37 = vld [vmem:[%s9109_s1 + $0x1e4] ss:$8 sps:$4 sm:$0xff]   ;;  %s5964_s11 = smul.u32 192, %s9118_s22  ;;  %v6033_v39 = vld [vmem:[%s9109_s1 + $0x1e0] ss:$8 sps:$4 sm:$0xff]   ;;  %vm3252_vm1 = vcmask 1046528  }
  0x19   : > { %1640 = vmatpush1.bf16.msra.mxu0 %v5996_v14  ;;  %v6034_v40 = vld [vmem:[%s9109_s1 + $0xd4] ss:$8 sps:$4 sm:$0xff]   ;;  %v6038_v42 = vld [vmem:[%s9109_s1 + $0xd0] ss:$8 sps:$4 sm:$0xff]   ;;  %v6040_v44 = vld [vmem:[%s9109_s1 + $0xc4] ss:$8 sps:$4 sm:$0xff]  }
  0x1a   : > { %1683 = vmatpush1.bf16.msra.mxu1 %v5997_v15  ;;  %1641 = vmatprep.subr.bf16.mxu0 %v5998_v16  ;;  %v6036_v41 = vld [vmem:[%s9109_s1 + $0x1d4] ss:$8 sps:$4 sm:$0xff]   ;;  %v6039_v43 = vld [vmem:[%s9109_s1 + $0x1d0] ss:$8 sps:$4 sm:$0xff]   ;;  %s7106_s26 = scalar_lea.vmem %s9108_s0, %s5964_s11  ;;  %v6042_v45 = vld [vmem:[%s9109_s1 + $0x1c4] ss:$8 sps:$4 sm:$0xff]   ;;  %s9044_s29 = scalar_lea.vmem %s9114_s6, %s5964_s11 }
  0x1b   : > { %1684 = vmatprep.subr.bf16.mxu1 %v6000_v17  ;;  %v254_v46 = vld [vmem:[%s7106_s26 + $0x8] sm:$0xff]  ;;  %v256_v48 = vld [vmem:[%s7106_s26 + $0x18] sm:$0xff]  ;;  %v253_v6 = vld [vmem:[%s7106_s26] sm:$0xff]  ;;  %vm3987_vm2 = vcmask 261120   ;;  %vm6918_vm3 = vmmov 1  }
  0x1c   : > { %v266_v47 = vld [vmem:[%s7106_s26 + $0x68] sm:$0xff]  ;;  %v268_v49 = vld [vmem:[%s7106_s26 + $0x78] sm:$0xff]  ;;  %v265_v7 = vld [vmem:[%s7106_s26 + $0x60] sm:$0xff] }
  0x1d   : > { %1642 = vmatpush1.bf16.msra.mxu0 %v6002_v18  ;;  %v6044_v50 = vld [vmem:[%s9109_s1 + $0xc0] ss:$8 sps:$4 sm:$0xff]   ;;  %v6046_v52 = vld [vmem:[%s9109_s1 + $0xb4] ss:$8 sps:$4 sm:$0xff]   ;;  %v7127_v53 = vpack.c.bf16 %v266_v47, %v254_v46  ;;  %v7129_v54 = vpack.c.bf16 %v268_v49, %v256_v48  ;;  %v6050_v56 = vld [vmem:[%s9109_s1 + $0xb0] ss:$8 sps:$4 sm:$0xff]   ;;  %v7188_v12 = vpack.c.bf16 %v265_v7, %v253_v6 }
  0x1e   : > { %1685 = vmatpush1.bf16.msra.mxu1 %v6003_v19  ;;  %1643 = vmatprep.subr.bf16.mxu0 %v6004_v20  ;;  %v6045_v51 = vld [vmem:[%s9109_s1 + $0x1c0] ss:$8 sps:$4 sm:$0xff]   ;;  %v6048_v55 = vld [vmem:[%s9109_s1 + $0x1b4] ss:$8 sps:$4 sm:$0xff]   ;;  %v6051_v57 = vld [vmem:[%s9109_s1 + $0x1b0] ss:$8 sps:$4 sm:$0xff]  }
  0x1f   : > { %1686 = vmatprep.subr.bf16.mxu1 %v6006_v21  ;;  %1665 = vmatprep.mubr.bf16.mxu0 %v7127_v53  ;;  %v6052_v58 = vld [vmem:[%s9109_s1 + $0xa4] ss:$8 sps:$4 sm:$0xff]   ;;  %v6056_v60 = vld [vmem:[%s9109_s1 + $0xa0] ss:$8 sps:$4 sm:$0xff]   ;;  %v6058_v62 = vld [vmem:[%s9109_s1 + $0x94] ss:$8 sps:$4 sm:$0xff]  }
  0x20   : > { %1708 = vmatprep.mubr.bf16.mxu1 %v7129_v54  ;;  %v6054_v59 = vld [vmem:[%s9109_s1 + $0x1a4] ss:$8 sps:$4 sm:$0xff]   ;;  %v6057_v61 = vld [vmem:[%s9109_s1 + $0x1a0] ss:$8 sps:$4 sm:$0xff]   ;;  %v6060_v63 = vld [vmem:[%s9109_s1 + $0x194] ss:$8 sps:$4 sm:$0xff]  }
  0x21   : > { %1644 = vmatpush1.bf16.msra.mxu0 %v6008_v22  ;;  %v6062_v0 = vld [vmem:[%s9109_s1 + $0x90] ss:$8 sps:$4 sm:$0xff]   ;;  %v6064_v2 = vld [vmem:[%s9109_s1 + $0x84] ss:$8 sps:$4 sm:$0xff]   ;;  %v6068_v4 = vld [vmem:[%s9109_s1 + $0x80] ss:$8 sps:$4 sm:$0xff]  }
  0x22   : > { %1687 = vmatpush1.bf16.msra.mxu1 %v6009_v23  ;;  %1645 = vmatprep.subr.bf16.mxu0 %v6010_v24  ;;  %v6063_v1 = vld [vmem:[%s9109_s1 + $0x190] ss:$8 sps:$4 sm:$0xff]   ;;  %v6066_v3 = vld [vmem:[%s9109_s1 + $0x184] ss:$8 sps:$4 sm:$0xff]   ;;  %v6069_v5 = vld [vmem:[%s9109_s1 + $0x180] ss:$8 sps:$4 sm:$0xff]  }
  0x23   : > { %1688 = vmatprep.subr.bf16.mxu1 %v6012_v25  ;;  %v255_v8 = vld [vmem:[%s7106_s26 + $0x10] sm:$0xff]  ;;  %v6078_v16 = vld [vmem:[%s9109_s1 + $0x264] ss:$8 sps:$4 sm:$0xff]   ;;  %v6076_v18 = vld [vmem:[%s9109_s1 + $0x260] ss:$8 sps:$4 sm:$0xff]  }
  0x24   : > { %v267_v9 = vld [vmem:[%s7106_s26 + $0x70] sm:$0xff]  ;;  %v6081_v17 = vld [vmem:[%s9109_s1 + $0x364] ss:$8 sps:$4 sm:$0xff]   ;;  %v6079_v19 = vld [vmem:[%s9109_s1 + $0x360] ss:$8 sps:$4 sm:$0xff]  }
  0x25   : > { %1646 = vmatpush1.bf16.msra.mxu0 %v6014_v26  ;;  %v6072_v10 = vld [vmem:[%s9109_s1 + $0x274] ss:$8 sps:$4 sm:$0xff]   ;;  %v7190_v13 = vpack.c.bf16 %v267_v9, %v255_v8  ;;  %v6070_v14 = vld [vmem:[%s9109_s1 + $0x270] ss:$8 sps:$4 sm:$0xff]   ;;  %v6090_v24 = vld [vmem:[%s9109_s1 + $0x244] ss:$8 sps:$4 sm:$0xff]  }
  0x26   : > { %1689 = vmatpush1.bf16.msra.mxu1 %v6015_v27  ;;  %1647 = vmatprep.subr.bf16.mxu0 %v6016_v28  ;;  %v6075_v11 = vld [vmem:[%s9109_s1 + $0x374] ss:$8 sps:$4 sm:$0xff]   ;;  %v6073_v15 = vld [vmem:[%s9109_s1 + $0x370] ss:$8 sps:$4 sm:$0xff]   ;;  %v6093_v25 = vld [vmem:[%s9109_s1 + $0x344] ss:$8 sps:$4 sm:$0xff]  }
  0x27   : > { %1690 = vmatprep.subr.bf16.mxu1 %v6018_v29  ;;  %v6084_v20 = vld [vmem:[%s9109_s1 + $0x254] ss:$8 sps:$4 sm:$0xff]   ;;  %v6082_v22 = vld [vmem:[%s9109_s1 + $0x250] ss:$8 sps:$4 sm:$0xff]   ;;  %v6088_v26 = vld [vmem:[%s9109_s1 + $0x240] ss:$8 sps:$4 sm:$0xff]  }
  0x28   : > { %v6087_v21 = vld [vmem:[%s9109_s1 + $0x354] ss:$8 sps:$4 sm:$0xff]   ;;  %v6085_v23 = vld [vmem:[%s9109_s1 + $0x350] ss:$8 sps:$4 sm:$0xff]   ;;  %v6091_v27 = vld [vmem:[%s9109_s1 + $0x340] ss:$8 sps:$4 sm:$0xff]  }
  0x29   : > { %1648 = vmatpush1.bf16.msra.mxu0 %v6020_v30  ;;  %v6096_v28 = vld [vmem:[%s9109_s1 + $0x234] ss:$8 sps:$4 sm:$0xff]   ;;  %v6094_v30 = vld [vmem:[%s9109_s1 + $0x230] ss:$8 sps:$4 sm:$0xff]   ;;  %v6112_v48 = vld [vmem:[%s9109_s1 + $0x200] ss:$8 sps:$4 sm:$0xff]  }
  0x2a   : > { %1691 = vmatpush1.bf16.msra.mxu1 %v6021_v31  ;;  %1649 = vmatprep.subr.bf16.mxu0 %v6022_v32  ;;  %v6099_v29 = vld [vmem:[%s9109_s1 + $0x334] ss:$8 sps:$4 sm:$0xff]   ;;  %v6097_v31 = vld [vmem:[%s9109_s1 + $0x330] ss:$8 sps:$4 sm:$0xff]   ;;  %v6102_v32 = vld [vmem:[%s9109_s1 + $0x224] ss:$8 sps:$4 sm:$0xff]  }
  0x2b   : > { %1692 = vmatprep.subr.bf16.mxu1 %v6024_v33  ;;  %v6105_v33 = vld [vmem:[%s9109_s1 + $0x324] ss:$8 sps:$4 sm:$0xff]   ;;  %v272_v46 = vld [vmem:[%s7106_s26 + $0x98] sm:$0xff]  ;;  %v6115_v49 = vld [vmem:[%s9109_s1 + $0x300] ss:$8 sps:$4 sm:$0xff]  }
  0x2c   : > { %v6142_v6 = vld [vmem:[%s9109_s1 + $0x2b0] ss:$8 sps:$4 sm:$0xff]   ;;  %v6150_v8 = vld [vmem:[%s9109_s1 + $0x2a4] ss:$8 sps:$4 sm:$0xff]   ;;  %vm8342_vm4 = vmpackc.low %vm3252_vm1, %vm6918_vm3 }
  0x2d   : > { %1650 = vmatpush2.bf16.msra.mxu0 %v6026_v34  ;;  %v6100_v34 = vld [vmem:[%s9109_s1 + $0x220] ss:$8 sps:$4 sm:$0xff]   ;;  %v6145_v7 = vld [vmem:[%s9109_s1 + $0x3b0] ss:$8 sps:$4 sm:$0xff]   ;;  %v6153_v9 = vld [vmem:[%s9109_s1 + $0x3a4] ss:$8 sps:$4 sm:$0xff]  }
  0x2e   : > { %1693 = vmatpush2.bf16.msra.mxu1 %v6027_v35  ;;  %1651 = vmatprep.subr.bf16.mxu0 %v6028_v36  ;;  %v6103_v35 = vld [vmem:[%s9109_s1 + $0x320] ss:$8 sps:$4 sm:$0xff]   ;;  %v6108_v36 = vld [vmem:[%s9109_s1 + $0x214] ss:$8 sps:$4 sm:$0xff]  }
  0x2f   : > { %1694 = vmatprep.subr.bf16.mxu1 %v6030_v37  ;;  %v6111_v37 = vld [vmem:[%s9109_s1 + $0x314] ss:$8 sps:$4 sm:$0xff]  }
  0x31   : > { %1652 = vmatpush2.bf16.msra.mxu0 %v6032_v38  ;;  %v6106_v38 = vld [vmem:[%s9109_s1 + $0x210] ss:$8 sps:$4 sm:$0xff]  }
  0x32   : > { %1695 = vmatpush2.bf16.msra.mxu1 %v6033_v39  ;;  %1653 = vmatprep.subr.bf16.mxu0 %v6034_v40  ;;  %v6109_v39 = vld [vmem:[%s9109_s1 + $0x310] ss:$8 sps:$4 sm:$0xff]   ;;  %v258_v40 = vld [vmem:[%s7106_s26 + $0x28] sm:$0xff] }
  0x33   : > { %1696 = vmatprep.subr.bf16.mxu1 %v6036_v41  ;;  %v270_v41 = vld [vmem:[%s7106_s26 + $0x88] sm:$0xff] }
  0x35   : > { %1654 = vmatpush2.bf16.msra.mxu0 %v6038_v42  ;;  %v260_v42 = vld [vmem:[%s7106_s26 + $0x38] sm:$0xff] }
  0x36   : > { %1697 = vmatpush2.bf16.msra.mxu1 %v6039_v43  ;;  %1655 = vmatprep.subr.bf16.mxu0 %v6040_v44  ;;  %v6114_v43 = vld [vmem:[%s9109_s1 + $0x204] ss:$8 sps:$4 sm:$0xff]   ;;  %v7284_v47 = vpack.c.bf16 %v272_v46, %v260_v42  ;;  %v276_v42 = vld [vmem:[%s7106_s26 + $0xb8] sm:$0xff] }
  0x37   : > { %1698 = vmatprep.subr.bf16.mxu1 %v6042_v45  ;;  %v6117_v44 = vld [vmem:[%s9109_s1 + $0x304] ss:$8 sps:$4 sm:$0xff]   ;;  %v7281_v45 = vpack.c.bf16 %v270_v41, %v258_v40  ;;  %v264_v41 = vld [vmem:[%s7106_s26 + $0x58] sm:$0xff] }
  0x38   : > { %v7442_v46 = vpack.c.bf16 %v276_v42, %v264_v41  ;;  %v6256_v41 = vld [vmem:[%s9109_s1 + $0x480] ss:$8 sps:$4 sm:$0xff]  }
  0x39   : > { %1656 = vmatpush2.bf16.msra.mxu0 %v6044_v50  ;;  %v6120_v50 = vld [vmem:[%s9109_s1 + $0x2f4] ss:$8 sps:$4 sm:$0xff]   ;;  %v6259_v42 = vld [vmem:[%s9109_s1 + $0x580] ss:$8 sps:$4 sm:$0xff]  }
  0x3a   : > { %1699 = vmatpush2.bf16.msra.mxu1 %v6045_v51  ;;  %1657 = vmatprep.subr.bf16.mxu0 %v6046_v52  ;;  %v6123_v51 = vld [vmem:[%s9109_s1 + $0x3f4] ss:$8 sps:$4 sm:$0xff]   ;;  %v6118_v52 = vld [vmem:[%s9109_s1 + $0x2f0] ss:$8 sps:$4 sm:$0xff]  }
  0x3b   : > { %1700 = vmatprep.subr.bf16.mxu1 %v6048_v55  ;;  %v6121_v55 = vld [vmem:[%s9109_s1 + $0x3f0] ss:$8 sps:$4 sm:$0xff]  }
  0x3d   : > { %1658 = vmatpush2.bf16.msra.mxu0 %v6050_v56  ;;  %v6126_v56 = vld [vmem:[%s9109_s1 + $0x2e4] ss:$8 sps:$4 sm:$0xff]  }
  0x3e   : > { %1701 = vmatpush2.bf16.msra.mxu1 %v6051_v57  ;;  %1659 = vmatprep.subr.bf16.mxu0 %v6052_v58  ;;  %v6129_v57 = vld [vmem:[%s9109_s1 + $0x3e4] ss:$8 sps:$4 sm:$0xff]   ;;  %v6124_v58 = vld [vmem:[%s9109_s1 + $0x2e0] ss:$8 sps:$4 sm:$0xff]  }
  0x3f   : > { %1702 = vmatprep.subr.bf16.mxu1 %v6054_v59  ;;  %v6127_v59 = vld [vmem:[%s9109_s1 + $0x3e0] ss:$8 sps:$4 sm:$0xff]  }
  0x41   : > { %1660 = vmatpush2.bf16.msra.mxu0 %v6056_v60  ;;  %v6132_v60 = vld [vmem:[%s9109_s1 + $0x2d4] ss:$8 sps:$4 sm:$0xff]  }
  0x42   : > { %1703 = vmatpush2.bf16.msra.mxu1 %v6057_v61  ;;  %1661 = vmatprep.subr.bf16.mxu0 %v6058_v62  ;;  %v6135_v61 = vld [vmem:[%s9109_s1 + $0x3d4] ss:$8 sps:$4 sm:$0xff]   ;;  %v6130_v62 = vld [vmem:[%s9109_s1 + $0x2d0] ss:$8 sps:$4 sm:$0xff]  }
  0x43   : > { %1704 = vmatprep.subr.bf16.mxu1 %v6060_v63  ;;  %v6133_v63 = vld [vmem:[%s9109_s1 + $0x3d0] ss:$8 sps:$4 sm:$0xff]  }
  0x45   : > { %1662 = vmatpush2.bf16.msra.mxu0 %v6062_v0  ;;  %v6138_v0 = vld [vmem:[%s9109_s1 + $0x2c4] ss:$8 sps:$4 sm:$0xff]  }
  0x46   : > { %1705 = vmatpush2.bf16.msra.mxu1 %v6063_v1  ;;  %1663 = vmatprep.subr.bf16.mxu0 %v6064_v2  ;;  %v6141_v1 = vld [vmem:[%s9109_s1 + $0x3c4] ss:$8 sps:$4 sm:$0xff]   ;;  %v6136_v2 = vld [vmem:[%s9109_s1 + $0x2c0] ss:$8 sps:$4 sm:$0xff]  }
  0x47   : > { %1706 = vmatprep.subr.bf16.mxu1 %v6066_v3  ;;  %v6139_v3 = vld [vmem:[%s9109_s1 + $0x3c0] ss:$8 sps:$4 sm:$0xff]  }
  0x49   : > { %1664 = vmatpush2.bf16.msra.mxu0 %v6068_v4  ;;  %v6144_v4 = vld [vmem:[%s9109_s1 + $0x2b4] ss:$8 sps:$4 sm:$0xff]  }
  0x4a   : > { %1707 = vmatpush2.bf16.msra.mxu1 %v6069_v5  ;;  %1719 = vmatprep.subr.bf16.mxu0 %v6072_v10  ;;  %v6147_v5 = vld [vmem:[%s9109_s1 + $0x3b4] ss:$8 sps:$4 sm:$0xff]   ;;  %v6148_v10 = vld [vmem:[%s9109_s1 + $0x2a0] ss:$8 sps:$4 sm:$0xff]  }
  0x4b   : > { %1762 = vmatprep.subr.bf16.mxu1 %v6075_v11  ;;  %v6151_v11 = vld [vmem:[%s9109_s1 + $0x3a0] ss:$8 sps:$4 sm:$0xff]  }
  0x4c   : > { %1666 = vmatmul.mubr.bf16.vlgmr.msra.gmra.mxu0 %v7188_v12 }
  0x4d   : > { %1709 = vmatmul.mubr.bf16.vlgmr.msra.gmra.mxu1 %v7190_v13  ;;  %1720 = vmatpush1.bf16.msra.mxu0 %v6070_v14  ;;  %v6156_v14 = vld [vmem:[%s9109_s1 + $0x294] ss:$8 sps:$4 sm:$0xff]  }
  0x4e   : > { %1763 = vmatpush1.bf16.msra.mxu1 %v6073_v15  ;;  %1721 = vmatprep.subr.bf16.mxu0 %v6078_v16  ;;  %v6159_v15 = vld [vmem:[%s9109_s1 + $0x394] ss:$8 sps:$4 sm:$0xff]   ;;  %v6154_v16 = vld [vmem:[%s9109_s1 + $0x290] ss:$8 sps:$4 sm:$0xff]  }
  0x4f   : > { %1764 = vmatprep.subr.bf16.mxu1 %v6081_v17  ;;  %1751 = vmatprep.mubr.bf16.mxu0 %v7281_v45  ;;  %v6157_v17 = vld [vmem:[%s9109_s1 + $0x390] ss:$8 sps:$4 sm:$0xff]  }
  0x50   : > { %1794 = vmatprep.mubr.bf16.mxu1 %v7284_v47 }
  0x51   : > { %1722 = vmatpush1.bf16.msra.mxu0 %v6076_v18  ;;  %v6162_v18 = vld [vmem:[%s9109_s1 + $0x284] ss:$8 sps:$4 sm:$0xff]  }
  0x52   : > { %1765 = vmatpush1.bf16.msra.mxu1 %v6079_v19  ;;  %1723 = vmatprep.subr.bf16.mxu0 %v6084_v20  ;;  %v6165_v19 = vld [vmem:[%s9109_s1 + $0x384] ss:$8 sps:$4 sm:$0xff]   ;;  %v6160_v20 = vld [vmem:[%s9109_s1 + $0x280] ss:$8 sps:$4 sm:$0xff]  }
  0x53   : > { %1766 = vmatprep.subr.bf16.mxu1 %v6087_v21  ;;  %v6163_v21 = vld [vmem:[%s9109_s1 + $0x380] ss:$8 sps:$4 sm:$0xff]  }
  0x55   : > { %1724 = vmatpush1.bf16.msra.mxu0 %v6082_v22  ;;  %v257_v22 = vld [vmem:[%s7106_s26 + $0x20] sm:$0xff] }
  0x56   : > { %1767 = vmatpush1.bf16.msra.mxu1 %v6085_v23  ;;  %1725 = vmatprep.subr.bf16.mxu0 %v6090_v24  ;;  %v269_v23 = vld [vmem:[%s7106_s26 + $0x80] sm:$0xff]  ;;  %v259_v24 = vld [vmem:[%s7106_s26 + $0x30] sm:$0xff] }
  0x57   : > { %1768 = vmatprep.subr.bf16.mxu1 %v6093_v25  ;;  %v271_v25 = vld [vmem:[%s7106_s26 + $0x90] sm:$0xff] }
  0x59   : > { %1726 = vmatpush1.bf16.msra.mxu0 %v6088_v26  ;;  %v6168_v26 = vld [vmem:[%s9109_s1 + $0x474] ss:$8 sps:$4 sm:$0xff]  }
  0x5a   : > { %1769 = vmatpush1.bf16.msra.mxu1 %v6091_v27  ;;  %1727 = vmatprep.subr.bf16.mxu0 %v6096_v28  ;;  %v6171_v27 = vld [vmem:[%s9109_s1 + $0x574] ss:$8 sps:$4 sm:$0xff]   ;;  %v7400_v28 = vpack.c.bf16 %v269_v23, %v257_v22  ;;  %v6232_v22 = vld [vmem:[%s9109_s1 + $0x4c0] ss:$8 sps:$4 sm:$0xff]  }
  0x5b   : > { %1770 = vmatprep.subr.bf16.mxu1 %v6099_v29  ;;  %v7402_v29 = vpack.c.bf16 %v271_v25, %v259_v24  ;;  %v6235_v23 = vld [vmem:[%s9109_s1 + $0x5c0] ss:$8 sps:$4 sm:$0xff]   ;;  %v6240_v24 = vld [vmem:[%s9109_s1 + $0x4b4] ss:$8 sps:$4 sm:$0xff]  }
  0x5c   : > { %v6243_v25 = vld [vmem:[%s9109_s1 + $0x5b4] ss:$8 sps:$4 sm:$0xff]  }
  0x5d   : > { %1728 = vmatpush1.bf16.msra.mxu0 %v6094_v30  ;;  %v6166_v30 = vld [vmem:[%s9109_s1 + $0x470] ss:$8 sps:$4 sm:$0xff]  }
  0x5e   : > { %1771 = vmatpush1.bf16.msra.mxu1 %v6097_v31  ;;  %1729 = vmatprep.subr.bf16.mxu0 %v6102_v32  ;;  %v6169_v31 = vld [vmem:[%s9109_s1 + $0x570] ss:$8 sps:$4 sm:$0xff]   ;;  %v6174_v32 = vld [vmem:[%s9109_s1 + $0x464] ss:$8 sps:$4 sm:$0xff]  }
  0x5f   : > { %1772 = vmatprep.subr.bf16.mxu1 %v6105_v33  ;;  %v6177_v33 = vld [vmem:[%s9109_s1 + $0x564] ss:$8 sps:$4 sm:$0xff]  }
  0x61   : > { %1730 = vmatpush1.bf16.msra.mxu0 %v6100_v34  ;;  %v6172_v34 = vld [vmem:[%s9109_s1 + $0x460] ss:$8 sps:$4 sm:$0xff]  }
  0x62   : > { %1773 = vmatpush1.bf16.msra.mxu1 %v6103_v35  ;;  %1731 = vmatprep.subr.bf16.mxu0 %v6108_v36  ;;  %v6175_v35 = vld [vmem:[%s9109_s1 + $0x560] ss:$8 sps:$4 sm:$0xff]   ;;  %v6180_v36 = vld [vmem:[%s9109_s1 + $0x454] ss:$8 sps:$4 sm:$0xff]  }
  0x63   : > { %1774 = vmatprep.subr.bf16.mxu1 %v6111_v37  ;;  %v6183_v37 = vld [vmem:[%s9109_s1 + $0x554] ss:$8 sps:$4 sm:$0xff]  }
  0x65   : > { %1732 = vmatpush1.bf16.msra.mxu0 %v6106_v38  ;;  %v262_v38 = vld [vmem:[%s7106_s26 + $0x48] sm:$0xff] }
  0x66   : > { %1775 = vmatpush1.bf16.msra.mxu1 %v6109_v39  ;;  %1733 = vmatprep.subr.bf16.mxu0 %v6114_v43  ;;  %v274_v39 = vld [vmem:[%s7106_s26 + $0xa8] sm:$0xff]  ;;  %v6178_v43 = vld [vmem:[%s9109_s1 + $0x450] ss:$8 sps:$4 sm:$0xff]  }
  0x67   : > { %1776 = vmatprep.subr.bf16.mxu1 %v6117_v44  ;;  %v7432_v40 = vpack.c.bf16 %v274_v39, %v262_v38  ;;  %v6181_v44 = vld [vmem:[%s9109_s1 + $0x550] ss:$8 sps:$4 sm:$0xff]   ;;  %v6258_v38 = vld [vmem:[%s9109_s1 + $0x484] ss:$8 sps:$4 sm:$0xff]  }
  0x68   : > { %v6261_v39 = vld [vmem:[%s9109_s1 + $0x584] ss:$8 sps:$4 sm:$0xff]  }
  0x69   : > { %1734 = vmatpush1.bf16.msra.mxu0 %v6112_v48  ;;  %v6186_v48 = vld [vmem:[%s9109_s1 + $0x444] ss:$8 sps:$4 sm:$0xff]  }
  0x6a   : > { %1777 = vmatpush1.bf16.msra.mxu1 %v6115_v49  ;;  %1735 = vmatprep.subr.bf16.mxu0 %v6120_v50  ;;  %v6189_v49 = vld [vmem:[%s9109_s1 + $0x544] ss:$8 sps:$4 sm:$0xff]   ;;  %v6184_v50 = vld [vmem:[%s9109_s1 + $0x440] ss:$8 sps:$4 sm:$0xff]  }
  0x6b   : > { %1778 = vmatprep.subr.bf16.mxu1 %v6123_v51  ;;  %v6187_v51 = vld [vmem:[%s9109_s1 + $0x540] ss:$8 sps:$4 sm:$0xff]  }
  0x6d   : > { %1736 = vmatpush2.bf16.msra.mxu0 %v6118_v52  ;;  %v6192_v52 = vld [vmem:[%s9109_s1 + $0x434] ss:$8 sps:$4 sm:$0xff]  }
  0x6e   : > { %1779 = vmatpush2.bf16.msra.mxu1 %v6121_v55  ;;  %1737 = vmatprep.subr.bf16.mxu0 %v6126_v56  ;;  %v6195_v55 = vld [vmem:[%s9109_s1 + $0x534] ss:$8 sps:$4 sm:$0xff]   ;;  %v6190_v56 = vld [vmem:[%s9109_s1 + $0x430] ss:$8 sps:$4 sm:$0xff]  }
  0x6f   : > { %1780 = vmatprep.subr.bf16.mxu1 %v6129_v57  ;;  %v6193_v57 = vld [vmem:[%s9109_s1 + $0x530] ss:$8 sps:$4 sm:$0xff]  }
  0x71   : > { %1738 = vmatpush2.bf16.msra.mxu0 %v6124_v58  ;;  %v6198_v58 = vld [vmem:[%s9109_s1 + $0x424] ss:$8 sps:$4 sm:$0xff]  }
  0x72   : > { %1781 = vmatpush2.bf16.msra.mxu1 %v6127_v59  ;;  %1739 = vmatprep.subr.bf16.mxu0 %v6132_v60  ;;  %v6201_v59 = vld [vmem:[%s9109_s1 + $0x524] ss:$8 sps:$4 sm:$0xff]   ;;  %v6196_v60 = vld [vmem:[%s9109_s1 + $0x420] ss:$8 sps:$4 sm:$0xff]  }
  0x73   : > { %1782 = vmatprep.subr.bf16.mxu1 %v6135_v61  ;;  %v6199_v61 = vld [vmem:[%s9109_s1 + $0x520] ss:$8 sps:$4 sm:$0xff]  }
  0x75   : > { %1740 = vmatpush2.bf16.msra.mxu0 %v6130_v62  ;;  %v6204_v62 = vld [vmem:[%s9109_s1 + $0x414] ss:$8 sps:$4 sm:$0xff]  }
  0x76   : > { %1783 = vmatpush2.bf16.msra.mxu1 %v6133_v63  ;;  %1741 = vmatprep.subr.bf16.mxu0 %v6138_v0  ;;  %v6207_v63 = vld [vmem:[%s9109_s1 + $0x514] ss:$8 sps:$4 sm:$0xff]   ;;  %v6202_v0 = vld [vmem:[%s9109_s1 + $0x410] ss:$8 sps:$4 sm:$0xff]  }
  0x77   : > { %1784 = vmatprep.subr.bf16.mxu1 %v6141_v1  ;;  %v6205_v1 = vld [vmem:[%s9109_s1 + $0x510] ss:$8 sps:$4 sm:$0xff]  }
  0x79   : > { %1742 = vmatpush2.bf16.msra.mxu0 %v6136_v2  ;;  %v6210_v2 = vld [vmem:[%s9109_s1 + $0x404] ss:$8 sps:$4 sm:$0xff]  }
  0x7a   : > { %1785 = vmatpush2.bf16.msra.mxu1 %v6139_v3  ;;  %1743 = vmatprep.subr.bf16.mxu0 %v6144_v4  ;;  %v6213_v3 = vld [vmem:[%s9109_s1 + $0x504] ss:$8 sps:$4 sm:$0xff]   ;;  %v6208_v4 = vld [vmem:[%s9109_s1 + $0x400] ss:$8 sps:$4 sm:$0xff]  }
  0x7b   : > { %1786 = vmatprep.subr.bf16.mxu1 %v6147_v5  ;;  %v6211_v5 = vld [vmem:[%s9109_s1 + $0x500] ss:$8 sps:$4 sm:$0xff]  }
  0x7d   : > { %1744 = vmatpush2.bf16.msra.mxu0 %v6142_v6  ;;  %v6216_v6 = vld [vmem:[%s9109_s1 + $0x4f4] ss:$8 sps:$4 sm:$0xff]  }
  0x7e   : > { %1787 = vmatpush2.bf16.msra.mxu1 %v6145_v7  ;;  %1745 = vmatprep.subr.bf16.mxu0 %v6150_v8  ;;  %v6219_v7 = vld [vmem:[%s9109_s1 + $0x5f4] ss:$8 sps:$4 sm:$0xff]   ;;  %v6214_v8 = vld [vmem:[%s9109_s1 + $0x4f0] ss:$8 sps:$4 sm:$0xff]  }
  0x7f   : > { %1788 = vmatprep.subr.bf16.mxu1 %v6153_v9  ;;  %v6217_v9 = vld [vmem:[%s9109_s1 + $0x5f0] ss:$8 sps:$4 sm:$0xff]  }
  0x81   : > { %1746 = vmatpush2.bf16.msra.mxu0 %v6148_v10  ;;  %v6222_v10 = vld [vmem:[%s9109_s1 + $0x4e4] ss:$8 sps:$4 sm:$0xff]  }
  0x82   : > { %1789 = vmatpush2.bf16.msra.mxu1 %v6151_v11  ;;  %1747 = vmatprep.subr.bf16.mxu0 %v6156_v14  ;;  %v6225_v11 = vld [vmem:[%s9109_s1 + $0x5e4] ss:$8 sps:$4 sm:$0xff]   ;;  %v6220_v14 = vld [vmem:[%s9109_s1 + $0x4e0] ss:$8 sps:$4 sm:$0xff]  }
  0x83   : > { %1790 = vmatprep.subr.bf16.mxu1 %v6159_v15  ;;  %v6223_v15 = vld [vmem:[%s9109_s1 + $0x5e0] ss:$8 sps:$4 sm:$0xff]  }
  0x85   : > { %1748 = vmatpush2.bf16.msra.mxu0 %v6154_v16  ;;  %v6228_v16 = vld [vmem:[%s9109_s1 + $0x4d4] ss:$8 sps:$4 sm:$0xff]  }
  0x86   : > { %1791 = vmatpush2.bf16.msra.mxu1 %v6157_v17  ;;  %1749 = vmatprep.subr.bf16.mxu0 %v6162_v18  ;;  %v6231_v17 = vld [vmem:[%s9109_s1 + $0x5d4] ss:$8 sps:$4 sm:$0xff]   ;;  %v6226_v18 = vld [vmem:[%s9109_s1 + $0x4d0] ss:$8 sps:$4 sm:$0xff]  }
  0x87   : > { %1792 = vmatprep.subr.bf16.mxu1 %v6165_v19  ;;  %v6229_v19 = vld [vmem:[%s9109_s1 + $0x5d0] ss:$8 sps:$4 sm:$0xff]  }
  0x89   : > { %1750 = vmatpush2.bf16.msra.mxu0 %v6160_v20  ;;  %v6234_v20 = vld [vmem:[%s9109_s1 + $0x4c4] ss:$8 sps:$4 sm:$0xff]  }
  0x8a   : > { %1793 = vmatpush2.bf16.msra.mxu1 %v6163_v21  ;;  %1805 = vmatprep.subr.bf16.mxu0 %v6168_v26  ;;  %v6237_v21 = vld [vmem:[%s9109_s1 + $0x5c4] ss:$8 sps:$4 sm:$0xff]   ;;  %v6238_v26 = vld [vmem:[%s9109_s1 + $0x4b0] ss:$8 sps:$4 sm:$0xff]  }
  0x8b   : > { %1848 = vmatprep.subr.bf16.mxu1 %v6171_v27  ;;  %v6241_v27 = vld [vmem:[%s9109_s1 + $0x5b0] ss:$8 sps:$4 sm:$0xff]  }
  0x8c   : > { %1752 = vmatmul.mubr.bf16.vlgmr.msra.gmra.mxu0 %v7400_v28 }
  0x8d   : > { %1795 = vmatmul.mubr.bf16.vlgmr.msra.gmra.mxu1 %v7402_v29  ;;  %1806 = vmatpush1.bf16.msra.mxu0 %v6166_v30  ;;  %v6246_v30 = vld [vmem:[%s9109_s1 + $0x4a4] ss:$8 sps:$4 sm:$0xff]  }
  0x8e   : > { %1849 = vmatpush1.bf16.msra.mxu1 %v6169_v31  ;;  %1807 = vmatprep.subr.bf16.mxu0 %v6174_v32  ;;  %v6249_v31 = vld [vmem:[%s9109_s1 + $0x5a4] ss:$8 sps:$4 sm:$0xff]   ;;  %v6244_v32 = vld [vmem:[%s9109_s1 + $0x4a0] ss:$8 sps:$4 sm:$0xff]  }
  0x8f   : > { %1850 = vmatprep.subr.bf16.mxu1 %v6177_v33  ;;  %1837 = vmatprep.mubr.bf16.mxu0 %v7432_v40  ;;  %v6247_v33 = vld [vmem:[%s9109_s1 + $0x5a0] ss:$8 sps:$4 sm:$0xff]  }
  0x90   : > { %1880 = vmatprep.mubr.bf16.mxu1 %v7442_v46 }
  0x91   : > { %1808 = vmatpush1.bf16.msra.mxu0 %v6172_v34  ;;  %v6252_v34 = vld [vmem:[%s9109_s1 + $0x494] ss:$8 sps:$4 sm:$0xff]  }
  0x92   : > { %1851 = vmatpush1.bf16.msra.mxu1 %v6175_v35  ;;  %1809 = vmatprep.subr.bf16.mxu0 %v6180_v36  ;;  %v6255_v35 = vld [vmem:[%s9109_s1 + $0x594] ss:$8 sps:$4 sm:$0xff]   ;;  %v6250_v36 = vld [vmem:[%s9109_s1 + $0x490] ss:$8 sps:$4 sm:$0xff]  }
  0x93   : > { %1852 = vmatprep.subr.bf16.mxu1 %v6183_v37  ;;  %v6253_v37 = vld [vmem:[%s9109_s1 + $0x590] ss:$8 sps:$4 sm:$0xff]  }
  0x95   : > { %1810 = vmatpush1.bf16.msra.mxu0 %v6178_v43  ;;  %v261_v43 = vld [vmem:[%s7106_s26 + $0x40] sm:$0xff] }
  0x96   : > { %1853 = vmatpush1.bf16.msra.mxu1 %v6181_v44  ;;  %1811 = vmatprep.subr.bf16.mxu0 %v6186_v48  ;;  %v273_v44 = vld [vmem:[%s7106_s26 + $0xa0] sm:$0xff]  ;;  %v263_v48 = vld [vmem:[%s7106_s26 + $0x50] sm:$0xff] }
  0x97   : > { %1854 = vmatprep.subr.bf16.mxu1 %v6189_v49  ;;  %v275_v49 = vld [vmem:[%s7106_s26 + $0xb0] sm:$0xff] }
  0x99   : > { %1812 = vmatpush1.bf16.msra.mxu0 %v6184_v50  ;;  %v6264_v50 = vld [vmem:[%s9110_s2 + $0x74] ss:$8 sps:$4 sm:$0xff]  }
  0x9a   : > { %1855 = vmatpush1.bf16.msra.mxu1 %v6187_v51  ;;  %1813 = vmatprep.subr.bf16.mxu0 %v6192_v52  ;;  %v6267_v51 = vld [vmem:[%s9110_s2 + $0x174] ss:$8 sps:$4 sm:$0xff]   ;;  %v7612_v52 = vpack.c.bf16 %v273_v44, %v261_v43  ;;  %v6334_v43 = vld [vmem:[%s9110_s2 + $0xb0] ss:$8 sps:$4 sm:$0xff]  }
  0x9b   : > { %1856 = vmatprep.subr.bf16.mxu1 %v6195_v55  ;;  %v7614_v55 = vpack.c.bf16 %v275_v49, %v263_v48  ;;  %v6337_v44 = vld [vmem:[%s9110_s2 + $0x1b0] ss:$8 sps:$4 sm:$0xff]   ;;  %v6342_v48 = vld [vmem:[%s9110_s2 + $0xa4] ss:$8 sps:$4 sm:$0xff]  }
  0x9c   : > { %v6345_v49 = vld [vmem:[%s9110_s2 + $0x1a4] ss:$8 sps:$4 sm:$0xff]  }
  0x9d   : > { %1814 = vmatpush1.bf16.msra.mxu0 %v6190_v56  ;;  %v6262_v56 = vld [vmem:[%s9110_s2 + $0x70] ss:$8 sps:$4 sm:$0xff]  }
  0x9e   : > { %1857 = vmatpush1.bf16.msra.mxu1 %v6193_v57  ;;  %1815 = vmatprep.subr.bf16.mxu0 %v6198_v58  ;;  %v6265_v57 = vld [vmem:[%s9110_s2 + $0x170] ss:$8 sps:$4 sm:$0xff]   ;;  %v6270_v58 = vld [vmem:[%s9110_s2 + $0x64] ss:$8 sps:$4 sm:$0xff]  }
  0x9f   : > { %1858 = vmatprep.subr.bf16.mxu1 %v6201_v59  ;;  %v6273_v59 = vld [vmem:[%s9110_s2 + $0x164] ss:$8 sps:$4 sm:$0xff]  }
  0xa1   : > { %1816 = vmatpush1.bf16.msra.mxu0 %v6196_v60  ;;  %v6268_v60 = vld [vmem:[%s9110_s2 + $0x60] ss:$8 sps:$4 sm:$0xff]  }
  0xa2   : > { %1859 = vmatpush1.bf16.msra.mxu1 %v6199_v61  ;;  %1817 = vmatprep.subr.bf16.mxu0 %v6204_v62  ;;  %v6271_v61 = vld [vmem:[%s9110_s2 + $0x160] ss:$8 sps:$4 sm:$0xff]   ;;  %v6276_v62 = vld [vmem:[%s9110_s2 + $0x54] ss:$8 sps:$4 sm:$0xff]  }
  0xa3   : > { %1860 = vmatprep.subr.bf16.mxu1 %v6207_v63  ;;  %v6279_v63 = vld [vmem:[%s9110_s2 + $0x154] ss:$8 sps:$4 sm:$0xff]  }
  0xa5   : > { %1818 = vmatpush1.bf16.msra.mxu0 %v6202_v0  ;;  %v6274_v0 = vld [vmem:[%s9110_s2 + $0x50] ss:$8 sps:$4 sm:$0xff]  }
  0xa6   : > { %1861 = vmatpush1.bf16.msra.mxu1 %v6205_v1  ;;  %1819 = vmatprep.subr.bf16.mxu0 %v6210_v2  ;;  %v6277_v1 = vld [vmem:[%s9110_s2 + $0x150] ss:$8 sps:$4 sm:$0xff]   ;;  %v6282_v2 = vld [vmem:[%s9110_s2 + $0x44] ss:$8 sps:$4 sm:$0xff]  }
  0xa7   : > { %1862 = vmatprep.subr.bf16.mxu1 %v6213_v3  ;;  %v6283_v3 = vld [vmem:[%s9110_s2 + $0x140] ss:$8 sps:$4 sm:$0xff]  }
  0xa9   : > { %1820 = vmatpush1.bf16.msra.mxu0 %v6208_v4  ;;  %v6288_v4 = vld [vmem:[%s9110_s2 + $0x34] ss:$8 sps:$4 sm:$0xff]  }
  0xaa   : > { %1863 = vmatpush1.bf16.msra.mxu1 %v6211_v5  ;;  %1821 = vmatprep.subr.bf16.mxu0 %v6216_v6  ;;  %v6291_v5 = vld [vmem:[%s9110_s2 + $0x134] ss:$8 sps:$4 sm:$0xff]   ;;  %v6286_v6 = vld [vmem:[%s9110_s2 + $0x30] ss:$8 sps:$4 sm:$0xff]  }
  0xab   : > { %1864 = vmatprep.subr.bf16.mxu1 %v6219_v7  ;;  %v6289_v7 = vld [vmem:[%s9110_s2 + $0x130] ss:$8 sps:$4 sm:$0xff]  }
  0xad   : > { %1822 = vmatpush2.bf16.msra.mxu0 %v6214_v8  ;;  %v6294_v8 = vld [vmem:[%s9110_s2 + $0x24] ss:$8 sps:$4 sm:$0xff]  }
  0xae   : > { %1865 = vmatpush2.bf16.msra.mxu1 %v6217_v9  ;;  %1823 = vmatprep.subr.bf16.mxu0 %v6222_v10  ;;  %v6297_v9 = vld [vmem:[%s9110_s2 + $0x124] ss:$8 sps:$4 sm:$0xff]   ;;  %v6292_v10 = vld [vmem:[%s9110_s2 + $0x20] ss:$8 sps:$4 sm:$0xff]  }
  0xaf   : > { %1866 = vmatprep.subr.bf16.mxu1 %v6225_v11  ;;  %v6295_v11 = vld [vmem:[%s9110_s2 + $0x120] ss:$8 sps:$4 sm:$0xff]  }
  0xb1   : > { %1824 = vmatpush2.bf16.msra.mxu0 %v6220_v14  ;;  %v6300_v14 = vld [vmem:[%s9110_s2 + $0x14] ss:$8 sps:$4 sm:$0xff]  }
  0xb2   : > { %1867 = vmatpush2.bf16.msra.mxu1 %v6223_v15  ;;  %1825 = vmatprep.subr.bf16.mxu0 %v6228_v16  ;;  %v6303_v15 = vld [vmem:[%s9110_s2 + $0x114] ss:$8 sps:$4 sm:$0xff]   ;;  %v6298_v16 = vld [vmem:[%s9110_s2 + $0x10] ss:$8 sps:$4 sm:$0xff]  }
  0xb3   : > { %1868 = vmatprep.subr.bf16.mxu1 %v6231_v17  ;;  %v6301_v17 = vld [vmem:[%s9110_s2 + $0x110] ss:$8 sps:$4 sm:$0xff]  }
  0xb5   : > { %1826 = vmatpush2.bf16.msra.mxu0 %v6226_v18  ;;  %v6306_v18 = vld [vmem:[%s9110_s2 + $0x4] ss:$8 sps:$4 sm:$0xff]  }
  0xb6   : > { %1869 = vmatpush2.bf16.msra.mxu1 %v6229_v19  ;;  %1827 = vmatprep.subr.bf16.mxu0 %v6234_v20  ;;  %v6309_v19 = vld [vmem:[%s9110_s2 + $0x104] ss:$8 sps:$4 sm:$0xff]   ;;  %v6304_v20 = vld [vmem:[%s9110_s2] ss:$8 sps:$4 sm:$0xff]  }
  0xb7   : > { %1870 = vmatprep.subr.bf16.mxu1 %v6237_v21  ;;  %v6307_v21 = vld [vmem:[%s9110_s2 + $0x100] ss:$8 sps:$4 sm:$0xff]  }
  0xb9   : > { %1828 = vmatpush2.bf16.msra.mxu0 %v6232_v22  ;;  %v6312_v22 = vld [vmem:[%s9110_s2 + $0xf4] ss:$8 sps:$4 sm:$0xff]  }
  0xba   : > { %1871 = vmatpush2.bf16.msra.mxu1 %v6235_v23  ;;  %1829 = vmatprep.subr.bf16.mxu0 %v6240_v24  ;;  %v6315_v23 = vld [vmem:[%s9110_s2 + $0x1f4] ss:$8 sps:$4 sm:$0xff]   ;;  %v6310_v24 = vld [vmem:[%s9110_s2 + $0xf0] ss:$8 sps:$4 sm:$0xff]  }
  0xbb   : > { %1872 = vmatprep.subr.bf16.mxu1 %v6243_v25  ;;  %v6313_v25 = vld [vmem:[%s9110_s2 + $0x1f0] ss:$8 sps:$4 sm:$0xff]  }
  0xbd   : > { %1830 = vmatpush2.bf16.msra.mxu0 %v6238_v26  ;;  %v6318_v26 = vld [vmem:[%s9110_s2 + $0xe4] ss:$8 sps:$4 sm:$0xff]  }
  0xbe   : > { %1873 = vmatpush2.bf16.msra.mxu1 %v6241_v27  ;;  %1831 = vmatprep.subr.bf16.mxu0 %v6246_v30  ;;  %v6321_v27 = vld [vmem:[%s9110_s2 + $0x1e4] ss:$8 sps:$4 sm:$0xff]   ;;  %v6316_v30 = vld [vmem:[%s9110_s2 + $0xe0] ss:$8 sps:$4 sm:$0xff]  }
  0xbf   : > { %1874 = vmatprep.subr.bf16.mxu1 %v6249_v31  ;;  %v6319_v31 = vld [vmem:[%s9110_s2 + $0x1e0] ss:$8 sps:$4 sm:$0xff]  }
  0xc1   : > { %1832 = vmatpush2.bf16.msra.mxu0 %v6244_v32  ;;  %v6324_v32 = vld [vmem:[%s9110_s2 + $0xd4] ss:$8 sps:$4 sm:$0xff]  }
  0xc2   : > { %1875 = vmatpush2.bf16.msra.mxu1 %v6247_v33  ;;  %1833 = vmatprep.subr.bf16.mxu0 %v6252_v34  ;;  %v6327_v33 = vld [vmem:[%s9110_s2 + $0x1d4] ss:$8 sps:$4 sm:$0xff]   ;;  %v6322_v34 = vld [vmem:[%s9110_s2 + $0xd0] ss:$8 sps:$4 sm:$0xff]  }
  0xc3   : > { %1876 = vmatprep.subr.bf16.mxu1 %v6255_v35  ;;  %v6325_v35 = vld [vmem:[%s9110_s2 + $0x1d0] ss:$8 sps:$4 sm:$0xff]  }
  0xc5   : > { %1834 = vmatpush2.bf16.msra.mxu0 %v6250_v36  ;;  %v6330_v36 = vld [vmem:[%s9110_s2 + $0xc4] ss:$8 sps:$4 sm:$0xff]  }
  0xc6   : > { %1877 = vmatpush2.bf16.msra.mxu1 %v6253_v37  ;;  %1835 = vmatprep.subr.bf16.mxu0 %v6258_v38  ;;  %v6333_v37 = vld [vmem:[%s9110_s2 + $0x1c4] ss:$8 sps:$4 sm:$0xff]   ;;  %v6328_v38 = vld [vmem:[%s9110_s2 + $0xc0] ss:$8 sps:$4 sm:$0xff]  }
  0xc7   : > { %1878 = vmatprep.subr.bf16.mxu1 %v6261_v39  ;;  %v6331_v39 = vld [vmem:[%s9110_s2 + $0x1c0] ss:$8 sps:$4 sm:$0xff]  }
  0xc9   : > { %1836 = vmatpush2.bf16.msra.mxu0 %v6256_v41  ;;  %v6336_v41 = vld [vmem:[%s9110_s2 + $0xb4] ss:$8 sps:$4 sm:$0xff]  }
  0xca   : > { %1879 = vmatpush2.bf16.msra.mxu1 %v6259_v42  ;;  %2868 = vmatprep.subr.bf16.mxu0 %v6264_v50  ;;  %v6339_v42 = vld [vmem:[%s9110_s2 + $0x1b4] ss:$8 sps:$4 sm:$0xff]   ;;  %v6340_v50 = vld [vmem:[%s9110_s2 + $0xa0] ss:$8 sps:$4 sm:$0xff]  }
  0xcb   : > { %2911 = vmatprep.subr.bf16.mxu1 %v6267_v51  ;;  %v6343_v51 = vld [vmem:[%s9110_s2 + $0x1a0] ss:$8 sps:$4 sm:$0xff]  }
  0xcc   : > { %1838 = vmatmul.mubr.bf16.vlgmr.msra.gmra.mxu0 %v7612_v52 }
  0xcd   : > { %1881 = vmatmul.mubr.bf16.vlgmr.msra.gmra.mxu1 %v7614_v55  ;;  %2869 = vmatpush1.bf16.msra.mxu0 %v6262_v56  ;;  %v6348_v56 = vld [vmem:[%s9110_s2 + $0x94] ss:$8 sps:$4 sm:$0xff]  }
  0xce   : > { %2912 = vmatpush1.bf16.msra.mxu1 %v6265_v57  ;;  %2870 = vmatprep.subr.bf16.mxu0 %v6270_v58  ;;  %v6351_v57 = vld [vmem:[%s9110_s2 + $0x194] ss:$8 sps:$4 sm:$0xff]   ;;  %v6346_v58 = vld [vmem:[%s9110_s2 + $0x90] ss:$8 sps:$4 sm:$0xff]  }
  0xcf   : > { %2913 = vmatprep.subr.bf16.mxu1 %v6273_v59  ;;  %2900 = vmatprep.mubr.bf16.mxu0 %v7127_v53  ;;  %v6285_v53 = vld [vmem:[%s9110_s2 + $0x144] ss:$8 sps:$4 sm:$0xff]   ;;  %v6349_v59 = vld [vmem:[%s9110_s2 + $0x190] ss:$8 sps:$4 sm:$0xff]  }
  0xd0   : > { %2943 = vmatprep.mubr.bf16.mxu1 %v7129_v54  ;;  %v6280_v54 = vld [vmem:[%s9110_s2 + $0x40] ss:$8 sps:$4 sm:$0xff]  }
  0xd1   : > { %2871 = vmatpush1.bf16.msra.mxu0 %v6268_v60  ;;  %v6354_v60 = vld [vmem:[%s9110_s2 + $0x84] ss:$8 sps:$4 sm:$0xff]  }
  0xd2   : > { %2914 = vmatpush1.bf16.msra.mxu1 %v6271_v61  ;;  %2872 = vmatprep.subr.bf16.mxu0 %v6276_v62  ;;  %v6357_v61 = vld [vmem:[%s9110_s2 + $0x184] ss:$8 sps:$4 sm:$0xff]   ;;  %v6352_v62 = vld [vmem:[%s9110_s2 + $0x80] ss:$8 sps:$4 sm:$0xff]  }
  0xd3   : > { %2915 = vmatprep.subr.bf16.mxu1 %v6279_v63  ;;  %v6355_v63 = vld [vmem:[%s9110_s2 + $0x180] ss:$8 sps:$4 sm:$0xff]  }
  0xd5   : > { %2873 = vmatpush1.bf16.msra.mxu0 %v6274_v0  ;;  %v6360_v0 = vld [vmem:[%s9110_s2 + $0x274] ss:$8 sps:$4 sm:$0xff]  }
  0xd6   : > { %2916 = vmatpush1.bf16.msra.mxu1 %v6277_v1  ;;  %2874 = vmatprep.subr.bf16.mxu0 %v6282_v2  ;;  %v6363_v1 = vld [vmem:[%s9110_s2 + $0x374] ss:$8 sps:$4 sm:$0xff]   ;;  %v6358_v2 = vld [vmem:[%s9110_s2 + $0x270] ss:$8 sps:$4 sm:$0xff]  }
  0xd7   : > { %2917 = vmatprep.subr.bf16.mxu1 %v6285_v53  ;;  %v6361_v53 = vld [vmem:[%s9110_s2 + $0x370] ss:$8 sps:$4 sm:$0xff]  }
  0xd9   : > { %2875 = vmatpush1.bf16.msra.mxu0 %v6280_v54  ;;  %v6366_v54 = vld [vmem:[%s9110_s2 + $0x264] ss:$8 sps:$4 sm:$0xff]  }
  0xda   : > { %2918 = vmatpush1.bf16.msra.mxu1 %v6283_v3  ;;  %2876 = vmatprep.subr.bf16.mxu0 %v6288_v4  ;;  %v6369_v3 = vld [vmem:[%s9110_s2 + $0x364] ss:$8 sps:$4 sm:$0xff]   ;;  %v6364_v4 = vld [vmem:[%s9110_s2 + $0x260] ss:$8 sps:$4 sm:$0xff]  }
  0xdb   : > { %2919 = vmatprep.subr.bf16.mxu1 %v6291_v5  ;;  %v6367_v5 = vld [vmem:[%s9110_s2 + $0x360] ss:$8 sps:$4 sm:$0xff]  }
  0xdd   : > { %2877 = vmatpush1.bf16.msra.mxu0 %v6286_v6  ;;  %v6372_v6 = vld [vmem:[%s9110_s2 + $0x254] ss:$8 sps:$4 sm:$0xff]  }
  0xde   : > { %2920 = vmatpush1.bf16.msra.mxu1 %v6289_v7  ;;  %2878 = vmatprep.subr.bf16.mxu0 %v6294_v8  ;;  %v6373_v7 = vld [vmem:[%s9110_s2 + $0x350] ss:$8 sps:$4 sm:$0xff]   ;;  %v6378_v8 = vld [vmem:[%s9110_s2 + $0x244] ss:$8 sps:$4 sm:$0xff]  }
  0xdf   : > { %2921 = vmatprep.subr.bf16.mxu1 %v6297_v9  ;;  %v6381_v9 = vld [vmem:[%s9110_s2 + $0x344] ss:$8 sps:$4 sm:$0xff]  }
  0xe1   : > { %2879 = vmatpush1.bf16.msra.mxu0 %v6292_v10  ;;  %v6376_v10 = vld [vmem:[%s9110_s2 + $0x240] ss:$8 sps:$4 sm:$0xff]  }
  0xe2   : > { %2922 = vmatpush1.bf16.msra.mxu1 %v6295_v11  ;;  %2880 = vmatprep.subr.bf16.mxu0 %v6300_v14  ;;  %v6387_v11 = vld [vmem:[%s9110_s2 + $0x334] ss:$8 sps:$4 sm:$0xff]   ;;  %v6382_v14 = vld [vmem:[%s9110_s2 + $0x230] ss:$8 sps:$4 sm:$0xff]  }
  0xe3   : > { %2923 = vmatprep.subr.bf16.mxu1 %v6303_v15  ;;  %v6385_v15 = vld [vmem:[%s9110_s2 + $0x330] ss:$8 sps:$4 sm:$0xff]  }
  0xe5   : > { %2881 = vmatpush1.bf16.msra.mxu0 %v6298_v16  ;;  %v6390_v16 = vld [vmem:[%s9110_s2 + $0x224] ss:$8 sps:$4 sm:$0xff]  }
  0xe6   : > { %2924 = vmatpush1.bf16.msra.mxu1 %v6301_v17  ;;  %2882 = vmatprep.subr.bf16.mxu0 %v6306_v18  ;;  %v6393_v17 = vld [vmem:[%s9110_s2 + $0x324] ss:$8 sps:$4 sm:$0xff]   ;;  %v6388_v18 = vld [vmem:[%s9110_s2 + $0x220] ss:$8 sps:$4 sm:$0xff]  }
  0xe7   : > { %2925 = vmatprep.subr.bf16.mxu1 %v6309_v19  ;;  %v6391_v19 = vld [vmem:[%s9110_s2 + $0x320] ss:$8 sps:$4 sm:$0xff]  }
  0xe9   : > { %2883 = vmatpush1.bf16.msra.mxu0 %v6304_v20  ;;  %v6396_v20 = vld [vmem:[%s9110_s2 + $0x214] ss:$8 sps:$4 sm:$0xff]  }
  0xea   : > { %2926 = vmatpush1.bf16.msra.mxu1 %v6307_v21  ;;  %2884 = vmatprep.subr.bf16.mxu0 %v6312_v22  ;;  %v6399_v21 = vld [vmem:[%s9110_s2 + $0x314] ss:$8 sps:$4 sm:$0xff]   ;;  %v6394_v22 = vld [vmem:[%s9110_s2 + $0x210] ss:$8 sps:$4 sm:$0xff]  }
  0xeb   : > { %2927 = vmatprep.subr.bf16.mxu1 %v6315_v23  ;;  %v6397_v23 = vld [vmem:[%s9110_s2 + $0x310] ss:$8 sps:$4 sm:$0xff]  }
  0xed   : > { %2885 = vmatpush2.bf16.msra.mxu0 %v6310_v24  ;;  %v6402_v24 = vld [vmem:[%s9110_s2 + $0x204] ss:$8 sps:$4 sm:$0xff]  }
  0xee   : > { %2928 = vmatpush2.bf16.msra.mxu1 %v6313_v25  ;;  %2886 = vmatprep.subr.bf16.mxu0 %v6318_v26  ;;  %v6405_v25 = vld [vmem:[%s9110_s2 + $0x304] ss:$8 sps:$4 sm:$0xff]   ;;  %v6400_v26 = vld [vmem:[%s9110_s2 + $0x200] ss:$8 sps:$4 sm:$0xff]  }
  0xef   : > { %2929 = vmatprep.subr.bf16.mxu1 %v6321_v27  ;;  %v6403_v27 = vld [vmem:[%s9110_s2 + $0x300] ss:$8 sps:$4 sm:$0xff]  }
  0xf1   : > { %2887 = vmatpush2.bf16.msra.mxu0 %v6316_v30  ;;  %v6408_v30 = vld [vmem:[%s9110_s2 + $0x2f4] ss:$8 sps:$4 sm:$0xff]  }
  0xf2   : > { %2930 = vmatpush2.bf16.msra.mxu1 %v6319_v31  ;;  %2888 = vmatprep.subr.bf16.mxu0 %v6324_v32  ;;  %v6411_v31 = vld [vmem:[%s9110_s2 + $0x3f4] ss:$8 sps:$4 sm:$0xff]   ;;  %v6406_v32 = vld [vmem:[%s9110_s2 + $0x2f0] ss:$8 sps:$4 sm:$0xff]  }
  0xf3   : > { %2931 = vmatprep.subr.bf16.mxu1 %v6327_v33  ;;  %v6409_v33 = vld [vmem:[%s9110_s2 + $0x3f0] ss:$8 sps:$4 sm:$0xff]  }
  0xf5   : > { %2889 = vmatpush2.bf16.msra.mxu0 %v6322_v34  ;;  %v6414_v34 = vld [vmem:[%s9110_s2 + $0x2e4] ss:$8 sps:$4 sm:$0xff]  }
  0xf6   : > { %2932 = vmatpush2.bf16.msra.mxu1 %v6325_v35  ;;  %2890 = vmatprep.subr.bf16.mxu0 %v6330_v36  ;;  %v6417_v35 = vld [vmem:[%s9110_s2 + $0x3e4] ss:$8 sps:$4 sm:$0xff]   ;;  %v6412_v36 = vld [vmem:[%s9110_s2 + $0x2e0] ss:$8 sps:$4 sm:$0xff]  }
  0xf7   : > { %2933 = vmatprep.subr.bf16.mxu1 %v6333_v37  ;;  %v6415_v37 = vld [vmem:[%s9110_s2 + $0x3e0] ss:$8 sps:$4 sm:$0xff]  }
  0xf9   : > { %2891 = vmatpush2.bf16.msra.mxu0 %v6328_v38  ;;  %v6420_v38 = vld [vmem:[%s9110_s2 + $0x2d4] ss:$8 sps:$4 sm:$0xff]  }
  0xfa   : > { %2934 = vmatpush2.bf16.msra.mxu1 %v6331_v39  ;;  %2892 = vmatprep.subr.bf16.mxu0 %v6336_v41  ;;  %v6423_v39 = vld [vmem:[%s9110_s2 + $0x3d4] ss:$8 sps:$4 sm:$0xff]   ;;  %v6418_v41 = vld [vmem:[%s9110_s2 + $0x2d0] ss:$8 sps:$4 sm:$0xff]  }
  0xfb   : > { %2935 = vmatprep.subr.bf16.mxu1 %v6339_v42  ;;  %v6421_v42 = vld [vmem:[%s9110_s2 + $0x3d0] ss:$8 sps:$4 sm:$0xff]  }
  0xfd   : > { %2893 = vmatpush2.bf16.msra.mxu0 %v6334_v43  ;;  %v6426_v43 = vld [vmem:[%s9110_s2 + $0x2c4] ss:$8 sps:$4 sm:$0xff]  }
  0xfe   : > { %2936 = vmatpush2.bf16.msra.mxu1 %v6337_v44  ;;  %2894 = vmatprep.subr.bf16.mxu0 %v6342_v48  ;;  %v6429_v44 = vld [vmem:[%s9110_s2 + $0x3c4] ss:$8 sps:$4 sm:$0xff]   ;;  %v6424_v48 = vld [vmem:[%s9110_s2 + $0x2c0] ss:$8 sps:$4 sm:$0xff]  }
  0xff   : > { %2937 = vmatprep.subr.bf16.mxu1 %v6345_v49  ;;  %v6427_v49 = vld [vmem:[%s9110_s2 + $0x3c0] ss:$8 sps:$4 sm:$0xff]  }
 0x101   : > { %2895 = vmatpush2.bf16.msra.mxu0 %v6340_v50  ;;  %v6432_v50 = vld [vmem:[%s9110_s2 + $0x2b4] ss:$8 sps:$4 sm:$0xff]  }
 0x102   : > { %2938 = vmatpush2.bf16.msra.mxu1 %v6343_v51  ;;  %2896 = vmatprep.subr.bf16.mxu0 %v6348_v56  ;;  %v6435_v51 = vld [vmem:[%s9110_s2 + $0x3b4] ss:$8 sps:$4 sm:$0xff]   ;;  %v6430_v56 = vld [vmem:[%s9110_s2 + $0x2b0] ss:$8 sps:$4 sm:$0xff]  }
 0x103   : > { %2939 = vmatprep.subr.bf16.mxu1 %v6351_v57  ;;  %v6433_v57 = vld [vmem:[%s9110_s2 + $0x3b0] ss:$8 sps:$4 sm:$0xff]  }
 0x105   : > { %2897 = vmatpush2.bf16.msra.mxu0 %v6346_v58  ;;  %v6438_v58 = vld [vmem:[%s9110_s2 + $0x2a4] ss:$8 sps:$4 sm:$0xff]  }
 0x106   : > { %2940 = vmatpush2.bf16.msra.mxu1 %v6349_v59  ;;  %2898 = vmatprep.subr.bf16.mxu0 %v6354_v60  ;;  %v6441_v59 = vld [vmem:[%s9110_s2 + $0x3a4] ss:$8 sps:$4 sm:$0xff]   ;;  %v6436_v60 = vld [vmem:[%s9110_s2 + $0x2a0] ss:$8 sps:$4 sm:$0xff]  }
 0x107   : > { %2941 = vmatprep.subr.bf16.mxu1 %v6357_v61  ;;  %v6439_v61 = vld [vmem:[%s9110_s2 + $0x3a0] ss:$8 sps:$4 sm:$0xff]  }
 0x109   : > { %2899 = vmatpush2.bf16.msra.mxu0 %v6352_v62  ;;  %v6444_v62 = vld [vmem:[%s9110_s2 + $0x294] ss:$8 sps:$4 sm:$0xff]  }
 0x10a   : > { %2942 = vmatpush2.bf16.msra.mxu1 %v6355_v63  ;;  %2954 = vmatprep.subr.bf16.mxu0 %v6360_v0  ;;  %v6447_v63 = vld [vmem:[%s9110_s2 + $0x394] ss:$8 sps:$4 sm:$0xff]   ;;  %v6442_v0 = vld [vmem:[%s9110_s2 + $0x290] ss:$8 sps:$4 sm:$0xff]  }
 0x10b   : > { %2997 = vmatprep.subr.bf16.mxu1 %v6363_v1  ;;  %v6445_v1 = vld [vmem:[%s9110_s2 + $0x390] ss:$8 sps:$4 sm:$0xff]  }
 0x10c   : > { %2901 = vmatmul.mubr.bf16.vlgmr.msra.gmra.mxu0 %v7188_v12  ;;  %v6375_v12 = vld [vmem:[%s9110_s2 + $0x354] ss:$8 sps:$4 sm:$0xff]  }
 0x10d   : > { %2944 = vmatmul.mubr.bf16.vlgmr.msra.gmra.mxu1 %v7190_v13  ;;  %2955 = vmatpush1.bf16.msra.mxu0 %v6358_v2  ;;  %v6370_v13 = vld [vmem:[%s9110_s2 + $0x250] ss:$8 sps:$4 sm:$0xff]   ;;  %v6450_v2 = vld [vmem:[%s9110_s2 + $0x284] ss:$8 sps:$4 sm:$0xff]  }
 0x10e   : > { %2998 = vmatpush1.bf16.msra.mxu1 %v6361_v53  ;;  %2956 = vmatprep.subr.bf16.mxu0 %v6366_v54  ;;  %v6453_v53 = vld [vmem:[%s9110_s2 + $0x384] ss:$8 sps:$4 sm:$0xff]   ;;  %v6448_v54 = vld [vmem:[%s9110_s2 + $0x280] ss:$8 sps:$4 sm:$0xff]  }
 0x10f   : > { %2999 = vmatprep.subr.bf16.mxu1 %v6369_v3  ;;  %2986 = vmatprep.mubr.bf16.mxu0 %v7281_v45  ;;  %v6379_v45 = vld [vmem:[%s9110_s2 + $0x340] ss:$8 sps:$4 sm:$0xff]  }
 0x110   : > { %3029 = vmatprep.mubr.bf16.mxu1 %v7284_v47  ;;  %v6384_v47 = vld [vmem:[%s9110_s2 + $0x234] ss:$8 sps:$4 sm:$0xff]   ;;  %v6451_v3 = vld [vmem:[%s9110_s2 + $0x380] ss:$8 sps:$4 sm:$0xff]  }
 0x111   : > { %2957 = vmatpush1.bf16.msra.mxu0 %v6364_v4  ;;  %v6456_v4 = vld [vmem:[%s9110_s2 + $0x474] ss:$8 sps:$4 sm:$0xff]  }
 0x112   : > { %3000 = vmatpush1.bf16.msra.mxu1 %v6367_v5  ;;  %2958 = vmatprep.subr.bf16.mxu0 %v6372_v6  ;;  %v6459_v5 = vld [vmem:[%s9110_s2 + $0x574] ss:$8 sps:$4 sm:$0xff]   ;;  %v6454_v6 = vld [vmem:[%s9110_s2 + $0x470] ss:$8 sps:$4 sm:$0xff]  }
 0x113   : > { %3001 = vmatprep.subr.bf16.mxu1 %v6375_v12  ;;  %v6457_v12 = vld [vmem:[%s9110_s2 + $0x570] ss:$8 sps:$4 sm:$0xff]  }
 0x115   : > { %2959 = vmatpush1.bf16.msra.mxu0 %v6370_v13  ;;  %v6462_v13 = vld [vmem:[%s9110_s2 + $0x464] ss:$8 sps:$4 sm:$0xff]  }
 0x116   : > { %3002 = vmatpush1.bf16.msra.mxu1 %v6373_v7  ;;  %2960 = vmatprep.subr.bf16.mxu0 %v6378_v8  ;;  %v6465_v7 = vld [vmem:[%s9110_s2 + $0x564] ss:$8 sps:$4 sm:$0xff]   ;;  %v6460_v8 = vld [vmem:[%s9110_s2 + $0x460] ss:$8 sps:$4 sm:$0xff]  }
 0x117   : > { %3003 = vmatprep.subr.bf16.mxu1 %v6381_v9  ;;  %v6463_v9 = vld [vmem:[%s9110_s2 + $0x560] ss:$8 sps:$4 sm:$0xff]  }
 0x119   : > { %2961 = vmatpush1.bf16.msra.mxu0 %v6376_v10  ;;  %v6468_v10 = vld [vmem:[%s9110_s2 + $0x454] ss:$8 sps:$4 sm:$0xff]  }
 0x11a   : > { %3004 = vmatpush1.bf16.msra.mxu1 %v6379_v45  ;;  %2962 = vmatprep.subr.bf16.mxu0 %v6384_v47  ;;  %v6471_v45 = vld [vmem:[%s9110_s2 + $0x554] ss:$8 sps:$4 sm:$0xff]   ;;  %v6466_v47 = vld [vmem:[%s9110_s2 + $0x450] ss:$8 sps:$4 sm:$0xff]  }
 0x11b   : > { %3005 = vmatprep.subr.bf16.mxu1 %v6387_v11  ;;  %v6477_v11 = vld [vmem:[%s9110_s2 + $0x544] ss:$8 sps:$4 sm:$0xff]  }
 0x11d   : > { %2963 = vmatpush1.bf16.msra.mxu0 %v6382_v14  ;;  %v6472_v14 = vld [vmem:[%s9110_s2 + $0x440] ss:$8 sps:$4 sm:$0xff]  }
 0x11e   : > { %3006 = vmatpush1.bf16.msra.mxu1 %v6385_v15  ;;  %2964 = vmatprep.subr.bf16.mxu0 %v6390_v16  ;;  %v6483_v15 = vld [vmem:[%s9110_s2 + $0x534] ss:$8 sps:$4 sm:$0xff]   ;;  %v6478_v16 = vld [vmem:[%s9110_s2 + $0x430] ss:$8 sps:$4 sm:$0xff]  }
 0x11f   : > { %3007 = vmatprep.subr.bf16.mxu1 %v6393_v17  ;;  %v6481_v17 = vld [vmem:[%s9110_s2 + $0x530] ss:$8 sps:$4 sm:$0xff]  }
 0x121   : > { %2965 = vmatpush1.bf16.msra.mxu0 %v6388_v18  ;;  %v6486_v18 = vld [vmem:[%s9110_s2 + $0x424] ss:$8 sps:$4 sm:$0xff]  }
 0x122   : > { %3008 = vmatpush1.bf16.msra.mxu1 %v6391_v19  ;;  %2966 = vmatprep.subr.bf16.mxu0 %v6396_v20  ;;  %v6489_v19 = vld [vmem:[%s9110_s2 + $0x524] ss:$8 sps:$4 sm:$0xff]   ;;  %v6484_v20 = vld [vmem:[%s9110_s2 + $0x420] ss:$8 sps:$4 sm:$0xff]  }
 0x123   : > { %3009 = vmatprep.subr.bf16.mxu1 %v6399_v21  ;;  %v6487_v21 = vld [vmem:[%s9110_s2 + $0x520] ss:$8 sps:$4 sm:$0xff]  }
 0x125   : > { %2967 = vmatpush1.bf16.msra.mxu0 %v6394_v22  ;;  %v6492_v22 = vld [vmem:[%s9110_s2 + $0x414] ss:$8 sps:$4 sm:$0xff]  }
 0x126   : > { %3010 = vmatpush1.bf16.msra.mxu1 %v6397_v23  ;;  %2968 = vmatprep.subr.bf16.mxu0 %v6402_v24  ;;  %v6495_v23 = vld [vmem:[%s9110_s2 + $0x514] ss:$8 sps:$4 sm:$0xff]   ;;  %v6490_v24 = vld [vmem:[%s9110_s2 + $0x410] ss:$8 sps:$4 sm:$0xff]  }
 0x127   : > { %3011 = vmatprep.subr.bf16.mxu1 %v6405_v25  ;;  %v6493_v25 = vld [vmem:[%s9110_s2 + $0x510] ss:$8 sps:$4 sm:$0xff]  }
 0x129   : > { %2969 = vmatpush1.bf16.msra.mxu0 %v6400_v26  ;;  %v6498_v26 = vld [vmem:[%s9110_s2 + $0x404] ss:$8 sps:$4 sm:$0xff]  }
 0x12a   : > { %3012 = vmatpush1.bf16.msra.mxu1 %v6403_v27  ;;  %2970 = vmatprep.subr.bf16.mxu0 %v6408_v30  ;;  %v6501_v27 = vld [vmem:[%s9110_s2 + $0x504] ss:$8 sps:$4 sm:$0xff]   ;;  %v6496_v30 = vld [vmem:[%s9110_s2 + $0x400] ss:$8 sps:$4 sm:$0xff]  }
 0x12b   : > { %3013 = vmatprep.subr.bf16.mxu1 %v6411_v31  ;;  %v6499_v31 = vld [vmem:[%s9110_s2 + $0x500] ss:$8 sps:$4 sm:$0xff]  }
 0x12d   : > { %2971 = vmatpush2.bf16.msra.mxu0 %v6406_v32  ;;  %v6504_v32 = vld [vmem:[%s9110_s2 + $0x4f4] ss:$8 sps:$4 sm:$0xff]  }
 0x12e   : > { %3014 = vmatpush2.bf16.msra.mxu1 %v6409_v33  ;;  %2972 = vmatprep.subr.bf16.mxu0 %v6414_v34  ;;  %v6507_v33 = vld [vmem:[%s9110_s2 + $0x5f4] ss:$8 sps:$4 sm:$0xff]   ;;  %v6502_v34 = vld [vmem:[%s9110_s2 + $0x4f0] ss:$8 sps:$4 sm:$0xff]  }
 0x12f   : > { %3015 = vmatprep.subr.bf16.mxu1 %v6417_v35  ;;  %v6505_v35 = vld [vmem:[%s9110_s2 + $0x5f0] ss:$8 sps:$4 sm:$0xff]  }
 0x131   : > { %2973 = vmatpush2.bf16.msra.mxu0 %v6412_v36  ;;  %v6510_v36 = vld [vmem:[%s9110_s2 + $0x4e4] ss:$8 sps:$4 sm:$0xff]  }
 0x132   : > { %3016 = vmatpush2.bf16.msra.mxu1 %v6415_v37  ;;  %2974 = vmatprep.subr.bf16.mxu0 %v6420_v38  ;;  %v6513_v37 = vld [vmem:[%s9110_s2 + $0x5e4] ss:$8 sps:$4 sm:$0xff]   ;;  %v6508_v38 = vld [vmem:[%s9110_s2 + $0x4e0] ss:$8 sps:$4 sm:$0xff]  }
 0x133   : > { %3017 = vmatprep.subr.bf16.mxu1 %v6423_v39  ;;  %v6511_v39 = vld [vmem:[%s9110_s2 + $0x5e0] ss:$8 sps:$4 sm:$0xff]  }
 0x135   : > { %2975 = vmatpush2.bf16.msra.mxu0 %v6418_v41  ;;  %v6516_v41 = vld [vmem:[%s9110_s2 + $0x4d4] ss:$8 sps:$4 sm:$0xff]  }
 0x136   : > { %3018 = vmatpush2.bf16.msra.mxu1 %v6421_v42  ;;  %2976 = vmatprep.subr.bf16.mxu0 %v6426_v43  ;;  %v6519_v42 = vld [vmem:[%s9110_s2 + $0x5d4] ss:$8 sps:$4 sm:$0xff]   ;;  %v6514_v43 = vld [vmem:[%s9110_s2 + $0x4d0] ss:$8 sps:$4 sm:$0xff]  }
 0x137   : > { %3019 = vmatprep.subr.bf16.mxu1 %v6429_v44  ;;  %v6517_v44 = vld [vmem:[%s9110_s2 + $0x5d0] ss:$8 sps:$4 sm:$0xff]  }
 0x139   : > { %2977 = vmatpush2.bf16.msra.mxu0 %v6424_v48  ;;  %v6522_v48 = vld [vmem:[%s9110_s2 + $0x4c4] ss:$8 sps:$4 sm:$0xff]  }
 0x13a   : > { %3020 = vmatpush2.bf16.msra.mxu1 %v6427_v49  ;;  %2978 = vmatprep.subr.bf16.mxu0 %v6432_v50  ;;  %v6525_v49 = vld [vmem:[%s9110_s2 + $0x5c4] ss:$8 sps:$4 sm:$0xff]   ;;  %v6520_v50 = vld [vmem:[%s9110_s2 + $0x4c0] ss:$8 sps:$4 sm:$0xff]  }
 0x13b   : > { %3021 = vmatprep.subr.bf16.mxu1 %v6435_v51  ;;  %v6523_v51 = vld [vmem:[%s9110_s2 + $0x5c0] ss:$8 sps:$4 sm:$0xff]  }
 0x13d   : > { %2979 = vmatpush2.bf16.msra.mxu0 %v6430_v56  ;;  %v6528_v56 = vld [vmem:[%s9110_s2 + $0x4b4] ss:$8 sps:$4 sm:$0xff]  }
 0x13e   : > { %3022 = vmatpush2.bf16.msra.mxu1 %v6433_v57  ;;  %2980 = vmatprep.subr.bf16.mxu0 %v6438_v58  ;;  %v6531_v57 = vld [vmem:[%s9110_s2 + $0x5b4] ss:$8 sps:$4 sm:$0xff]   ;;  %v6526_v58 = vld [vmem:[%s9110_s2 + $0x4b0] ss:$8 sps:$4 sm:$0xff]  }
 0x13f   : > { %3023 = vmatprep.subr.bf16.mxu1 %v6441_v59  ;;  %v6529_v59 = vld [vmem:[%s9110_s2 + $0x5b0] ss:$8 sps:$4 sm:$0xff]  }
 0x141   : > { %2981 = vmatpush2.bf16.msra.mxu0 %v6436_v60  ;;  %v6534_v60 = vld [vmem:[%s9110_s2 + $0x4a4] ss:$8 sps:$4 sm:$0xff]  }
 0x142   : > { %3024 = vmatpush2.bf16.msra.mxu1 %v6439_v61  ;;  %2982 = vmatprep.subr.bf16.mxu0 %v6444_v62  ;;  %v6537_v61 = vld [vmem:[%s9110_s2 + $0x5a4] ss:$8 sps:$4 sm:$0xff]   ;;  %v6532_v62 = vld [vmem:[%s9110_s2 + $0x4a0] ss:$8 sps:$4 sm:$0xff]  }
 0x143   : > { %3025 = vmatprep.subr.bf16.mxu1 %v6447_v63  ;;  %v6535_v63 = vld [vmem:[%s9110_s2 + $0x5a0] ss:$8 sps:$4 sm:$0xff]  }
 0x145   : > { %2983 = vmatpush2.bf16.msra.mxu0 %v6442_v0  ;;  %v6540_v0 = vld [vmem:[%s9110_s2 + $0x494] ss:$8 sps:$4 sm:$0xff]  }
 0x146   : > { %3026 = vmatpush2.bf16.msra.mxu1 %v6445_v1  ;;  %2984 = vmatprep.subr.bf16.mxu0 %v6450_v2  ;;  %v6543_v1 = vld [vmem:[%s9110_s2 + $0x594] ss:$8 sps:$4 sm:$0xff]   ;;  %v6538_v2 = vld [vmem:[%s9110_s2 + $0x490] ss:$8 sps:$4 sm:$0xff]  }
 0x147   : > { %3027 = vmatprep.subr.bf16.mxu1 %v6453_v53  ;;  %v6541_v53 = vld [vmem:[%s9110_s2 + $0x590] ss:$8 sps:$4 sm:$0xff]  }
 0x149   : > { %2985 = vmatpush2.bf16.msra.mxu0 %v6448_v54  ;;  %v6546_v54 = vld [vmem:[%s9110_s2 + $0x484] ss:$8 sps:$4 sm:$0xff]  }
 0x14a   : > { %3028 = vmatpush2.bf16.msra.mxu1 %v6451_v3  ;;  %3040 = vmatprep.subr.bf16.mxu0 %v6456_v4  ;;  %v6549_v3 = vld [vmem:[%s9110_s2 + $0x584] ss:$8 sps:$4 sm:$0xff]   ;;  %v6544_v4 = vld [vmem:[%s9110_s2 + $0x480] ss:$8 sps:$4 sm:$0xff]  }
 0x14b   : > { %3083 = vmatprep.subr.bf16.mxu1 %v6459_v5  ;;  %v6547_v5 = vld [vmem:[%s9110_s2 + $0x580] ss:$8 sps:$4 sm:$0xff]  }
 0x14c   : > { %2987 = vmatmul.mubr.bf16.vlgmr.msra.gmra.mxu0 %v7400_v28  ;;  %v6469_v28 = vld [vmem:[%s9110_s2 + $0x550] ss:$8 sps:$4 sm:$0xff]  }
 0x14d   : > { %3030 = vmatmul.mubr.bf16.vlgmr.msra.gmra.mxu1 %v7402_v29  ;;  %3041 = vmatpush1.bf16.msra.mxu0 %v6454_v6  ;;  %v6474_v29 = vld [vmem:[%s9110_s2 + $0x444] ss:$8 sps:$4 sm:$0xff]   ;;  %v6550_v6 = vld [vmem:[%s9112_s4 + $0x2a0] ss:$48 sps:$4 sm:$0xff]  }
 0x14e   : > { %3084 = vmatpush1.bf16.msra.mxu1 %v6457_v12  ;;  %3042 = vmatprep.subr.bf16.mxu0 %v6462_v13  ;;  %v6552_v12 = vld [vmem:[%s9112_s4 + $0x2a4] ss:$48 sps:$4 sm:$0xff]   ;;  %v6553_v13 = vld [vmem:[%s9112_s4 + $0x2a8] ss:$48 sps:$4 sm:$0xff]  }
 0x14f   : > { %3085 = vmatprep.subr.bf16.mxu1 %v6465_v7  ;;  %3072 = vmatprep.mubr.bf16.mxu0 %v7432_v40  ;;  %v6475_v40 = vld [vmem:[%s9110_s2 + $0x540] ss:$8 sps:$4 sm:$0xff]   ;;  %v6555_v7 = vld [vmem:[%s9112_s4 + $0x2ac] ss:$48 sps:$4 sm:$0xff]  }
 0x150   : > { %3115 = vmatprep.mubr.bf16.mxu1 %v7442_v46  ;;  %v6480_v46 = vld [vmem:[%s9110_s2 + $0x434] ss:$8 sps:$4 sm:$0xff]  }
 0x151   : > { %3043 = vmatpush1.bf16.msra.mxu0 %v6460_v8  ;;  %v6561_v8 = vld [vmem:[%s9112_s4 + $0x24c] ss:$48 sps:$4 sm:$0xff]  }
 0x152   : > { %3086 = vmatpush1.bf16.msra.mxu1 %v6463_v9  ;;  %3044 = vmatprep.subr.bf16.mxu0 %v6468_v10  ;;  %v6559_v9 = vld [vmem:[%s9112_s4 + $0x248] ss:$48 sps:$4 sm:$0xff]   ;;  %v6564_v10 = vld [vmem:[%s9112_s4 + $0x1e4] ss:$48 sps:$4 sm:$0xff]  }
 0x153   : > { %3087 = vmatprep.subr.bf16.mxu1 %v6471_v45  ;;  %v6567_v45 = vld [vmem:[%s9112_s4 + $0x1ec] ss:$48 sps:$4 sm:$0xff]  }
 0x155   : > { %3045 = vmatpush1.bf16.msra.mxu0 %v6466_v47  ;;  %v6562_v47 = vld [vmem:[%s9112_s4 + $0x1e0] ss:$48 sps:$4 sm:$0xff]  }
 0x156   : > { %3088 = vmatpush1.bf16.msra.mxu1 %v6469_v28  ;;  %3046 = vmatprep.subr.bf16.mxu0 %v6474_v29  ;;  %v6565_v28 = vld [vmem:[%s9112_s4 + $0x1e8] ss:$48 sps:$4 sm:$0xff]   ;;  %v6570_v29 = vld [vmem:[%s9112_s4 + $0x184] ss:$48 sps:$4 sm:$0xff]  }
 0x157   : > { %3089 = vmatprep.subr.bf16.mxu1 %v6477_v11  ;;  %v6573_v11 = vld [vmem:[%s9112_s4 + $0x18c] ss:$48 sps:$4 sm:$0xff]  }
 0x159   : > { %3047 = vmatpush1.bf16.msra.mxu0 %v6472_v14  ;;  %v6568_v14 = vld [vmem:[%s9112_s4 + $0x180] ss:$48 sps:$4 sm:$0xff]  }
 0x15a   : > { %3090 = vmatpush1.bf16.msra.mxu1 %v6475_v40  ;;  %3048 = vmatprep.subr.bf16.mxu0 %v6480_v46  ;;  %v6571_v40 = vld [vmem:[%s9112_s4 + $0x188] ss:$48 sps:$4 sm:$0xff]   ;;  %v6576_v46 = vld [vmem:[%s9112_s4 + $0x124] ss:$48 sps:$4 sm:$0xff]  }
 0x15b   : > { %3091 = vmatprep.subr.bf16.mxu1 %v6483_v15  ;;  %v6579_v15 = vld [vmem:[%s9112_s4 + $0x12c] ss:$48 sps:$4 sm:$0xff]  }
 0x15d   : > { %3049 = vmatpush1.bf16.msra.mxu0 %v6478_v16  ;;  %v6574_v16 = vld [vmem:[%s9112_s4 + $0x120] ss:$48 sps:$4 sm:$0xff]  }
 0x15e   : > { %3092 = vmatpush1.bf16.msra.mxu1 %v6481_v17  ;;  %3050 = vmatprep.subr.bf16.mxu0 %v6486_v18  ;;  %v6577_v17 = vld [vmem:[%s9112_s4 + $0x128] ss:$48 sps:$4 sm:$0xff]   ;;  %v6582_v18 = vld [vmem:[%s9112_s4 + $0xc4] ss:$48 sps:$4 sm:$0xff]  }
 0x15f   : > { %3093 = vmatprep.subr.bf16.mxu1 %v6489_v19  ;;  %v6585_v19 = vld [vmem:[%s9112_s4 + $0xcc] ss:$48 sps:$4 sm:$0xff]  }
 0x161   : > { %3051 = vmatpush1.bf16.msra.mxu0 %v6484_v20  ;;  %v6580_v20 = vld [vmem:[%s9112_s4 + $0xc0] ss:$48 sps:$4 sm:$0xff]  }
 0x162   : > { %3094 = vmatpush1.bf16.msra.mxu1 %v6487_v21  ;;  %3052 = vmatprep.subr.bf16.mxu0 %v6492_v22  ;;  %v6583_v21 = vld [vmem:[%s9112_s4 + $0xc8] ss:$48 sps:$4 sm:$0xff]   ;;  %v6588_v22 = vld [vmem:[%s9112_s4 + $0x64] ss:$48 sps:$4 sm:$0xff]  }
 0x163   : > { %3095 = vmatprep.subr.bf16.mxu1 %v6495_v23  ;;  %v6591_v23 = vld [vmem:[%s9112_s4 + $0x6c] ss:$48 sps:$4 sm:$0xff]  }
 0x165   : > { %3053 = vmatpush1.bf16.msra.mxu0 %v6490_v24  ;;  %v6586_v24 = vld [vmem:[%s9112_s4 + $0x60] ss:$48 sps:$4 sm:$0xff]  }
 0x166   : > { %3096 = vmatpush1.bf16.msra.mxu1 %v6493_v25  ;;  %3054 = vmatprep.subr.bf16.mxu0 %v6498_v26  ;;  %v6589_v25 = vld [vmem:[%s9112_s4 + $0x68] ss:$48 sps:$4 sm:$0xff]   ;;  %v6594_v26 = vld [vmem:[%s9112_s4 + $0x4] ss:$48 sps:$4 sm:$0xff]  }
 0x167   : > { %3097 = vmatprep.subr.bf16.mxu1 %v6501_v27  ;;  %v6597_v27 = vld [vmem:[%s9112_s4 + $0xc] ss:$48 sps:$4 sm:$0xff]  }
 0x169   : > { %3055 = vmatpush1.bf16.msra.mxu0 %v6496_v30  ;;  %v6592_v30 = vld [vmem:[%s9112_s4] ss:$48 sps:$4 sm:$0xff]  }
 0x16a   : > { %3098 = vmatpush1.bf16.msra.mxu1 %v6499_v31  ;;  %3056 = vmatprep.subr.bf16.mxu0 %v6504_v32  ;;  %v6595_v31 = vld [vmem:[%s9112_s4 + $0x8] ss:$48 sps:$4 sm:$0xff]   ;;  %v6600_v32 = vld [vmem:[%s9112_s4 + $0x364] ss:$48 sps:$4 sm:$0xff]  }
 0x16b   : > { %3099 = vmatprep.subr.bf16.mxu1 %v6507_v33  ;;  %v6603_v33 = vld [vmem:[%s9112_s4 + $0x36c] ss:$48 sps:$4 sm:$0xff]  }
 0x16d   : > { %3057 = vmatpush2.bf16.msra.mxu0 %v6502_v34  ;;  %v6598_v34 = vld [vmem:[%s9112_s4 + $0x360] ss:$48 sps:$4 sm:$0xff]  }
 0x16e   : > { %3100 = vmatpush2.bf16.msra.mxu1 %v6505_v35  ;;  %3058 = vmatprep.subr.bf16.mxu0 %v6510_v36  ;;  %v6601_v35 = vld [vmem:[%s9112_s4 + $0x368] ss:$48 sps:$4 sm:$0xff]   ;;  %v6606_v36 = vld [vmem:[%s9112_s4 + $0x304] ss:$48 sps:$4 sm:$0xff]  }
 0x16f   : > { %3101 = vmatprep.subr.bf16.mxu1 %v6513_v37  ;;  %v6609_v37 = vld [vmem:[%s9112_s4 + $0x30c] ss:$48 sps:$4 sm:$0xff]  }
 0x171   : > { %3059 = vmatpush2.bf16.msra.mxu0 %v6508_v38  ;;  %v6604_v38 = vld [vmem:[%s9112_s4 + $0x300] ss:$48 sps:$4 sm:$0xff]  }
 0x172   : > { %3102 = vmatpush2.bf16.msra.mxu1 %v6511_v39  ;;  %3060 = vmatprep.subr.bf16.mxu0 %v6516_v41  ;;  %v6607_v39 = vld [vmem:[%s9112_s4 + $0x308] ss:$48 sps:$4 sm:$0xff]   ;;  %v6612_v41 = vld [vmem:[%s9112_s4 + $0x2b4] ss:$48 sps:$4 sm:$0xff]  }
 0x173   : > { %3103 = vmatprep.subr.bf16.mxu1 %v6519_v42  ;;  %v6615_v42 = vld [vmem:[%s9112_s4 + $0x2bc] ss:$48 sps:$4 sm:$0xff]  }
 0x175   : > { %3061 = vmatpush2.bf16.msra.mxu0 %v6514_v43  ;;  %v1667_v43 = vpop.f32.mrf.mxu0 }
 0x176   : > { %3104 = vmatpush2.bf16.msra.mxu1 %v6517_v44  ;;  %3062 = vmatprep.subr.bf16.mxu0 %v6522_v48  ;;  %v1710_v44 = vpop.f32.mrf.mxu1 }
 0x177   : > { %3105 = vmatprep.subr.bf16.mxu1 %v6525_v49  ;;  %v1669_v48 = vpop.f32.mrf.mxu0 }
 0x178   : > { %v1712_v49 = vpop.f32.mrf.mxu1 }
 0x179   : > { %3063 = vmatpush2.bf16.msra.mxu0 %v6520_v50  ;;  %v1671_v50 = vpop.f32.mrf.mxu0 }
 0x17a   : > { %3106 = vmatpush2.bf16.msra.mxu1 %v6523_v51  ;;  %3064 = vmatprep.subr.bf16.mxu0 %v6528_v56  ;;  %v1714_v51 = vpop.f32.mrf.mxu1 }
 0x17b   : > { %3107 = vmatprep.subr.bf16.mxu1 %v6531_v57  ;;  %v1673_v56 = vpop.f32.mrf.mxu0 }
 0x17c   : > { %v1716_v57 = vpop.f32.mrf.mxu1 }
 0x17d   : > { %3065 = vmatpush2.bf16.msra.mxu0 %v6526_v58  ;;  %v1753_v58 = vpop.f32.mrf.mxu0 }
 0x17e   : > { %3108 = vmatpush2.bf16.msra.mxu1 %v6529_v59  ;;  %3066 = vmatprep.subr.bf16.mxu0 %v6534_v60  ;;  %v1796_v59 = vpop.f32.mrf.mxu1 }
 0x17f   : > { %3109 = vmatprep.subr.bf16.mxu1 %v6537_v61  ;;  %v1755_v60 = vpop.f32.mrf.mxu0 }
 0x180   : > { %v1798_v61 = vpop.f32.mrf.mxu1 }
 0x181   : > { %3067 = vmatpush2.bf16.msra.mxu0 %v6532_v62  ;;  %v1757_v62 = vpop.f32.mrf.mxu0 }
 0x182   : > { %3110 = vmatpush2.bf16.msra.mxu1 %v6535_v63  ;;  %3068 = vmatprep.subr.bf16.mxu0 %v6540_v0  ;;  %v1800_v63 = vpop.f32.mrf.mxu1 }
 0x183   : > { %3111 = vmatprep.subr.bf16.mxu1 %v6543_v1  ;;  %v1759_v0 = vpop.f32.mrf.mxu0 }
 0x184   : > { %v1802_v1 = vpop.f32.mrf.mxu1 }
 0x185   : > { %3069 = vmatpush2.bf16.msra.mxu0 %v6538_v2 }
 0x186   : > { %3112 = vmatpush2.bf16.msra.mxu1 %v6541_v53  ;;  %3070 = vmatprep.subr.bf16.mxu0 %v6546_v54 }
 0x187   : > { %3113 = vmatprep.subr.bf16.mxu1 %v6549_v3 }
 0x189   : > { %3071 = vmatpush2.bf16.msra.mxu0 %v6544_v4 }
 0x18a   : > { %3114 = vmatpush2.bf16.msra.mxu1 %v6547_v5  ;;  %3991 = vmatprep.subr.bf16.mxu0 %v6552_v12  ;;  %v1713_v12 = vadd.f32 %v1712_v49, %v1669_v48 }
 0x18b   : > { %4034 = vmatprep.subr.bf16.mxu1 %v6555_v7 }
 0x18c   : > { %3073 = vmatmul.mubr.bf16.vlgmr.msra.gmra.mxu0 %v7612_v52  ;;  %v6558_v52 = vld [vmem:[%s9112_s4 + $0x244] ss:$48 sps:$4 sm:$0xff]   ;;  %v1839_v2 = vpop.f32.mrf.mxu0 }
 0x18d   : > { %3116 = vmatmul.mubr.bf16.vlgmr.msra.gmra.mxu1 %v7614_v55  ;;  %3992 = vmatpush1.bf16.msra.mxu0 %v6550_v6  ;;  %v6556_v55 = vld [vmem:[%s9112_s4 + $0x240] ss:$48 sps:$4 sm:$0xff]   ;;  %v1882_v53 = vpop.f32.mrf.mxu1  ;;  %v1711_v6 = vadd.f32 %v1710_v44, %v1667_v43 }
 0x18e   : > { %4035 = vmatpush1.bf16.msra.mxu1 %v6553_v13  ;;  %3993 = vmatprep.subr.bf16.mxu0 %v6558_v52  ;;  %v1841_v54 = vpop.f32.mrf.mxu0 }
 0x18f   : > { %4036 = vmatprep.subr.bf16.mxu1 %v6561_v8  ;;  %v1884_v3 = vpop.f32.mrf.mxu1  ;;  %v1754_v52 = vadd.f32 %v1753_v58, %v1711_v6  ;;  %v1756_v8 = vadd.f32 %v1755_v60, %v1713_v12 }
 0x190   : > { %v1843_v4 = vpop.f32.mrf.mxu0 }
 0x191   : > { %3994 = vmatpush1.bf16.msra.mxu0 %v6556_v55  ;;  %v1886_v5 = vpop.f32.mrf.mxu1  ;;  %v1715_v55 = vadd.f32 %v1714_v51, %v1671_v50 }
 0x192   : > { %4037 = vmatpush1.bf16.msra.mxu1 %v6559_v9  ;;  %3995 = vmatprep.subr.bf16.mxu0 %v6564_v10  ;;  %v1845_v13 = vpop.f32.mrf.mxu0 }
 0x193   : > { %4038 = vmatprep.subr.bf16.mxu1 %v6567_v45  ;;  %v1888_v7 = vpop.f32.mrf.mxu1  ;;  %v1717_v45 = vadd.f32 %v1716_v57, %v1673_v56 }
 0x195   : > { %3996 = vmatpush1.bf16.msra.mxu0 %v6562_v47  ;;  %v1758_v47 = vadd.f32 %v1757_v62, %v1715_v55 }
 0x196   : > { %4039 = vmatpush1.bf16.msra.mxu1 %v6565_v28  ;;  %3997 = vmatprep.subr.bf16.mxu0 %v6570_v29  ;;  %v1797_v28 = vadd.f32 %v1796_v59, %v1754_v52  ;;  %v1799_v29 = vadd.f32 %v1798_v61, %v1756_v8 }
 0x197   : > { %4040 = vmatprep.subr.bf16.mxu1 %v6573_v11  ;;  %v1760_v11 = vadd.f32 %v1759_v0, %v1717_v45 }
 0x199   : > { %3998 = vmatpush1.bf16.msra.mxu0 %v6568_v14 }
 0x19a   : > { %4041 = vmatpush1.bf16.msra.mxu1 %v6571_v40  ;;  %3999 = vmatprep.subr.bf16.mxu0 %v6576_v46  ;;  %v1840_v46 = vadd.f32 %v1839_v2, %v1797_v28 }
 0x19b   : > { %4042 = vmatprep.subr.bf16.mxu1 %v6579_v15  ;;  %v1801_v15 = vadd.f32 %v1800_v63, %v1758_v47 }
 0x19d   : > { %4000 = vmatpush1.bf16.msra.mxu0 %v6574_v16  ;;  %v1842_v16 = vadd.f32 %v1841_v54, %v1799_v29 }
 0x19e   : > { %4043 = vmatpush1.bf16.msra.mxu1 %v6577_v17  ;;  %4001 = vmatprep.subr.bf16.mxu0 %v6582_v18  ;;  %v1803_v17 = vadd.f32 %v1802_v1, %v1760_v11  ;;  %v1844_v18 = vadd.f32 %v1843_v4, %v1801_v15 }
 0x19f   : > { %4044 = vmatprep.subr.bf16.mxu1 %v6585_v19 }
 0x1a1   : > { %4002 = vmatpush1.bf16.msra.mxu0 %v6580_v20 }
 0x1a2   : > { %4045 = vmatpush1.bf16.msra.mxu1 %v6583_v21  ;;  %4003 = vmatprep.subr.bf16.mxu0 %v6588_v22  ;;  %v1883_v21 = vadd.f32 %v1882_v53, %v1840_v46  ;;  %v1885_v22 = vadd.f32 %v1884_v3, %v1842_v16 }
 0x1a3   : > { %4046 = vmatprep.subr.bf16.mxu1 %v6591_v23  ;;  %v1846_v23 = vadd.f32 %v1845_v13, %v1803_v17 }
 0x1a5   : > { %4004 = vmatpush1.bf16.msra.mxu0 %v6586_v24  ;;  %v1887_v24 = vadd.f32 %v1886_v5, %v1844_v18 }
 0x1a6   : > { %4047 = vmatpush1.bf16.msra.mxu1 %v6589_v25  ;;  %4005 = vmatprep.subr.bf16.mxu0 %v6594_v26 }
 0x1a7   : > { %4048 = vmatprep.subr.bf16.mxu1 %v6597_v27  ;;  %v1896_v27 = vrot.slane %v1883_v21, 7 }
 0x1a9   : > { %4006 = vmatpush1.bf16.msra.mxu0 %v6592_v30  ;;  %v1897_v30 = vrot.slane %v1885_v22, 7 }
 0x1aa   : > { %4049 = vmatpush1.bf16.msra.mxu1 %v6595_v31  ;;  %4019 = vmatprep.subr.bf16.mxu0 %v6600_v32  ;;  %v1889_v31 = vadd.f32 %v1888_v7, %v1846_v23  ;;  %v6613_v23 = vld [vmem:[%s9112_s4 + $0x2b8] ss:$48 sps:$4 sm:$0xff]  }
 0x1ab   : > { %4062 = vmatprep.subr.bf16.mxu1 %v6603_v33 }
 0x1ad   : > { %4020 = vmatpush2.bf16.msra.mxu0 %v6598_v34  ;;  %v1898_v34 = vrot.slane %v1887_v24, 7  ;;  %v6747_v24 = vld [vmem:[%s9111_s3 + $0x1ec] ss:$48 sps:$4 sm:$0xff]  }
 0x1ae   : > { %4063 = vmatpush2.bf16.msra.mxu1 %v6601_v35  ;;  %4021 = vmatprep.subr.bf16.mxu0 %v6606_v36  ;;  %v1906_v35 = vsel %vm1895_vm0, %v1883_v21, %v1896_v27  ;;  %v1900_v36 = vrot.slane %v1889_v31, 7  ;;  %v6619_v31 = vld [vmem:[%s9112_s4 + $0x258] ss:$48 sps:$4 sm:$0xff]  }
 0x1af   : > { %4064 = vmatprep.subr.bf16.mxu1 %v6609_v37  ;;  %v1899_v43 = vsel %vm1895_vm0, %v1896_v27, %v1898_v34  ;;  %v6621_v27 = vld [vmem:[%s9112_s4 + $0x25c] ss:$48 sps:$4 sm:$0xff]   ;;  %v6622_v34 = vld [vmem:[%s9112_s4 + $0x1f0] ss:$48 sps:$4 sm:$0xff]  }
 0x1b0   : > { %v1901_v49 = vsel %vm1895_vm0, %v1897_v30, %v1900_v36  ;;  %v6630_v36 = vld [vmem:[%s9112_s4 + $0x194] ss:$48 sps:$4 sm:$0xff]  }
 0x1b1   : > { %4022 = vmatpush2.bf16.msra.mxu0 %v6604_v38  ;;  %v1907_v38 = vsel %vm1895_vm0, %v1885_v22, %v1897_v30  ;;  %v6610_v22 = vld [vmem:[%s9112_s4 + $0x2b0] ss:$48 sps:$4 sm:$0xff]  }
 0x1b2   : > { %4065 = vmatpush2.bf16.msra.mxu1 %v6607_v39  ;;  %4077 = vmatprep.subr.bf16.mxu0 %v6612_v41  ;;  %v6616_v30 = vld [vmem:[%s9112_s4 + $0x250] ss:$48 sps:$4 sm:$0xff]  }
 0x1b3   : > { %4120 = vmatprep.subr.bf16.mxu1 %v6615_v42 }
 0x1cc   : > { %v2902_v9 = vpop.f32.mrf.mxu0 }
 0x1cd   : > { %v2945_v10 = vpop.f32.mrf.mxu1  ;;  %v2903_v37 = vadd.f32 %v2902_v9, %v1906_v35  ;;  %v6625_v35 = vld [vmem:[%s9112_s4 + $0x1f8] ss:$48 sps:$4 sm:$0xff]  }
 0x1ce   : > { %v2904_v14 = vpop.f32.mrf.mxu0 }
 0x1cf   : > { %v2947_v40 = vpop.f32.mrf.mxu1  ;;  %v2905_v42 = vadd.f32 %v2904_v14, %v1907_v38  ;;  %v2946_v48 = vadd.f32 %v2945_v10, %v2903_v37  ;;  %v6633_v37 = vld [vmem:[%s9112_s4 + $0x19c] ss:$48 sps:$4 sm:$0xff]   ;;  %v6628_v38 = vld [vmem:[%s9112_s4 + $0x190] ss:$48 sps:$4 sm:$0xff]  }
 0x1d0   : > { %v2906_v19 = vpop.f32.mrf.mxu0 }
 0x1d1   : > { %v2949_v20 = vpop.f32.mrf.mxu1  ;;  %v2907_v44 = vadd.f32 %v2906_v19, %v1899_v43  ;;  %v2948_v56 = vadd.f32 %v2947_v40, %v2905_v42  ;;  %v6639_v42 = vld [vmem:[%s9112_s4 + $0x13c] ss:$48 sps:$4 sm:$0xff]   ;;  %v6634_v43 = vld [vmem:[%s9112_s4 + $0x130] ss:$48 sps:$4 sm:$0xff]  }
 0x1d2   : > { %v2908_v25 = vpop.f32.mrf.mxu0 }
 0x1d3   : > { %v2951_v26 = vpop.f32.mrf.mxu1  ;;  %v2909_v57 = vadd.f32 %v2908_v25, %v1901_v49  ;;  %v2950_v59 = vadd.f32 %v2949_v20, %v2907_v44  ;;  %v6637_v44 = vld [vmem:[%s9112_s4 + $0x138] ss:$48 sps:$4 sm:$0xff]   ;;  %v6645_v49 = vld [vmem:[%s9112_s4 + $0xdc] ss:$48 sps:$4 sm:$0xff]  }
 0x1d5   : > { %v2952_v63 = vadd.f32 %v2951_v26, %v2909_v57  ;;  %v6618_v26 = vld [vmem:[%s9112_s4 + $0x254] ss:$48 sps:$4 sm:$0xff]   ;;  %v6651_v57 = vld [vmem:[%s9112_s4 + $0x7c] ss:$48 sps:$4 sm:$0xff]  }
 0x20c   : > { %v2988_v32 = vpop.f32.mrf.mxu0 }
 0x20d   : > { %v3031_v33 = vpop.f32.mrf.mxu1  ;;  %v2989_v58 = vadd.f32 %v2988_v32, %v2946_v48  ;;  %v6624_v32 = vld [vmem:[%s9112_s4 + $0x1f4] ss:$48 sps:$4 sm:$0xff]  }
 0x20e   : > { %v2990_v39 = vpop.f32.mrf.mxu0  ;;  %v6642_v48 = vld [vmem:[%s9112_s4 + $0xd4] ss:$48 sps:$4 sm:$0xff]  }
 0x20f   : > { %v3033_v41 = vpop.f32.mrf.mxu1  ;;  %v2991_v60 = vadd.f32 %v2990_v39, %v2948_v56  ;;  %v3032_v1 = vadd.f32 %v3031_v33, %v2989_v58  ;;  %v6627_v33 = vld [vmem:[%s9112_s4 + $0x1fc] ss:$48 sps:$4 sm:$0xff]   ;;  %v6631_v39 = vld [vmem:[%s9112_s4 + $0x198] ss:$48 sps:$4 sm:$0xff]   ;;  %v6648_v56 = vld [vmem:[%s9112_s4 + $0x74] ss:$48 sps:$4 sm:$0xff]  }
 0x210   : > { %v2992_v50 = vpop.f32.mrf.mxu0  ;;  %v6646_v58 = vld [vmem:[%s9112_s4 + $0x70] ss:$48 sps:$4 sm:$0xff]  }
 0x211   : > { %v3035_v51 = vpop.f32.mrf.mxu1  ;;  %v2993_v0 = vadd.f32 %v2992_v50, %v2950_v59  ;;  %v3034_v54 = vadd.f32 %v3033_v41, %v2991_v60  ;;  %v6636_v41 = vld [vmem:[%s9112_s4 + $0x134] ss:$48 sps:$4 sm:$0xff]   ;;  %v6640_v50 = vld [vmem:[%s9112_s4 + $0xd0] ss:$48 sps:$4 sm:$0xff]   ;;  %v6649_v59 = vld [vmem:[%s9112_s4 + $0x78] ss:$48 sps:$4 sm:$0xff]  }
 0x212   : > { %v2994_v61 = vpop.f32.mrf.mxu0  ;;  %v6654_v60 = vld [vmem:[%s9112_s4 + $0x14] ss:$48 sps:$4 sm:$0xff]  }
 0x213   : > { %v3037_v62 = vpop.f32.mrf.mxu1  ;;  %v2995_v3 = vadd.f32 %v2994_v61, %v2952_v63  ;;  %v3036_v12 = vadd.f32 %v3035_v51, %v2993_v0  ;;  %v6643_v51 = vld [vmem:[%s9112_s4 + $0xd8] ss:$48 sps:$4 sm:$0xff]   ;;  %v6657_v61 = vld [vmem:[%s9112_s4 + $0x1c] ss:$48 sps:$4 sm:$0xff]   ;;  %v6660_v0 = vld [vmem:[%s9112_s4 + $0x374] ss:$48 sps:$4 sm:$0xff]  }
 0x214   : > { %v6655_v63 = vld [vmem:[%s9112_s4 + $0x18] ss:$48 sps:$4 sm:$0xff]  }
 0x215   : > { %v3038_v55 = vadd.f32 %v3037_v62, %v2995_v3  ;;  %v6652_v62 = vld [vmem:[%s9112_s4 + $0x10] ss:$48 sps:$4 sm:$0xff]   ;;  %v6669_v3 = vld [vmem:[%s9112_s4 + $0x31c] ss:$48 sps:$4 sm:$0xff]  }
 0x24c   : > { %v3074_v2 = vpop.f32.mrf.mxu0 }
 0x24d   : > { %v3117_v53 = vpop.f32.mrf.mxu1  ;;  %v3075_v4 = vadd.f32 %v3074_v2, %v3032_v1  ;;  %v6663_v1 = vld [vmem:[%s9112_s4 + $0x37c] ss:$48 sps:$4 sm:$0xff]   ;;  %v6658_v2 = vld [vmem:[%s9112_s4 + $0x370] ss:$48 sps:$4 sm:$0xff]  }
 0x24e   : > { %v3076_v5 = vpop.f32.mrf.mxu0 }
 0x24f   : > { %v3119_v6 = vpop.f32.mrf.mxu1  ;;  %v3077_v13 = vadd.f32 %v3076_v5, %v3034_v54  ;;  %v3118_v9 = vadd.f32 %v3117_v53, %v3075_v4  ;;  %v6661_v53 = vld [vmem:[%s9112_s4 + $0x378] ss:$48 sps:$4 sm:$0xff]   ;;  %v6666_v54 = vld [vmem:[%s9112_s4 + $0x314] ss:$48 sps:$4 sm:$0xff]   ;;  %v6664_v4 = vld [vmem:[%s9112_s4 + $0x310] ss:$48 sps:$4 sm:$0xff]  }
 0x250   : > { %v3078_v7 = vpop.f32.mrf.mxu0  ;;  %v6667_v5 = vld [vmem:[%s9112_s4 + $0x318] ss:$48 sps:$4 sm:$0xff]  }
 0x251   : > { %v3121_v52 = vpop.f32.mrf.mxu1  ;;  %v3079_v8 = vadd.f32 %v3078_v7, %v3036_v12  ;;  %v3120_v45 = vadd.f32 %v3119_v6, %v3077_v13  ;;  %v3253_v46 = vrot.slane %v3118_v9, 1  ;;  %v6672_v6 = vld [vmem:[%s9112_s4 + $0x2c4] ss:$48 sps:$4 sm:$0xff]   ;;  %v6675_v12 = vld [vmem:[%s9112_s4 + $0x2cc] ss:$48 sps:$4 sm:$0xff]  }
 0x252   : > { %v3080_v10 = vpop.f32.mrf.mxu0  ;;  %v6670_v13 = vld [vmem:[%s9112_s4 + $0x2c0] ss:$48 sps:$4 sm:$0xff]   ;;  %v6673_v7 = vld [vmem:[%s9112_s4 + $0x2c8] ss:$48 sps:$4 sm:$0xff]  }
 0x253   : > { %v3122_v47 = vadd.f32 %v3121_v52, %v3079_v8  ;;  %v3081_v28 = vadd.f32 %v3080_v10, %v3038_v55  ;;  %v3123_v29 = vpop.f32.mrf.mxu1  ;;  %v3256_v15 = vrot.slane %v3120_v45, 1  ;;  %v6678_v52 = vld [vmem:[%s9112_s4 + $0x264] ss:$48 sps:$4 sm:$0xff]   ;;  %v6681_v55 = vld [vmem:[%s9112_s4 + $0x26c] ss:$48 sps:$4 sm:$0xff]  }
 0x254   : > { %v6676_v8 = vld [vmem:[%s9112_s4 + $0x260] ss:$48 sps:$4 sm:$0xff]   ;;  %v6684_v10 = vld [vmem:[%s9112_s4 + $0x204] ss:$48 sps:$4 sm:$0xff]  }
 0x255   : > { %v8326_v11 = vpack.c.bf16 %v3122_v47, %v3118_v9  ;;  %v3254_v14 = vrot.slane %v3122_v47, 1  ;;  %v3124_v40 = vadd.f32 %v3123_v29, %v3081_v28  ;;  %v6679_v9 = vld [vmem:[%s9112_s4 + $0x268] ss:$48 sps:$4 sm:$0xff]   ;;  %v6682_v47 = vld [vmem:[%s9112_s4 + $0x200] ss:$48 sps:$4 sm:$0xff]  }
 0x256   : > { %v6685_v28 = vld [vmem:[%s9112_s4 + $0x208] ss:$48 sps:$4 sm:$0xff]   ;;  %v6690_v29 = vld [vmem:[%s9112_s4 + $0x1a4] ss:$48 sps:$4 sm:$0xff]  }
 0x257   : > { %v8328_v16 = vpack.c.bf16 %v3124_v40, %v3120_v45  ;;  %v3257_v17 = vrot.slane %v3124_v40, 1  ;;  %v3255_v18 = vsel %vm3252_vm1, %v3253_v46, %v3254_v14  ;;  %v6687_v45 = vld [vmem:[%s9112_s4 + $0x20c] ss:$48 sps:$4 sm:$0xff]   ;;  %v6688_v40 = vld [vmem:[%s9112_s4 + $0x1a0] ss:$48 sps:$4 sm:$0xff]  }
 0x258   : > { %v8346_v25 = vpack.c.bf16 %v3254_v14, %v3255_v18  ;;  %v6693_v14 = vld [vmem:[%s9112_s4 + $0x1ac] ss:$48 sps:$4 sm:$0xff]   ;;  %v6691_v46 = vld [vmem:[%s9112_s4 + $0x1a8] ss:$48 sps:$4 sm:$0xff]   ;;  %v6694_v18 = vld [vmem:[%s9112_s4 + $0x140] ss:$48 sps:$4 sm:$0xff]  }
 0x259   : > { %v3258_v19 = vsel %vm3252_vm1, %v3256_v15, %v3257_v17  ;;  %v3264_v20 = vsel %vm3252_vm1, %v3257_v17, 0.0  ;;  %v6696_v15 = vld [vmem:[%s9112_s4 + $0x144] ss:$48 sps:$4 sm:$0xff]   ;;  %v6699_v17 = vld [vmem:[%s9112_s4 + $0x14c] ss:$48 sps:$4 sm:$0xff]  }
 0x25a   : > { %v8333_v21 = vpack.c.bf16 %v3264_v20, %v3258_v19  ;;  %v6697_v19 = vld [vmem:[%s9112_s4 + $0x148] ss:$48 sps:$4 sm:$0xff]   ;;  %v6702_v20 = vld [vmem:[%s9112_s4 + $0xe4] ss:$48 sps:$4 sm:$0xff]  }
 0x25c   : > { %5812 = vmatprep.mubr.msk.bf16.mxu0 %vm3987_vm2, %v8333_v21  ;;  %5816 = vmatprep.mubr.msk.bf16.mxu1 %vm3987_vm2, %v8333_v21 }
 0x25d   : > { %5815 = vmatmul.mubr.msk.bf16.vlgmr.msra.gmra.mxu0 %vm8342_vm4, %v8346_v25  ;;  %5819 = vmatmul.mubr.msk.bf16.vlgmr.msra.gmra.mxu1 %vm8342_vm4, %v8346_v25 }
 0x25e   : > { %4078 = vmatpush1.bf16.msra.mxu0 %v6610_v22  ;;  %4121 = vmatpush1.bf16.msra.mxu1 %v6613_v23  ;;  %v6700_v22 = vld [vmem:[%s9112_s4 + $0xe0] ss:$48 sps:$4 sm:$0xff]   ;;  %v6703_v23 = vld [vmem:[%s9112_s4 + $0xe8] ss:$48 sps:$4 sm:$0xff]  }
 0x25f   : > { %5820 = vmatprep.mubr.msk.bf16.mxu0 %vm3987_vm2, %v8333_v21  ;;  %5824 = vmatprep.mubr.msk.bf16.mxu1 %vm3987_vm2, %v8333_v21 }
 0x260   : > { %4079 = vmatprep.subr.bf16.mxu0 %v6618_v26  ;;  %4122 = vmatprep.subr.bf16.mxu1 %v6621_v27  ;;  %v6708_v26 = vld [vmem:[%s9112_s4 + $0x84] ss:$48 sps:$4 sm:$0xff]   ;;  %v6711_v27 = vld [vmem:[%s9112_s4 + $0x8c] ss:$48 sps:$4 sm:$0xff]  }
 0x262   : > { %4080 = vmatpush1.bf16.msra.mxu0 %v6616_v30  ;;  %4123 = vmatpush1.bf16.msra.mxu1 %v6619_v31  ;;  %v6706_v30 = vld [vmem:[%s9112_s4 + $0x80] ss:$48 sps:$4 sm:$0xff]   ;;  %v6709_v31 = vld [vmem:[%s9112_s4 + $0x88] ss:$48 sps:$4 sm:$0xff]  }
 0x263   : > { %4081 = vmatprep.subr.bf16.mxu0 %v6624_v32  ;;  %4124 = vmatprep.subr.bf16.mxu1 %v6627_v33  ;;  %v6714_v32 = vld [vmem:[%s9112_s4 + $0x24] ss:$48 sps:$4 sm:$0xff]   ;;  %v6717_v33 = vld [vmem:[%s9112_s4 + $0x2c] ss:$48 sps:$4 sm:$0xff]  }
 0x266   : > { %4082 = vmatpush1.bf16.msra.mxu0 %v6622_v34  ;;  %4125 = vmatpush1.bf16.msra.mxu1 %v6625_v35  ;;  %v6712_v34 = vld [vmem:[%s9112_s4 + $0x20] ss:$48 sps:$4 sm:$0xff]   ;;  %v6715_v35 = vld [vmem:[%s9112_s4 + $0x28] ss:$48 sps:$4 sm:$0xff]  }
 0x267   : > { %4083 = vmatprep.subr.bf16.mxu0 %v6630_v36  ;;  %4126 = vmatprep.subr.bf16.mxu1 %v6633_v37  ;;  %v6720_v36 = vld [vmem:[%s9112_s4 + $0x384] ss:$48 sps:$4 sm:$0xff]   ;;  %v6723_v37 = vld [vmem:[%s9112_s4 + $0x38c] ss:$48 sps:$4 sm:$0xff]  }
 0x26a   : > { %4084 = vmatpush1.bf16.msra.mxu0 %v6628_v38  ;;  %4127 = vmatpush1.bf16.msra.mxu1 %v6631_v39  ;;  %v6718_v38 = vld [vmem:[%s9112_s4 + $0x380] ss:$48 sps:$4 sm:$0xff]   ;;  %v6721_v39 = vld [vmem:[%s9112_s4 + $0x388] ss:$48 sps:$4 sm:$0xff]  }
 0x26b   : > { %4085 = vmatprep.subr.bf16.mxu0 %v6636_v41  ;;  %4128 = vmatprep.subr.bf16.mxu1 %v6639_v42  ;;  %v6726_v41 = vld [vmem:[%s9112_s4 + $0x324] ss:$48 sps:$4 sm:$0xff]   ;;  %v6729_v42 = vld [vmem:[%s9112_s4 + $0x32c] ss:$48 sps:$4 sm:$0xff]  }
 0x26e   : > { %4086 = vmatpush1.bf16.msra.mxu0 %v6634_v43  ;;  %4129 = vmatpush1.bf16.msra.mxu1 %v6637_v44  ;;  %v6724_v43 = vld [vmem:[%s9112_s4 + $0x320] ss:$48 sps:$4 sm:$0xff]   ;;  %v6727_v44 = vld [vmem:[%s9112_s4 + $0x328] ss:$48 sps:$4 sm:$0xff]  }
 0x26f   : > { %4087 = vmatprep.subr.bf16.mxu0 %v6642_v48  ;;  %4130 = vmatprep.subr.bf16.mxu1 %v6645_v49  ;;  %v6732_v48 = vld [vmem:[%s9111_s3 + $0x2a4] ss:$48 sps:$4 sm:$0xff]   ;;  %v6735_v49 = vld [vmem:[%s9111_s3 + $0x2ac] ss:$48 sps:$4 sm:$0xff]  }
 0x272   : > { %4088 = vmatpush1.bf16.msra.mxu0 %v6640_v50  ;;  %4131 = vmatpush1.bf16.msra.mxu1 %v6643_v51  ;;  %v6730_v50 = vld [vmem:[%s9111_s3 + $0x2a0] ss:$48 sps:$4 sm:$0xff]   ;;  %v6733_v51 = vld [vmem:[%s9111_s3 + $0x2a8] ss:$48 sps:$4 sm:$0xff]  }
 0x273   : > { %4089 = vmatprep.subr.bf16.mxu0 %v6648_v56  ;;  %4132 = vmatprep.subr.bf16.mxu1 %v6651_v57  ;;  %v6738_v56 = vld [vmem:[%s9111_s3 + $0x244] ss:$48 sps:$4 sm:$0xff]   ;;  %v6741_v57 = vld [vmem:[%s9111_s3 + $0x24c] ss:$48 sps:$4 sm:$0xff]  }
 0x276   : > { %4090 = vmatpush1.bf16.msra.mxu0 %v6646_v58  ;;  %4133 = vmatpush1.bf16.msra.mxu1 %v6649_v59  ;;  %v6736_v58 = vld [vmem:[%s9111_s3 + $0x240] ss:$48 sps:$4 sm:$0xff]   ;;  %v6739_v59 = vld [vmem:[%s9111_s3 + $0x248] ss:$48 sps:$4 sm:$0xff]  }
 0x277   : > { %4091 = vmatprep.subr.bf16.mxu0 %v6654_v60  ;;  %4134 = vmatprep.subr.bf16.mxu1 %v6657_v61  ;;  %v6744_v60 = vld [vmem:[%s9111_s3 + $0x1e4] ss:$48 sps:$4 sm:$0xff]   ;;  %v6745_v61 = vld [vmem:[%s9111_s3 + $0x1e8] ss:$48 sps:$4 sm:$0xff]  }
 0x27a   : > { %4092 = vmatpush1.bf16.msra.mxu0 %v6652_v62  ;;  %4135 = vmatpush1.bf16.msra.mxu1 %v6655_v63  ;;  %v6750_v62 = vld [vmem:[%s9111_s3 + $0x184] ss:$48 sps:$4 sm:$0xff]   ;;  %v6753_v63 = vld [vmem:[%s9111_s3 + $0x18c] ss:$48 sps:$4 sm:$0xff]  }
 0x27b   : > { %4105 = vmatprep.subr.bf16.mxu0 %v6660_v0  ;;  %4148 = vmatprep.subr.bf16.mxu1 %v6663_v1  ;;  %v6748_v0 = vld [vmem:[%s9111_s3 + $0x180] ss:$48 sps:$4 sm:$0xff]   ;;  %v6751_v1 = vld [vmem:[%s9111_s3 + $0x188] ss:$48 sps:$4 sm:$0xff]  }
 0x27e   : > { %4106 = vmatpush2.bf16.msra.mxu0 %v6658_v2  ;;  %4149 = vmatpush2.bf16.msra.mxu1 %v6661_v53  ;;  %v6756_v2 = vld [vmem:[%s9111_s3 + $0x124] ss:$48 sps:$4 sm:$0xff]   ;;  %v6759_v53 = vld [vmem:[%s9111_s3 + $0x12c] ss:$48 sps:$4 sm:$0xff]  }
 0x27f   : > { %4107 = vmatprep.subr.bf16.mxu0 %v6666_v54  ;;  %4150 = vmatprep.subr.bf16.mxu1 %v6669_v3  ;;  %v6754_v54 = vld [vmem:[%s9111_s3 + $0x120] ss:$48 sps:$4 sm:$0xff]   ;;  %v6757_v3 = vld [vmem:[%s9111_s3 + $0x128] ss:$48 sps:$4 sm:$0xff]  }
 0x282   : > { %4108 = vmatpush2.bf16.msra.mxu0 %v6664_v4  ;;  %4151 = vmatpush2.bf16.msra.mxu1 %v6667_v5  ;;  %v6762_v4 = vld [vmem:[%s9111_s3 + $0xc4] ss:$48 sps:$4 sm:$0xff]   ;;  %v6765_v5 = vld [vmem:[%s9111_s3 + $0xcc] ss:$48 sps:$4 sm:$0xff]  }
 0x283   : > { %4163 = vmatprep.subr.bf16.mxu0 %v6672_v6  ;;  %4206 = vmatprep.subr.bf16.mxu1 %v6675_v12  ;;  %v6760_v6 = vld [vmem:[%s9111_s3 + $0xc0] ss:$48 sps:$4 sm:$0xff]   ;;  %v6763_v12 = vld [vmem:[%s9111_s3 + $0xc8] ss:$48 sps:$4 sm:$0xff]  }
 0x285   : > { %5823 = vmatmul.mubr.msk.bf16.vlgmr.msra.gmra.mxu0 %vm8342_vm4, %v8346_v25  ;;  %5827 = vmatmul.mubr.msk.bf16.vlgmr.msra.gmra.mxu1 %vm8342_vm4, %v8346_v25 }
 0x286   : > { %4164 = vmatpush1.bf16.msra.mxu0 %v6670_v13  ;;  %5828 = vmatprep.mubr.msk.bf16.mxu0 %vm3987_vm2, %v8333_v21  ;;  %v6768_v13 = vld [vmem:[%s9111_s3 + $0x64] ss:$48 sps:$4 sm:$0xff]  }
 0x287   : > { %4207 = vmatpush1.bf16.msra.mxu1 %v6673_v7  ;;  %5832 = vmatprep.mubr.msk.bf16.mxu1 %vm3987_vm2, %v8333_v21  ;;  %v6705_v21 = vld [vmem:[%s9112_s4 + $0xec] ss:$48 sps:$4 sm:$0xff]  }
 0x288   : > { %4165 = vmatprep.subr.bf16.mxu0 %v6678_v52  ;;  %4208 = vmatprep.subr.bf16.mxu1 %v6681_v55  ;;  %v6771_v7 = vld [vmem:[%s9111_s3 + $0x6c] ss:$48 sps:$4 sm:$0xff]   ;;  %v6766_v52 = vld [vmem:[%s9111_s3 + $0x60] ss:$48 sps:$4 sm:$0xff]   ;;  %v6769_v55 = vld [vmem:[%s9111_s3 + $0x68] ss:$48 sps:$4 sm:$0xff]  }
 0x28a   : > { %4166 = vmatpush1.bf16.msra.mxu0 %v6676_v8  ;;  %v6774_v8 = vld [vmem:[%s9111_s3 + $0x4] ss:$48 sps:$4 sm:$0xff]  }
 0x28b   : > { %4209 = vmatpush1.bf16.msra.mxu1 %v6679_v9  ;;  %4167 = vmatprep.subr.bf16.mxu0 %v6684_v10  ;;  %v6777_v9 = vld [vmem:[%s9111_s3 + $0xc] ss:$48 sps:$4 sm:$0xff]   ;;  %v6772_v10 = vld [vmem:[%s9111_s3] ss:$48 sps:$4 sm:$0xff]  }
 0x28c   : > { %4210 = vmatprep.subr.bf16.mxu1 %v6687_v45  ;;  %v6775_v45 = vld [vmem:[%s9111_s3 + $0x8] ss:$48 sps:$4 sm:$0xff]  }
 0x28e   : > { %4168 = vmatpush1.bf16.msra.mxu0 %v6682_v47  ;;  %v6780_v47 = vld [vmem:[%s9111_s3 + $0x364] ss:$48 sps:$4 sm:$0xff]  }
 0x28f   : > { %4211 = vmatpush1.bf16.msra.mxu1 %v6685_v28  ;;  %4169 = vmatprep.subr.bf16.mxu0 %v6690_v29  ;;  %v6783_v28 = vld [vmem:[%s9111_s3 + $0x36c] ss:$48 sps:$4 sm:$0xff]   ;;  %v6778_v29 = vld [vmem:[%s9111_s3 + $0x360] ss:$48 sps:$4 sm:$0xff]  }
 0x290   : > { %4212 = vmatprep.subr.bf16.mxu1 %v6693_v14  ;;  %v6781_v14 = vld [vmem:[%s9111_s3 + $0x368] ss:$48 sps:$4 sm:$0xff]  }
 0x292   : > { %4170 = vmatpush1.bf16.msra.mxu0 %v6688_v40  ;;  %v6786_v40 = vld [vmem:[%s9111_s3 + $0x304] ss:$48 sps:$4 sm:$0xff]  }
 0x293   : > { %4213 = vmatpush1.bf16.msra.mxu1 %v6691_v46  ;;  %4171 = vmatprep.subr.bf16.mxu0 %v6696_v15  ;;  %v6789_v46 = vld [vmem:[%s9111_s3 + $0x30c] ss:$48 sps:$4 sm:$0xff]   ;;  %v6784_v15 = vld [vmem:[%s9111_s3 + $0x300] ss:$48 sps:$4 sm:$0xff]  }
 0x294   : > { %4214 = vmatprep.subr.bf16.mxu1 %v6699_v17  ;;  %v6787_v17 = vld [vmem:[%s9111_s3 + $0x308] ss:$48 sps:$4 sm:$0xff]  }
 0x296   : > { %4172 = vmatpush1.bf16.msra.mxu0 %v6694_v18  ;;  %v6792_v18 = vld [vmem:[%s9111_s3 + $0x2b4] ss:$48 sps:$4 sm:$0xff]  }
 0x297   : > { %4215 = vmatpush1.bf16.msra.mxu1 %v6697_v19  ;;  %4173 = vmatprep.subr.bf16.mxu0 %v6702_v20  ;;  %v6795_v19 = vld [vmem:[%s9111_s3 + $0x2bc] ss:$48 sps:$4 sm:$0xff]   ;;  %v6790_v20 = vld [vmem:[%s9111_s3 + $0x2b0] ss:$48 sps:$4 sm:$0xff]  }
 0x298   : > { %4216 = vmatprep.subr.bf16.mxu1 %v6705_v21  ;;  %v6793_v21 = vld [vmem:[%s9111_s3 + $0x2b8] ss:$48 sps:$4 sm:$0xff]  }
 0x29a   : > { %4174 = vmatpush1.bf16.msra.mxu0 %v6700_v22  ;;  %v6798_v22 = vld [vmem:[%s9111_s3 + $0x254] ss:$48 sps:$4 sm:$0xff]  }
 0x29b   : > { %4217 = vmatpush1.bf16.msra.mxu1 %v6703_v23  ;;  %4175 = vmatprep.subr.bf16.mxu0 %v6708_v26  ;;  %v6801_v23 = vld [vmem:[%s9111_s3 + $0x25c] ss:$48 sps:$4 sm:$0xff]   ;;  %v6796_v26 = vld [vmem:[%s9111_s3 + $0x250] ss:$48 sps:$4 sm:$0xff]  }
 0x29c   : > { %4218 = vmatprep.subr.bf16.mxu1 %v6711_v27  ;;  %v6799_v27 = vld [vmem:[%s9111_s3 + $0x258] ss:$48 sps:$4 sm:$0xff]  }
 0x29e   : > { %4176 = vmatpush1.bf16.msra.mxu0 %v6706_v30  ;;  %v6804_v30 = vld [vmem:[%s9111_s3 + $0x1f4] ss:$48 sps:$4 sm:$0xff]  }
 0x29f   : > { %4219 = vmatpush1.bf16.msra.mxu1 %v6709_v31  ;;  %4177 = vmatprep.subr.bf16.mxu0 %v6714_v32  ;;  %v6807_v31 = vld [vmem:[%s9111_s3 + $0x1fc] ss:$48 sps:$4 sm:$0xff]   ;;  %v6802_v32 = vld [vmem:[%s9111_s3 + $0x1f0] ss:$48 sps:$4 sm:$0xff]  }
 0x2a0   : > { %4220 = vmatprep.subr.bf16.mxu1 %v6717_v33  ;;  %v6805_v33 = vld [vmem:[%s9111_s3 + $0x1f8] ss:$48 sps:$4 sm:$0xff]  }
 0x2a2   : > { %4178 = vmatpush1.bf16.msra.mxu0 %v6712_v34  ;;  %v6810_v34 = vld [vmem:[%s9111_s3 + $0x194] ss:$48 sps:$4 sm:$0xff]  }
 0x2a3   : > { %4221 = vmatpush1.bf16.msra.mxu1 %v6715_v35  ;;  %4191 = vmatprep.subr.bf16.mxu0 %v6720_v36  ;;  %v6813_v35 = vld [vmem:[%s9111_s3 + $0x19c] ss:$48 sps:$4 sm:$0xff]   ;;  %v6808_v36 = vld [vmem:[%s9111_s3 + $0x190] ss:$48 sps:$4 sm:$0xff]  }
 0x2a4   : > { %4234 = vmatprep.subr.bf16.mxu1 %v6723_v37  ;;  %v6811_v37 = vld [vmem:[%s9111_s3 + $0x198] ss:$48 sps:$4 sm:$0xff]  }
 0x2a6   : > { %4192 = vmatpush2.bf16.msra.mxu0 %v6718_v38  ;;  %v6816_v38 = vld [vmem:[%s9111_s3 + $0x134] ss:$48 sps:$4 sm:$0xff]  }
 0x2a7   : > { %4235 = vmatpush2.bf16.msra.mxu1 %v6721_v39  ;;  %4193 = vmatprep.subr.bf16.mxu0 %v6726_v41  ;;  %v6819_v39 = vld [vmem:[%s9111_s3 + $0x13c] ss:$48 sps:$4 sm:$0xff]   ;;  %v6814_v41 = vld [vmem:[%s9111_s3 + $0x130] ss:$48 sps:$4 sm:$0xff]  }
 0x2a8   : > { %4236 = vmatprep.subr.bf16.mxu1 %v6729_v42  ;;  %v6817_v42 = vld [vmem:[%s9111_s3 + $0x138] ss:$48 sps:$4 sm:$0xff]  }
 0x2aa   : > { %4194 = vmatpush2.bf16.msra.mxu0 %v6724_v43  ;;  %v6822_v43 = vld [vmem:[%s9111_s3 + $0xd4] ss:$48 sps:$4 sm:$0xff]  }
 0x2ab   : > { %4237 = vmatpush2.bf16.msra.mxu1 %v6727_v44  ;;  %4852 = vmatprep.subr.bf16.mxu0 %v6732_v48  ;;  %v6825_v44 = vld [vmem:[%s9111_s3 + $0xdc] ss:$48 sps:$4 sm:$0xff]   ;;  %v6820_v48 = vld [vmem:[%s9111_s3 + $0xd0] ss:$48 sps:$4 sm:$0xff]  }
 0x2ac   : > { %4895 = vmatprep.subr.bf16.mxu1 %v6735_v49  ;;  %v6823_v49 = vld [vmem:[%s9111_s3 + $0xd8] ss:$48 sps:$4 sm:$0xff]  }
 0x2ad   : > { %5831 = vmatmul.mubr.msk.bf16.vlgmr.msra.gmra.mxu0 %vm8342_vm4, %v8346_v25 }
 0x2ae   : > { %5835 = vmatmul.mubr.msk.bf16.vlgmr.msra.gmra.mxu1 %vm8342_vm4, %v8346_v25  ;;  %4853 = vmatpush1.bf16.msra.mxu0 %v6730_v50  ;;  %v6742_v25 = vld [vmem:[%s9111_s3 + $0x1e0] ss:$48 sps:$4 sm:$0xff]   ;;  %v6828_v50 = vld [vmem:[%s9111_s3 + $0x74] ss:$48 sps:$4 sm:$0xff]  }
 0x2af   : > { %5956 = vmatprep.mubr.msk.bf16.mxu0 %vm3987_vm2, %v8328_v16  ;;  %4896 = vmatpush1.bf16.msra.mxu1 %v6733_v51  ;;  %v6831_v51 = vld [vmem:[%s9111_s3 + $0x7c] ss:$48 sps:$4 sm:$0xff]  }
 0x2b0   : > { %5957 = vmatprep.mubr.msk.bf16.mxu1 %vm3987_vm2, %v8328_v16  ;;  %4854 = vmatprep.subr.bf16.mxu0 %v6738_v56  ;;  %v6826_v56 = vld [vmem:[%s9111_s3 + $0x70] ss:$48 sps:$4 sm:$0xff]  }
 0x2b1   : > { %4897 = vmatprep.subr.bf16.mxu1 %v6741_v57  ;;  %v6829_v57 = vld [vmem:[%s9111_s3 + $0x78] ss:$48 sps:$4 sm:$0xff]  }
 0x2b2   : > { %4855 = vmatpush1.bf16.msra.mxu0 %v6736_v58  ;;  %v6834_v58 = vld [vmem:[%s9111_s3 + $0x14] ss:$48 sps:$4 sm:$0xff]  }
 0x2b3   : > { %4898 = vmatpush1.bf16.msra.mxu1 %v6739_v59  ;;  %4856 = vmatprep.subr.bf16.mxu0 %v6744_v60  ;;  %v6837_v59 = vld [vmem:[%s9111_s3 + $0x1c] ss:$48 sps:$4 sm:$0xff]   ;;  %v6832_v60 = vld [vmem:[%s9111_s3 + $0x10] ss:$48 sps:$4 sm:$0xff]  }
 0x2b4   : > { %4899 = vmatprep.subr.bf16.mxu1 %v6747_v24  ;;  %v6835_v24 = vld [vmem:[%s9111_s3 + $0x18] ss:$48 sps:$4 sm:$0xff]  }
 0x2b6   : > { %4857 = vmatpush1.bf16.msra.mxu0 %v6742_v25  ;;  %v6840_v25 = vld [vmem:[%s9111_s3 + $0x374] ss:$48 sps:$4 sm:$0xff]  }
 0x2b7   : > { %4900 = vmatpush1.bf16.msra.mxu1 %v6745_v61  ;;  %4858 = vmatprep.subr.bf16.mxu0 %v6750_v62  ;;  %v6843_v61 = vld [vmem:[%s9111_s3 + $0x37c] ss:$48 sps:$4 sm:$0xff]   ;;  %v6838_v62 = vld [vmem:[%s9111_s3 + $0x370] ss:$48 sps:$4 sm:$0xff]  }
 0x2b8   : > { %4901 = vmatprep.subr.bf16.mxu1 %v6753_v63  ;;  %v6841_v63 = vld [vmem:[%s9111_s3 + $0x378] ss:$48 sps:$4 sm:$0xff]  }
 0x2ba   : > { %4859 = vmatpush1.bf16.msra.mxu0 %v6748_v0  ;;  %v6846_v0 = vld [vmem:[%s9111_s3 + $0x314] ss:$48 sps:$4 sm:$0xff]  }
 0x2bb   : > { %4902 = vmatpush1.bf16.msra.mxu1 %v6751_v1  ;;  %4860 = vmatprep.subr.bf16.mxu0 %v6756_v2  ;;  %v6849_v1 = vld [vmem:[%s9111_s3 + $0x31c] ss:$48 sps:$4 sm:$0xff]   ;;  %v6844_v2 = vld [vmem:[%s9111_s3 + $0x310] ss:$48 sps:$4 sm:$0xff]  }
 0x2bc   : > { %4903 = vmatprep.subr.bf16.mxu1 %v6759_v53  ;;  %v6847_v53 = vld [vmem:[%s9111_s3 + $0x318] ss:$48 sps:$4 sm:$0xff]  }
 0x2be   : > { %4861 = vmatpush1.bf16.msra.mxu0 %v6754_v54  ;;  %v6852_v54 = vld [vmem:[%s9111_s3 + $0x2c4] ss:$48 sps:$4 sm:$0xff]  }
 0x2bf   : > { %4904 = vmatpush1.bf16.msra.mxu1 %v6757_v3  ;;  %4862 = vmatprep.subr.bf16.mxu0 %v6762_v4  ;;  %v6855_v3 = vld [vmem:[%s9111_s3 + $0x2cc] ss:$48 sps:$4 sm:$0xff]   ;;  %v6850_v4 = vld [vmem:[%s9111_s3 + $0x2c0] ss:$48 sps:$4 sm:$0xff]  }
 0x2c0   : > { %4905 = vmatprep.subr.bf16.mxu1 %v6765_v5  ;;  %v6853_v5 = vld [vmem:[%s9111_s3 + $0x2c8] ss:$48 sps:$4 sm:$0xff]  }
 0x2c2   : > { %4863 = vmatpush1.bf16.msra.mxu0 %v6760_v6  ;;  %v6858_v6 = vld [vmem:[%s9111_s3 + $0x264] ss:$48 sps:$4 sm:$0xff]  }
 0x2c3   : > { %4906 = vmatpush1.bf16.msra.mxu1 %v6763_v12  ;;  %4864 = vmatprep.subr.bf16.mxu0 %v6768_v13  ;;  %v6861_v12 = vld [vmem:[%s9111_s3 + $0x26c] ss:$48 sps:$4 sm:$0xff]   ;;  %v6856_v13 = vld [vmem:[%s9111_s3 + $0x260] ss:$48 sps:$4 sm:$0xff]  }
 0x2c4   : > { %4907 = vmatprep.subr.bf16.mxu1 %v6771_v7  ;;  %v6859_v7 = vld [vmem:[%s9111_s3 + $0x268] ss:$48 sps:$4 sm:$0xff]  }
 0x2c6   : > { %4865 = vmatpush1.bf16.msra.mxu0 %v6766_v52  ;;  %v6864_v52 = vld [vmem:[%s9111_s3 + $0x204] ss:$48 sps:$4 sm:$0xff]  }
 0x2c7   : > { %4908 = vmatpush1.bf16.msra.mxu1 %v6769_v55  ;;  %4866 = vmatprep.subr.bf16.mxu0 %v6774_v8  ;;  %v6867_v55 = vld [vmem:[%s9111_s3 + $0x20c] ss:$48 sps:$4 sm:$0xff]   ;;  %v6862_v8 = vld [vmem:[%s9111_s3 + $0x200] ss:$48 sps:$4 sm:$0xff]  }
 0x2c8   : > { %4909 = vmatprep.subr.bf16.mxu1 %v6777_v9  ;;  %v6865_v9 = vld [vmem:[%s9111_s3 + $0x208] ss:$48 sps:$4 sm:$0xff]  }
 0x2ca   : > { %4867 = vmatpush1.bf16.msra.mxu0 %v6772_v10  ;;  %v6873_v10 = vld [vmem:[%s9111_s3 + $0x1ac] ss:$48 sps:$4 sm:$0xff]  }
 0x2cb   : > { %4910 = vmatpush1.bf16.msra.mxu1 %v6775_v45  ;;  %4880 = vmatprep.subr.bf16.mxu0 %v6780_v47  ;;  %v6868_v45 = vld [vmem:[%s9111_s3 + $0x1a0] ss:$48 sps:$4 sm:$0xff]   ;;  %v6871_v47 = vld [vmem:[%s9111_s3 + $0x1a8] ss:$48 sps:$4 sm:$0xff]  }
 0x2cc   : > { %4923 = vmatprep.subr.bf16.mxu1 %v6783_v28  ;;  %v6876_v28 = vld [vmem:[%s9111_s3 + $0x144] ss:$48 sps:$4 sm:$0xff]  }
 0x2ce   : > { %4881 = vmatpush2.bf16.msra.mxu0 %v6778_v29  ;;  %v6879_v29 = vld [vmem:[%s9111_s3 + $0x14c] ss:$48 sps:$4 sm:$0xff]  }
 0x2cf   : > { %4924 = vmatpush2.bf16.msra.mxu1 %v6781_v14  ;;  %4882 = vmatprep.subr.bf16.mxu0 %v6786_v40  ;;  %v6874_v14 = vld [vmem:[%s9111_s3 + $0x140] ss:$48 sps:$4 sm:$0xff]   ;;  %v6877_v40 = vld [vmem:[%s9111_s3 + $0x148] ss:$48 sps:$4 sm:$0xff]  }
 0x2d0   : > { %4925 = vmatprep.subr.bf16.mxu1 %v6789_v46  ;;  %v6882_v46 = vld [vmem:[%s9111_s3 + $0xe4] ss:$48 sps:$4 sm:$0xff]  }
 0x2d2   : > { %4883 = vmatpush2.bf16.msra.mxu0 %v6784_v15  ;;  %v6885_v15 = vld [vmem:[%s9111_s3 + $0xec] ss:$48 sps:$4 sm:$0xff]  }
 0x2d3   : > { %4926 = vmatpush2.bf16.msra.mxu1 %v6787_v17  ;;  %4938 = vmatprep.subr.bf16.mxu0 %v6792_v18  ;;  %v6880_v17 = vld [vmem:[%s9111_s3 + $0xe0] ss:$48 sps:$4 sm:$0xff]   ;;  %v6883_v18 = vld [vmem:[%s9111_s3 + $0xe8] ss:$48 sps:$4 sm:$0xff]  }
 0x2d4   : > { %4981 = vmatprep.subr.bf16.mxu1 %v6795_v19  ;;  %v6888_v19 = vld [vmem:[%s9111_s3 + $0x84] ss:$48 sps:$4 sm:$0xff]  }
 0x2d5   : > { %4885 = vmatmul.mubr.bf16.vlgmr.msra.gmra.mxu0 %v8326_v11 }
 0x2d6   : > { %4928 = vmatmul.mubr.bf16.vlgmr.msra.gmra.mxu1 %v8326_v11  ;;  %4939 = vmatpush1.bf16.msra.mxu0 %v6790_v20  ;;  %v6891_v20 = vld [vmem:[%s9111_s3 + $0x8c] ss:$48 sps:$4 sm:$0xff]  }
 0x2d7   : > { %5958 = vmatprep.mubr.msk.bf16.mxu0 %vm3987_vm2, %v8328_v16  ;;  %4982 = vmatpush1.bf16.msra.mxu1 %v6793_v21  ;;  %v6886_v21 = vld [vmem:[%s9111_s3 + $0x80] ss:$48 sps:$4 sm:$0xff]  }
 0x2d8   : > { %5959 = vmatprep.mubr.msk.bf16.mxu1 %vm3987_vm2, %v8328_v16  ;;  %4940 = vmatprep.subr.bf16.mxu0 %v6798_v22  ;;  %v6889_v22 = vld [vmem:[%s9111_s3 + $0x88] ss:$48 sps:$4 sm:$0xff]  }
 0x2d9   : > { %4983 = vmatprep.subr.bf16.mxu1 %v6801_v23  ;;  %v6894_v23 = vld [vmem:[%s9111_s3 + $0x24] ss:$48 sps:$4 sm:$0xff]  }
 0x2da   : > { %4941 = vmatpush1.bf16.msra.mxu0 %v6796_v26  ;;  %v6897_v26 = vld [vmem:[%s9111_s3 + $0x2c] ss:$48 sps:$4 sm:$0xff]  }
 0x2db   : > { %4984 = vmatpush1.bf16.msra.mxu1 %v6799_v27  ;;  %4942 = vmatprep.subr.bf16.mxu0 %v6804_v30  ;;  %v6892_v27 = vld [vmem:[%s9111_s3 + $0x20] ss:$48 sps:$4 sm:$0xff]   ;;  %v6895_v30 = vld [vmem:[%s9111_s3 + $0x28] ss:$48 sps:$4 sm:$0xff]  }
 0x2dc   : > { %4985 = vmatprep.subr.bf16.mxu1 %v6807_v31  ;;  %v6900_v31 = vld [vmem:[%s9111_s3 + $0x384] ss:$48 sps:$4 sm:$0xff]  }
 0x2de   : > { %4943 = vmatpush1.bf16.msra.mxu0 %v6802_v32  ;;  %v6903_v32 = vld [vmem:[%s9111_s3 + $0x38c] ss:$48 sps:$4 sm:$0xff]  }
 0x2df   : > { %4986 = vmatpush1.bf16.msra.mxu1 %v6805_v33  ;;  %4944 = vmatprep.subr.bf16.mxu0 %v6810_v34  ;;  %v6898_v33 = vld [vmem:[%s9111_s3 + $0x380] ss:$48 sps:$4 sm:$0xff]   ;;  %v6901_v34 = vld [vmem:[%s9111_s3 + $0x388] ss:$48 sps:$4 sm:$0xff]  }
 0x2e0   : > { %4987 = vmatprep.subr.bf16.mxu1 %v6813_v35  ;;  %v6906_v35 = vld [vmem:[%s9111_s3 + $0x324] ss:$48 sps:$4 sm:$0xff]  }
 0x2e2   : > { %4945 = vmatpush1.bf16.msra.mxu0 %v6808_v36  ;;  %v6909_v36 = vld [vmem:[%s9111_s3 + $0x32c] ss:$48 sps:$4 sm:$0xff]  }
 0x2e3   : > { %4988 = vmatpush1.bf16.msra.mxu1 %v6811_v37  ;;  %4946 = vmatprep.subr.bf16.mxu0 %v6816_v38  ;;  %v6904_v37 = vld [vmem:[%s9111_s3 + $0x320] ss:$48 sps:$4 sm:$0xff]   ;;  %v6907_v38 = vld [vmem:[%s9111_s3 + $0x328] ss:$48 sps:$4 sm:$0xff]  }
 0x2e4   : > { %4989 = vmatprep.subr.bf16.mxu1 %v6819_v39 }
 0x2e6   : > { %4947 = vmatpush1.bf16.msra.mxu0 %v6814_v41 }
 0x2e7   : > { %4990 = vmatpush1.bf16.msra.mxu1 %v6817_v42  ;;  %4948 = vmatprep.subr.bf16.mxu0 %v6822_v43 }
 0x2e8   : > { %4991 = vmatprep.subr.bf16.mxu1 %v6825_v44 }
 0x2ea   : > { %4949 = vmatpush1.bf16.msra.mxu0 %v6820_v48 }
 0x2eb   : > { %4992 = vmatpush1.bf16.msra.mxu1 %v6823_v49  ;;  %4950 = vmatprep.subr.bf16.mxu0 %v6828_v50 }
 0x2ec   : > { %4993 = vmatprep.subr.bf16.mxu1 %v6831_v51 }
 0x2ee   : > { %4951 = vmatpush1.bf16.msra.mxu0 %v6826_v56 }
 0x2ef   : > { %4994 = vmatpush1.bf16.msra.mxu1 %v6829_v57  ;;  %4952 = vmatprep.subr.bf16.mxu0 %v6834_v58 }
 0x2f0   : > { %4995 = vmatprep.subr.bf16.mxu1 %v6837_v59 }
 0x2f2   : > { %4953 = vmatpush1.bf16.msra.mxu0 %v6832_v60 }
 0x2f3   : > { %4996 = vmatpush1.bf16.msra.mxu1 %v6835_v24  ;;  %4966 = vmatprep.subr.bf16.mxu0 %v6840_v25 }
 0x2f4   : > { %5009 = vmatprep.subr.bf16.mxu1 %v6843_v61 }
 0x2f6   : > { %4967 = vmatpush2.bf16.msra.mxu0 %v6838_v62  ;;  %v5114_v62 = vlaneseq }
 0x2f7   : > { %5010 = vmatpush2.bf16.msra.mxu1 %v6841_v63  ;;  %4968 = vmatprep.subr.bf16.mxu0 %v6846_v0 }
 0x2f8   : > { %5011 = vmatprep.subr.bf16.mxu1 %v6849_v1  ;;  %v9008_v1 = vshrl.u32 %v5114_v62, 7 }
 0x2fa   : > { %4969 = vmatpush2.bf16.msra.mxu0 %v6844_v2 }
 0x2fb   : > { %5012 = vmatpush2.bf16.msra.mxu1 %v6847_v53  ;;  %5024 = vmatprep.subr.bf16.mxu0 %v6852_v54  ;;  %v5116_v54 = vsub.s32 0, %v9008_v1 }
 0x2fc   : > { %5067 = vmatprep.subr.bf16.mxu1 %v6855_v3  ;;  %v9018_v3 = vld [vmem:[%s9113_s5] sm:$0xff] }
 0x2fd   : > { %4971 = vmatmul.mubr.bf16.vlgmr.msra.gmra.mxu0 %v8326_v11 }
 0x2fe   : > { %5014 = vmatmul.mubr.bf16.vlgmr.msra.gmra.mxu1 %v8326_v11  ;;  %5025 = vmatpush1.bf16.msra.mxu0 %v6850_v4  ;;  %v5124_v4 = vsub.s32 2, %v9008_v1 }
 0x2ff   : > { %5960 = vmatprep.mubr.msk.bf16.mxu0 %vm3987_vm2, %v8328_v16  ;;  %5068 = vmatpush1.bf16.msra.mxu1 %v6853_v5  ;;  %v5120_v5 = vsub.s32 1, %v9008_v1 }
 0x300   : > { %5961 = vmatprep.mubr.msk.bf16.mxu1 %vm3987_vm2, %v8328_v16  ;;  %5026 = vmatprep.subr.bf16.mxu0 %v6858_v6  ;;  %v6870_v16 = vld [vmem:[%s9111_s3 + $0x1a4] ss:$48 sps:$4 sm:$0xff]  }
 0x301   : > { %5069 = vmatprep.subr.bf16.mxu1 %v6861_v12  ;;  %v5128_v12 = vsub.s32 3, %v9008_v1 }
 0x302   : > { %5027 = vmatpush1.bf16.msra.mxu0 %v6856_v13 }
 0x303   : > { %5070 = vmatpush1.bf16.msra.mxu1 %v6859_v7  ;;  %5028 = vmatprep.subr.bf16.mxu0 %v6864_v52  ;;  %v5117_v7 = vrot.slane %v9018_v3, %v5116_v54 }
 0x304   : > { %5071 = vmatprep.subr.bf16.mxu1 %v6867_v55  ;;  %v5125_v55 = vrot.slane %v9018_v3, %v5124_v4 }
 0x306   : > { %5029 = vmatpush1.bf16.msra.mxu0 %v6862_v8 }
 0x307   : > { %5072 = vmatpush1.bf16.msra.mxu1 %v6865_v9  ;;  %5030 = vmatprep.subr.bf16.mxu0 %v6870_v16  ;;  %v5121_v16 = vrot.slane %v9018_v3, %v5120_v5 }
 0x308   : > { %5073 = vmatprep.subr.bf16.mxu1 %v6873_v10 }
 0x30a   : > { %5031 = vmatpush1.bf16.msra.mxu0 %v6868_v45 }
 0x30b   : > { %5074 = vmatpush1.bf16.msra.mxu1 %v6871_v47  ;;  %5032 = vmatprep.subr.bf16.mxu0 %v6876_v28  ;;  %v5129_v47 = vrot.slane %v9018_v3, %v5128_v12 }
 0x30c   : > { %5075 = vmatprep.subr.bf16.mxu1 %v6879_v29 }
 0x30e   : > { %5033 = vmatpush1.bf16.msra.mxu0 %v6874_v14 }
 0x30f   : > { %5076 = vmatpush1.bf16.msra.mxu1 %v6877_v40  ;;  %5034 = vmatprep.subr.bf16.mxu0 %v6882_v46 }
 0x310   : > { %5077 = vmatprep.subr.bf16.mxu1 %v6885_v15 }
 0x312   : > { %5035 = vmatpush1.bf16.msra.mxu0 %v6880_v17 }
 0x313   : > { %5078 = vmatpush1.bf16.msra.mxu1 %v6883_v18  ;;  %5036 = vmatprep.subr.bf16.mxu0 %v6888_v19 }
 0x314   : > { %5079 = vmatprep.subr.bf16.mxu1 %v6891_v20 }
 0x316   : > { %5037 = vmatpush1.bf16.msra.mxu0 %v6886_v21 }
 0x317   : > { %5080 = vmatpush1.bf16.msra.mxu1 %v6889_v22  ;;  %5038 = vmatprep.subr.bf16.mxu0 %v6894_v23 }
 0x318   : > { %5081 = vmatprep.subr.bf16.mxu1 %v6897_v26 }
 0x31a   : > { %5039 = vmatpush1.bf16.msra.mxu0 %v6892_v27 }
 0x31b   : > { %5082 = vmatpush1.bf16.msra.mxu1 %v6895_v30  ;;  %5052 = vmatprep.subr.bf16.mxu0 %v6900_v31 }
 0x31c   : > { %5095 = vmatprep.subr.bf16.mxu1 %v6903_v32 }
 0x31d   : > { %v4025_v39 = vpop.f32.mrf.mxu0  ;;  %v4068_v41 = vpop.f32.mrf.mxu1 }
 0x31e   : > { %5053 = vmatpush2.bf16.msra.mxu0 %v6898_v33 }
 0x31f   : > { %5096 = vmatpush2.bf16.msra.mxu1 %v6901_v34  ;;  %5054 = vmatprep.subr.bf16.mxu0 %v6906_v35  ;;  %v4027_v42 = vpop.f32.mrf.mxu0  ;;  %v4070_v43 = vpop.f32.mrf.mxu1 }
 0x320   : > { %5097 = vmatprep.subr.bf16.mxu1 %v6909_v36 }
 0x321   : > { %v4029_v44 = vpop.f32.mrf.mxu0  ;;  %v4072_v48 = vpop.f32.mrf.mxu1 }
 0x322   : > { %5055 = vmatpush2.bf16.msra.mxu0 %v6904_v37 }
 0x323   : > { %5098 = vmatpush2.bf16.msra.mxu1 %v6907_v38  ;;  %v4031_v49 = vpop.f32.mrf.mxu0  ;;  %v4074_v50 = vpop.f32.mrf.mxu1 }
 0x325   : > { %5057 = vmatmul.mubr.bf16.vlgmr.msra.gmra.mxu0 %v8326_v11 }
 0x326   : > { %5100 = vmatmul.mubr.bf16.vlgmr.msra.gmra.mxu1 %v8326_v11 }
 0x345   : > { %v8984_v51 = vpop.f32.mrf.mxu0  ;;  %v8986_v56 = vpop.f32.mrf.mxu1 }
 0x347   : > { %v8988_v57 = vpop.f32.mrf.mxu0  ;;  %v8990_v58 = vpop.f32.mrf.mxu1 }
 0x349   : > { %v8992_v59 = vpop.f32.mrf.mxu0  ;;  %v8994_v60 = vpop.f32.mrf.mxu1 }
 0x34b   : > { %v8996_v11 = vpop.f32.mrf.mxu0  ;;  %v8998_v24 = vpop.f32.mrf.mxu1 }
 0x36d   : > { %v9000_v25 = vpop.f32.mrf.mxu0 }
 0x36e   : > { %v9002_v61 = vpop.f32.mrf.mxu1 }
 0x36f   : > { %v9004_v63 = vpop.f32.mrf.mxu0 }
 0x370   : > { %v9006_v0 = vpop.f32.mrf.mxu1 }
 0x371   : > { %v9010_v2 = vpop.f32.mrf.mxu0 }
 0x372   : > { %v9012_v53 = vpop.f32.mrf.mxu1 }
 0x373   : > { %v9022_v6 = vpop.f32.mrf.mxu0 }
 0x374   : > { %v9025_v13 = vpop.f32.mrf.mxu1 }
 0x395   : > { %v4886_v52 = vpop.f32.mrf.mxu0 }
 0x396   : > { %v4887_v8 = vadd.f32 %v4886_v52, %v4025_v39  ;;  %v4929_v9 = vpop.f32.mrf.mxu1 }
 0x397   : > { %v4930_v10 = vadd.f32 %v4929_v9, %v4068_v41  ;;  %v4888_v45 = vpop.f32.mrf.mxu0 }
 0x398   : > { %v5174_v28 = vadd.f32 %v5117_v7, %v4887_v8  ;;  %v4889_v29 = vadd.f32 %v4888_v45, %v4027_v42  ;;  %v4931_v14 = vpop.f32.mrf.mxu1 }
 0x399   : > { %v5176_v40 = vadd.f32 %v5125_v55, %v4930_v10  ;;  %v4932_v46 = vadd.f32 %v4931_v14, %v4070_v43  ;;  %v4890_v15 = vpop.f32.mrf.mxu0  ;;  %v5132_v43 = vsub.s32 4, %v9008_v1 }
 0x39a   : > { %v5198_v17 = vmax.f32 %v5174_v28, 0.0  ;;  %v5175_v18 = vadd.f32 %v5121_v16, %v4889_v29  ;;  %v4891_v19 = vadd.f32 %v4890_v15, %v4029_v44  ;;  %v4933_v20 = vpop.f32.mrf.mxu1  ;;  %v5140_v44 = vsub.s32 6, %v9008_v1 }
 0x39b   : > { %v5200_v21 = vmax.f32 %v5176_v40, 0.0  ;;  %v5177_v22 = vadd.f32 %v5129_v47, %v4932_v46  ;;  %v4934_v23 = vadd.f32 %v4933_v20, %v4072_v48  ;;  %v4892_v26 = vpop.f32.mrf.mxu0  ;;  %v5136_v48 = vsub.s32 5, %v9008_v1 }
 0x39c   : > { %5222 = vst [vmem:[%s9044_s29] sm:$0xff] %v5198_v17  ;;  %v5199_v27 = vmax.f32 %v5175_v18, 0.0  ;;  %v5186_v30 = vadd.f32 %v5117_v7, %v4891_v19  ;;  %v4893_v31 = vadd.f32 %v4892_v26, %v4031_v49  ;;  %v4935_v32 = vpop.f32.mrf.mxu1  ;;  %v5144_v49 = vsub.s32 7, %v9008_v1 }
 0x39d   : > { %5224 = vst [vmem:[%s9044_s29 + $0x10] sm:$0xff] %v5200_v21  ;;  %v5201_v33 = vmax.f32 %v5177_v22, 0.0  ;;  %v5188_v34 = vadd.f32 %v5125_v55, %v4934_v23  ;;  %v4936_v35 = vadd.f32 %v4935_v32, %v4074_v50  ;;  %v5133_v50 = vrot.slane %v9018_v3, %v5132_v43 }
 0x39e   : > { %5223 = vst [vmem:[%s9044_s29 + $0x8] sm:$0xff] %v5199_v27  ;;  %v5210_v36 = vmax.f32 %v5186_v30, 0.0  ;;  %v5187_v37 = vadd.f32 %v5121_v16, %v4893_v31  ;;  %v5141_v7 = vrot.slane %v9018_v3, %v5140_v44  ;;  %v5137_v8 = vrot.slane %v9018_v3, %v5136_v48 }
 0x39f   : > { %5225 = vst [vmem:[%s9044_s29 + $0x18] sm:$0xff] %v5201_v33  ;;  %v5212_v38 = vmax.f32 %v5188_v34, 0.0  ;;  %v5189_v39 = vadd.f32 %v5129_v47, %v4936_v35  ;;  %v5145_v10 = vrot.slane %v9018_v3, %v5144_v49 }
 0x3a0   : > { %5234 = vst [vmem:[%s9044_s29 + $0x60] sm:$0xff] %v5210_v36  ;;  %v5211_v41 = vmax.f32 %v5187_v37, 0.0 }
 0x3a1   : > { %5236 = vst [vmem:[%s9044_s29 + $0x70] sm:$0xff] %v5212_v38  ;;  %v5213_v42 = vmax.f32 %v5189_v39, 0.0 }
 0x3a2   : > { %5235 = vst [vmem:[%s9044_s29 + $0x68] sm:$0xff] %v5211_v41 }
 0x3a3   : > { %5237 = vst [vmem:[%s9044_s29 + $0x78] sm:$0xff] %v5213_v42 }
 0x3bd   : > { %v4972_v62 = vpop.f32.mrf.mxu0 }
 0x3be   : > { %v4973_v52 = vadd.f32 %v4972_v62, %v8984_v51  ;;  %v5015_v55 = vpop.f32.mrf.mxu1 }
 0x3bf   : > { %v5016_v9 = vadd.f32 %v5015_v55, %v8986_v56  ;;  %v4974_v16 = vpop.f32.mrf.mxu0 }
 0x3c0   : > { %v5178_v45 = vadd.f32 %v5133_v50, %v4973_v52  ;;  %v4975_v47 = vadd.f32 %v4974_v16, %v8988_v57  ;;  %v5017_v28 = vpop.f32.mrf.mxu1 }
 0x3c1   : > { %v5180_v29 = vadd.f32 %v5141_v7, %v5016_v9  ;;  %v5018_v14 = vadd.f32 %v5017_v28, %v8990_v58  ;;  %v4976_v40 = vpop.f32.mrf.mxu0 }
 0x3c2   : > { %v5202_v46 = vmax.f32 %v5178_v45, 0.0  ;;  %v5179_v51 = vadd.f32 %v5137_v8, %v4975_v47  ;;  %v4977_v15 = vadd.f32 %v4976_v40, %v8992_v59  ;;  %v5019_v17 = vpop.f32.mrf.mxu1 }
 0x3c3   : > { %v5204_v56 = vmax.f32 %v5180_v29, 0.0  ;;  %v5181_v18 = vadd.f32 %v5145_v10, %v5018_v14  ;;  %v5020_v3 = vadd.f32 %v5019_v17, %v8994_v60  ;;  %v4978_v19 = vpop.f32.mrf.mxu0 }
 0x3c4   : > { %5226 = vst [vmem:[%s9044_s29 + $0x20] sm:$0xff] %v5202_v46  ;;  %v5203_v57 = vmax.f32 %v5179_v51, 0.0  ;;  %v5190_v20 = vadd.f32 %v5133_v50, %v4977_v15  ;;  %v4979_v58 = vadd.f32 %v4978_v19, %v8996_v11  ;;  %v5021_v21 = vpop.f32.mrf.mxu1  ;;  %v5111_v11 = vld [vmem:[%s9113_s5 + $0x8] sm:$0xf] }
 0x3c5   : > { %5228 = vst [vmem:[%s9044_s29 + $0x30] sm:$0xff] %v5204_v56  ;;  %v5205_v22 = vmax.f32 %v5181_v18, 0.0  ;;  %v5192_v59 = vadd.f32 %v5141_v7, %v5020_v3  ;;  %v5022_v23 = vadd.f32 %v5021_v21, %v8998_v24  ;;  %v5149_v33 = vrot.slane %v5111_v11, %v5116_v54 }
 0x3c6   : > { %5227 = vst [vmem:[%s9044_s29 + $0x28] sm:$0xff] %v5203_v57  ;;  %v5214_v26 = vmax.f32 %v5190_v20, 0.0  ;;  %v5191_v27 = vadd.f32 %v5137_v8, %v4979_v58  ;;  %v5157_v34 = vrot.slane %v5111_v11, %v5124_v4  ;;  %v5153_v37 = vrot.slane %v5111_v11, %v5120_v5 }
 0x3c7   : > { %5229 = vst [vmem:[%s9044_s29 + $0x38] sm:$0xff] %v5205_v22  ;;  %v5216_v60 = vmax.f32 %v5192_v59, 0.0  ;;  %v5193_v30 = vadd.f32 %v5145_v10, %v5022_v23  ;;  %v5161_v41 = vrot.slane %v5111_v11, %v5128_v12 }
 0x3c8   : > { %5238 = vst [vmem:[%s9044_s29 + $0x80] sm:$0xff] %v5214_v26  ;;  %v5215_v31 = vmax.f32 %v5191_v27, 0.0 }
 0x3c9   : > { %5240 = vst [vmem:[%s9044_s29 + $0x90] sm:$0xff] %v5216_v60  ;;  %v5217_v32 = vmax.f32 %v5193_v30, 0.0 }
 0x3ca   : > { %5239 = vst [vmem:[%s9044_s29 + $0x88] sm:$0xff] %v5215_v31 }
 0x3cb   : > { %5241 = vst [vmem:[%s9044_s29 + $0x98] sm:$0xff] %v5217_v32 }
 0x3e5   : > { %v5058_v24 = vpop.f32.mrf.mxu0 }
 0x3e6   : > { %v5059_v35 = vadd.f32 %v5058_v24, %v9000_v25  ;;  %v5101_v36 = vpop.f32.mrf.mxu1 }
 0x3e7   : > { %v5102_v38 = vadd.f32 %v5101_v36, %v9002_v61  ;;  %v5060_v39 = vpop.f32.mrf.mxu0 }
 0x3e8   : > { %v5182_v42 = vadd.f32 %v5149_v33, %v5059_v35  ;;  %v5061_v54 = vadd.f32 %v5060_v39, %v9004_v63  ;;  %v5103_v43 = vpop.f32.mrf.mxu1 }
 0x3e9   : > { %v5184_v44 = vadd.f32 %v5157_v34, %v5102_v38  ;;  %v5104_v4 = vadd.f32 %v5103_v43, %v9006_v0  ;;  %v5062_v25 = vpop.f32.mrf.mxu0 }
 0x3ea   : > { %v5206_v48 = vmax.f32 %v5182_v42, 0.0  ;;  %v5183_v49 = vadd.f32 %v5153_v37, %v5061_v54  ;;  %v5063_v5 = vadd.f32 %v5062_v25, %v9010_v2  ;;  %v5105_v61 = vpop.f32.mrf.mxu1 }
 0x3eb   : > { %v5208_v50 = vmax.f32 %v5184_v44, 0.0  ;;  %v5185_v1 = vadd.f32 %v5161_v41, %v5104_v4  ;;  %v5106_v12 = vadd.f32 %v5105_v61, %v9012_v53  ;;  %v5064_v62 = vpop.f32.mrf.mxu0 }
 0x3ec   : > { %5230 = vst [vmem:[%s9044_s29 + $0x40] sm:$0xff] %v5206_v48  ;;  %v5207_v63 = vmax.f32 %v5183_v49, 0.0  ;;  %v5194_v7 = vadd.f32 %v5149_v33, %v5063_v5  ;;  %v5065_v0 = vadd.f32 %v5064_v62, %v9022_v6  ;;  %v5107_v52 = vpop.f32.mrf.mxu1 }
 0x3ed   : > { %5232 = vst [vmem:[%s9044_s29 + $0x50] sm:$0xff] %v5208_v50  ;;  %v5209_v55 = vmax.f32 %v5185_v1, 0.0  ;;  %v5196_v2 = vadd.f32 %v5157_v34, %v5106_v12  ;;  %v5108_v8 = vadd.f32 %v5107_v52, %v9025_v13 }
 0x3ee   : > { %5231 = vst [vmem:[%s9044_s29 + $0x48] sm:$0xff] %v5207_v63  ;;  %v5218_v9 = vmax.f32 %v5194_v7, 0.0  ;;  %v5195_v16 = vadd.f32 %v5153_v37, %v5065_v0 }
 0x3ef   : > { %5233 = vst [vmem:[%s9044_s29 + $0x58] sm:$0xff] %v5209_v55  ;;  %v5220_v53 = vmax.f32 %v5196_v2, 0.0  ;;  %v5197_v10 = vadd.f32 %v5161_v41, %v5108_v8 }
 0x3f0   : > { %5242 = vst [vmem:[%s9044_s29 + $0xa0] sm:$0xff] %v5218_v9  ;;  %v5219_v45 = vmax.f32 %v5195_v16, 0.0 }
 0x3f1   : > { %5244 = vst [vmem:[%s9044_s29 + $0xb0] sm:$0xff] %v5220_v53  ;;  %v5221_v47 = vmax.f32 %v5197_v10, 0.0 }
 0x3f2   : > { %5243 = vst [vmem:[%s9044_s29 + $0xa8] sm:$0xff] %v5219_v45 }
 0x3f3   : > { %5245 = vst [vmem:[%s9044_s29 + $0xb8] sm:$0xff] %v5221_v47 }
 0x3f4 PF: > { %s16_s21 = sadd.s32 1, %s6916_s21  }
 0x3f5   : > { %p13_p4 = scmp.ge.s32.totalorder %s16_s21, 4  }
 0x3f7   :  { %15 = sbr.rel (!%p13_p4) target bundleno = 1 (0x1), region = 74 }

// kernel: ftdnn_forward.69
= control target key start
LH: loop header
LB: loop body
LE: loop exit
PB: predicated region body
PF: predicated region fallthrough
CT: control target
= control target key end

     0   :  { %7 = vsyncpa [#allocation3], 0  ;;  %s2990_s0 = inlined_call_operand.vmem [shape: f32[2,16,1536], index: 0, kind: input, shape index: {}]   ;;  %s2991_s1 = inlined_call_operand.vmem [shape: bf16[1536,256], index: 1, kind: input, shape index: {}]   ;;  %s2992_s2 = inlined_call_operand.hbm [shape: f32[2,16,256], index: 2, kind: output, shape index: {}]  }
   0x1   :  { %9 = vsyncpa [#allocation3 + $0x1], 0  ;;  %s2282_s9 = smov 0   ;;  %s2284_s10 = smov 0  }
   0x2   :  { %s2286_s11 = smov 0   ;;  %s2288_s12 = smov 0  }
   0x3 LB: > { %s2303_s13 = sadd.s32 4294967295, %s2262_s12   ;;  %s1668_s14 = sadd.s32 4294967294, %s2262_s12   ;;  %s2262_s12 = sphi %s2288_s12, %s2998_s12   ;;  %s2258_s11 = sphi %s2286_s11, %s2997_s11   ;;  %s2254_s10 = sphi %s2284_s10, %s2996_s10   ;;  %s2250_s9 = sphi %s2282_s9, %s2995_s9  }
   0x4   : > { %s2307_s15 = sadd.s32 1, %s2262_s12   ;;  %s69_s16 = sadd.s32 1, %s2258_s11 }
   0x5   : > { %s66_s17 = ssub.s32 %s2262_s12, %s2307_s15  ;;  %p79_p0 = scmp.ne.s32.totalorder %s2258_s11, %s2254_s10 }
   0x6   : > { %p67_p1 = scmp.eq.s32.totalorder %s66_s17, 0  ;;  %p80_p2 = scmp.eq.s32.totalorder %s2303_s13, 1 }
   0x7   : > { %p85_p3 = scmp.ne.s32.totalorder %s2254_s10, %s2250_s9  ;;  %p86_p4 = scmp.eq.s32.totalorder %s1668_s14, 1 }
   0x8   : > { %s2318_s18 = scalar_select %p67_p1, %s2258_s11, %s69_s16  }
   0x9   : > { %p2320_p5 = por %p80_p2, %p79_p0  ;;  %p2324_p6 = por %p86_p4, %p85_p3 }
   0xa   : > { %p1671_p7 = scmp.ge.s32.totalorder %s2262_s12, 1  ;;  %p115_p8 = scmp.lt.s32.totalorder %s2262_s12, 3 }
   0xc   : > { %p116_p9 = pnand %p1671_p7, %p115_p8 }
   0xd   : > { %p137_p10 = scmp.lt.s32.totalorder (!%p116_p9), %s2303_s13, 1  ;;  %s1871_s30 = sshll.u32 (!%p116_p9), %s2303_s13, 9 }
   0xe   : > { %119 = sbr.rel (%p116_p9) target bundleno = 429 (0x1ad), region = 28  ;;  %s2946_s5 = scalar_lea.hbm (!%p116_p9), %s2992_s2, %s1871_s30 }
   0xf   : > { %s2264_s7 = smov (!%p116_p9), [#allocation2]  }
  0x13   : > { %v1914_v0 = vld [vmem:[%s2991_s1 + $0x74] ss:$8 sps:$4 sm:$0xff]   ;;  %v1918_v2 = vld [vmem:[%s2991_s1 + $0x70] ss:$8 sps:$4 sm:$0xff]   ;;  %v1920_v4 = vld [vmem:[%s2991_s1 + $0x64] ss:$8 sps:$4 sm:$0xff]  }
  0x14   : > { %v1916_v1 = vld [vmem:[%s2991_s1 + $0x174] ss:$8 sps:$4 sm:$0xff]   ;;  %1330 = vmatprep.subr.bf16.mxu0 %v1914_v0  ;;  %v1919_v3 = vld [vmem:[%s2991_s1 + $0x170] ss:$8 sps:$4 sm:$0xff]   ;;  %v1922_v5 = vld [vmem:[%s2991_s1 + $0x164] ss:$8 sps:$4 sm:$0xff]  }
  0x15   : > { %1373 = vmatprep.subr.bf16.mxu1 %v1916_v1  ;;  %1331 = vmatpush1.bf16.msra.mxu0 %v1918_v2  ;;  %v1924_v6 = vld [vmem:[%s2991_s1 + $0x60] ss:$8 sps:$4 sm:$0xff]   ;;  %v1926_v8 = vld [vmem:[%s2991_s1 + $0x54] ss:$8 sps:$4 sm:$0xff]   ;;  %v1930_v10 = vld [vmem:[%s2991_s1 + $0x50] ss:$8 sps:$4 sm:$0xff]  }
  0x16   : > { %1374 = vmatpush1.bf16.msra.mxu1 %v1919_v3  ;;  %1332 = vmatprep.subr.bf16.mxu0 %v1920_v4  ;;  %v1925_v7 = vld [vmem:[%s2991_s1 + $0x160] ss:$8 sps:$4 sm:$0xff]   ;;  %v1928_v9 = vld [vmem:[%s2991_s1 + $0x154] ss:$8 sps:$4 sm:$0xff]   ;;  %v1931_v11 = vld [vmem:[%s2991_s1 + $0x150] ss:$8 sps:$4 sm:$0xff]  }
  0x17   : > { %1375 = vmatprep.subr.bf16.mxu1 %v1922_v5  ;;  %v1932_v12 = vld [vmem:[%s2991_s1 + $0x44] ss:$8 sps:$4 sm:$0xff]   ;;  %v1936_v14 = vld [vmem:[%s2991_s1 + $0x40] ss:$8 sps:$4 sm:$0xff]   ;;  %v1938_v16 = vld [vmem:[%s2991_s1 + $0x34] ss:$8 sps:$4 sm:$0xff]  }
  0x18   : > { %v1934_v13 = vld [vmem:[%s2991_s1 + $0x144] ss:$8 sps:$4 sm:$0xff]   ;;  %v1937_v15 = vld [vmem:[%s2991_s1 + $0x140] ss:$8 sps:$4 sm:$0xff]   ;;  %v1940_v17 = vld [vmem:[%s2991_s1 + $0x134] ss:$8 sps:$4 sm:$0xff]  }
  0x19   : > { %1333 = vmatpush1.bf16.msra.mxu0 %v1924_v6  ;;  %v1942_v18 = vld [vmem:[%s2991_s1 + $0x30] ss:$8 sps:$4 sm:$0xff]   ;;  %v1944_v20 = vld [vmem:[%s2991_s1 + $0x24] ss:$8 sps:$4 sm:$0xff]   ;;  %v1948_v22 = vld [vmem:[%s2991_s1 + $0x20] ss:$8 sps:$4 sm:$0xff]  }
  0x1a   : > { %1376 = vmatpush1.bf16.msra.mxu1 %v1925_v7  ;;  %1334 = vmatprep.subr.bf16.mxu0 %v1926_v8  ;;  %v1943_v19 = vld [vmem:[%s2991_s1 + $0x130] ss:$8 sps:$4 sm:$0xff]   ;;  %v1946_v21 = vld [vmem:[%s2991_s1 + $0x124] ss:$8 sps:$4 sm:$0xff]   ;;  %v1949_v23 = vld [vmem:[%s2991_s1 + $0x120] ss:$8 sps:$4 sm:$0xff]  }
  0x1b   : > { %1377 = vmatprep.subr.bf16.mxu1 %v1928_v9  ;;  %v1950_v24 = vld [vmem:[%s2991_s1 + $0x14] ss:$8 sps:$4 sm:$0xff]   ;;  %v1954_v26 = vld [vmem:[%s2991_s1 + $0x10] ss:$8 sps:$4 sm:$0xff]   ;;  %v1956_v28 = vld [vmem:[%s2991_s1 + $0x4] ss:$8 sps:$4 sm:$0xff]  }
  0x1c   : > { %v1952_v25 = vld [vmem:[%s2991_s1 + $0x114] ss:$8 sps:$4 sm:$0xff]   ;;  %v1955_v27 = vld [vmem:[%s2991_s1 + $0x110] ss:$8 sps:$4 sm:$0xff]   ;;  %v1958_v29 = vld [vmem:[%s2991_s1 + $0x104] ss:$8 sps:$4 sm:$0xff]  }
  0x1d   : > { %1335 = vmatpush1.bf16.msra.mxu0 %v1930_v10  ;;  %v1960_v30 = vld [vmem:[%s2991_s1] ss:$8 sps:$4 sm:$0xff]   ;;  %v1962_v32 = vld [vmem:[%s2991_s1 + $0xf4] ss:$8 sps:$4 sm:$0xff]   ;;  %v1966_v34 = vld [vmem:[%s2991_s1 + $0xf0] ss:$8 sps:$4 sm:$0xff]  }
  0x1e   : > { %1378 = vmatpush1.bf16.msra.mxu1 %v1931_v11  ;;  %1336 = vmatprep.subr.bf16.mxu0 %v1932_v12  ;;  %v1961_v31 = vld [vmem:[%s2991_s1 + $0x100] ss:$8 sps:$4 sm:$0xff]   ;;  %v1964_v33 = vld [vmem:[%s2991_s1 + $0x1f4] ss:$8 sps:$4 sm:$0xff]   ;;  %v1967_v35 = vld [vmem:[%s2991_s1 + $0x1f0] ss:$8 sps:$4 sm:$0xff]  }
  0x1f   : > { %1379 = vmatprep.subr.bf16.mxu1 %v1934_v13  ;;  %s138_s8 = scalar_select %p137_p10, %s2303_s13, 1  ;;  %v1968_v36 = vld [vmem:[%s2991_s1 + $0xe4] ss:$8 sps:$4 sm:$0xff]   ;;  %v1972_v38 = vld [vmem:[%s2991_s1 + $0xe0] ss:$8 sps:$4 sm:$0xff]  }
  0x20   : > { %v1970_v37 = vld [vmem:[%s2991_s1 + $0x1e4] ss:$8 sps:$4 sm:$0xff]   ;;  %v1973_v39 = vld [vmem:[%s2991_s1 + $0x1e0] ss:$8 sps:$4 sm:$0xff]   ;;  %v1974_v40 = vld [vmem:[%s2991_s1 + $0xd4] ss:$8 sps:$4 sm:$0xff]  }
  0x21   : > { %1337 = vmatpush1.bf16.msra.mxu0 %v1936_v14  ;;  %s1872_s24 = smul.u32 192, %s138_s8  ;;  %v1976_v41 = vld [vmem:[%s2991_s1 + $0x1d4] ss:$8 sps:$4 sm:$0xff]   ;;  %v1978_v42 = vld [vmem:[%s2991_s1 + $0xd0] ss:$8 sps:$4 sm:$0xff]   ;;  %s2206_s8 = sshll.u32 %s2264_s7, 4  ;;  %s2207_s8 = int_to_ptr.vmem [resolvable:$false] %s2206_s8 }
  0x22   : > { %1380 = vmatpush1.bf16.msra.mxu1 %v1937_v15  ;;  %1338 = vmatprep.subr.bf16.mxu0 %v1938_v16  ;;  %v1979_v43 = vld [vmem:[%s2991_s1 + $0x1d0] ss:$8 sps:$4 sm:$0xff]   ;;  %v1980_v44 = vld [vmem:[%s2991_s1 + $0xc4] ss:$8 sps:$4 sm:$0xff]   ;;  %v1984_v50 = vld [vmem:[%s2991_s1 + $0xc0] ss:$8 sps:$4 sm:$0xff]  }
  0x23   : > { %1381 = vmatprep.subr.bf16.mxu1 %v1940_v17  ;;  %s2467_s14 = scalar_lea.vmem %s2990_s0, %s1872_s24  ;;  %v1982_v45 = vld [vmem:[%s2991_s1 + $0x1c4] ss:$8 sps:$4 sm:$0xff]   ;;  %v1985_v51 = vld [vmem:[%s2991_s1 + $0x1c0] ss:$8 sps:$4 sm:$0xff]   ;;  %v1986_v52 = vld [vmem:[%s2991_s1 + $0xb4] ss:$8 sps:$4 sm:$0xff]  }
  0x24   : > { %v143_v46 = vld [vmem:[%s2467_s14 + $0x8] sm:$0xff]  ;;  %v145_v48 = vld [vmem:[%s2467_s14 + $0x18] sm:$0xff]  ;;  %v142_v6 = vld [vmem:[%s2467_s14] sm:$0xff]  ;;  %s2208_s16 = scalar_lea.vmem %s2207_s8, 1024 }
  0x25   : > { %1339 = vmatpush1.bf16.msra.mxu0 %v1942_v18  ;;  %v155_v47 = vld [vmem:[%s2467_s14 + $0x68] sm:$0xff]  ;;  %v157_v49 = vld [vmem:[%s2467_s14 + $0x78] sm:$0xff]  ;;  %v154_v7 = vld [vmem:[%s2467_s14 + $0x60] sm:$0xff] }
  0x26   : > { %1382 = vmatpush1.bf16.msra.mxu1 %v1943_v19  ;;  %1340 = vmatprep.subr.bf16.mxu0 %v1944_v20  ;;  %v167_v53 = vpack.c.bf16 %v155_v47, %v143_v46  ;;  %v169_v54 = vpack.c.bf16 %v157_v49, %v145_v48  ;;  %v1988_v55 = vld [vmem:[%s2991_s1 + $0x1b4] ss:$8 sps:$4 sm:$0xff]   ;;  %v1990_v56 = vld [vmem:[%s2991_s1 + $0xb0] ss:$8 sps:$4 sm:$0xff]   ;;  %v1992_v58 = vld [vmem:[%s2991_s1 + $0xa4] ss:$8 sps:$4 sm:$0xff]   ;;  %v166_v12 = vpack.c.bf16 %v154_v7, %v142_v6 }
  0x27   : > { %1383 = vmatprep.subr.bf16.mxu1 %v1946_v21  ;;  %v1991_v57 = vld [vmem:[%s2991_s1 + $0x1b0] ss:$8 sps:$4 sm:$0xff]   ;;  %v1994_v59 = vld [vmem:[%s2991_s1 + $0x1a4] ss:$8 sps:$4 sm:$0xff]   ;;  %v1996_v60 = vld [vmem:[%s2991_s1 + $0xa0] ss:$8 sps:$4 sm:$0xff]  }
  0x28   : > { %1362 = vmatprep.mubr.bf16.mxu0 %v167_v53  ;;  %1405 = vmatprep.mubr.bf16.mxu1 %v169_v54  ;;  %v1997_v61 = vld [vmem:[%s2991_s1 + $0x1a0] ss:$8 sps:$4 sm:$0xff]   ;;  %v1998_v62 = vld [vmem:[%s2991_s1 + $0x94] ss:$8 sps:$4 sm:$0xff]   ;;  %v2002_v0 = vld [vmem:[%s2991_s1 + $0x90] ss:$8 sps:$4 sm:$0xff]  }
  0x29   : > { %1341 = vmatpush1.bf16.msra.mxu0 %v1948_v22  ;;  %v2000_v63 = vld [vmem:[%s2991_s1 + $0x194] ss:$8 sps:$4 sm:$0xff]   ;;  %v2003_v1 = vld [vmem:[%s2991_s1 + $0x190] ss:$8 sps:$4 sm:$0xff]   ;;  %v2004_v2 = vld [vmem:[%s2991_s1 + $0x84] ss:$8 sps:$4 sm:$0xff]  }
  0x2a   : > { %1384 = vmatpush1.bf16.msra.mxu1 %v1949_v23  ;;  %1342 = vmatprep.subr.bf16.mxu0 %v1950_v24  ;;  %v2006_v3 = vld [vmem:[%s2991_s1 + $0x184] ss:$8 sps:$4 sm:$0xff]   ;;  %v2008_v4 = vld [vmem:[%s2991_s1 + $0x80] ss:$8 sps:$4 sm:$0xff]   ;;  %v144_v8 = vld [vmem:[%s2467_s14 + $0x10] sm:$0xff] }
  0x2b   : > { %1385 = vmatprep.subr.bf16.mxu1 %v1952_v25  ;;  %v2009_v5 = vld [vmem:[%s2991_s1 + $0x180] ss:$8 sps:$4 sm:$0xff]   ;;  %v156_v9 = vld [vmem:[%s2467_s14 + $0x70] sm:$0xff]  ;;  %v2018_v16 = vld [vmem:[%s2991_s1 + $0x264] ss:$8 sps:$4 sm:$0xff]  }
  0x2c   : > { %v2012_v10 = vld [vmem:[%s2991_s1 + $0x274] ss:$8 sps:$4 sm:$0xff]   ;;  %v168_v13 = vpack.c.bf16 %v156_v9, %v144_v8  ;;  %v2010_v14 = vld [vmem:[%s2991_s1 + $0x270] ss:$8 sps:$4 sm:$0xff]   ;;  %v2021_v17 = vld [vmem:[%s2991_s1 + $0x364] ss:$8 sps:$4 sm:$0xff]  }
  0x2d   : > { %1343 = vmatpush1.bf16.msra.mxu0 %v1954_v26  ;;  %v2015_v11 = vld [vmem:[%s2991_s1 + $0x374] ss:$8 sps:$4 sm:$0xff]   ;;  %v2013_v15 = vld [vmem:[%s2991_s1 + $0x370] ss:$8 sps:$4 sm:$0xff]   ;;  %v2016_v18 = vld [vmem:[%s2991_s1 + $0x260] ss:$8 sps:$4 sm:$0xff]  }
  0x2e   : > { %1386 = vmatpush1.bf16.msra.mxu1 %v1955_v27  ;;  %1344 = vmatprep.subr.bf16.mxu0 %v1956_v28  ;;  %v2019_v19 = vld [vmem:[%s2991_s1 + $0x360] ss:$8 sps:$4 sm:$0xff]   ;;  %v2024_v20 = vld [vmem:[%s2991_s1 + $0x254] ss:$8 sps:$4 sm:$0xff]   ;;  %v2022_v22 = vld [vmem:[%s2991_s1 + $0x250] ss:$8 sps:$4 sm:$0xff]  }
  0x2f   : > { %1387 = vmatprep.subr.bf16.mxu1 %v1958_v29  ;;  %v2027_v21 = vld [vmem:[%s2991_s1 + $0x354] ss:$8 sps:$4 sm:$0xff]   ;;  %v2025_v23 = vld [vmem:[%s2991_s1 + $0x350] ss:$8 sps:$4 sm:$0xff]   ;;  %v2030_v24 = vld [vmem:[%s2991_s1 + $0x244] ss:$8 sps:$4 sm:$0xff]  }
  0x30   : > { %v2033_v25 = vld [vmem:[%s2991_s1 + $0x344] ss:$8 sps:$4 sm:$0xff]   ;;  %v2028_v26 = vld [vmem:[%s2991_s1 + $0x240] ss:$8 sps:$4 sm:$0xff]   ;;  %v2036_v28 = vld [vmem:[%s2991_s1 + $0x234] ss:$8 sps:$4 sm:$0xff]  }
  0x31   : > { %1345 = vmatpush1.bf16.msra.mxu0 %v1960_v30  ;;  %v2031_v27 = vld [vmem:[%s2991_s1 + $0x340] ss:$8 sps:$4 sm:$0xff]   ;;  %v2039_v29 = vld [vmem:[%s2991_s1 + $0x334] ss:$8 sps:$4 sm:$0xff]   ;;  %v2034_v30 = vld [vmem:[%s2991_s1 + $0x230] ss:$8 sps:$4 sm:$0xff]  }
  0x32   : > { %1388 = vmatpush1.bf16.msra.mxu1 %v1961_v31  ;;  %1346 = vmatprep.subr.bf16.mxu0 %v1962_v32  ;;  %v2037_v31 = vld [vmem:[%s2991_s1 + $0x330] ss:$8 sps:$4 sm:$0xff]   ;;  %v2042_v32 = vld [vmem:[%s2991_s1 + $0x224] ss:$8 sps:$4 sm:$0xff]   ;;  %v2052_v48 = vld [vmem:[%s2991_s1 + $0x200] ss:$8 sps:$4 sm:$0xff]  }
  0x33   : > { %1389 = vmatprep.subr.bf16.mxu1 %v1964_v33  ;;  %v2045_v33 = vld [vmem:[%s2991_s1 + $0x324] ss:$8 sps:$4 sm:$0xff]   ;;  %v161_v46 = vld [vmem:[%s2467_s14 + $0x98] sm:$0xff]  ;;  %v2055_v49 = vld [vmem:[%s2991_s1 + $0x300] ss:$8 sps:$4 sm:$0xff]  }
  0x34   : > { %v2061_v53 = vld [vmem:[%s2991_s1 + $0x3f0] ss:$8 sps:$4 sm:$0xff]   ;;  %v2066_v54 = vld [vmem:[%s2991_s1 + $0x2e4] ss:$8 sps:$4 sm:$0xff]   ;;  %v2088_v8 = vld [vmem:[%s2991_s1 + $0x2a0] ss:$8 sps:$4 sm:$0xff]  }
  0x35   : > { %1347 = vmatpush2.bf16.msra.mxu0 %v1966_v34  ;;  %v2040_v34 = vld [vmem:[%s2991_s1 + $0x220] ss:$8 sps:$4 sm:$0xff]   ;;  %v2090_v6 = vld [vmem:[%s2991_s1 + $0x2a4] ss:$8 sps:$4 sm:$0xff]  }
  0x36   : > { %1390 = vmatpush2.bf16.msra.mxu1 %v1967_v35  ;;  %1348 = vmatprep.subr.bf16.mxu0 %v1968_v36  ;;  %v2043_v35 = vld [vmem:[%s2991_s1 + $0x320] ss:$8 sps:$4 sm:$0xff]   ;;  %v2048_v36 = vld [vmem:[%s2991_s1 + $0x214] ss:$8 sps:$4 sm:$0xff]   ;;  %v2093_v7 = vld [vmem:[%s2991_s1 + $0x3a4] ss:$8 sps:$4 sm:$0xff]  }
  0x37   : > { %1391 = vmatprep.subr.bf16.mxu1 %v1970_v37  ;;  %v2051_v37 = vld [vmem:[%s2991_s1 + $0x314] ss:$8 sps:$4 sm:$0xff]   ;;  %v2091_v9 = vld [vmem:[%s2991_s1 + $0x3a0] ss:$8 sps:$4 sm:$0xff]  }
  0x39   : > { %1349 = vmatpush2.bf16.msra.mxu0 %v1972_v38  ;;  %v2046_v38 = vld [vmem:[%s2991_s1 + $0x210] ss:$8 sps:$4 sm:$0xff]  }
  0x3a   : > { %1392 = vmatpush2.bf16.msra.mxu1 %v1973_v39  ;;  %1350 = vmatprep.subr.bf16.mxu0 %v1974_v40  ;;  %v2049_v39 = vld [vmem:[%s2991_s1 + $0x310] ss:$8 sps:$4 sm:$0xff]   ;;  %v147_v40 = vld [vmem:[%s2467_s14 + $0x28] sm:$0xff] }
  0x3b   : > { %1393 = vmatprep.subr.bf16.mxu1 %v1976_v41  ;;  %v159_v41 = vld [vmem:[%s2467_s14 + $0x88] sm:$0xff] }
  0x3d   : > { %1351 = vmatpush2.bf16.msra.mxu0 %v1978_v42  ;;  %v149_v42 = vld [vmem:[%s2467_s14 + $0x38] sm:$0xff] }
  0x3e   : > { %1394 = vmatpush2.bf16.msra.mxu1 %v1979_v43  ;;  %1352 = vmatprep.subr.bf16.mxu0 %v1980_v44  ;;  %v2054_v43 = vld [vmem:[%s2991_s1 + $0x204] ss:$8 sps:$4 sm:$0xff]   ;;  %v173_v47 = vpack.c.bf16 %v161_v46, %v149_v42  ;;  %v2132_v46 = vld [vmem:[%s2991_s1 + $0x434] ss:$8 sps:$4 sm:$0xff]  }
  0x3f   : > { %1395 = vmatprep.subr.bf16.mxu1 %v1982_v45  ;;  %v2057_v44 = vld [vmem:[%s2991_s1 + $0x304] ss:$8 sps:$4 sm:$0xff]   ;;  %v171_v45 = vpack.c.bf16 %v159_v41, %v147_v40  ;;  %v2118_v40 = vld [vmem:[%s2991_s1 + $0x450] ss:$8 sps:$4 sm:$0xff]  }
  0x40   : > { %v2121_v41 = vld [vmem:[%s2991_s1 + $0x550] ss:$8 sps:$4 sm:$0xff]   ;;  %v2126_v42 = vld [vmem:[%s2991_s1 + $0x444] ss:$8 sps:$4 sm:$0xff]  }
  0x41   : > { %1353 = vmatpush2.bf16.msra.mxu0 %v1984_v50  ;;  %v2060_v50 = vld [vmem:[%s2991_s1 + $0x2f4] ss:$8 sps:$4 sm:$0xff]  }
  0x42   : > { %1396 = vmatpush2.bf16.msra.mxu1 %v1985_v51  ;;  %1354 = vmatprep.subr.bf16.mxu0 %v1986_v52  ;;  %v2063_v51 = vld [vmem:[%s2991_s1 + $0x3f4] ss:$8 sps:$4 sm:$0xff]   ;;  %v2058_v52 = vld [vmem:[%s2991_s1 + $0x2f0] ss:$8 sps:$4 sm:$0xff]  }
  0x43   : > { %1397 = vmatprep.subr.bf16.mxu1 %v1988_v55  ;;  %v2069_v55 = vld [vmem:[%s2991_s1 + $0x3e4] ss:$8 sps:$4 sm:$0xff]  }
  0x45   : > { %1355 = vmatpush2.bf16.msra.mxu0 %v1990_v56  ;;  %v2064_v56 = vld [vmem:[%s2991_s1 + $0x2e0] ss:$8 sps:$4 sm:$0xff]  }
  0x46   : > { %1398 = vmatpush2.bf16.msra.mxu1 %v1991_v57  ;;  %1356 = vmatprep.subr.bf16.mxu0 %v1992_v58  ;;  %v2067_v57 = vld [vmem:[%s2991_s1 + $0x3e0] ss:$8 sps:$4 sm:$0xff]   ;;  %v2072_v58 = vld [vmem:[%s2991_s1 + $0x2d4] ss:$8 sps:$4 sm:$0xff]  }
  0x47   : > { %1399 = vmatprep.subr.bf16.mxu1 %v1994_v59  ;;  %v2075_v59 = vld [vmem:[%s2991_s1 + $0x3d4] ss:$8 sps:$4 sm:$0xff]  }
  0x49   : > { %1357 = vmatpush2.bf16.msra.mxu0 %v1996_v60  ;;  %v2070_v60 = vld [vmem:[%s2991_s1 + $0x2d0] ss:$8 sps:$4 sm:$0xff]  }
  0x4a   : > { %1400 = vmatpush2.bf16.msra.mxu1 %v1997_v61  ;;  %1358 = vmatprep.subr.bf16.mxu0 %v1998_v62  ;;  %v2073_v61 = vld [vmem:[%s2991_s1 + $0x3d0] ss:$8 sps:$4 sm:$0xff]   ;;  %v2078_v62 = vld [vmem:[%s2991_s1 + $0x2c4] ss:$8 sps:$4 sm:$0xff]  }
  0x4b   : > { %1401 = vmatprep.subr.bf16.mxu1 %v2000_v63  ;;  %v2081_v63 = vld [vmem:[%s2991_s1 + $0x3c4] ss:$8 sps:$4 sm:$0xff]  }
  0x4d   : > { %1359 = vmatpush2.bf16.msra.mxu0 %v2002_v0  ;;  %v2076_v0 = vld [vmem:[%s2991_s1 + $0x2c0] ss:$8 sps:$4 sm:$0xff]  }
  0x4e   : > { %1402 = vmatpush2.bf16.msra.mxu1 %v2003_v1  ;;  %1360 = vmatprep.subr.bf16.mxu0 %v2004_v2  ;;  %v2079_v1 = vld [vmem:[%s2991_s1 + $0x3c0] ss:$8 sps:$4 sm:$0xff]   ;;  %v2084_v2 = vld [vmem:[%s2991_s1 + $0x2b4] ss:$8 sps:$4 sm:$0xff]  }
  0x4f   : > { %1403 = vmatprep.subr.bf16.mxu1 %v2006_v3  ;;  %v2087_v3 = vld [vmem:[%s2991_s1 + $0x3b4] ss:$8 sps:$4 sm:$0xff]  }
  0x51   : > { %1361 = vmatpush2.bf16.msra.mxu0 %v2008_v4  ;;  %v2082_v4 = vld [vmem:[%s2991_s1 + $0x2b0] ss:$8 sps:$4 sm:$0xff]  }
  0x52   : > { %1404 = vmatpush2.bf16.msra.mxu1 %v2009_v5  ;;  %1416 = vmatprep.subr.bf16.mxu0 %v2012_v10  ;;  %v2085_v5 = vld [vmem:[%s2991_s1 + $0x3b0] ss:$8 sps:$4 sm:$0xff]   ;;  %v2096_v10 = vld [vmem:[%s2991_s1 + $0x294] ss:$8 sps:$4 sm:$0xff]  }
  0x53   : > { %1459 = vmatprep.subr.bf16.mxu1 %v2015_v11  ;;  %v2099_v11 = vld [vmem:[%s2991_s1 + $0x394] ss:$8 sps:$4 sm:$0xff]  }
  0x54   : > { %1363 = vmatmul.mubr.bf16.vlgmr.msra.gmra.mxu0 %v166_v12  ;;  %v2094_v12 = vld [vmem:[%s2991_s1 + $0x290] ss:$8 sps:$4 sm:$0xff]  }
  0x55   : > { %1406 = vmatmul.mubr.bf16.vlgmr.msra.gmra.mxu1 %v168_v13  ;;  %1417 = vmatpush1.bf16.msra.mxu0 %v2010_v14  ;;  %v2097_v13 = vld [vmem:[%s2991_s1 + $0x390] ss:$8 sps:$4 sm:$0xff]   ;;  %v2102_v14 = vld [vmem:[%s2991_s1 + $0x284] ss:$8 sps:$4 sm:$0xff]  }
  0x56   : > { %1460 = vmatpush1.bf16.msra.mxu1 %v2013_v15  ;;  %1418 = vmatprep.subr.bf16.mxu0 %v2018_v16  ;;  %v2105_v15 = vld [vmem:[%s2991_s1 + $0x384] ss:$8 sps:$4 sm:$0xff]   ;;  %v2100_v16 = vld [vmem:[%s2991_s1 + $0x280] ss:$8 sps:$4 sm:$0xff]  }
  0x57   : > { %1461 = vmatprep.subr.bf16.mxu1 %v2021_v17  ;;  %1448 = vmatprep.mubr.bf16.mxu0 %v171_v45  ;;  %v2103_v17 = vld [vmem:[%s2991_s1 + $0x380] ss:$8 sps:$4 sm:$0xff]  }
  0x58   : > { %1491 = vmatprep.mubr.bf16.mxu1 %v173_v47  ;;  %v2127_v45 = vld [vmem:[%s2991_s1 + $0x540] ss:$8 sps:$4 sm:$0xff]   ;;  %v2135_v47 = vld [vmem:[%s2991_s1 + $0x534] ss:$8 sps:$4 sm:$0xff]  }
  0x59   : > { %1419 = vmatpush1.bf16.msra.mxu0 %v2016_v18  ;;  %v146_v18 = vld [vmem:[%s2467_s14 + $0x20] sm:$0xff] }
  0x5a   : > { %1462 = vmatpush1.bf16.msra.mxu1 %v2019_v19  ;;  %1420 = vmatprep.subr.bf16.mxu0 %v2024_v20  ;;  %v158_v19 = vld [vmem:[%s2467_s14 + $0x80] sm:$0xff]  ;;  %v148_v20 = vld [vmem:[%s2467_s14 + $0x30] sm:$0xff] }
  0x5b   : > { %1463 = vmatprep.subr.bf16.mxu1 %v2027_v21  ;;  %v160_v21 = vld [vmem:[%s2467_s14 + $0x90] sm:$0xff] }
  0x5d   : > { %1421 = vmatpush1.bf16.msra.mxu0 %v2022_v22  ;;  %v2108_v22 = vld [vmem:[%s2991_s1 + $0x474] ss:$8 sps:$4 sm:$0xff]  }
  0x5e   : > { %1464 = vmatpush1.bf16.msra.mxu1 %v2025_v23  ;;  %1422 = vmatprep.subr.bf16.mxu0 %v2030_v24  ;;  %v2111_v23 = vld [vmem:[%s2991_s1 + $0x574] ss:$8 sps:$4 sm:$0xff]   ;;  %v170_v24 = vpack.c.bf16 %v158_v19, %v146_v18  ;;  %v2186_v18 = vld [vmem:[%s2991_s1 + $0x4a4] ss:$8 sps:$4 sm:$0xff]  }
  0x5f   : > { %1465 = vmatprep.subr.bf16.mxu1 %v2033_v25  ;;  %v172_v25 = vpack.c.bf16 %v160_v21, %v148_v20  ;;  %v2189_v19 = vld [vmem:[%s2991_s1 + $0x5a4] ss:$8 sps:$4 sm:$0xff]   ;;  %v2184_v20 = vld [vmem:[%s2991_s1 + $0x4a0] ss:$8 sps:$4 sm:$0xff]  }
  0x60   : > { %v2187_v21 = vld [vmem:[%s2991_s1 + $0x5a0] ss:$8 sps:$4 sm:$0xff]  }
  0x61   : > { %1423 = vmatpush1.bf16.msra.mxu0 %v2028_v26  ;;  %v2106_v26 = vld [vmem:[%s2991_s1 + $0x470] ss:$8 sps:$4 sm:$0xff]  }
  0x62   : > { %1466 = vmatpush1.bf16.msra.mxu1 %v2031_v27  ;;  %1424 = vmatprep.subr.bf16.mxu0 %v2036_v28  ;;  %v2109_v27 = vld [vmem:[%s2991_s1 + $0x570] ss:$8 sps:$4 sm:$0xff]   ;;  %v2114_v28 = vld [vmem:[%s2991_s1 + $0x464] ss:$8 sps:$4 sm:$0xff]  }
  0x63   : > { %1467 = vmatprep.subr.bf16.mxu1 %v2039_v29  ;;  %v2117_v29 = vld [vmem:[%s2991_s1 + $0x564] ss:$8 sps:$4 sm:$0xff]  }
  0x65   : > { %1425 = vmatpush1.bf16.msra.mxu0 %v2034_v30  ;;  %v2112_v30 = vld [vmem:[%s2991_s1 + $0x460] ss:$8 sps:$4 sm:$0xff]  }
  0x66   : > { %1468 = vmatpush1.bf16.msra.mxu1 %v2037_v31  ;;  %1426 = vmatprep.subr.bf16.mxu0 %v2042_v32  ;;  %v2115_v31 = vld [vmem:[%s2991_s1 + $0x560] ss:$8 sps:$4 sm:$0xff]   ;;  %v2120_v32 = vld [vmem:[%s2991_s1 + $0x454] ss:$8 sps:$4 sm:$0xff]  }
  0x67   : > { %1469 = vmatprep.subr.bf16.mxu1 %v2045_v33  ;;  %v2123_v33 = vld [vmem:[%s2991_s1 + $0x554] ss:$8 sps:$4 sm:$0xff]  }
  0x69   : > { %1427 = vmatpush1.bf16.msra.mxu0 %v2040_v34  ;;  %v151_v34 = vld [vmem:[%s2467_s14 + $0x48] sm:$0xff] }
  0x6a   : > { %1470 = vmatpush1.bf16.msra.mxu1 %v2043_v35  ;;  %1428 = vmatprep.subr.bf16.mxu0 %v2048_v36  ;;  %v163_v35 = vld [vmem:[%s2467_s14 + $0xa8] sm:$0xff] }
  0x6b   : > { %1471 = vmatprep.subr.bf16.mxu1 %v2051_v37  ;;  %v175_v36 = vpack.c.bf16 %v163_v35, %v151_v34  ;;  %v153_v37 = vld [vmem:[%s2467_s14 + $0x58] sm:$0xff] }
  0x6d   : > { %1429 = vmatpush1.bf16.msra.mxu0 %v2046_v38  ;;  %v165_v38 = vld [vmem:[%s2467_s14 + $0xb8] sm:$0xff] }
  0x6e   : > { %1472 = vmatpush1.bf16.msra.mxu1 %v2049_v39  ;;  %1430 = vmatprep.subr.bf16.mxu0 %v2054_v43  ;;  %v177_v39 = vpack.c.bf16 %v165_v38, %v153_v37  ;;  %v2129_v43 = vld [vmem:[%s2991_s1 + $0x544] ss:$8 sps:$4 sm:$0xff]  }
  0x6f   : > { %1473 = vmatprep.subr.bf16.mxu1 %v2057_v44  ;;  %v2124_v44 = vld [vmem:[%s2991_s1 + $0x440] ss:$8 sps:$4 sm:$0xff]  }
  0x71   : > { %1431 = vmatpush1.bf16.msra.mxu0 %v2052_v48  ;;  %v2130_v48 = vld [vmem:[%s2991_s1 + $0x430] ss:$8 sps:$4 sm:$0xff]  }
  0x72   : > { %1474 = vmatpush1.bf16.msra.mxu1 %v2055_v49  ;;  %1432 = vmatprep.subr.bf16.mxu0 %v2060_v50  ;;  %v2133_v49 = vld [vmem:[%s2991_s1 + $0x530] ss:$8 sps:$4 sm:$0xff]   ;;  %v2138_v50 = vld [vmem:[%s2991_s1 + $0x424] ss:$8 sps:$4 sm:$0xff]  }
  0x73   : > { %1475 = vmatprep.subr.bf16.mxu1 %v2063_v51  ;;  %v2141_v51 = vld [vmem:[%s2991_s1 + $0x524] ss:$8 sps:$4 sm:$0xff]  }
  0x75   : > { %1433 = vmatpush2.bf16.msra.mxu0 %v2058_v52  ;;  %v2136_v52 = vld [vmem:[%s2991_s1 + $0x420] ss:$8 sps:$4 sm:$0xff]  }
  0x76   : > { %1476 = vmatpush2.bf16.msra.mxu1 %v2061_v53  ;;  %1434 = vmatprep.subr.bf16.mxu0 %v2066_v54  ;;  %v2139_v53 = vld [vmem:[%s2991_s1 + $0x520] ss:$8 sps:$4 sm:$0xff]   ;;  %v2144_v54 = vld [vmem:[%s2991_s1 + $0x414] ss:$8 sps:$4 sm:$0xff]  }
  0x77   : > { %1477 = vmatprep.subr.bf16.mxu1 %v2069_v55  ;;  %v2147_v55 = vld [vmem:[%s2991_s1 + $0x514] ss:$8 sps:$4 sm:$0xff]  }
  0x79   : > { %1435 = vmatpush2.bf16.msra.mxu0 %v2064_v56  ;;  %v2142_v56 = vld [vmem:[%s2991_s1 + $0x410] ss:$8 sps:$4 sm:$0xff]  }
  0x7a   : > { %1478 = vmatpush2.bf16.msra.mxu1 %v2067_v57  ;;  %1436 = vmatprep.subr.bf16.mxu0 %v2072_v58  ;;  %v2145_v57 = vld [vmem:[%s2991_s1 + $0x510] ss:$8 sps:$4 sm:$0xff]   ;;  %v2150_v58 = vld [vmem:[%s2991_s1 + $0x404] ss:$8 sps:$4 sm:$0xff]  }
  0x7b   : > { %1479 = vmatprep.subr.bf16.mxu1 %v2075_v59  ;;  %v2153_v59 = vld [vmem:[%s2991_s1 + $0x504] ss:$8 sps:$4 sm:$0xff]  }
  0x7d   : > { %1437 = vmatpush2.bf16.msra.mxu0 %v2070_v60  ;;  %v2148_v60 = vld [vmem:[%s2991_s1 + $0x400] ss:$8 sps:$4 sm:$0xff]  }
  0x7e   : > { %1480 = vmatpush2.bf16.msra.mxu1 %v2073_v61  ;;  %1438 = vmatprep.subr.bf16.mxu0 %v2078_v62  ;;  %v2151_v61 = vld [vmem:[%s2991_s1 + $0x500] ss:$8 sps:$4 sm:$0xff]   ;;  %v2156_v62 = vld [vmem:[%s2991_s1 + $0x4f4] ss:$8 sps:$4 sm:$0xff]  }
  0x7f   : > { %1481 = vmatprep.subr.bf16.mxu1 %v2081_v63  ;;  %v2159_v63 = vld [vmem:[%s2991_s1 + $0x5f4] ss:$8 sps:$4 sm:$0xff]  }
  0x81   : > { %1439 = vmatpush2.bf16.msra.mxu0 %v2076_v0  ;;  %v2154_v0 = vld [vmem:[%s2991_s1 + $0x4f0] ss:$8 sps:$4 sm:$0xff]  }
  0x82   : > { %1482 = vmatpush2.bf16.msra.mxu1 %v2079_v1  ;;  %1440 = vmatprep.subr.bf16.mxu0 %v2084_v2  ;;  %v2157_v1 = vld [vmem:[%s2991_s1 + $0x5f0] ss:$8 sps:$4 sm:$0xff]   ;;  %v2162_v2 = vld [vmem:[%s2991_s1 + $0x4e4] ss:$8 sps:$4 sm:$0xff]  }
  0x83   : > { %1483 = vmatprep.subr.bf16.mxu1 %v2087_v3  ;;  %v2165_v3 = vld [vmem:[%s2991_s1 + $0x5e4] ss:$8 sps:$4 sm:$0xff]  }
  0x85   : > { %1441 = vmatpush2.bf16.msra.mxu0 %v2082_v4  ;;  %v2160_v4 = vld [vmem:[%s2991_s1 + $0x4e0] ss:$8 sps:$4 sm:$0xff]  }
  0x86   : > { %1484 = vmatpush2.bf16.msra.mxu1 %v2085_v5  ;;  %1442 = vmatprep.subr.bf16.mxu0 %v2090_v6  ;;  %v2163_v5 = vld [vmem:[%s2991_s1 + $0x5e0] ss:$8 sps:$4 sm:$0xff]   ;;  %v2168_v6 = vld [vmem:[%s2991_s1 + $0x4d4] ss:$8 sps:$4 sm:$0xff]  }
  0x87   : > { %1485 = vmatprep.subr.bf16.mxu1 %v2093_v7  ;;  %v2171_v7 = vld [vmem:[%s2991_s1 + $0x5d4] ss:$8 sps:$4 sm:$0xff]  }
  0x89   : > { %1443 = vmatpush2.bf16.msra.mxu0 %v2088_v8  ;;  %v2166_v8 = vld [vmem:[%s2991_s1 + $0x4d0] ss:$8 sps:$4 sm:$0xff]  }
  0x8a   : > { %1486 = vmatpush2.bf16.msra.mxu1 %v2091_v9  ;;  %1444 = vmatprep.subr.bf16.mxu0 %v2096_v10  ;;  %v2169_v9 = vld [vmem:[%s2991_s1 + $0x5d0] ss:$8 sps:$4 sm:$0xff]   ;;  %v2174_v10 = vld [vmem:[%s2991_s1 + $0x4c4] ss:$8 sps:$4 sm:$0xff]  }
  0x8b   : > { %1487 = vmatprep.subr.bf16.mxu1 %v2099_v11  ;;  %v2177_v11 = vld [vmem:[%s2991_s1 + $0x5c4] ss:$8 sps:$4 sm:$0xff]  }
  0x8d   : > { %1445 = vmatpush2.bf16.msra.mxu0 %v2094_v12  ;;  %v2172_v12 = vld [vmem:[%s2991_s1 + $0x4c0] ss:$8 sps:$4 sm:$0xff]  }
  0x8e   : > { %1488 = vmatpush2.bf16.msra.mxu1 %v2097_v13  ;;  %1446 = vmatprep.subr.bf16.mxu0 %v2102_v14  ;;  %v2175_v13 = vld [vmem:[%s2991_s1 + $0x5c0] ss:$8 sps:$4 sm:$0xff]   ;;  %v2180_v14 = vld [vmem:[%s2991_s1 + $0x4b4] ss:$8 sps:$4 sm:$0xff]  }
  0x8f   : > { %1489 = vmatprep.subr.bf16.mxu1 %v2105_v15  ;;  %v2183_v15 = vld [vmem:[%s2991_s1 + $0x5b4] ss:$8 sps:$4 sm:$0xff]  }
  0x91   : > { %1447 = vmatpush2.bf16.msra.mxu0 %v2100_v16  ;;  %v2178_v16 = vld [vmem:[%s2991_s1 + $0x4b0] ss:$8 sps:$4 sm:$0xff]  }
  0x92   : > { %1490 = vmatpush2.bf16.msra.mxu1 %v2103_v17  ;;  %1502 = vmatprep.subr.bf16.mxu0 %v2108_v22  ;;  %v2181_v17 = vld [vmem:[%s2991_s1 + $0x5b0] ss:$8 sps:$4 sm:$0xff]   ;;  %v2192_v22 = vld [vmem:[%s2991_s1 + $0x494] ss:$8 sps:$4 sm:$0xff]  }
  0x93   : > { %1545 = vmatprep.subr.bf16.mxu1 %v2111_v23  ;;  %v2195_v23 = vld [vmem:[%s2991_s1 + $0x594] ss:$8 sps:$4 sm:$0xff]  }
  0x94   : > { %1449 = vmatmul.mubr.bf16.vlgmr.msra.gmra.mxu0 %v170_v24  ;;  %v2190_v24 = vld [vmem:[%s2991_s1 + $0x490] ss:$8 sps:$4 sm:$0xff]  }
  0x95   : > { %1492 = vmatmul.mubr.bf16.vlgmr.msra.gmra.mxu1 %v172_v25  ;;  %1503 = vmatpush1.bf16.msra.mxu0 %v2106_v26  ;;  %v2193_v25 = vld [vmem:[%s2991_s1 + $0x590] ss:$8 sps:$4 sm:$0xff]   ;;  %v2198_v26 = vld [vmem:[%s2991_s1 + $0x484] ss:$8 sps:$4 sm:$0xff]  }
  0x96   : > { %1546 = vmatpush1.bf16.msra.mxu1 %v2109_v27  ;;  %1504 = vmatprep.subr.bf16.mxu0 %v2114_v28  ;;  %v2201_v27 = vld [vmem:[%s2991_s1 + $0x584] ss:$8 sps:$4 sm:$0xff]   ;;  %v2196_v28 = vld [vmem:[%s2991_s1 + $0x480] ss:$8 sps:$4 sm:$0xff]  }
  0x97   : > { %1547 = vmatprep.subr.bf16.mxu1 %v2117_v29  ;;  %1534 = vmatprep.mubr.bf16.mxu0 %v175_v36  ;;  %v2199_v29 = vld [vmem:[%s2991_s1 + $0x580] ss:$8 sps:$4 sm:$0xff]  }
  0x98   : > { %1577 = vmatprep.mubr.bf16.mxu1 %v177_v39 }
  0x99   : > { %1505 = vmatpush1.bf16.msra.mxu0 %v2112_v30  ;;  %v150_v30 = vld [vmem:[%s2467_s14 + $0x40] sm:$0xff] }
  0x9a   : > { %1548 = vmatpush1.bf16.msra.mxu1 %v2115_v31  ;;  %1506 = vmatprep.subr.bf16.mxu0 %v2120_v32  ;;  %v162_v31 = vld [vmem:[%s2467_s14 + $0xa0] sm:$0xff]  ;;  %v152_v32 = vld [vmem:[%s2467_s14 + $0x50] sm:$0xff] }
  0x9b   : > { %1549 = vmatprep.subr.bf16.mxu1 %v2123_v33  ;;  %v164_v33 = vld [vmem:[%s2467_s14 + $0xb0] sm:$0xff]  ;;  %v174_v34 = vpack.c.bf16 %v162_v31, %v150_v30  ;;  %s134_s14 = sand.u32 1, %s2254_s10  }
  0x9c   : > { %v176_v35 = vpack.c.bf16 %v164_v33, %v152_v32  ;;  %s1672_s27 = sshll.u32 %s134_s14, 5  ;;  %s2950_s13 = scalar_lea.sflag [#allocation3], %s134_s14 }
  0x9d   : > { %1507 = vmatpush1.bf16.msra.mxu0 %v2118_v40  ;;  %s136_s28 = scalar_lea.vmem [#allocation2], %s1672_s27 }
  0x9e   : > { %1550 = vmatpush1.bf16.msra.mxu1 %v2121_v41  ;;  %1508 = vmatprep.subr.bf16.mxu0 %v2126_v42  ;;  %s1606_s29 = sshll.u32 %s136_s28, 4  ;;  %s2941_s29 = int_to_ptr.vmem [resolvable:$true] %s1606_s29 }
  0x9f   : > { %1551 = vmatprep.subr.bf16.mxu1 %v2129_v43  ;;  %s2202_s6 = scalar_lea.vmem %s2941_s29, 512  ;;  %p2209_p0 = scmp.lt.s32.totalorder %s2941_s29, %s2207_s8 }
  0xa0   : > { %p2203_p11 = scmp.ne.s32.totalorder %s2941_s29, %s2202_s6  ;;  %p2210_p1 = scmp.lt.s32.totalorder %s2208_s16, %s2202_s6 }
  0xa1   : > { %1509 = vmatpush1.bf16.msra.mxu0 %v2124_v44 }
  0xa2   : > { %1552 = vmatpush1.bf16.msra.mxu1 %v2127_v45  ;;  %1510 = vmatprep.subr.bf16.mxu0 %v2132_v46  ;;  %p2204_p12 = pnand %p2203_p11, %p2320_p5  ;;  %p2211_p2 = por %p2210_p1, %p2209_p0 }
  0xa3   : > { %1553 = vmatprep.subr.bf16.mxu1 %v2135_v47 }
  0xa4   : > { %p2205_p13 = pneg %p2204_p12 }
  0xa5   : > { %1511 = vmatpush1.bf16.msra.mxu0 %v2130_v48 }
  0xa6   : > { %1554 = vmatpush1.bf16.msra.mxu1 %v2133_v49  ;;  %1512 = vmatprep.subr.bf16.mxu0 %v2138_v50  ;;  %p2212_p3 = pnand %p2211_p2, %p2205_p13 }
  0xa7   : > { %1555 = vmatprep.subr.bf16.mxu1 %v2141_v51 }
  0xa9   : > { %1513 = vmatpush1.bf16.msra.mxu0 %v2136_v52 }
  0xaa   : > { %1556 = vmatpush1.bf16.msra.mxu1 %v2139_v53  ;;  %1514 = vmatprep.subr.bf16.mxu0 %v2144_v54 }
  0xab   : > { %1557 = vmatprep.subr.bf16.mxu1 %v2147_v55 }
  0xad   : > { %1515 = vmatpush1.bf16.msra.mxu0 %v2142_v56 }
  0xae   : > { %1558 = vmatpush1.bf16.msra.mxu1 %v2145_v57  ;;  %1516 = vmatprep.subr.bf16.mxu0 %v2150_v58 }
  0xaf   : > { %1559 = vmatprep.subr.bf16.mxu1 %v2153_v59 }
  0xb1   : > { %1517 = vmatpush1.bf16.msra.mxu0 %v2148_v60 }
  0xb2   : > { %1560 = vmatpush1.bf16.msra.mxu1 %v2151_v61  ;;  %1518 = vmatprep.subr.bf16.mxu0 %v2156_v62 }
  0xb3   : > { %1561 = vmatprep.subr.bf16.mxu1 %v2159_v63 }
  0xb5   : > { %1519 = vmatpush2.bf16.msra.mxu0 %v2154_v0 }
  0xb6   : > { %1562 = vmatpush2.bf16.msra.mxu1 %v2157_v1  ;;  %1520 = vmatprep.subr.bf16.mxu0 %v2162_v2 }
  0xb7   : > { %1563 = vmatprep.subr.bf16.mxu1 %v2165_v3 }
  0xb9   : > { %1521 = vmatpush2.bf16.msra.mxu0 %v2160_v4 }
  0xba   : > { %1564 = vmatpush2.bf16.msra.mxu1 %v2163_v5  ;;  %1522 = vmatprep.subr.bf16.mxu0 %v2168_v6 }
  0xbb   : > { %1565 = vmatprep.subr.bf16.mxu1 %v2171_v7 }
  0xbd   : > { %1523 = vmatpush2.bf16.msra.mxu0 %v2166_v8 }
  0xbe   : > { %1566 = vmatpush2.bf16.msra.mxu1 %v2169_v9  ;;  %1524 = vmatprep.subr.bf16.mxu0 %v2174_v10 }
  0xbf   : > { %1567 = vmatprep.subr.bf16.mxu1 %v2177_v11 }
  0xc1   : > { %1525 = vmatpush2.bf16.msra.mxu0 %v2172_v12 }
  0xc2   : > { %1568 = vmatpush2.bf16.msra.mxu1 %v2175_v13  ;;  %1526 = vmatprep.subr.bf16.mxu0 %v2180_v14 }
  0xc3   : > { %1569 = vmatprep.subr.bf16.mxu1 %v2183_v15 }
  0xc5   : > { %1527 = vmatpush2.bf16.msra.mxu0 %v2178_v16 }
  0xc6   : > { %1570 = vmatpush2.bf16.msra.mxu1 %v2181_v17  ;;  %1528 = vmatprep.subr.bf16.mxu0 %v2186_v18 }
  0xc7   : > { %1571 = vmatprep.subr.bf16.mxu1 %v2189_v19 }
  0xc9   : > { %1529 = vmatpush2.bf16.msra.mxu0 %v2184_v20 }
  0xca   : > { %1572 = vmatpush2.bf16.msra.mxu1 %v2187_v21  ;;  %1530 = vmatprep.subr.bf16.mxu0 %v2192_v22 }
  0xcb   : > { %1573 = vmatprep.subr.bf16.mxu1 %v2195_v23 }
  0xcd   : > { %1531 = vmatpush2.bf16.msra.mxu0 %v2190_v24 }
  0xce   : > { %1574 = vmatpush2.bf16.msra.mxu1 %v2193_v25  ;;  %1532 = vmatprep.subr.bf16.mxu0 %v2198_v26 }
  0xcf   : > { %1575 = vmatprep.subr.bf16.mxu1 %v2201_v27 }
  0xd1   : > { %1533 = vmatpush2.bf16.msra.mxu0 %v2196_v28 }
  0xd2   : > { %1576 = vmatpush2.bf16.msra.mxu1 %v2199_v29 }
  0xd4   : > { %1535 = vmatmul.mubr.bf16.vlgmr.msra.gmra.mxu0 %v174_v34 }
  0xd5   : > { %1578 = vmatmul.mubr.bf16.vlgmr.msra.gmra.mxu1 %v176_v35 }
 0x114   : > { %v1364_v36 = vpop.f32.mrf.mxu0 }
 0x115   : > { %v1407_v37 = vpop.f32.mrf.mxu1 }
 0x116   : > { %v1366_v38 = vpop.f32.mrf.mxu0  ;;  %v1408_v48 = vadd.f32 %v1407_v37, %v1364_v36 }
 0x117   : > { %v1409_v39 = vpop.f32.mrf.mxu1 }
 0x118   : > { %v1368_v40 = vpop.f32.mrf.mxu0  ;;  %v1410_v51 = vadd.f32 %v1409_v39, %v1366_v38 }
 0x119   : > { %v1411_v41 = vpop.f32.mrf.mxu1 }
 0x11a   : > { %v1370_v42 = vpop.f32.mrf.mxu0  ;;  %v1412_v53 = vadd.f32 %v1411_v41, %v1368_v40 }
 0x11b   : > { %v1413_v43 = vpop.f32.mrf.mxu1 }
 0x11c   : > { %v1414_v57 = vadd.f32 %v1413_v43, %v1370_v42 }
 0x154   : > { %v1450_v44 = vpop.f32.mrf.mxu0 }
 0x155   : > { %v1493_v45 = vpop.f32.mrf.mxu1  ;;  %v1451_v52 = vadd.f32 %v1450_v44, %v1408_v48 }
 0x156   : > { %v1452_v46 = vpop.f32.mrf.mxu0 }
 0x157   : > { %v1495_v47 = vpop.f32.mrf.mxu1  ;;  %v1453_v54 = vadd.f32 %v1452_v46, %v1410_v51  ;;  %v1494_v58 = vadd.f32 %v1493_v45, %v1451_v52 }
 0x158   : > { %v1454_v49 = vpop.f32.mrf.mxu0 }
 0x159   : > { %v1497_v50 = vpop.f32.mrf.mxu1  ;;  %v1455_v59 = vadd.f32 %v1454_v49, %v1412_v53  ;;  %v1496_v62 = vadd.f32 %v1495_v47, %v1453_v54 }
 0x15a   : > { %v1456_v55 = vpop.f32.mrf.mxu0 }
 0x15b   : > { %v1499_v56 = vpop.f32.mrf.mxu1  ;;  %v1457_v63 = vadd.f32 %v1456_v55, %v1414_v57  ;;  %v1498_v3 = vadd.f32 %v1497_v50, %v1455_v59 }
 0x15d   : > { %v1500_v8 = vadd.f32 %v1499_v56, %v1457_v63 }
 0x194   : > { %v1536_v60 = vpop.f32.mrf.mxu0 }
 0x195   : > { %v1579_v61 = vpop.f32.mrf.mxu1  ;;  %v1537_v0 = vadd.f32 %v1536_v60, %v1494_v58 }
 0x196   : > { %v1538_v1 = vpop.f32.mrf.mxu0 }
 0x197   : > { %v1581_v2 = vpop.f32.mrf.mxu1  ;;  %v1580_v4 = vadd.f32 %v1579_v61, %v1537_v0  ;;  %v1539_v5 = vadd.f32 %v1538_v1, %v1496_v62 }
 0x198   : > { %v1540_v6 = vpop.f32.mrf.mxu0 }
 0x199   : > { %v1583_v7 = vpop.f32.mrf.mxu1  ;;  %1588 = vst [vmem:[%s136_s28] sm:$0xff] %v1580_v4  ;;  %v1582_v9 = vadd.f32 %v1581_v2, %v1539_v5  ;;  %v1541_v10 = vadd.f32 %v1540_v6, %v1498_v3 }
 0x19a   : > { %v1542_v11 = vpop.f32.mrf.mxu0 }
 0x19b   : > { %1589 = vst [vmem:[%s136_s28 + $0x8] sm:$0xff] %v1582_v9  ;;  %v1584_v12 = vadd.f32 %v1583_v7, %v1541_v10  ;;  %v1543_v13 = vadd.f32 %v1542_v11, %v1500_v8  ;;  %v1585_v14 = vpop.f32.mrf.mxu1 }
 0x19d   : > { %1590 = vst [vmem:[%s136_s28 + $0x10] sm:$0xff] %v1584_v12  ;;  %v1586_v15 = vadd.f32 %v1585_v14, %v1543_v13 }
 0x19f   : > { %1591 = vst [vmem:[%s136_s28 + $0x18] sm:$0xff] %v1586_v15 }
 0x1a0   : > { %2215 = shalt.err (!%p2212_p3)
}
 0x1a1   : > { %s2216_s17 = scalar_lea.hbm %s2946_s5, 512  ;;  %s2220_s23 = scalar_lea.hbm %s2992_s2, 1024 }
 0x1a2   : > { %p2217_p4 = scmp.ne.s32.totalorder %s2946_s5, %s2216_s17  ;;  %p2221_p9 = scmp.lt.s32.totalorder %s2946_s5, %s2992_s2 }
 0x1a3   : > { %p2222_p10 = scmp.lt.s32.totalorder %s2220_s23, %s2216_s17 }
 0x1a4   : > { %p2218_p7 = pnand %p2217_p4, %p2320_p5 }
 0x1a5   : > { %p2223_p11 = por %p2222_p10, %p2221_p9 }
 0x1a6   : > { %p2219_p8 = pneg %p2218_p7 }
 0x1a8   : > { %p2224_p12 = pnand %p2223_p11, %p2219_p8 }
 0x1aa   : > { %2227 = shalt.err (!%p2224_p12)
}
 0x1ab   : > { %s2265_s26 = smov 256   ;;  %s2266_s14 = smov 16  }
 0x1ac   : > { %1873 = dma.vmem_to_hbm [thread:$0]  (%p2320_p5), %s2941_s29, 512, %s2946_s5, %s2950_s13, %s2265_s26, %s2265_s26, %s2266_s14  }
 0x1ad PF: > { %p1879_p13 = scmp.ge.s32.totalorder %s2262_s12, 2  ;;  %s1621_s27 = sand.u32 1, %s2250_s9  }
 0x1ae   : > { %s1622_s28 = scalar_lea.sflag [#allocation3], %s1621_s27 }
 0x1af   : > { %p1876_p0 = pnand %p1879_p13, %p2324_p6 }
 0x1b1   : > { %p1877_p1 = pneg %p1876_p0 }
 0x1b3   : > { %2245 = dma.done.wait (%p1877_p1), %s1622_s28, 512  }
 0x1b4   : > { %2247 = vsyncadd (%p1877_p1), %s1622_s28, 4294966784  ;;  %p12_p2 = scmp.ge.s32.totalorder %s2307_s15, 4   ;;  %s2995_s9 = smov %s2254_s10 }
 0x1b5   : > { %s2996_s10 = smov %s2258_s11  ;;  %s2997_s11 = smov %s2318_s18 }
 0x1b6   : > { %s2998_s12 = smov %s2307_s15  ;;  %14 = sbr.rel (!%p12_p2) target bundleno = 3 (0x3), region = 63 }
 0x1bb   :  { %1627 = vsyncpa [#allocation3], 1 }
 0x1bc   :  { %1629 = vsyncpa [#allocation3 + $0x1], 1 }

// kernel: ftdnn_forward.43
= control target key start
LH: loop header
LB: loop body
LE: loop exit
PB: predicated region body
PF: predicated region fallthrough
CT: control target
= control target key end

     0   :  { %s3633_s15 = smov 0   ;;  %s4703_s0 = inlined_call_operand.vmem [shape: f32[2,16,1536], index: 0, kind: input, shape index: {}]   ;;  %s4704_s1 = inlined_call_operand.vmem [shape: bf16[1536,160], index: 1, kind: input, shape index: {}]   ;;  %s4705_s2 = inlined_call_operand.vmem [shape: bf16[160,1536], index: 2, kind: input, shape index: {}]   ;;  %s4706_s3 = inlined_call_operand.vmem [shape: f32[1,1536], index: 3, kind: input, shape index: {}]   ;;  %s4707_s4 = inlined_call_operand.vmem [shape: f32[2,16,1536], index: 4, kind: output, shape index: {}]  }
   0x1 LB: > { %s2796_s16 = sadd.s32 4294967295, %s3606_s15   ;;  %p2800_p0 = scmp.ge.s32.totalorder %s3606_s15, 1  ;;  %s3606_s15 = sphi %s3633_s15, %s14_s15  }
   0x2   : > { %p162_p1 = scmp.lt.s32.totalorder %s3606_s15, 3 }
   0x4   : > { %p163_p2 = pnand %p2800_p0, %p162_p1 }
   0x5   : > { %p188_p3 = scmp.lt.s32.totalorder (!%p163_p2), %s2796_s16, 1 }
   0x6   : > { %166 = sbr.rel (%p163_p2) target bundleno = 695 (0x2b7), region = 36 }
   0xb   : > { %v3132_v0 = vld [vmem:[%s4704_s1 + $0x74] ss:$8 sps:$4 sm:$0xff]   ;;  %v3136_v2 = vld [vmem:[%s4704_s1 + $0x70] ss:$8 sps:$4 sm:$0xff]   ;;  %v3138_v4 = vld [vmem:[%s4704_s1 + $0x64] ss:$8 sps:$4 sm:$0xff]  }
   0xc   : > { %v3134_v1 = vld [vmem:[%s4704_s1 + $0x174] ss:$8 sps:$4 sm:$0xff]   ;;  %1387 = vmatprep.subr.bf16.mxu0 %v3132_v0  ;;  %v3137_v3 = vld [vmem:[%s4704_s1 + $0x170] ss:$8 sps:$4 sm:$0xff]   ;;  %v3140_v5 = vld [vmem:[%s4704_s1 + $0x164] ss:$8 sps:$4 sm:$0xff]  }
   0xd   : > { %1430 = vmatprep.subr.bf16.mxu1 %v3134_v1  ;;  %1388 = vmatpush1.bf16.msra.mxu0 %v3136_v2  ;;  %v3142_v6 = vld [vmem:[%s4704_s1 + $0x60] ss:$8 sps:$4 sm:$0xff]   ;;  %v3144_v8 = vld [vmem:[%s4704_s1 + $0x54] ss:$8 sps:$4 sm:$0xff]   ;;  %v3148_v10 = vld [vmem:[%s4704_s1 + $0x50] ss:$8 sps:$4 sm:$0xff]  }
   0xe   : > { %1431 = vmatpush1.bf16.msra.mxu1 %v3137_v3  ;;  %1389 = vmatprep.subr.bf16.mxu0 %v3138_v4  ;;  %v3143_v7 = vld [vmem:[%s4704_s1 + $0x160] ss:$8 sps:$4 sm:$0xff]   ;;  %v3146_v9 = vld [vmem:[%s4704_s1 + $0x154] ss:$8 sps:$4 sm:$0xff]   ;;  %v3149_v11 = vld [vmem:[%s4704_s1 + $0x150] ss:$8 sps:$4 sm:$0xff]  }
   0xf   : > { %1432 = vmatprep.subr.bf16.mxu1 %v3140_v5  ;;  %v3150_v12 = vld [vmem:[%s4704_s1 + $0x44] ss:$8 sps:$4 sm:$0xff]   ;;  %v3154_v14 = vld [vmem:[%s4704_s1 + $0x40] ss:$8 sps:$4 sm:$0xff]   ;;  %v3156_v16 = vld [vmem:[%s4704_s1 + $0x34] ss:$8 sps:$4 sm:$0xff]  }
  0x10   : > { %v3152_v13 = vld [vmem:[%s4704_s1 + $0x144] ss:$8 sps:$4 sm:$0xff]   ;;  %v3155_v15 = vld [vmem:[%s4704_s1 + $0x140] ss:$8 sps:$4 sm:$0xff]   ;;  %v3158_v17 = vld [vmem:[%s4704_s1 + $0x134] ss:$8 sps:$4 sm:$0xff]  }
  0x11   : > { %1390 = vmatpush1.bf16.msra.mxu0 %v3142_v6  ;;  %v3160_v18 = vld [vmem:[%s4704_s1 + $0x30] ss:$8 sps:$4 sm:$0xff]   ;;  %v3162_v20 = vld [vmem:[%s4704_s1 + $0x24] ss:$8 sps:$4 sm:$0xff]   ;;  %v3166_v22 = vld [vmem:[%s4704_s1 + $0x20] ss:$8 sps:$4 sm:$0xff]  }
  0x12   : > { %1433 = vmatpush1.bf16.msra.mxu1 %v3143_v7  ;;  %1391 = vmatprep.subr.bf16.mxu0 %v3144_v8  ;;  %v3161_v19 = vld [vmem:[%s4704_s1 + $0x130] ss:$8 sps:$4 sm:$0xff]   ;;  %v3164_v21 = vld [vmem:[%s4704_s1 + $0x124] ss:$8 sps:$4 sm:$0xff]   ;;  %v3167_v23 = vld [vmem:[%s4704_s1 + $0x120] ss:$8 sps:$4 sm:$0xff]  }
  0x13   : > { %1434 = vmatprep.subr.bf16.mxu1 %v3146_v9  ;;  %v3168_v24 = vld [vmem:[%s4704_s1 + $0x14] ss:$8 sps:$4 sm:$0xff]   ;;  %v3172_v26 = vld [vmem:[%s4704_s1 + $0x10] ss:$8 sps:$4 sm:$0xff]   ;;  %v3174_v28 = vld [vmem:[%s4704_s1 + $0x4] ss:$8 sps:$4 sm:$0xff]  }
  0x14   : > { %v3170_v25 = vld [vmem:[%s4704_s1 + $0x114] ss:$8 sps:$4 sm:$0xff]   ;;  %v3173_v27 = vld [vmem:[%s4704_s1 + $0x110] ss:$8 sps:$4 sm:$0xff]   ;;  %v3176_v29 = vld [vmem:[%s4704_s1 + $0x104] ss:$8 sps:$4 sm:$0xff]  }
  0x15   : > { %1392 = vmatpush1.bf16.msra.mxu0 %v3148_v10  ;;  %v3178_v30 = vld [vmem:[%s4704_s1] ss:$8 sps:$4 sm:$0xff]   ;;  %v3180_v32 = vld [vmem:[%s4704_s1 + $0xf4] ss:$8 sps:$4 sm:$0xff]   ;;  %v3184_v34 = vld [vmem:[%s4704_s1 + $0xf0] ss:$8 sps:$4 sm:$0xff]  }
  0x16   : > { %1435 = vmatpush1.bf16.msra.mxu1 %v3149_v11  ;;  %1393 = vmatprep.subr.bf16.mxu0 %v3150_v12  ;;  %v3179_v31 = vld [vmem:[%s4704_s1 + $0x100] ss:$8 sps:$4 sm:$0xff]   ;;  %v3182_v33 = vld [vmem:[%s4704_s1 + $0x1f4] ss:$8 sps:$4 sm:$0xff]   ;;  %v3185_v35 = vld [vmem:[%s4704_s1 + $0x1f0] ss:$8 sps:$4 sm:$0xff]  }
  0x17   : > { %1436 = vmatprep.subr.bf16.mxu1 %v3152_v13  ;;  %s4709_s16 = smov (!%p188_p3, %s2796_s16), 1  ;;  %v3186_v36 = vld [vmem:[%s4704_s1 + $0xe4] ss:$8 sps:$4 sm:$0xff]   ;;  %v3190_v38 = vld [vmem:[%s4704_s1 + $0xe0] ss:$8 sps:$4 sm:$0xff]   ;;  %vm2431_vm0 = vcmask 261120  }
  0x18   : > { %v3188_v37 = vld [vmem:[%s4704_s1 + $0x1e4] ss:$8 sps:$4 sm:$0xff]   ;;  %s3123_s23 = smul.u32 192, %s4709_s16  ;;  %v3191_v39 = vld [vmem:[%s4704_s1 + $0x1e0] ss:$8 sps:$4 sm:$0xff]  }
  0x19   : > { %1394 = vmatpush1.bf16.msra.mxu0 %v3154_v14  ;;  %v3192_v40 = vld [vmem:[%s4704_s1 + $0xd4] ss:$8 sps:$4 sm:$0xff]   ;;  %v3196_v42 = vld [vmem:[%s4704_s1 + $0xd0] ss:$8 sps:$4 sm:$0xff]   ;;  %v3198_v44 = vld [vmem:[%s4704_s1 + $0xc4] ss:$8 sps:$4 sm:$0xff]  }
  0x1a   : > { %1437 = vmatpush1.bf16.msra.mxu1 %v3155_v15  ;;  %1395 = vmatprep.subr.bf16.mxu0 %v3156_v16  ;;  %v3194_v41 = vld [vmem:[%s4704_s1 + $0x1d4] ss:$8 sps:$4 sm:$0xff]   ;;  %v3197_v43 = vld [vmem:[%s4704_s1 + $0x1d0] ss:$8 sps:$4 sm:$0xff]   ;;  %s3785_s10 = scalar_lea.vmem %s4703_s0, %s3123_s23  ;;  %v3200_v45 = vld [vmem:[%s4704_s1 + $0x1c4] ss:$8 sps:$4 sm:$0xff]   ;;  %s4659_s12 = scalar_lea.vmem %s4707_s4, %s3123_s23 }
  0x1b   : > { %1438 = vmatprep.subr.bf16.mxu1 %v3158_v17  ;;  %v200_v46 = vld [vmem:[%s3785_s10 + $0x8] sm:$0xff]  ;;  %v202_v48 = vld [vmem:[%s3785_s10 + $0x18] sm:$0xff]  ;;  %v199_v6 = vld [vmem:[%s3785_s10] sm:$0xff] }
  0x1c   : > { %v212_v47 = vld [vmem:[%s3785_s10 + $0x68] sm:$0xff]  ;;  %v214_v49 = vld [vmem:[%s3785_s10 + $0x78] sm:$0xff]  ;;  %v211_v7 = vld [vmem:[%s3785_s10 + $0x60] sm:$0xff] }
  0x1d   : > { %1396 = vmatpush1.bf16.msra.mxu0 %v3160_v18  ;;  %v3202_v50 = vld [vmem:[%s4704_s1 + $0xc0] ss:$8 sps:$4 sm:$0xff]   ;;  %v3204_v52 = vld [vmem:[%s4704_s1 + $0xb4] ss:$8 sps:$4 sm:$0xff]   ;;  %v224_v53 = vpack.c.bf16 %v212_v47, %v200_v46  ;;  %v226_v54 = vpack.c.bf16 %v214_v49, %v202_v48  ;;  %v3208_v56 = vld [vmem:[%s4704_s1 + $0xb0] ss:$8 sps:$4 sm:$0xff]   ;;  %v223_v12 = vpack.c.bf16 %v211_v7, %v199_v6 }
  0x1e   : > { %1439 = vmatpush1.bf16.msra.mxu1 %v3161_v19  ;;  %1397 = vmatprep.subr.bf16.mxu0 %v3162_v20  ;;  %v3203_v51 = vld [vmem:[%s4704_s1 + $0x1c0] ss:$8 sps:$4 sm:$0xff]   ;;  %v3206_v55 = vld [vmem:[%s4704_s1 + $0x1b4] ss:$8 sps:$4 sm:$0xff]   ;;  %v3209_v57 = vld [vmem:[%s4704_s1 + $0x1b0] ss:$8 sps:$4 sm:$0xff]  }
  0x1f   : > { %1440 = vmatprep.subr.bf16.mxu1 %v3164_v21  ;;  %1419 = vmatprep.mubr.bf16.mxu0 %v224_v53  ;;  %v3210_v58 = vld [vmem:[%s4704_s1 + $0xa4] ss:$8 sps:$4 sm:$0xff]   ;;  %v3214_v60 = vld [vmem:[%s4704_s1 + $0xa0] ss:$8 sps:$4 sm:$0xff]   ;;  %v3216_v62 = vld [vmem:[%s4704_s1 + $0x94] ss:$8 sps:$4 sm:$0xff]  }
  0x20   : > { %1462 = vmatprep.mubr.bf16.mxu1 %v226_v54  ;;  %v3212_v59 = vld [vmem:[%s4704_s1 + $0x1a4] ss:$8 sps:$4 sm:$0xff]   ;;  %v3215_v61 = vld [vmem:[%s4704_s1 + $0x1a0] ss:$8 sps:$4 sm:$0xff]   ;;  %v3218_v63 = vld [vmem:[%s4704_s1 + $0x194] ss:$8 sps:$4 sm:$0xff]  }
  0x21   : > { %1398 = vmatpush1.bf16.msra.mxu0 %v3166_v22  ;;  %v3220_v0 = vld [vmem:[%s4704_s1 + $0x90] ss:$8 sps:$4 sm:$0xff]   ;;  %v3222_v2 = vld [vmem:[%s4704_s1 + $0x84] ss:$8 sps:$4 sm:$0xff]   ;;  %v3226_v4 = vld [vmem:[%s4704_s1 + $0x80] ss:$8 sps:$4 sm:$0xff]  }
  0x22   : > { %1441 = vmatpush1.bf16.msra.mxu1 %v3167_v23  ;;  %1399 = vmatprep.subr.bf16.mxu0 %v3168_v24  ;;  %v3221_v1 = vld [vmem:[%s4704_s1 + $0x190] ss:$8 sps:$4 sm:$0xff]   ;;  %v3224_v3 = vld [vmem:[%s4704_s1 + $0x184] ss:$8 sps:$4 sm:$0xff]   ;;  %v3227_v5 = vld [vmem:[%s4704_s1 + $0x180] ss:$8 sps:$4 sm:$0xff]  }
  0x23   : > { %1442 = vmatprep.subr.bf16.mxu1 %v3170_v25  ;;  %v201_v8 = vld [vmem:[%s3785_s10 + $0x10] sm:$0xff]  ;;  %v3236_v16 = vld [vmem:[%s4704_s1 + $0x264] ss:$8 sps:$4 sm:$0xff]   ;;  %v3234_v18 = vld [vmem:[%s4704_s1 + $0x260] ss:$8 sps:$4 sm:$0xff]  }
  0x24   : > { %v213_v9 = vld [vmem:[%s3785_s10 + $0x70] sm:$0xff]  ;;  %v3239_v17 = vld [vmem:[%s4704_s1 + $0x364] ss:$8 sps:$4 sm:$0xff]   ;;  %v3237_v19 = vld [vmem:[%s4704_s1 + $0x360] ss:$8 sps:$4 sm:$0xff]  }
  0x25   : > { %1400 = vmatpush1.bf16.msra.mxu0 %v3172_v26  ;;  %v3230_v10 = vld [vmem:[%s4704_s1 + $0x274] ss:$8 sps:$4 sm:$0xff]   ;;  %v225_v13 = vpack.c.bf16 %v213_v9, %v201_v8  ;;  %v3228_v14 = vld [vmem:[%s4704_s1 + $0x270] ss:$8 sps:$4 sm:$0xff]   ;;  %v3248_v24 = vld [vmem:[%s4704_s1 + $0x244] ss:$8 sps:$4 sm:$0xff]  }
  0x26   : > { %1443 = vmatpush1.bf16.msra.mxu1 %v3173_v27  ;;  %1401 = vmatprep.subr.bf16.mxu0 %v3174_v28  ;;  %v3233_v11 = vld [vmem:[%s4704_s1 + $0x374] ss:$8 sps:$4 sm:$0xff]   ;;  %v3231_v15 = vld [vmem:[%s4704_s1 + $0x370] ss:$8 sps:$4 sm:$0xff]   ;;  %v3251_v25 = vld [vmem:[%s4704_s1 + $0x344] ss:$8 sps:$4 sm:$0xff]  }
  0x27   : > { %1444 = vmatprep.subr.bf16.mxu1 %v3176_v29  ;;  %v3242_v20 = vld [vmem:[%s4704_s1 + $0x254] ss:$8 sps:$4 sm:$0xff]   ;;  %v3240_v22 = vld [vmem:[%s4704_s1 + $0x250] ss:$8 sps:$4 sm:$0xff]   ;;  %v3246_v26 = vld [vmem:[%s4704_s1 + $0x240] ss:$8 sps:$4 sm:$0xff]  }
  0x28   : > { %v3245_v21 = vld [vmem:[%s4704_s1 + $0x354] ss:$8 sps:$4 sm:$0xff]   ;;  %v3243_v23 = vld [vmem:[%s4704_s1 + $0x350] ss:$8 sps:$4 sm:$0xff]   ;;  %v3249_v27 = vld [vmem:[%s4704_s1 + $0x340] ss:$8 sps:$4 sm:$0xff]  }
  0x29   : > { %1402 = vmatpush1.bf16.msra.mxu0 %v3178_v30  ;;  %v3254_v28 = vld [vmem:[%s4704_s1 + $0x234] ss:$8 sps:$4 sm:$0xff]   ;;  %v3252_v30 = vld [vmem:[%s4704_s1 + $0x230] ss:$8 sps:$4 sm:$0xff]   ;;  %v3270_v48 = vld [vmem:[%s4704_s1 + $0x200] ss:$8 sps:$4 sm:$0xff]  }
  0x2a   : > { %1445 = vmatpush1.bf16.msra.mxu1 %v3179_v31  ;;  %1403 = vmatprep.subr.bf16.mxu0 %v3180_v32  ;;  %v3257_v29 = vld [vmem:[%s4704_s1 + $0x334] ss:$8 sps:$4 sm:$0xff]   ;;  %v3255_v31 = vld [vmem:[%s4704_s1 + $0x330] ss:$8 sps:$4 sm:$0xff]   ;;  %v3260_v32 = vld [vmem:[%s4704_s1 + $0x224] ss:$8 sps:$4 sm:$0xff]  }
  0x2b   : > { %1446 = vmatprep.subr.bf16.mxu1 %v3182_v33  ;;  %v3263_v33 = vld [vmem:[%s4704_s1 + $0x324] ss:$8 sps:$4 sm:$0xff]   ;;  %v218_v46 = vld [vmem:[%s3785_s10 + $0x98] sm:$0xff]  ;;  %v3273_v49 = vld [vmem:[%s4704_s1 + $0x300] ss:$8 sps:$4 sm:$0xff]  }
  0x2c   : > { %v3279_v53 = vld [vmem:[%s4704_s1 + $0x3f0] ss:$8 sps:$4 sm:$0xff]   ;;  %v3284_v54 = vld [vmem:[%s4704_s1 + $0x2e4] ss:$8 sps:$4 sm:$0xff]   ;;  %v3306_v8 = vld [vmem:[%s4704_s1 + $0x2a0] ss:$8 sps:$4 sm:$0xff]  }
  0x2d   : > { %1404 = vmatpush2.bf16.msra.mxu0 %v3184_v34  ;;  %v3258_v34 = vld [vmem:[%s4704_s1 + $0x220] ss:$8 sps:$4 sm:$0xff]   ;;  %v3308_v6 = vld [vmem:[%s4704_s1 + $0x2a4] ss:$8 sps:$4 sm:$0xff]  }
  0x2e   : > { %1447 = vmatpush2.bf16.msra.mxu1 %v3185_v35  ;;  %1405 = vmatprep.subr.bf16.mxu0 %v3186_v36  ;;  %v3261_v35 = vld [vmem:[%s4704_s1 + $0x320] ss:$8 sps:$4 sm:$0xff]   ;;  %v3266_v36 = vld [vmem:[%s4704_s1 + $0x214] ss:$8 sps:$4 sm:$0xff]   ;;  %v3311_v7 = vld [vmem:[%s4704_s1 + $0x3a4] ss:$8 sps:$4 sm:$0xff]  }
  0x2f   : > { %1448 = vmatprep.subr.bf16.mxu1 %v3188_v37  ;;  %v3269_v37 = vld [vmem:[%s4704_s1 + $0x314] ss:$8 sps:$4 sm:$0xff]   ;;  %v3309_v9 = vld [vmem:[%s4704_s1 + $0x3a0] ss:$8 sps:$4 sm:$0xff]  }
  0x31   : > { %1406 = vmatpush2.bf16.msra.mxu0 %v3190_v38  ;;  %v3264_v38 = vld [vmem:[%s4704_s1 + $0x210] ss:$8 sps:$4 sm:$0xff]  }
  0x32   : > { %1449 = vmatpush2.bf16.msra.mxu1 %v3191_v39  ;;  %1407 = vmatprep.subr.bf16.mxu0 %v3192_v40  ;;  %v3267_v39 = vld [vmem:[%s4704_s1 + $0x310] ss:$8 sps:$4 sm:$0xff]   ;;  %v204_v40 = vld [vmem:[%s3785_s10 + $0x28] sm:$0xff] }
  0x33   : > { %1450 = vmatprep.subr.bf16.mxu1 %v3194_v41  ;;  %v216_v41 = vld [vmem:[%s3785_s10 + $0x88] sm:$0xff] }
  0x35   : > { %1408 = vmatpush2.bf16.msra.mxu0 %v3196_v42  ;;  %v206_v42 = vld [vmem:[%s3785_s10 + $0x38] sm:$0xff] }
  0x36   : > { %1451 = vmatpush2.bf16.msra.mxu1 %v3197_v43  ;;  %1409 = vmatprep.subr.bf16.mxu0 %v3198_v44  ;;  %v3272_v43 = vld [vmem:[%s4704_s1 + $0x204] ss:$8 sps:$4 sm:$0xff]   ;;  %v230_v47 = vpack.c.bf16 %v218_v46, %v206_v42  ;;  %v3350_v46 = vld [vmem:[%s4704_s1 + $0x434] ss:$8 sps:$4 sm:$0xff]  }
  0x37   : > { %1452 = vmatprep.subr.bf16.mxu1 %v3200_v45  ;;  %v3275_v44 = vld [vmem:[%s4704_s1 + $0x304] ss:$8 sps:$4 sm:$0xff]   ;;  %v228_v45 = vpack.c.bf16 %v216_v41, %v204_v40  ;;  %v3339_v40 = vld [vmem:[%s4704_s1 + $0x550] ss:$8 sps:$4 sm:$0xff]  }
  0x38   : > { %v3344_v41 = vld [vmem:[%s4704_s1 + $0x444] ss:$8 sps:$4 sm:$0xff]  }
  0x39   : > { %1410 = vmatpush2.bf16.msra.mxu0 %v3202_v50  ;;  %v3278_v50 = vld [vmem:[%s4704_s1 + $0x2f4] ss:$8 sps:$4 sm:$0xff]   ;;  %v3347_v42 = vld [vmem:[%s4704_s1 + $0x544] ss:$8 sps:$4 sm:$0xff]  }
  0x3a   : > { %1453 = vmatpush2.bf16.msra.mxu1 %v3203_v51  ;;  %1411 = vmatprep.subr.bf16.mxu0 %v3204_v52  ;;  %v3281_v51 = vld [vmem:[%s4704_s1 + $0x3f4] ss:$8 sps:$4 sm:$0xff]   ;;  %v3276_v52 = vld [vmem:[%s4704_s1 + $0x2f0] ss:$8 sps:$4 sm:$0xff]  }
  0x3b   : > { %1454 = vmatprep.subr.bf16.mxu1 %v3206_v55  ;;  %v3287_v55 = vld [vmem:[%s4704_s1 + $0x3e4] ss:$8 sps:$4 sm:$0xff]  }
  0x3d   : > { %1412 = vmatpush2.bf16.msra.mxu0 %v3208_v56  ;;  %v3282_v56 = vld [vmem:[%s4704_s1 + $0x2e0] ss:$8 sps:$4 sm:$0xff]  }
  0x3e   : > { %1455 = vmatpush2.bf16.msra.mxu1 %v3209_v57  ;;  %1413 = vmatprep.subr.bf16.mxu0 %v3210_v58  ;;  %v3285_v57 = vld [vmem:[%s4704_s1 + $0x3e0] ss:$8 sps:$4 sm:$0xff]   ;;  %v3290_v58 = vld [vmem:[%s4704_s1 + $0x2d4] ss:$8 sps:$4 sm:$0xff]  }
  0x3f   : > { %1456 = vmatprep.subr.bf16.mxu1 %v3212_v59  ;;  %v3293_v59 = vld [vmem:[%s4704_s1 + $0x3d4] ss:$8 sps:$4 sm:$0xff]  }
  0x41   : > { %1414 = vmatpush2.bf16.msra.mxu0 %v3214_v60  ;;  %v3288_v60 = vld [vmem:[%s4704_s1 + $0x2d0] ss:$8 sps:$4 sm:$0xff]  }
  0x42   : > { %1457 = vmatpush2.bf16.msra.mxu1 %v3215_v61  ;;  %1415 = vmatprep.subr.bf16.mxu0 %v3216_v62  ;;  %v3291_v61 = vld [vmem:[%s4704_s1 + $0x3d0] ss:$8 sps:$4 sm:$0xff]   ;;  %v3296_v62 = vld [vmem:[%s4704_s1 + $0x2c4] ss:$8 sps:$4 sm:$0xff]  }
  0x43   : > { %1458 = vmatprep.subr.bf16.mxu1 %v3218_v63  ;;  %v3299_v63 = vld [vmem:[%s4704_s1 + $0x3c4] ss:$8 sps:$4 sm:$0xff]  }
  0x45   : > { %1416 = vmatpush2.bf16.msra.mxu0 %v3220_v0  ;;  %v3294_v0 = vld [vmem:[%s4704_s1 + $0x2c0] ss:$8 sps:$4 sm:$0xff]  }
  0x46   : > { %1459 = vmatpush2.bf16.msra.mxu1 %v3221_v1  ;;  %1417 = vmatprep.subr.bf16.mxu0 %v3222_v2  ;;  %v3297_v1 = vld [vmem:[%s4704_s1 + $0x3c0] ss:$8 sps:$4 sm:$0xff]   ;;  %v3302_v2 = vld [vmem:[%s4704_s1 + $0x2b4] ss:$8 sps:$4 sm:$0xff]  }
  0x47   : > { %1460 = vmatprep.subr.bf16.mxu1 %v3224_v3  ;;  %v3305_v3 = vld [vmem:[%s4704_s1 + $0x3b4] ss:$8 sps:$4 sm:$0xff]  }
  0x49   : > { %1418 = vmatpush2.bf16.msra.mxu0 %v3226_v4  ;;  %v3300_v4 = vld [vmem:[%s4704_s1 + $0x2b0] ss:$8 sps:$4 sm:$0xff]  }
  0x4a   : > { %1461 = vmatpush2.bf16.msra.mxu1 %v3227_v5  ;;  %1473 = vmatprep.subr.bf16.mxu0 %v3230_v10  ;;  %v3303_v5 = vld [vmem:[%s4704_s1 + $0x3b0] ss:$8 sps:$4 sm:$0xff]   ;;  %v3314_v10 = vld [vmem:[%s4704_s1 + $0x294] ss:$8 sps:$4 sm:$0xff]  }
  0x4b   : > { %1516 = vmatprep.subr.bf16.mxu1 %v3233_v11  ;;  %v3317_v11 = vld [vmem:[%s4704_s1 + $0x394] ss:$8 sps:$4 sm:$0xff]  }
  0x4c   : > { %1420 = vmatmul.mubr.bf16.vlgmr.msra.gmra.mxu0 %v223_v12  ;;  %v3312_v12 = vld [vmem:[%s4704_s1 + $0x290] ss:$8 sps:$4 sm:$0xff]  }
  0x4d   : > { %1463 = vmatmul.mubr.bf16.vlgmr.msra.gmra.mxu1 %v225_v13  ;;  %1474 = vmatpush1.bf16.msra.mxu0 %v3228_v14  ;;  %v3315_v13 = vld [vmem:[%s4704_s1 + $0x390] ss:$8 sps:$4 sm:$0xff]   ;;  %v3320_v14 = vld [vmem:[%s4704_s1 + $0x284] ss:$8 sps:$4 sm:$0xff]  }
  0x4e   : > { %1517 = vmatpush1.bf16.msra.mxu1 %v3231_v15  ;;  %1475 = vmatprep.subr.bf16.mxu0 %v3236_v16  ;;  %v3323_v15 = vld [vmem:[%s4704_s1 + $0x384] ss:$8 sps:$4 sm:$0xff]   ;;  %v3318_v16 = vld [vmem:[%s4704_s1 + $0x280] ss:$8 sps:$4 sm:$0xff]  }
  0x4f   : > { %1518 = vmatprep.subr.bf16.mxu1 %v3239_v17  ;;  %1505 = vmatprep.mubr.bf16.mxu0 %v228_v45  ;;  %v3321_v17 = vld [vmem:[%s4704_s1 + $0x380] ss:$8 sps:$4 sm:$0xff]  }
  0x50   : > { %1548 = vmatprep.mubr.bf16.mxu1 %v230_v47  ;;  %v3345_v45 = vld [vmem:[%s4704_s1 + $0x540] ss:$8 sps:$4 sm:$0xff]   ;;  %v3353_v47 = vld [vmem:[%s4704_s1 + $0x534] ss:$8 sps:$4 sm:$0xff]  }
  0x51   : > { %1476 = vmatpush1.bf16.msra.mxu0 %v3234_v18  ;;  %v203_v18 = vld [vmem:[%s3785_s10 + $0x20] sm:$0xff] }
  0x52   : > { %1519 = vmatpush1.bf16.msra.mxu1 %v3237_v19  ;;  %1477 = vmatprep.subr.bf16.mxu0 %v3242_v20  ;;  %v215_v19 = vld [vmem:[%s3785_s10 + $0x80] sm:$0xff]  ;;  %v205_v20 = vld [vmem:[%s3785_s10 + $0x30] sm:$0xff] }
  0x53   : > { %1520 = vmatprep.subr.bf16.mxu1 %v3245_v21  ;;  %v217_v21 = vld [vmem:[%s3785_s10 + $0x90] sm:$0xff] }
  0x55   : > { %1478 = vmatpush1.bf16.msra.mxu0 %v3240_v22  ;;  %v3326_v22 = vld [vmem:[%s4704_s1 + $0x474] ss:$8 sps:$4 sm:$0xff]  }
  0x56   : > { %1521 = vmatpush1.bf16.msra.mxu1 %v3243_v23  ;;  %1479 = vmatprep.subr.bf16.mxu0 %v3248_v24  ;;  %v3329_v23 = vld [vmem:[%s4704_s1 + $0x574] ss:$8 sps:$4 sm:$0xff]   ;;  %v227_v24 = vpack.c.bf16 %v215_v19, %v203_v18  ;;  %v3404_v18 = vld [vmem:[%s4704_s1 + $0x4a4] ss:$8 sps:$4 sm:$0xff]  }
  0x57   : > { %1522 = vmatprep.subr.bf16.mxu1 %v3251_v25  ;;  %v229_v25 = vpack.c.bf16 %v217_v21, %v205_v20  ;;  %v3407_v19 = vld [vmem:[%s4704_s1 + $0x5a4] ss:$8 sps:$4 sm:$0xff]   ;;  %v3402_v20 = vld [vmem:[%s4704_s1 + $0x4a0] ss:$8 sps:$4 sm:$0xff]  }
  0x58   : > { %v3405_v21 = vld [vmem:[%s4704_s1 + $0x5a0] ss:$8 sps:$4 sm:$0xff]  }
  0x59   : > { %1480 = vmatpush1.bf16.msra.mxu0 %v3246_v26  ;;  %v3324_v26 = vld [vmem:[%s4704_s1 + $0x470] ss:$8 sps:$4 sm:$0xff]  }
  0x5a   : > { %1523 = vmatpush1.bf16.msra.mxu1 %v3249_v27  ;;  %1481 = vmatprep.subr.bf16.mxu0 %v3254_v28  ;;  %v3327_v27 = vld [vmem:[%s4704_s1 + $0x570] ss:$8 sps:$4 sm:$0xff]   ;;  %v3332_v28 = vld [vmem:[%s4704_s1 + $0x464] ss:$8 sps:$4 sm:$0xff]  }
  0x5b   : > { %1524 = vmatprep.subr.bf16.mxu1 %v3257_v29  ;;  %v3335_v29 = vld [vmem:[%s4704_s1 + $0x564] ss:$8 sps:$4 sm:$0xff]  }
  0x5d   : > { %1482 = vmatpush1.bf16.msra.mxu0 %v3252_v30  ;;  %v3330_v30 = vld [vmem:[%s4704_s1 + $0x460] ss:$8 sps:$4 sm:$0xff]  }
  0x5e   : > { %1525 = vmatpush1.bf16.msra.mxu1 %v3255_v31  ;;  %1483 = vmatprep.subr.bf16.mxu0 %v3260_v32  ;;  %v3333_v31 = vld [vmem:[%s4704_s1 + $0x560] ss:$8 sps:$4 sm:$0xff]   ;;  %v3338_v32 = vld [vmem:[%s4704_s1 + $0x454] ss:$8 sps:$4 sm:$0xff]  }
  0x5f   : > { %1526 = vmatprep.subr.bf16.mxu1 %v3263_v33  ;;  %v3341_v33 = vld [vmem:[%s4704_s1 + $0x554] ss:$8 sps:$4 sm:$0xff]  }
  0x61   : > { %1484 = vmatpush1.bf16.msra.mxu0 %v3258_v34  ;;  %v208_v34 = vld [vmem:[%s3785_s10 + $0x48] sm:$0xff] }
  0x62   : > { %1527 = vmatpush1.bf16.msra.mxu1 %v3261_v35  ;;  %1485 = vmatprep.subr.bf16.mxu0 %v3266_v36  ;;  %v220_v35 = vld [vmem:[%s3785_s10 + $0xa8] sm:$0xff]  ;;  %v3336_v36 = vld [vmem:[%s4704_s1 + $0x450] ss:$8 sps:$4 sm:$0xff]  }
  0x63   : > { %1528 = vmatprep.subr.bf16.mxu1 %v3269_v37  ;;  %v232_v37 = vpack.c.bf16 %v220_v35, %v208_v34 }
  0x65   : > { %1486 = vmatpush1.bf16.msra.mxu0 %v3264_v38  ;;  %v210_v38 = vld [vmem:[%s3785_s10 + $0x58] sm:$0xff] }
  0x66   : > { %1529 = vmatpush1.bf16.msra.mxu1 %v3267_v39  ;;  %1487 = vmatprep.subr.bf16.mxu0 %v3272_v43  ;;  %v222_v39 = vld [vmem:[%s3785_s10 + $0xb8] sm:$0xff] }
  0x67   : > { %1530 = vmatprep.subr.bf16.mxu1 %v3275_v44  ;;  %v234_v43 = vpack.c.bf16 %v222_v39, %v210_v38  ;;  %v3342_v44 = vld [vmem:[%s4704_s1 + $0x440] ss:$8 sps:$4 sm:$0xff]   ;;  %v3425_v39 = vld [vmem:[%s4705_s2 + $0x2ac] ss:$48 sps:$4 sm:$0xff]  }
  0x68   : > { %v3423_v38 = vld [vmem:[%s4705_s2 + $0x2a8] ss:$48 sps:$4 sm:$0xff]  }
  0x69   : > { %1488 = vmatpush1.bf16.msra.mxu0 %v3270_v48  ;;  %v3348_v48 = vld [vmem:[%s4704_s1 + $0x430] ss:$8 sps:$4 sm:$0xff]  }
  0x6a   : > { %1531 = vmatpush1.bf16.msra.mxu1 %v3273_v49  ;;  %1489 = vmatprep.subr.bf16.mxu0 %v3278_v50  ;;  %v3351_v49 = vld [vmem:[%s4704_s1 + $0x530] ss:$8 sps:$4 sm:$0xff]   ;;  %v3356_v50 = vld [vmem:[%s4704_s1 + $0x424] ss:$8 sps:$4 sm:$0xff]  }
  0x6b   : > { %1532 = vmatprep.subr.bf16.mxu1 %v3281_v51  ;;  %v3359_v51 = vld [vmem:[%s4704_s1 + $0x524] ss:$8 sps:$4 sm:$0xff]  }
  0x6d   : > { %1490 = vmatpush2.bf16.msra.mxu0 %v3276_v52  ;;  %v3354_v52 = vld [vmem:[%s4704_s1 + $0x420] ss:$8 sps:$4 sm:$0xff]  }
  0x6e   : > { %1533 = vmatpush2.bf16.msra.mxu1 %v3279_v53  ;;  %1491 = vmatprep.subr.bf16.mxu0 %v3284_v54  ;;  %v3357_v53 = vld [vmem:[%s4704_s1 + $0x520] ss:$8 sps:$4 sm:$0xff]   ;;  %v3362_v54 = vld [vmem:[%s4704_s1 + $0x414] ss:$8 sps:$4 sm:$0xff]  }
  0x6f   : > { %1534 = vmatprep.subr.bf16.mxu1 %v3287_v55  ;;  %v3365_v55 = vld [vmem:[%s4704_s1 + $0x514] ss:$8 sps:$4 sm:$0xff]  }
  0x71   : > { %1492 = vmatpush2.bf16.msra.mxu0 %v3282_v56  ;;  %v3360_v56 = vld [vmem:[%s4704_s1 + $0x410] ss:$8 sps:$4 sm:$0xff]  }
  0x72   : > { %1535 = vmatpush2.bf16.msra.mxu1 %v3285_v57  ;;  %1493 = vmatprep.subr.bf16.mxu0 %v3290_v58  ;;  %v3363_v57 = vld [vmem:[%s4704_s1 + $0x510] ss:$8 sps:$4 sm:$0xff]   ;;  %v3368_v58 = vld [vmem:[%s4704_s1 + $0x404] ss:$8 sps:$4 sm:$0xff]  }
  0x73   : > { %1536 = vmatprep.subr.bf16.mxu1 %v3293_v59  ;;  %v3371_v59 = vld [vmem:[%s4704_s1 + $0x504] ss:$8 sps:$4 sm:$0xff]  }
  0x75   : > { %1494 = vmatpush2.bf16.msra.mxu0 %v3288_v60  ;;  %v3366_v60 = vld [vmem:[%s4704_s1 + $0x400] ss:$8 sps:$4 sm:$0xff]  }
  0x76   : > { %1537 = vmatpush2.bf16.msra.mxu1 %v3291_v61  ;;  %1495 = vmatprep.subr.bf16.mxu0 %v3296_v62  ;;  %v3369_v61 = vld [vmem:[%s4704_s1 + $0x500] ss:$8 sps:$4 sm:$0xff]   ;;  %v3374_v62 = vld [vmem:[%s4704_s1 + $0x4f4] ss:$8 sps:$4 sm:$0xff]  }
  0x77   : > { %1538 = vmatprep.subr.bf16.mxu1 %v3299_v63  ;;  %v3377_v63 = vld [vmem:[%s4704_s1 + $0x5f4] ss:$8 sps:$4 sm:$0xff]  }
  0x79   : > { %1496 = vmatpush2.bf16.msra.mxu0 %v3294_v0  ;;  %v3372_v0 = vld [vmem:[%s4704_s1 + $0x4f0] ss:$8 sps:$4 sm:$0xff]  }
  0x7a   : > { %1539 = vmatpush2.bf16.msra.mxu1 %v3297_v1  ;;  %1497 = vmatprep.subr.bf16.mxu0 %v3302_v2  ;;  %v3375_v1 = vld [vmem:[%s4704_s1 + $0x5f0] ss:$8 sps:$4 sm:$0xff]   ;;  %v3380_v2 = vld [vmem:[%s4704_s1 + $0x4e4] ss:$8 sps:$4 sm:$0xff]  }
  0x7b   : > { %1540 = vmatprep.subr.bf16.mxu1 %v3305_v3  ;;  %v3383_v3 = vld [vmem:[%s4704_s1 + $0x5e4] ss:$8 sps:$4 sm:$0xff]  }
  0x7d   : > { %1498 = vmatpush2.bf16.msra.mxu0 %v3300_v4  ;;  %v3378_v4 = vld [vmem:[%s4704_s1 + $0x4e0] ss:$8 sps:$4 sm:$0xff]  }
  0x7e   : > { %1541 = vmatpush2.bf16.msra.mxu1 %v3303_v5  ;;  %1499 = vmatprep.subr.bf16.mxu0 %v3308_v6  ;;  %v3381_v5 = vld [vmem:[%s4704_s1 + $0x5e0] ss:$8 sps:$4 sm:$0xff]   ;;  %v3386_v6 = vld [vmem:[%s4704_s1 + $0x4d4] ss:$8 sps:$4 sm:$0xff]  }
  0x7f   : > { %1542 = vmatprep.subr.bf16.mxu1 %v3311_v7  ;;  %v3389_v7 = vld [vmem:[%s4704_s1 + $0x5d4] ss:$8 sps:$4 sm:$0xff]  }
  0x81   : > { %1500 = vmatpush2.bf16.msra.mxu0 %v3306_v8  ;;  %v3384_v8 = vld [vmem:[%s4704_s1 + $0x4d0] ss:$8 sps:$4 sm:$0xff]  }
  0x82   : > { %1543 = vmatpush2.bf16.msra.mxu1 %v3309_v9  ;;  %1501 = vmatprep.subr.bf16.mxu0 %v3314_v10  ;;  %v3387_v9 = vld [vmem:[%s4704_s1 + $0x5d0] ss:$8 sps:$4 sm:$0xff]   ;;  %v3392_v10 = vld [vmem:[%s4704_s1 + $0x4c4] ss:$8 sps:$4 sm:$0xff]  }
  0x83   : > { %1544 = vmatprep.subr.bf16.mxu1 %v3317_v11  ;;  %v3395_v11 = vld [vmem:[%s4704_s1 + $0x5c4] ss:$8 sps:$4 sm:$0xff]  }
  0x85   : > { %1502 = vmatpush2.bf16.msra.mxu0 %v3312_v12  ;;  %v3390_v12 = vld [vmem:[%s4704_s1 + $0x4c0] ss:$8 sps:$4 sm:$0xff]  }
  0x86   : > { %1545 = vmatpush2.bf16.msra.mxu1 %v3315_v13  ;;  %1503 = vmatprep.subr.bf16.mxu0 %v3320_v14  ;;  %v3393_v13 = vld [vmem:[%s4704_s1 + $0x5c0] ss:$8 sps:$4 sm:$0xff]   ;;  %v3398_v14 = vld [vmem:[%s4704_s1 + $0x4b4] ss:$8 sps:$4 sm:$0xff]  }
  0x87   : > { %1546 = vmatprep.subr.bf16.mxu1 %v3323_v15  ;;  %v3401_v15 = vld [vmem:[%s4704_s1 + $0x5b4] ss:$8 sps:$4 sm:$0xff]  }
  0x89   : > { %1504 = vmatpush2.bf16.msra.mxu0 %v3318_v16  ;;  %v3396_v16 = vld [vmem:[%s4704_s1 + $0x4b0] ss:$8 sps:$4 sm:$0xff]  }
  0x8a   : > { %1547 = vmatpush2.bf16.msra.mxu1 %v3321_v17  ;;  %1559 = vmatprep.subr.bf16.mxu0 %v3326_v22  ;;  %v3399_v17 = vld [vmem:[%s4704_s1 + $0x5b0] ss:$8 sps:$4 sm:$0xff]   ;;  %v3410_v22 = vld [vmem:[%s4704_s1 + $0x494] ss:$8 sps:$4 sm:$0xff]  }
  0x8b   : > { %1602 = vmatprep.subr.bf16.mxu1 %v3329_v23  ;;  %v3413_v23 = vld [vmem:[%s4704_s1 + $0x594] ss:$8 sps:$4 sm:$0xff]  }
  0x8c   : > { %1506 = vmatmul.mubr.bf16.vlgmr.msra.gmra.mxu0 %v227_v24  ;;  %v3408_v24 = vld [vmem:[%s4704_s1 + $0x490] ss:$8 sps:$4 sm:$0xff]  }
  0x8d   : > { %1549 = vmatmul.mubr.bf16.vlgmr.msra.gmra.mxu1 %v229_v25  ;;  %1560 = vmatpush1.bf16.msra.mxu0 %v3324_v26  ;;  %v3411_v25 = vld [vmem:[%s4704_s1 + $0x590] ss:$8 sps:$4 sm:$0xff]   ;;  %v3416_v26 = vld [vmem:[%s4704_s1 + $0x484] ss:$8 sps:$4 sm:$0xff]  }
  0x8e   : > { %1603 = vmatpush1.bf16.msra.mxu1 %v3327_v27  ;;  %1561 = vmatprep.subr.bf16.mxu0 %v3332_v28  ;;  %v3419_v27 = vld [vmem:[%s4704_s1 + $0x584] ss:$8 sps:$4 sm:$0xff]   ;;  %v3414_v28 = vld [vmem:[%s4704_s1 + $0x480] ss:$8 sps:$4 sm:$0xff]  }
  0x8f   : > { %1604 = vmatprep.subr.bf16.mxu1 %v3335_v29  ;;  %1591 = vmatprep.mubr.bf16.mxu0 %v232_v37  ;;  %v3417_v29 = vld [vmem:[%s4704_s1 + $0x580] ss:$8 sps:$4 sm:$0xff]   ;;  %v3422_v37 = vld [vmem:[%s4705_s2 + $0x2a4] ss:$48 sps:$4 sm:$0xff]  }
  0x90   : > { %1634 = vmatprep.mubr.bf16.mxu1 %v234_v43  ;;  %v3429_v43 = vld [vmem:[%s4705_s2 + $0x248] ss:$48 sps:$4 sm:$0xff]  }
  0x91   : > { %1562 = vmatpush1.bf16.msra.mxu0 %v3330_v30  ;;  %v207_v30 = vld [vmem:[%s3785_s10 + $0x40] sm:$0xff] }
  0x92   : > { %1605 = vmatpush1.bf16.msra.mxu1 %v3333_v31  ;;  %1563 = vmatprep.subr.bf16.mxu0 %v3338_v32  ;;  %v219_v31 = vld [vmem:[%s3785_s10 + $0xa0] sm:$0xff]  ;;  %v209_v32 = vld [vmem:[%s3785_s10 + $0x50] sm:$0xff] }
  0x93   : > { %1606 = vmatprep.subr.bf16.mxu1 %v3341_v33  ;;  %v221_v33 = vld [vmem:[%s3785_s10 + $0xb0] sm:$0xff]  ;;  %v231_v34 = vpack.c.bf16 %v219_v31, %v207_v30 }
  0x94   : > { %v233_v35 = vpack.c.bf16 %v221_v33, %v209_v32 }
  0x95   : > { %1564 = vmatpush1.bf16.msra.mxu0 %v3336_v36  ;;  %v3420_v36 = vld [vmem:[%s4705_s2 + $0x2a0] ss:$48 sps:$4 sm:$0xff]  }
  0x96   : > { %1607 = vmatpush1.bf16.msra.mxu1 %v3339_v40  ;;  %1565 = vmatprep.subr.bf16.mxu0 %v3344_v41  ;;  %v3428_v40 = vld [vmem:[%s4705_s2 + $0x244] ss:$48 sps:$4 sm:$0xff]   ;;  %v3431_v41 = vld [vmem:[%s4705_s2 + $0x24c] ss:$48 sps:$4 sm:$0xff]  }
  0x97   : > { %1608 = vmatprep.subr.bf16.mxu1 %v3347_v42  ;;  %v3426_v42 = vld [vmem:[%s4705_s2 + $0x240] ss:$48 sps:$4 sm:$0xff]  }
  0x99   : > { %1566 = vmatpush1.bf16.msra.mxu0 %v3342_v44  ;;  %v3434_v44 = vld [vmem:[%s4705_s2 + $0x1e4] ss:$48 sps:$4 sm:$0xff]  }
  0x9a   : > { %1609 = vmatpush1.bf16.msra.mxu1 %v3345_v45  ;;  %1567 = vmatprep.subr.bf16.mxu0 %v3350_v46  ;;  %v3437_v45 = vld [vmem:[%s4705_s2 + $0x1ec] ss:$48 sps:$4 sm:$0xff]   ;;  %v3432_v46 = vld [vmem:[%s4705_s2 + $0x1e0] ss:$48 sps:$4 sm:$0xff]  }
  0x9b   : > { %1610 = vmatprep.subr.bf16.mxu1 %v3353_v47  ;;  %v3435_v47 = vld [vmem:[%s4705_s2 + $0x1e8] ss:$48 sps:$4 sm:$0xff]  }
  0x9d   : > { %1568 = vmatpush1.bf16.msra.mxu0 %v3348_v48  ;;  %v3440_v48 = vld [vmem:[%s4705_s2 + $0x184] ss:$48 sps:$4 sm:$0xff]  }
  0x9e   : > { %1611 = vmatpush1.bf16.msra.mxu1 %v3351_v49  ;;  %1569 = vmatprep.subr.bf16.mxu0 %v3356_v50  ;;  %v3443_v49 = vld [vmem:[%s4705_s2 + $0x18c] ss:$48 sps:$4 sm:$0xff]   ;;  %v3438_v50 = vld [vmem:[%s4705_s2 + $0x180] ss:$48 sps:$4 sm:$0xff]  }
  0x9f   : > { %1612 = vmatprep.subr.bf16.mxu1 %v3359_v51  ;;  %v3441_v51 = vld [vmem:[%s4705_s2 + $0x188] ss:$48 sps:$4 sm:$0xff]  }
  0xa1   : > { %1570 = vmatpush1.bf16.msra.mxu0 %v3354_v52  ;;  %v3446_v52 = vld [vmem:[%s4705_s2 + $0x124] ss:$48 sps:$4 sm:$0xff]  }
  0xa2   : > { %1613 = vmatpush1.bf16.msra.mxu1 %v3357_v53  ;;  %1571 = vmatprep.subr.bf16.mxu0 %v3362_v54  ;;  %v3449_v53 = vld [vmem:[%s4705_s2 + $0x12c] ss:$48 sps:$4 sm:$0xff]   ;;  %v3444_v54 = vld [vmem:[%s4705_s2 + $0x120] ss:$48 sps:$4 sm:$0xff]  }
  0xa3   : > { %1614 = vmatprep.subr.bf16.mxu1 %v3365_v55  ;;  %v3447_v55 = vld [vmem:[%s4705_s2 + $0x128] ss:$48 sps:$4 sm:$0xff]  }
  0xa5   : > { %1572 = vmatpush1.bf16.msra.mxu0 %v3360_v56  ;;  %v3452_v56 = vld [vmem:[%s4705_s2 + $0xc4] ss:$48 sps:$4 sm:$0xff]  }
  0xa6   : > { %1615 = vmatpush1.bf16.msra.mxu1 %v3363_v57  ;;  %1573 = vmatprep.subr.bf16.mxu0 %v3368_v58  ;;  %v3455_v57 = vld [vmem:[%s4705_s2 + $0xcc] ss:$48 sps:$4 sm:$0xff]   ;;  %v3450_v58 = vld [vmem:[%s4705_s2 + $0xc0] ss:$48 sps:$4 sm:$0xff]  }
  0xa7   : > { %1616 = vmatprep.subr.bf16.mxu1 %v3371_v59  ;;  %v3453_v59 = vld [vmem:[%s4705_s2 + $0xc8] ss:$48 sps:$4 sm:$0xff]  }
  0xa9   : > { %1574 = vmatpush1.bf16.msra.mxu0 %v3366_v60  ;;  %v3458_v60 = vld [vmem:[%s4705_s2 + $0x64] ss:$48 sps:$4 sm:$0xff]  }
  0xaa   : > { %1617 = vmatpush1.bf16.msra.mxu1 %v3369_v61  ;;  %1575 = vmatprep.subr.bf16.mxu0 %v3374_v62  ;;  %v3461_v61 = vld [vmem:[%s4705_s2 + $0x6c] ss:$48 sps:$4 sm:$0xff]   ;;  %v3456_v62 = vld [vmem:[%s4705_s2 + $0x60] ss:$48 sps:$4 sm:$0xff]  }
  0xab   : > { %1618 = vmatprep.subr.bf16.mxu1 %v3377_v63  ;;  %v3459_v63 = vld [vmem:[%s4705_s2 + $0x68] ss:$48 sps:$4 sm:$0xff]  }
  0xad   : > { %1576 = vmatpush2.bf16.msra.mxu0 %v3372_v0  ;;  %v3464_v0 = vld [vmem:[%s4705_s2 + $0x4] ss:$48 sps:$4 sm:$0xff]  }
  0xae   : > { %1619 = vmatpush2.bf16.msra.mxu1 %v3375_v1  ;;  %1577 = vmatprep.subr.bf16.mxu0 %v3380_v2  ;;  %v3467_v1 = vld [vmem:[%s4705_s2 + $0xc] ss:$48 sps:$4 sm:$0xff]   ;;  %v3462_v2 = vld [vmem:[%s4705_s2] ss:$48 sps:$4 sm:$0xff]  }
  0xaf   : > { %1620 = vmatprep.subr.bf16.mxu1 %v3383_v3  ;;  %v3465_v3 = vld [vmem:[%s4705_s2 + $0x8] ss:$48 sps:$4 sm:$0xff]  }
  0xb1   : > { %1578 = vmatpush2.bf16.msra.mxu0 %v3378_v4  ;;  %v3470_v4 = vld [vmem:[%s4705_s2 + $0x364] ss:$48 sps:$4 sm:$0xff]  }
  0xb2   : > { %1621 = vmatpush2.bf16.msra.mxu1 %v3381_v5  ;;  %1579 = vmatprep.subr.bf16.mxu0 %v3386_v6  ;;  %v3473_v5 = vld [vmem:[%s4705_s2 + $0x36c] ss:$48 sps:$4 sm:$0xff]   ;;  %v3468_v6 = vld [vmem:[%s4705_s2 + $0x360] ss:$48 sps:$4 sm:$0xff]  }
  0xb3   : > { %1622 = vmatprep.subr.bf16.mxu1 %v3389_v7  ;;  %v3471_v7 = vld [vmem:[%s4705_s2 + $0x368] ss:$48 sps:$4 sm:$0xff]  }
  0xb5   : > { %1580 = vmatpush2.bf16.msra.mxu0 %v3384_v8  ;;  %v3476_v8 = vld [vmem:[%s4705_s2 + $0x304] ss:$48 sps:$4 sm:$0xff]  }
  0xb6   : > { %1623 = vmatpush2.bf16.msra.mxu1 %v3387_v9  ;;  %1581 = vmatprep.subr.bf16.mxu0 %v3392_v10  ;;  %v3479_v9 = vld [vmem:[%s4705_s2 + $0x30c] ss:$48 sps:$4 sm:$0xff]   ;;  %v3474_v10 = vld [vmem:[%s4705_s2 + $0x300] ss:$48 sps:$4 sm:$0xff]  }
  0xb7   : > { %1624 = vmatprep.subr.bf16.mxu1 %v3395_v11  ;;  %v3477_v11 = vld [vmem:[%s4705_s2 + $0x308] ss:$48 sps:$4 sm:$0xff]  }
  0xb9   : > { %1582 = vmatpush2.bf16.msra.mxu0 %v3390_v12  ;;  %v3482_v12 = vld [vmem:[%s4705_s2 + $0x2b4] ss:$48 sps:$4 sm:$0xff]  }
  0xba   : > { %1625 = vmatpush2.bf16.msra.mxu1 %v3393_v13  ;;  %1583 = vmatprep.subr.bf16.mxu0 %v3398_v14  ;;  %v3485_v13 = vld [vmem:[%s4705_s2 + $0x2bc] ss:$48 sps:$4 sm:$0xff]  }
  0xbb   : > { %1626 = vmatprep.subr.bf16.mxu1 %v3401_v15 }
  0xbd   : > { %1584 = vmatpush2.bf16.msra.mxu0 %v3396_v16 }
  0xbe   : > { %1627 = vmatpush2.bf16.msra.mxu1 %v3399_v17  ;;  %1585 = vmatprep.subr.bf16.mxu0 %v3404_v18 }
  0xbf   : > { %1628 = vmatprep.subr.bf16.mxu1 %v3407_v19 }
  0xc1   : > { %1586 = vmatpush2.bf16.msra.mxu0 %v3402_v20 }
  0xc2   : > { %1629 = vmatpush2.bf16.msra.mxu1 %v3405_v21  ;;  %1587 = vmatprep.subr.bf16.mxu0 %v3410_v22 }
  0xc3   : > { %1630 = vmatprep.subr.bf16.mxu1 %v3413_v23 }
  0xc5   : > { %1588 = vmatpush2.bf16.msra.mxu0 %v3408_v24 }
  0xc6   : > { %1631 = vmatpush2.bf16.msra.mxu1 %v3411_v25  ;;  %1589 = vmatprep.subr.bf16.mxu0 %v3416_v26 }
  0xc7   : > { %1632 = vmatprep.subr.bf16.mxu1 %v3419_v27 }
  0xc9   : > { %1590 = vmatpush2.bf16.msra.mxu0 %v3414_v28 }
  0xca   : > { %1633 = vmatpush2.bf16.msra.mxu1 %v3417_v29  ;;  %2435 = vmatprep.subr.bf16.mxu0 %v3422_v37 }
  0xcb   : > { %2478 = vmatprep.subr.bf16.mxu1 %v3425_v39 }
  0xcc   : > { %1592 = vmatmul.mubr.bf16.vlgmr.msra.gmra.mxu0 %v231_v34 }
  0xcd   : > { %1635 = vmatmul.mubr.bf16.vlgmr.msra.gmra.mxu1 %v233_v35  ;;  %2436 = vmatpush1.bf16.msra.mxu0 %v3420_v36 }
  0xce   : > { %2479 = vmatpush1.bf16.msra.mxu1 %v3423_v38  ;;  %2437 = vmatprep.subr.bf16.mxu0 %v3428_v40 }
  0xcf   : > { %2480 = vmatprep.subr.bf16.mxu1 %v3431_v41 }
  0xd1   : > { %2438 = vmatpush1.bf16.msra.mxu0 %v3426_v42 }
  0xd2   : > { %2481 = vmatpush1.bf16.msra.mxu1 %v3429_v43  ;;  %2439 = vmatprep.subr.bf16.mxu0 %v3434_v44 }
  0xd3   : > { %2482 = vmatprep.subr.bf16.mxu1 %v3437_v45 }
  0xd5   : > { %2440 = vmatpush1.bf16.msra.mxu0 %v3432_v46 }
  0xd6   : > { %2483 = vmatpush1.bf16.msra.mxu1 %v3435_v47  ;;  %2441 = vmatprep.subr.bf16.mxu0 %v3440_v48 }
  0xd7   : > { %2484 = vmatprep.subr.bf16.mxu1 %v3443_v49 }
  0xd9   : > { %2442 = vmatpush1.bf16.msra.mxu0 %v3438_v50 }
  0xda   : > { %2485 = vmatpush1.bf16.msra.mxu1 %v3441_v51  ;;  %2443 = vmatprep.subr.bf16.mxu0 %v3446_v52 }
  0xdb   : > { %2486 = vmatprep.subr.bf16.mxu1 %v3449_v53 }
  0xdd   : > { %2444 = vmatpush1.bf16.msra.mxu0 %v3444_v54 }
  0xde   : > { %2487 = vmatpush1.bf16.msra.mxu1 %v3447_v55  ;;  %2445 = vmatprep.subr.bf16.mxu0 %v3452_v56 }
  0xdf   : > { %2488 = vmatprep.subr.bf16.mxu1 %v3455_v57 }
  0xe1   : > { %2446 = vmatpush1.bf16.msra.mxu0 %v3450_v58 }
  0xe2   : > { %2489 = vmatpush1.bf16.msra.mxu1 %v3453_v59  ;;  %2447 = vmatprep.subr.bf16.mxu0 %v3458_v60  ;;  %v3480_v59 = vld [vmem:[%s4705_s2 + $0x2b0] ss:$48 sps:$4 sm:$0xff]   ;;  %v3483_v60 = vld [vmem:[%s4705_s2 + $0x2b8] ss:$48 sps:$4 sm:$0xff]  }
  0xe3   : > { %2490 = vmatprep.subr.bf16.mxu1 %v3461_v61 }
  0xe5   : > { %2448 = vmatpush1.bf16.msra.mxu0 %v3456_v62  ;;  %v3488_v62 = vld [vmem:[%s4705_s2 + $0x254] ss:$48 sps:$4 sm:$0xff]  }
  0xe6   : > { %2491 = vmatpush1.bf16.msra.mxu1 %v3459_v63  ;;  %2449 = vmatprep.subr.bf16.mxu0 %v3464_v0  ;;  %v3491_v63 = vld [vmem:[%s4705_s2 + $0x25c] ss:$48 sps:$4 sm:$0xff]   ;;  %v3486_v0 = vld [vmem:[%s4705_s2 + $0x250] ss:$48 sps:$4 sm:$0xff]  }
  0xe7   : > { %2492 = vmatprep.subr.bf16.mxu1 %v3467_v1  ;;  %v3489_v1 = vld [vmem:[%s4705_s2 + $0x258] ss:$48 sps:$4 sm:$0xff]  }
  0xe9   : > { %2450 = vmatpush1.bf16.msra.mxu0 %v3462_v2  ;;  %v3494_v2 = vld [vmem:[%s4705_s2 + $0x1f4] ss:$48 sps:$4 sm:$0xff]  }
  0xea   : > { %2493 = vmatpush1.bf16.msra.mxu1 %v3465_v3  ;;  %2463 = vmatprep.subr.bf16.mxu0 %v3470_v4  ;;  %v3497_v3 = vld [vmem:[%s4705_s2 + $0x1fc] ss:$48 sps:$4 sm:$0xff]   ;;  %v3492_v4 = vld [vmem:[%s4705_s2 + $0x1f0] ss:$48 sps:$4 sm:$0xff]  }
  0xeb   : > { %2506 = vmatprep.subr.bf16.mxu1 %v3473_v5  ;;  %v3495_v5 = vld [vmem:[%s4705_s2 + $0x1f8] ss:$48 sps:$4 sm:$0xff]  }
  0xed   : > { %2464 = vmatpush2.bf16.msra.mxu0 %v3468_v6  ;;  %v3500_v6 = vld [vmem:[%s4705_s2 + $0x194] ss:$48 sps:$4 sm:$0xff]  }
  0xee   : > { %2507 = vmatpush2.bf16.msra.mxu1 %v3471_v7  ;;  %2465 = vmatprep.subr.bf16.mxu0 %v3476_v8  ;;  %v3503_v7 = vld [vmem:[%s4705_s2 + $0x19c] ss:$48 sps:$4 sm:$0xff]   ;;  %v3498_v8 = vld [vmem:[%s4705_s2 + $0x190] ss:$48 sps:$4 sm:$0xff]  }
  0xef   : > { %2508 = vmatprep.subr.bf16.mxu1 %v3479_v9  ;;  %v3501_v9 = vld [vmem:[%s4705_s2 + $0x198] ss:$48 sps:$4 sm:$0xff]  }
  0xf1   : > { %2466 = vmatpush2.bf16.msra.mxu0 %v3474_v10  ;;  %v3506_v10 = vld [vmem:[%s4705_s2 + $0x134] ss:$48 sps:$4 sm:$0xff]  }
  0xf2   : > { %2509 = vmatpush2.bf16.msra.mxu1 %v3477_v11  ;;  %2521 = vmatprep.subr.bf16.mxu0 %v3482_v12  ;;  %v3509_v11 = vld [vmem:[%s4705_s2 + $0x13c] ss:$48 sps:$4 sm:$0xff]   ;;  %v3504_v12 = vld [vmem:[%s4705_s2 + $0x130] ss:$48 sps:$4 sm:$0xff]  }
  0xf3   : > { %2564 = vmatprep.subr.bf16.mxu1 %v3485_v13  ;;  %v3507_v13 = vld [vmem:[%s4705_s2 + $0x138] ss:$48 sps:$4 sm:$0xff]  }
 0x10c   : > { %v1421_v14 = vpop.f32.mrf.mxu0 }
 0x10d   : > { %v1464_v15 = vpop.f32.mrf.mxu1 }
 0x10e   : > { %v1423_v16 = vpop.f32.mrf.mxu0  ;;  %v1465_v30 = vadd.f32 %v1464_v15, %v1421_v14  ;;  %v3512_v14 = vld [vmem:[%s4705_s2 + $0xd4] ss:$48 sps:$4 sm:$0xff]   ;;  %v3515_v15 = vld [vmem:[%s4705_s2 + $0xdc] ss:$48 sps:$4 sm:$0xff]  }
 0x10f   : > { %v1466_v17 = vpop.f32.mrf.mxu1 }
 0x110   : > { %v1425_v18 = vpop.f32.mrf.mxu0  ;;  %v1467_v28 = vadd.f32 %v1466_v17, %v1423_v16  ;;  %v3510_v16 = vld [vmem:[%s4705_s2 + $0xd0] ss:$48 sps:$4 sm:$0xff]   ;;  %v3513_v17 = vld [vmem:[%s4705_s2 + $0xd8] ss:$48 sps:$4 sm:$0xff]  }
 0x111   : > { %v1468_v19 = vpop.f32.mrf.mxu1 }
 0x112   : > { %v1427_v20 = vpop.f32.mrf.mxu0  ;;  %v1469_v29 = vadd.f32 %v1468_v19, %v1425_v18  ;;  %v3518_v18 = vld [vmem:[%s4705_s2 + $0x74] ss:$48 sps:$4 sm:$0xff]   ;;  %v3521_v19 = vld [vmem:[%s4705_s2 + $0x7c] ss:$48 sps:$4 sm:$0xff]  }
 0x113   : > { %v1470_v21 = vpop.f32.mrf.mxu1 }
 0x114   : > { %v1471_v33 = vadd.f32 %v1470_v21, %v1427_v20  ;;  %v3516_v20 = vld [vmem:[%s4705_s2 + $0x70] ss:$48 sps:$4 sm:$0xff]   ;;  %v3519_v21 = vld [vmem:[%s4705_s2 + $0x78] ss:$48 sps:$4 sm:$0xff]  }
 0x14c   : > { %v1507_v22 = vpop.f32.mrf.mxu0 }
 0x14d   : > { %v1550_v23 = vpop.f32.mrf.mxu1  ;;  %v1508_v36 = vadd.f32 %v1507_v22, %v1465_v30  ;;  %v3524_v22 = vld [vmem:[%s4705_s2 + $0x14] ss:$48 sps:$4 sm:$0xff]  }
 0x14e   : > { %v1509_v24 = vpop.f32.mrf.mxu0  ;;  %v3536_v30 = vld [vmem:[%s4705_s2 + $0x314] ss:$48 sps:$4 sm:$0xff]  }
 0x14f   : > { %v1552_v25 = vpop.f32.mrf.mxu1  ;;  %v1510_v34 = vadd.f32 %v1509_v24, %v1467_v28  ;;  %v1551_v44 = vadd.f32 %v1550_v23, %v1508_v36  ;;  %v3527_v23 = vld [vmem:[%s4705_s2 + $0x1c] ss:$48 sps:$4 sm:$0xff]   ;;  %v3522_v24 = vld [vmem:[%s4705_s2 + $0x10] ss:$48 sps:$4 sm:$0xff]  }
 0x150   : > { %v1511_v26 = vpop.f32.mrf.mxu0  ;;  %v3528_v28 = vld [vmem:[%s4705_s2 + $0x370] ss:$48 sps:$4 sm:$0xff]  }
 0x151   : > { %v1554_v27 = vpop.f32.mrf.mxu1  ;;  %v1512_v35 = vadd.f32 %v1511_v26, %v1469_v29  ;;  %v1553_v42 = vadd.f32 %v1552_v25, %v1510_v34  ;;  %v3525_v25 = vld [vmem:[%s4705_s2 + $0x18] ss:$48 sps:$4 sm:$0xff]   ;;  %v3530_v26 = vld [vmem:[%s4705_s2 + $0x374] ss:$48 sps:$4 sm:$0xff]   ;;  %v3540_v36 = vld [vmem:[%s4705_s2 + $0x2c0] ss:$48 sps:$4 sm:$0xff]  }
 0x152   : > { %v1513_v31 = vpop.f32.mrf.mxu0  ;;  %v3531_v29 = vld [vmem:[%s4705_s2 + $0x378] ss:$48 sps:$4 sm:$0xff]   ;;  %v3542_v34 = vld [vmem:[%s4705_s2 + $0x2c4] ss:$48 sps:$4 sm:$0xff]  }
 0x153   : > { %v1556_v32 = vpop.f32.mrf.mxu1  ;;  %v1514_v39 = vadd.f32 %v1513_v31, %v1471_v33  ;;  %v1555_v43 = vadd.f32 %v1554_v27, %v1512_v35  ;;  %v3533_v27 = vld [vmem:[%s4705_s2 + $0x37c] ss:$48 sps:$4 sm:$0xff]   ;;  %v3537_v33 = vld [vmem:[%s4705_s2 + $0x318] ss:$48 sps:$4 sm:$0xff]  }
 0x154   : > { %v3539_v31 = vld [vmem:[%s4705_s2 + $0x31c] ss:$48 sps:$4 sm:$0xff]  }
 0x155   : > { %v1557_v47 = vadd.f32 %v1556_v32, %v1514_v39  ;;  %v3534_v32 = vld [vmem:[%s4705_s2 + $0x310] ss:$48 sps:$4 sm:$0xff]   ;;  %v3545_v35 = vld [vmem:[%s4705_s2 + $0x2cc] ss:$48 sps:$4 sm:$0xff]  }
 0x156   : > { %v3551_v39 = vld [vmem:[%s4705_s2 + $0x26c] ss:$48 sps:$4 sm:$0xff]  }
 0x18c   : > { %v1593_v37 = vpop.f32.mrf.mxu0 }
 0x18d   : > { %v1636_v38 = vpop.f32.mrf.mxu1  ;;  %v1594_v50 = vadd.f32 %v1593_v37, %v1551_v44  ;;  %v3543_v37 = vld [vmem:[%s4705_s2 + $0x2c8] ss:$48 sps:$4 sm:$0xff]   ;;  %v3552_v44 = vld [vmem:[%s4705_s2 + $0x200] ss:$48 sps:$4 sm:$0xff]  }
 0x18e   : > { %v1595_v40 = vpop.f32.mrf.mxu0 }
 0x18f   : > { %v1638_v41 = vpop.f32.mrf.mxu1  ;;  %v1596_v48 = vadd.f32 %v1595_v40, %v1553_v42  ;;  %v1637_v57 = vadd.f32 %v1636_v38, %v1594_v50  ;;  %v3548_v38 = vld [vmem:[%s4705_s2 + $0x264] ss:$48 sps:$4 sm:$0xff]   ;;  %v3546_v40 = vld [vmem:[%s4705_s2 + $0x260] ss:$48 sps:$4 sm:$0xff]  }
 0x190   : > { %v1597_v45 = vpop.f32.mrf.mxu0  ;;  %v3554_v42 = vld [vmem:[%s4705_s2 + $0x204] ss:$48 sps:$4 sm:$0xff]  }
 0x191   : > { %v1640_v46 = vpop.f32.mrf.mxu1  ;;  %v1598_v49 = vadd.f32 %v1597_v45, %v1555_v43  ;;  %v1639_v55 = vadd.f32 %v1638_v41, %v1596_v48  ;;  %v3549_v41 = vld [vmem:[%s4705_s2 + $0x268] ss:$48 sps:$4 sm:$0xff]   ;;  %v3557_v43 = vld [vmem:[%s4705_s2 + $0x20c] ss:$48 sps:$4 sm:$0xff]   ;;  %v3558_v48 = vld [vmem:[%s4705_s2 + $0x1a0] ss:$48 sps:$4 sm:$0xff]  }
 0x192   : > { %v1599_v51 = vpop.f32.mrf.mxu0  ;;  %v3555_v45 = vld [vmem:[%s4705_s2 + $0x208] ss:$48 sps:$4 sm:$0xff]   ;;  %v3566_v50 = vld [vmem:[%s4705_s2 + $0x144] ss:$48 sps:$4 sm:$0xff]  }
 0x193   : > { %v1600_v52 = vadd.f32 %v1599_v51, %v1557_v47  ;;  %v1641_v53 = vadd.f32 %v1640_v46, %v1598_v49  ;;  %v1642_v54 = vpop.f32.mrf.mxu1  ;;  %v3560_v46 = vld [vmem:[%s4705_s2 + $0x1a4] ss:$48 sps:$4 sm:$0xff]   ;;  %v3563_v47 = vld [vmem:[%s4705_s2 + $0x1ac] ss:$48 sps:$4 sm:$0xff]   ;;  %v3561_v49 = vld [vmem:[%s4705_s2 + $0x1a8] ss:$48 sps:$4 sm:$0xff]  }
 0x194   : > { %v3569_v51 = vld [vmem:[%s4705_s2 + $0x14c] ss:$48 sps:$4 sm:$0xff]  }
 0x195   : > { %v1643_v56 = vadd.f32 %v1642_v54, %v1600_v52  ;;  %v4389_v61 = vpack.c.bf16 %v1641_v53, %v1637_v57  ;;  %v3564_v52 = vld [vmem:[%s4705_s2 + $0x140] ss:$48 sps:$4 sm:$0xff]   ;;  %v3567_v53 = vld [vmem:[%s4705_s2 + $0x148] ss:$48 sps:$4 sm:$0xff]   ;;  %v3572_v54 = vld [vmem:[%s4705_s2 + $0xe4] ss:$48 sps:$4 sm:$0xff]  }
 0x196   : > { %v3573_v57 = vld [vmem:[%s4705_s2 + $0xe8] ss:$48 sps:$4 sm:$0xff]  }
 0x197   : > { %v4381_v58 = vpack.c.bf16 %v1643_v56, %v1639_v55  ;;  %v3575_v55 = vld [vmem:[%s4705_s2 + $0xec] ss:$48 sps:$4 sm:$0xff]   ;;  %v3570_v56 = vld [vmem:[%s4705_s2 + $0xe0] ss:$48 sps:$4 sm:$0xff]  }
 0x199   : > { %3115 = vmatprep.mubr.msk.bf16.mxu0 %vm2431_vm0, %v4381_v58  ;;  %3116 = vmatprep.mubr.msk.bf16.mxu1 %vm2431_vm0, %v4381_v58 }
 0x19a   : > { %2468 = vmatmul.mubr.bf16.vlgmr.msra.gmra.mxu0 %v4389_v61  ;;  %2511 = vmatmul.mubr.bf16.vlgmr.msra.gmra.mxu1 %v4389_v61 }
 0x19b   : > { %2522 = vmatpush1.bf16.msra.mxu0 %v3480_v59  ;;  %2565 = vmatpush1.bf16.msra.mxu1 %v3483_v60  ;;  %v3581_v59 = vld [vmem:[%s4705_s2 + $0x8c] ss:$48 sps:$4 sm:$0xff]   ;;  %v3576_v60 = vld [vmem:[%s4705_s2 + $0x80] ss:$48 sps:$4 sm:$0xff]  }
 0x19c   : > { %3117 = vmatprep.mubr.msk.bf16.mxu0 %vm2431_vm0, %v4381_v58  ;;  %3118 = vmatprep.mubr.msk.bf16.mxu1 %vm2431_vm0, %v4381_v58 }
 0x19d   : > { %2523 = vmatprep.subr.bf16.mxu0 %v3488_v62  ;;  %2566 = vmatprep.subr.bf16.mxu1 %v3491_v63  ;;  %v3579_v62 = vld [vmem:[%s4705_s2 + $0x88] ss:$48 sps:$4 sm:$0xff]   ;;  %v3584_v63 = vld [vmem:[%s4705_s2 + $0x24] ss:$48 sps:$4 sm:$0xff]  }
 0x19f   : > { %2524 = vmatpush1.bf16.msra.mxu0 %v3486_v0  ;;  %2567 = vmatpush1.bf16.msra.mxu1 %v3489_v1  ;;  %v3587_v0 = vld [vmem:[%s4705_s2 + $0x2c] ss:$48 sps:$4 sm:$0xff]   ;;  %v3582_v1 = vld [vmem:[%s4705_s2 + $0x20] ss:$48 sps:$4 sm:$0xff]  }
 0x1a0   : > { %2525 = vmatprep.subr.bf16.mxu0 %v3494_v2  ;;  %2568 = vmatprep.subr.bf16.mxu1 %v3497_v3  ;;  %v3585_v2 = vld [vmem:[%s4705_s2 + $0x28] ss:$48 sps:$4 sm:$0xff]   ;;  %v3590_v3 = vld [vmem:[%s4705_s2 + $0x384] ss:$48 sps:$4 sm:$0xff]  }
 0x1a3   : > { %2526 = vmatpush1.bf16.msra.mxu0 %v3492_v4  ;;  %2569 = vmatpush1.bf16.msra.mxu1 %v3495_v5  ;;  %v3593_v4 = vld [vmem:[%s4705_s2 + $0x38c] ss:$48 sps:$4 sm:$0xff]   ;;  %v3588_v5 = vld [vmem:[%s4705_s2 + $0x380] ss:$48 sps:$4 sm:$0xff]  }
 0x1a4   : > { %2527 = vmatprep.subr.bf16.mxu0 %v3500_v6  ;;  %2570 = vmatprep.subr.bf16.mxu1 %v3503_v7  ;;  %v3591_v6 = vld [vmem:[%s4705_s2 + $0x388] ss:$48 sps:$4 sm:$0xff]   ;;  %v3596_v7 = vld [vmem:[%s4705_s2 + $0x324] ss:$48 sps:$4 sm:$0xff]  }
 0x1a7   : > { %2528 = vmatpush1.bf16.msra.mxu0 %v3498_v8  ;;  %2571 = vmatpush1.bf16.msra.mxu1 %v3501_v9  ;;  %v3599_v8 = vld [vmem:[%s4705_s2 + $0x32c] ss:$48 sps:$4 sm:$0xff]   ;;  %v3594_v9 = vld [vmem:[%s4705_s2 + $0x320] ss:$48 sps:$4 sm:$0xff]  }
 0x1a8   : > { %2529 = vmatprep.subr.bf16.mxu0 %v3506_v10  ;;  %2572 = vmatprep.subr.bf16.mxu1 %v3509_v11  ;;  %v3597_v10 = vld [vmem:[%s4705_s2 + $0x328] ss:$48 sps:$4 sm:$0xff]   ;;  %v1771_v11 = vlaneseq }
 0x1ab   : > { %2530 = vmatpush1.bf16.msra.mxu0 %v3504_v12  ;;  %2573 = vmatpush1.bf16.msra.mxu1 %v3507_v13  ;;  %v4637_v12 = vshrl.u32 %v1771_v11, 7 }
 0x1ac   : > { %2531 = vmatprep.subr.bf16.mxu0 %v3512_v14  ;;  %2574 = vmatprep.subr.bf16.mxu1 %v3515_v15  ;;  %v1767_v15 = vld [vmem:[%s4706_s3] sm:$0xff] }
 0x1ad   : > { %v1773_v13 = vsub.s32 0, %v4637_v12  ;;  %v1781_v14 = vsub.s32 2, %v4637_v12 }
 0x1af   : > { %2532 = vmatpush1.bf16.msra.mxu0 %v3510_v16  ;;  %2575 = vmatpush1.bf16.msra.mxu1 %v3513_v17  ;;  %v1777_v16 = vsub.s32 1, %v4637_v12  ;;  %v1785_v17 = vsub.s32 3, %v4637_v12 }
 0x1b0   : > { %2533 = vmatprep.subr.bf16.mxu0 %v3518_v18  ;;  %2576 = vmatprep.subr.bf16.mxu1 %v3521_v19  ;;  %v1774_v18 = vrot.slane %v1767_v15, %v1773_v13 }
 0x1b1   : > { %v1778_v19 = vrot.slane %v1767_v15, %v1777_v16 }
 0x1b3   : > { %2534 = vmatpush1.bf16.msra.mxu0 %v3516_v20  ;;  %2577 = vmatpush1.bf16.msra.mxu1 %v3519_v21  ;;  %v1786_v20 = vrot.slane %v1767_v15, %v1785_v17 }
 0x1b4   : > { %2535 = vmatprep.subr.bf16.mxu0 %v3524_v22  ;;  %2578 = vmatprep.subr.bf16.mxu1 %v3527_v23 }
 0x1b7   : > { %2536 = vmatpush1.bf16.msra.mxu0 %v3522_v24  ;;  %2579 = vmatpush1.bf16.msra.mxu1 %v3525_v25 }
 0x1b8   : > { %2549 = vmatprep.subr.bf16.mxu0 %v3530_v26  ;;  %2592 = vmatprep.subr.bf16.mxu1 %v3533_v27 }
 0x1bb   : > { %2550 = vmatpush2.bf16.msra.mxu0 %v3528_v28  ;;  %2593 = vmatpush2.bf16.msra.mxu1 %v3531_v29 }
 0x1bc   : > { %2551 = vmatprep.subr.bf16.mxu0 %v3536_v30  ;;  %2594 = vmatprep.subr.bf16.mxu1 %v3539_v31 }
 0x1bf   : > { %2552 = vmatpush2.bf16.msra.mxu0 %v3534_v32  ;;  %2595 = vmatpush2.bf16.msra.mxu1 %v3537_v33 }
 0x1c0   : > { %2607 = vmatprep.subr.bf16.mxu0 %v3542_v34  ;;  %2650 = vmatprep.subr.bf16.mxu1 %v3545_v35 }
 0x1c2   : > { %2554 = vmatmul.mubr.bf16.vlgmr.msra.gmra.mxu0 %v4389_v61  ;;  %2597 = vmatmul.mubr.bf16.vlgmr.msra.gmra.mxu1 %v4389_v61 }
 0x1c3   : > { %2608 = vmatpush1.bf16.msra.mxu0 %v3540_v36  ;;  %3119 = vmatprep.mubr.msk.bf16.mxu0 %vm2431_vm0, %v4381_v58 }
 0x1c4   : > { %2651 = vmatpush1.bf16.msra.mxu1 %v3543_v37  ;;  %3120 = vmatprep.mubr.msk.bf16.mxu1 %vm2431_vm0, %v4381_v58  ;;  %v3578_v58 = vld [vmem:[%s4705_s2 + $0x84] ss:$48 sps:$4 sm:$0xff]  }
 0x1c5   : > { %2609 = vmatprep.subr.bf16.mxu0 %v3548_v38  ;;  %2652 = vmatprep.subr.bf16.mxu1 %v3551_v39 }
 0x1c7   : > { %2610 = vmatpush1.bf16.msra.mxu0 %v3546_v40 }
 0x1c8   : > { %2653 = vmatpush1.bf16.msra.mxu1 %v3549_v41  ;;  %2611 = vmatprep.subr.bf16.mxu0 %v3554_v42 }
 0x1c9   : > { %2654 = vmatprep.subr.bf16.mxu1 %v3557_v43 }
 0x1cb   : > { %2612 = vmatpush1.bf16.msra.mxu0 %v3552_v44 }
 0x1cc   : > { %2655 = vmatpush1.bf16.msra.mxu1 %v3555_v45  ;;  %2613 = vmatprep.subr.bf16.mxu0 %v3560_v46  ;;  %v1789_v45 = vsub.s32 4, %v4637_v12  ;;  %v1797_v46 = vsub.s32 6, %v4637_v12 }
 0x1cd   : > { %2656 = vmatprep.subr.bf16.mxu1 %v3563_v47  ;;  %v1793_v47 = vsub.s32 5, %v4637_v12 }
 0x1cf   : > { %2614 = vmatpush1.bf16.msra.mxu0 %v3558_v48  ;;  %v1801_v48 = vsub.s32 7, %v4637_v12 }
 0x1d0   : > { %2657 = vmatpush1.bf16.msra.mxu1 %v3561_v49  ;;  %2615 = vmatprep.subr.bf16.mxu0 %v3566_v50  ;;  %v1790_v49 = vrot.slane %v1767_v15, %v1789_v45  ;;  %v1798_v50 = vrot.slane %v1767_v15, %v1797_v46 }
 0x1d1   : > { %2658 = vmatprep.subr.bf16.mxu1 %v3569_v51  ;;  %v1794_v51 = vrot.slane %v1767_v15, %v1793_v47 }
 0x1d3   : > { %2616 = vmatpush1.bf16.msra.mxu0 %v3564_v52  ;;  %v1802_v52 = vrot.slane %v1767_v15, %v1801_v48 }
 0x1d4   : > { %2659 = vmatpush1.bf16.msra.mxu1 %v3567_v53  ;;  %2617 = vmatprep.subr.bf16.mxu0 %v3572_v54 }
 0x1d5   : > { %2660 = vmatprep.subr.bf16.mxu1 %v3575_v55 }
 0x1d7   : > { %2618 = vmatpush1.bf16.msra.mxu0 %v3570_v56 }
 0x1d8   : > { %2661 = vmatpush1.bf16.msra.mxu1 %v3573_v57  ;;  %2619 = vmatprep.subr.bf16.mxu0 %v3578_v58 }
 0x1d9   : > { %2662 = vmatprep.subr.bf16.mxu1 %v3581_v59 }
 0x1db   : > { %2620 = vmatpush1.bf16.msra.mxu0 %v3576_v60 }
 0x1dc   : > { %2663 = vmatpush1.bf16.msra.mxu1 %v3579_v62  ;;  %2621 = vmatprep.subr.bf16.mxu0 %v3584_v63 }
 0x1dd   : > { %2664 = vmatprep.subr.bf16.mxu1 %v3587_v0 }
 0x1df   : > { %2622 = vmatpush1.bf16.msra.mxu0 %v3582_v1 }
 0x1e0   : > { %2665 = vmatpush1.bf16.msra.mxu1 %v3585_v2  ;;  %2635 = vmatprep.subr.bf16.mxu0 %v3590_v3 }
 0x1e1   : > { %2678 = vmatprep.subr.bf16.mxu1 %v3593_v4 }
 0x1e3   : > { %2636 = vmatpush2.bf16.msra.mxu0 %v3588_v5 }
 0x1e4   : > { %2679 = vmatpush2.bf16.msra.mxu1 %v3591_v6  ;;  %2637 = vmatprep.subr.bf16.mxu0 %v3596_v7 }
 0x1e5   : > { %2680 = vmatprep.subr.bf16.mxu1 %v3599_v8 }
 0x1e7   : > { %2638 = vmatpush2.bf16.msra.mxu0 %v3594_v9 }
 0x1e8   : > { %2681 = vmatpush2.bf16.msra.mxu1 %v3597_v10 }
 0x1ea   : > { %2640 = vmatmul.mubr.bf16.vlgmr.msra.gmra.mxu0 %v4389_v61 }
 0x1eb   : > { %2683 = vmatmul.mubr.bf16.vlgmr.msra.gmra.mxu1 %v4389_v61  ;;  %v1782_v61 = vrot.slane %v1767_v15, %v1781_v14 }
 0x25a   : > { %v2469_v21 = vpop.f32.mrf.mxu0  ;;  %v2512_v22 = vpop.f32.mrf.mxu1 }
 0x25b   : > { %v2470_v23 = vadd.f32 %v2469_v21, %v1774_v18  ;;  %v2513_v24 = vadd.f32 %v2512_v22, %v1782_v61 }
 0x25c   : > { %v2471_v25 = vpop.f32.mrf.mxu0  ;;  %v2514_v26 = vpop.f32.mrf.mxu1 }
 0x25d   : > { %v2693_v27 = vmax.f32 %v2470_v23, 0.0  ;;  %v2695_v28 = vmax.f32 %v2513_v24, 0.0  ;;  %v2472_v29 = vadd.f32 %v2471_v25, %v1778_v19  ;;  %v2515_v30 = vadd.f32 %v2514_v26, %v1786_v20 }
 0x25e   : > { %v2473_v31 = vpop.f32.mrf.mxu0  ;;  %v2516_v32 = vpop.f32.mrf.mxu1 }
 0x25f   : > { %2717 = vst [vmem:[%s4659_s12] sm:$0xff] %v2693_v27  ;;  %2719 = vst [vmem:[%s4659_s12 + $0x10] sm:$0xff] %v2695_v28  ;;  %v2694_v33 = vmax.f32 %v2472_v29, 0.0  ;;  %v2696_v34 = vmax.f32 %v2515_v30, 0.0  ;;  %v2474_v35 = vadd.f32 %v2473_v31, %v1774_v18  ;;  %v2517_v36 = vadd.f32 %v2516_v32, %v1782_v61  ;;  %v1768_v61 = vld [vmem:[%s4706_s3 + $0x8] sm:$0xf] }
 0x260   : > { %v2475_v37 = vpop.f32.mrf.mxu0  ;;  %v2518_v38 = vpop.f32.mrf.mxu1  ;;  %v1810_v21 = vrot.slane %v1768_v61, %v1777_v16  ;;  %v1818_v23 = vrot.slane %v1768_v61, %v1785_v17 }
 0x261   : > { %2718 = vst [vmem:[%s4659_s12 + $0x8] sm:$0xff] %v2694_v33  ;;  %2720 = vst [vmem:[%s4659_s12 + $0x18] sm:$0xff] %v2696_v34  ;;  %v2705_v39 = vmax.f32 %v2474_v35, 0.0  ;;  %v2707_v40 = vmax.f32 %v2517_v36, 0.0  ;;  %v2476_v41 = vadd.f32 %v2475_v37, %v1778_v19  ;;  %v2519_v42 = vadd.f32 %v2518_v38, %v1786_v20 }
 0x262   : > { %v1806_v19 = vrot.slane %v1768_v61, %v1773_v13  ;;  %v1814_v20 = vrot.slane %v1768_v61, %v1781_v14 }
 0x263   : > { %2729 = vst [vmem:[%s4659_s12 + $0x60] sm:$0xff] %v2705_v39  ;;  %2731 = vst [vmem:[%s4659_s12 + $0x70] sm:$0xff] %v2707_v40  ;;  %v2706_v43 = vmax.f32 %v2476_v41, 0.0  ;;  %v2708_v44 = vmax.f32 %v2519_v42, 0.0 }
 0x265   : > { %2730 = vst [vmem:[%s4659_s12 + $0x68] sm:$0xff] %v2706_v43  ;;  %2732 = vst [vmem:[%s4659_s12 + $0x78] sm:$0xff] %v2708_v44 }
 0x282   : > { %v2555_v53 = vpop.f32.mrf.mxu0  ;;  %v2598_v54 = vpop.f32.mrf.mxu1 }
 0x283   : > { %v2556_v55 = vadd.f32 %v2555_v53, %v1790_v49  ;;  %v2599_v56 = vadd.f32 %v2598_v54, %v1798_v50 }
 0x284   : > { %v2557_v57 = vpop.f32.mrf.mxu0  ;;  %v2600_v58 = vpop.f32.mrf.mxu1 }
 0x285   : > { %v2697_v59 = vmax.f32 %v2556_v55, 0.0  ;;  %v2699_v60 = vmax.f32 %v2599_v56, 0.0  ;;  %v2558_v62 = vadd.f32 %v2557_v57, %v1794_v51  ;;  %v2601_v63 = vadd.f32 %v2600_v58, %v1802_v52 }
 0x286   : > { %v2559_v0 = vpop.f32.mrf.mxu0  ;;  %v2602_v1 = vpop.f32.mrf.mxu1 }
 0x287   : > { %2721 = vst [vmem:[%s4659_s12 + $0x20] sm:$0xff] %v2697_v59  ;;  %2723 = vst [vmem:[%s4659_s12 + $0x30] sm:$0xff] %v2699_v60  ;;  %v2698_v2 = vmax.f32 %v2558_v62, 0.0  ;;  %v2700_v3 = vmax.f32 %v2601_v63, 0.0  ;;  %v2560_v4 = vadd.f32 %v2559_v0, %v1790_v49  ;;  %v2603_v5 = vadd.f32 %v2602_v1, %v1798_v50 }
 0x288   : > { %v2561_v6 = vpop.f32.mrf.mxu0  ;;  %v2604_v7 = vpop.f32.mrf.mxu1 }
 0x289   : > { %2722 = vst [vmem:[%s4659_s12 + $0x28] sm:$0xff] %v2698_v2  ;;  %2724 = vst [vmem:[%s4659_s12 + $0x38] sm:$0xff] %v2700_v3  ;;  %v2709_v8 = vmax.f32 %v2560_v4, 0.0  ;;  %v2711_v9 = vmax.f32 %v2603_v5, 0.0  ;;  %v2562_v10 = vadd.f32 %v2561_v6, %v1794_v51  ;;  %v2605_v11 = vadd.f32 %v2604_v7, %v1802_v52 }
 0x28b   : > { %2733 = vst [vmem:[%s4659_s12 + $0x80] sm:$0xff] %v2709_v8  ;;  %2735 = vst [vmem:[%s4659_s12 + $0x90] sm:$0xff] %v2711_v9  ;;  %v2710_v15 = vmax.f32 %v2562_v10, 0.0  ;;  %v2712_v18 = vmax.f32 %v2605_v11, 0.0 }
 0x28d   : > { %2734 = vst [vmem:[%s4659_s12 + $0x88] sm:$0xff] %v2710_v15  ;;  %2736 = vst [vmem:[%s4659_s12 + $0x98] sm:$0xff] %v2712_v18 }
 0x2aa   : > { %v2641_v22 = vpop.f32.mrf.mxu0 }
 0x2ab   : > { %v2642_v24 = vadd.f32 %v2641_v22, %v1806_v19  ;;  %v2684_v25 = vpop.f32.mrf.mxu1 }
 0x2ac   : > { %v2685_v26 = vadd.f32 %v2684_v25, %v1814_v20  ;;  %v2643_v27 = vpop.f32.mrf.mxu0 }
 0x2ad   : > { %v2701_v28 = vmax.f32 %v2642_v24, 0.0  ;;  %v2644_v29 = vadd.f32 %v2643_v27, %v1810_v21  ;;  %v2686_v30 = vpop.f32.mrf.mxu1 }
 0x2ae   : > { %v2703_v13 = vmax.f32 %v2685_v26, 0.0  ;;  %v2687_v31 = vadd.f32 %v2686_v30, %v1818_v23  ;;  %v2645_v14 = vpop.f32.mrf.mxu0 }
 0x2af   : > { %2725 = vst [vmem:[%s4659_s12 + $0x40] sm:$0xff] %v2701_v28  ;;  %v2702_v16 = vmax.f32 %v2644_v29, 0.0  ;;  %v2646_v32 = vadd.f32 %v2645_v14, %v1806_v19  ;;  %v2688_v12 = vpop.f32.mrf.mxu1 }
 0x2b0   : > { %2727 = vst [vmem:[%s4659_s12 + $0x50] sm:$0xff] %v2703_v13  ;;  %v2704_v17 = vmax.f32 %v2687_v31, 0.0  ;;  %v2689_v33 = vadd.f32 %v2688_v12, %v1814_v20  ;;  %v2647_v34 = vpop.f32.mrf.mxu0 }
 0x2b1   : > { %2726 = vst [vmem:[%s4659_s12 + $0x48] sm:$0xff] %v2702_v16  ;;  %v2713_v35 = vmax.f32 %v2646_v32, 0.0  ;;  %v2648_v36 = vadd.f32 %v2647_v34, %v1810_v21  ;;  %v2690_v37 = vpop.f32.mrf.mxu1 }
 0x2b2   : > { %2728 = vst [vmem:[%s4659_s12 + $0x58] sm:$0xff] %v2704_v17  ;;  %v2715_v38 = vmax.f32 %v2689_v33, 0.0  ;;  %v2691_v39 = vadd.f32 %v2690_v37, %v1818_v23 }
 0x2b3   : > { %2737 = vst [vmem:[%s4659_s12 + $0xa0] sm:$0xff] %v2713_v35  ;;  %v2714_v40 = vmax.f32 %v2648_v36, 0.0 }
 0x2b4   : > { %2739 = vst [vmem:[%s4659_s12 + $0xb0] sm:$0xff] %v2715_v38  ;;  %v2716_v41 = vmax.f32 %v2691_v39, 0.0 }
 0x2b5   : > { %2738 = vst [vmem:[%s4659_s12 + $0xa8] sm:$0xff] %v2714_v40 }
 0x2b6   : > { %2740 = vst [vmem:[%s4659_s12 + $0xb8] sm:$0xff] %v2716_v41 }
 0x2b7 PF: > { %s14_s15 = sadd.s32 1, %s3606_s15  }
 0x2b8   : > { %p11_p4 = scmp.ge.s32.totalorder %s14_s15, 4  }
 0x2ba   :  { %13 = sbr.rel (!%p11_p4) target bundleno = 1 (0x1), region = 66 }

// kernel: ftdnn_forward.45
= control target key start
LH: loop header
LB: loop body
LE: loop exit
PB: predicated region body
PF: predicated region fallthrough
CT: control target
= control target key end

     0   :  { %s6962_s21 = smov 0   ;;  %s9118_s0 = inlined_call_operand.vmem [shape: f32[2,16,1536], index: 0, kind: input, shape index: {}]   ;;  %s9119_s1 = inlined_call_operand.vmem [shape: bf16[1536,160], index: 1, kind: input, shape index: {}]   ;;  %s9120_s2 = inlined_call_operand.vmem [shape: bf16[1536,160], index: 2, kind: input, shape index: {}]   ;;  %s9121_s3 = inlined_call_operand.vmem [shape: bf16[160,1536], index: 3, kind: input, shape index: {}]   ;;  %s9122_s4 = inlined_call_operand.vmem [shape: bf16[160,1536], index: 4, kind: input, shape index: {}]   ;;  %s9123_s5 = inlined_call_operand.vmem [shape: f32[1,1536], index: 5, kind: input, shape index: {}]   ;;  %s9124_s6 = inlined_call_operand.vmem [shape: f32[2,16,1536], index: 6, kind: output, shape index: {}]  }
   0x1 LB: > { %s5309_s22 = sadd.s32 4294967295, %s6924_s21   ;;  %p5313_p0 = scmp.ge.s32.totalorder %s6924_s21, 1  ;;  %s6924_s21 = sphi %s6962_s21, %s16_s21  }
   0x2   : > { %p212_p1 = scmp.lt.s32.totalorder %s6924_s21, 3 }
   0x4   : > { %p213_p2 = pnand %p5313_p0, %p212_p1 }
   0x5   : > { %p242_p3 = scmp.lt.s32.totalorder (!%p213_p2), %s5309_s22, 1 }
   0x6   : > { %216 = sbr.rel (%p213_p2) target bundleno = 1012 (0x3f4), region = 44 }
   0xb   : > { %v5982_v0 = vld [vmem:[%s9119_s1 + $0x74] ss:$8 sps:$4 sm:$0xff]   ;;  %v5986_v2 = vld [vmem:[%s9119_s1 + $0x70] ss:$8 sps:$4 sm:$0xff]   ;;  %v5988_v4 = vld [vmem:[%s9119_s1 + $0x64] ss:$8 sps:$4 sm:$0xff]  }
   0xc   : > { %v5984_v1 = vld [vmem:[%s9119_s1 + $0x174] ss:$8 sps:$4 sm:$0xff]   ;;  %1633 = vmatprep.subr.bf16.mxu0 %v5982_v0  ;;  %v5987_v3 = vld [vmem:[%s9119_s1 + $0x170] ss:$8 sps:$4 sm:$0xff]   ;;  %v5990_v5 = vld [vmem:[%s9119_s1 + $0x164] ss:$8 sps:$4 sm:$0xff]  }
   0xd   : > { %1676 = vmatprep.subr.bf16.mxu1 %v5984_v1  ;;  %1634 = vmatpush1.bf16.msra.mxu0 %v5986_v2  ;;  %v5992_v6 = vld [vmem:[%s9119_s1 + $0x60] ss:$8 sps:$4 sm:$0xff]   ;;  %v5994_v8 = vld [vmem:[%s9119_s1 + $0x54] ss:$8 sps:$4 sm:$0xff]   ;;  %v5998_v10 = vld [vmem:[%s9119_s1 + $0x50] ss:$8 sps:$4 sm:$0xff]  }
   0xe   : > { %1677 = vmatpush1.bf16.msra.mxu1 %v5987_v3  ;;  %1635 = vmatprep.subr.bf16.mxu0 %v5988_v4  ;;  %v5993_v7 = vld [vmem:[%s9119_s1 + $0x160] ss:$8 sps:$4 sm:$0xff]   ;;  %v5996_v9 = vld [vmem:[%s9119_s1 + $0x154] ss:$8 sps:$4 sm:$0xff]   ;;  %v5999_v11 = vld [vmem:[%s9119_s1 + $0x150] ss:$8 sps:$4 sm:$0xff]  }
   0xf   : > { %1678 = vmatprep.subr.bf16.mxu1 %v5990_v5  ;;  %v6000_v12 = vld [vmem:[%s9119_s1 + $0x44] ss:$8 sps:$4 sm:$0xff]   ;;  %v6004_v14 = vld [vmem:[%s9119_s1 + $0x40] ss:$8 sps:$4 sm:$0xff]   ;;  %v6006_v16 = vld [vmem:[%s9119_s1 + $0x34] ss:$8 sps:$4 sm:$0xff]  }
  0x10   : > { %v6002_v13 = vld [vmem:[%s9119_s1 + $0x144] ss:$8 sps:$4 sm:$0xff]   ;;  %v6005_v15 = vld [vmem:[%s9119_s1 + $0x140] ss:$8 sps:$4 sm:$0xff]   ;;  %v6008_v17 = vld [vmem:[%s9119_s1 + $0x134] ss:$8 sps:$4 sm:$0xff]  }
  0x11   : > { %1636 = vmatpush1.bf16.msra.mxu0 %v5992_v6  ;;  %v6010_v18 = vld [vmem:[%s9119_s1 + $0x30] ss:$8 sps:$4 sm:$0xff]   ;;  %v6012_v20 = vld [vmem:[%s9119_s1 + $0x24] ss:$8 sps:$4 sm:$0xff]   ;;  %v6016_v22 = vld [vmem:[%s9119_s1 + $0x20] ss:$8 sps:$4 sm:$0xff]  }
  0x12   : > { %1679 = vmatpush1.bf16.msra.mxu1 %v5993_v7  ;;  %1637 = vmatprep.subr.bf16.mxu0 %v5994_v8  ;;  %v6011_v19 = vld [vmem:[%s9119_s1 + $0x130] ss:$8 sps:$4 sm:$0xff]   ;;  %v6014_v21 = vld [vmem:[%s9119_s1 + $0x124] ss:$8 sps:$4 sm:$0xff]   ;;  %v6017_v23 = vld [vmem:[%s9119_s1 + $0x120] ss:$8 sps:$4 sm:$0xff]  }
  0x13   : > { %1680 = vmatprep.subr.bf16.mxu1 %v5996_v9  ;;  %v6018_v24 = vld [vmem:[%s9119_s1 + $0x14] ss:$8 sps:$4 sm:$0xff]   ;;  %v6022_v26 = vld [vmem:[%s9119_s1 + $0x10] ss:$8 sps:$4 sm:$0xff]   ;;  %v6024_v28 = vld [vmem:[%s9119_s1 + $0x4] ss:$8 sps:$4 sm:$0xff]  }
  0x14   : > { %v6020_v25 = vld [vmem:[%s9119_s1 + $0x114] ss:$8 sps:$4 sm:$0xff]   ;;  %v6023_v27 = vld [vmem:[%s9119_s1 + $0x110] ss:$8 sps:$4 sm:$0xff]   ;;  %v6026_v29 = vld [vmem:[%s9119_s1 + $0x104] ss:$8 sps:$4 sm:$0xff]  }
  0x15   : > { %1638 = vmatpush1.bf16.msra.mxu0 %v5998_v10  ;;  %v6028_v30 = vld [vmem:[%s9119_s1] ss:$8 sps:$4 sm:$0xff]   ;;  %v6030_v32 = vld [vmem:[%s9119_s1 + $0xf4] ss:$8 sps:$4 sm:$0xff]   ;;  %v6034_v34 = vld [vmem:[%s9119_s1 + $0xf0] ss:$8 sps:$4 sm:$0xff]  }
  0x16   : > { %1681 = vmatpush1.bf16.msra.mxu1 %v5999_v11  ;;  %1639 = vmatprep.subr.bf16.mxu0 %v6000_v12  ;;  %v6029_v31 = vld [vmem:[%s9119_s1 + $0x100] ss:$8 sps:$4 sm:$0xff]   ;;  %v6032_v33 = vld [vmem:[%s9119_s1 + $0x1f4] ss:$8 sps:$4 sm:$0xff]   ;;  %v6035_v35 = vld [vmem:[%s9119_s1 + $0x1f0] ss:$8 sps:$4 sm:$0xff]  }
  0x17   : > { %1682 = vmatprep.subr.bf16.mxu1 %v6002_v13  ;;  %s9128_s22 = smov (!%p242_p3, %s5309_s22), 1  ;;  %v6036_v36 = vld [vmem:[%s9119_s1 + $0xe4] ss:$8 sps:$4 sm:$0xff]   ;;  %v6040_v38 = vld [vmem:[%s9119_s1 + $0xe0] ss:$8 sps:$4 sm:$0xff]   ;;  %vm1903_vm0 = vcmask 1042432  }
  0x18   : > { %v6038_v37 = vld [vmem:[%s9119_s1 + $0x1e4] ss:$8 sps:$4 sm:$0xff]   ;;  %s5972_s11 = smul.u32 192, %s9128_s22  ;;  %v6041_v39 = vld [vmem:[%s9119_s1 + $0x1e0] ss:$8 sps:$4 sm:$0xff]   ;;  %vm3260_vm1 = vcmask 1044480  }
  0x19   : > { %1640 = vmatpush1.bf16.msra.mxu0 %v6004_v14  ;;  %v6042_v40 = vld [vmem:[%s9119_s1 + $0xd4] ss:$8 sps:$4 sm:$0xff]   ;;  %v6046_v42 = vld [vmem:[%s9119_s1 + $0xd0] ss:$8 sps:$4 sm:$0xff]   ;;  %v6048_v44 = vld [vmem:[%s9119_s1 + $0xc4] ss:$8 sps:$4 sm:$0xff]  }
  0x1a   : > { %1683 = vmatpush1.bf16.msra.mxu1 %v6005_v15  ;;  %1641 = vmatprep.subr.bf16.mxu0 %v6006_v16  ;;  %v6044_v41 = vld [vmem:[%s9119_s1 + $0x1d4] ss:$8 sps:$4 sm:$0xff]   ;;  %v6047_v43 = vld [vmem:[%s9119_s1 + $0x1d0] ss:$8 sps:$4 sm:$0xff]   ;;  %s7114_s26 = scalar_lea.vmem %s9118_s0, %s5972_s11  ;;  %v6050_v45 = vld [vmem:[%s9119_s1 + $0x1c4] ss:$8 sps:$4 sm:$0xff]   ;;  %s9055_s29 = scalar_lea.vmem %s9124_s6, %s5972_s11 }
  0x1b   : > { %1684 = vmatprep.subr.bf16.mxu1 %v6008_v17  ;;  %v254_v46 = vld [vmem:[%s7114_s26 + $0x8] sm:$0xff]  ;;  %v256_v48 = vld [vmem:[%s7114_s26 + $0x18] sm:$0xff]  ;;  %v253_v6 = vld [vmem:[%s7114_s26] sm:$0xff]  ;;  %vm3995_vm2 = vcmask 261120   ;;  %vm6926_vm3 = vmmov 1  }
  0x1c   : > { %v266_v47 = vld [vmem:[%s7114_s26 + $0x68] sm:$0xff]  ;;  %v268_v49 = vld [vmem:[%s7114_s26 + $0x78] sm:$0xff]  ;;  %v265_v7 = vld [vmem:[%s7114_s26 + $0x60] sm:$0xff] }
  0x1d   : > { %1642 = vmatpush1.bf16.msra.mxu0 %v6010_v18  ;;  %v6052_v50 = vld [vmem:[%s9119_s1 + $0xc0] ss:$8 sps:$4 sm:$0xff]   ;;  %v6054_v52 = vld [vmem:[%s9119_s1 + $0xb4] ss:$8 sps:$4 sm:$0xff]   ;;  %v7135_v53 = vpack.c.bf16 %v266_v47, %v254_v46  ;;  %v7137_v54 = vpack.c.bf16 %v268_v49, %v256_v48  ;;  %v6058_v56 = vld [vmem:[%s9119_s1 + $0xb0] ss:$8 sps:$4 sm:$0xff]   ;;  %v7196_v12 = vpack.c.bf16 %v265_v7, %v253_v6 }
  0x1e   : > { %1685 = vmatpush1.bf16.msra.mxu1 %v6011_v19  ;;  %1643 = vmatprep.subr.bf16.mxu0 %v6012_v20  ;;  %v6053_v51 = vld [vmem:[%s9119_s1 + $0x1c0] ss:$8 sps:$4 sm:$0xff]   ;;  %v6056_v55 = vld [vmem:[%s9119_s1 + $0x1b4] ss:$8 sps:$4 sm:$0xff]   ;;  %v6059_v57 = vld [vmem:[%s9119_s1 + $0x1b0] ss:$8 sps:$4 sm:$0xff]  }
  0x1f   : > { %1686 = vmatprep.subr.bf16.mxu1 %v6014_v21  ;;  %1665 = vmatprep.mubr.bf16.mxu0 %v7135_v53  ;;  %v6060_v58 = vld [vmem:[%s9119_s1 + $0xa4] ss:$8 sps:$4 sm:$0xff]   ;;  %v6064_v60 = vld [vmem:[%s9119_s1 + $0xa0] ss:$8 sps:$4 sm:$0xff]   ;;  %v6066_v62 = vld [vmem:[%s9119_s1 + $0x94] ss:$8 sps:$4 sm:$0xff]  }
  0x20   : > { %1708 = vmatprep.mubr.bf16.mxu1 %v7137_v54  ;;  %v6062_v59 = vld [vmem:[%s9119_s1 + $0x1a4] ss:$8 sps:$4 sm:$0xff]   ;;  %v6065_v61 = vld [vmem:[%s9119_s1 + $0x1a0] ss:$8 sps:$4 sm:$0xff]   ;;  %v6068_v63 = vld [vmem:[%s9119_s1 + $0x194] ss:$8 sps:$4 sm:$0xff]  }
  0x21   : > { %1644 = vmatpush1.bf16.msra.mxu0 %v6016_v22  ;;  %v6070_v0 = vld [vmem:[%s9119_s1 + $0x90] ss:$8 sps:$4 sm:$0xff]   ;;  %v6072_v2 = vld [vmem:[%s9119_s1 + $0x84] ss:$8 sps:$4 sm:$0xff]   ;;  %v6076_v4 = vld [vmem:[%s9119_s1 + $0x80] ss:$8 sps:$4 sm:$0xff]  }
  0x22   : > { %1687 = vmatpush1.bf16.msra.mxu1 %v6017_v23  ;;  %1645 = vmatprep.subr.bf16.mxu0 %v6018_v24  ;;  %v6071_v1 = vld [vmem:[%s9119_s1 + $0x190] ss:$8 sps:$4 sm:$0xff]   ;;  %v6074_v3 = vld [vmem:[%s9119_s1 + $0x184] ss:$8 sps:$4 sm:$0xff]   ;;  %v6077_v5 = vld [vmem:[%s9119_s1 + $0x180] ss:$8 sps:$4 sm:$0xff]  }
  0x23   : > { %1688 = vmatprep.subr.bf16.mxu1 %v6020_v25  ;;  %v255_v8 = vld [vmem:[%s7114_s26 + $0x10] sm:$0xff]  ;;  %v6086_v16 = vld [vmem:[%s9119_s1 + $0x264] ss:$8 sps:$4 sm:$0xff]   ;;  %v6084_v18 = vld [vmem:[%s9119_s1 + $0x260] ss:$8 sps:$4 sm:$0xff]  }
  0x24   : > { %v267_v9 = vld [vmem:[%s7114_s26 + $0x70] sm:$0xff]  ;;  %v6089_v17 = vld [vmem:[%s9119_s1 + $0x364] ss:$8 sps:$4 sm:$0xff]   ;;  %v6087_v19 = vld [vmem:[%s9119_s1 + $0x360] ss:$8 sps:$4 sm:$0xff]  }
  0x25   : > { %1646 = vmatpush1.bf16.msra.mxu0 %v6022_v26  ;;  %v6080_v10 = vld [vmem:[%s9119_s1 + $0x274] ss:$8 sps:$4 sm:$0xff]   ;;  %v7198_v13 = vpack.c.bf16 %v267_v9, %v255_v8  ;;  %v6078_v14 = vld [vmem:[%s9119_s1 + $0x270] ss:$8 sps:$4 sm:$0xff]   ;;  %v6098_v24 = vld [vmem:[%s9119_s1 + $0x244] ss:$8 sps:$4 sm:$0xff]  }
  0x26   : > { %1689 = vmatpush1.bf16.msra.mxu1 %v6023_v27  ;;  %1647 = vmatprep.subr.bf16.mxu0 %v6024_v28  ;;  %v6083_v11 = vld [vmem:[%s9119_s1 + $0x374] ss:$8 sps:$4 sm:$0xff]   ;;  %v6081_v15 = vld [vmem:[%s9119_s1 + $0x370] ss:$8 sps:$4 sm:$0xff]   ;;  %v6101_v25 = vld [vmem:[%s9119_s1 + $0x344] ss:$8 sps:$4 sm:$0xff]  }
  0x27   : > { %1690 = vmatprep.subr.bf16.mxu1 %v6026_v29  ;;  %v6092_v20 = vld [vmem:[%s9119_s1 + $0x254] ss:$8 sps:$4 sm:$0xff]   ;;  %v6090_v22 = vld [vmem:[%s9119_s1 + $0x250] ss:$8 sps:$4 sm:$0xff]   ;;  %v6096_v26 = vld [vmem:[%s9119_s1 + $0x240] ss:$8 sps:$4 sm:$0xff]  }
  0x28   : > { %v6095_v21 = vld [vmem:[%s9119_s1 + $0x354] ss:$8 sps:$4 sm:$0xff]   ;;  %v6093_v23 = vld [vmem:[%s9119_s1 + $0x350] ss:$8 sps:$4 sm:$0xff]   ;;  %v6099_v27 = vld [vmem:[%s9119_s1 + $0x340] ss:$8 sps:$4 sm:$0xff]  }
  0x29   : > { %1648 = vmatpush1.bf16.msra.mxu0 %v6028_v30  ;;  %v6104_v28 = vld [vmem:[%s9119_s1 + $0x234] ss:$8 sps:$4 sm:$0xff]   ;;  %v6102_v30 = vld [vmem:[%s9119_s1 + $0x230] ss:$8 sps:$4 sm:$0xff]   ;;  %v6120_v48 = vld [vmem:[%s9119_s1 + $0x200] ss:$8 sps:$4 sm:$0xff]  }
  0x2a   : > { %1691 = vmatpush1.bf16.msra.mxu1 %v6029_v31  ;;  %1649 = vmatprep.subr.bf16.mxu0 %v6030_v32  ;;  %v6107_v29 = vld [vmem:[%s9119_s1 + $0x334] ss:$8 sps:$4 sm:$0xff]   ;;  %v6105_v31 = vld [vmem:[%s9119_s1 + $0x330] ss:$8 sps:$4 sm:$0xff]   ;;  %v6110_v32 = vld [vmem:[%s9119_s1 + $0x224] ss:$8 sps:$4 sm:$0xff]  }
  0x2b   : > { %1692 = vmatprep.subr.bf16.mxu1 %v6032_v33  ;;  %v6113_v33 = vld [vmem:[%s9119_s1 + $0x324] ss:$8 sps:$4 sm:$0xff]   ;;  %v272_v46 = vld [vmem:[%s7114_s26 + $0x98] sm:$0xff]  ;;  %v6123_v49 = vld [vmem:[%s9119_s1 + $0x300] ss:$8 sps:$4 sm:$0xff]  }
  0x2c   : > { %v6150_v6 = vld [vmem:[%s9119_s1 + $0x2b0] ss:$8 sps:$4 sm:$0xff]   ;;  %v6158_v8 = vld [vmem:[%s9119_s1 + $0x2a4] ss:$8 sps:$4 sm:$0xff]   ;;  %vm8357_vm4 = vmpackc.low %vm3260_vm1, %vm6926_vm3 }
  0x2d   : > { %1650 = vmatpush2.bf16.msra.mxu0 %v6034_v34  ;;  %v6108_v34 = vld [vmem:[%s9119_s1 + $0x220] ss:$8 sps:$4 sm:$0xff]   ;;  %v6153_v7 = vld [vmem:[%s9119_s1 + $0x3b0] ss:$8 sps:$4 sm:$0xff]   ;;  %v6161_v9 = vld [vmem:[%s9119_s1 + $0x3a4] ss:$8 sps:$4 sm:$0xff]  }
  0x2e   : > { %1693 = vmatpush2.bf16.msra.mxu1 %v6035_v35  ;;  %1651 = vmatprep.subr.bf16.mxu0 %v6036_v36  ;;  %v6111_v35 = vld [vmem:[%s9119_s1 + $0x320] ss:$8 sps:$4 sm:$0xff]   ;;  %v6116_v36 = vld [vmem:[%s9119_s1 + $0x214] ss:$8 sps:$4 sm:$0xff]  }
  0x2f   : > { %1694 = vmatprep.subr.bf16.mxu1 %v6038_v37  ;;  %v6119_v37 = vld [vmem:[%s9119_s1 + $0x314] ss:$8 sps:$4 sm:$0xff]  }
  0x31   : > { %1652 = vmatpush2.bf16.msra.mxu0 %v6040_v38  ;;  %v6114_v38 = vld [vmem:[%s9119_s1 + $0x210] ss:$8 sps:$4 sm:$0xff]  }
  0x32   : > { %1695 = vmatpush2.bf16.msra.mxu1 %v6041_v39  ;;  %1653 = vmatprep.subr.bf16.mxu0 %v6042_v40  ;;  %v6117_v39 = vld [vmem:[%s9119_s1 + $0x310] ss:$8 sps:$4 sm:$0xff]   ;;  %v258_v40 = vld [vmem:[%s7114_s26 + $0x28] sm:$0xff] }
  0x33   : > { %1696 = vmatprep.subr.bf16.mxu1 %v6044_v41  ;;  %v270_v41 = vld [vmem:[%s7114_s26 + $0x88] sm:$0xff] }
  0x35   : > { %1654 = vmatpush2.bf16.msra.mxu0 %v6046_v42  ;;  %v260_v42 = vld [vmem:[%s7114_s26 + $0x38] sm:$0xff] }
  0x36   : > { %1697 = vmatpush2.bf16.msra.mxu1 %v6047_v43  ;;  %1655 = vmatprep.subr.bf16.mxu0 %v6048_v44  ;;  %v6122_v43 = vld [vmem:[%s9119_s1 + $0x204] ss:$8 sps:$4 sm:$0xff]   ;;  %v7292_v47 = vpack.c.bf16 %v272_v46, %v260_v42  ;;  %v276_v42 = vld [vmem:[%s7114_s26 + $0xb8] sm:$0xff] }
  0x37   : > { %1698 = vmatprep.subr.bf16.mxu1 %v6050_v45  ;;  %v6125_v44 = vld [vmem:[%s9119_s1 + $0x304] ss:$8 sps:$4 sm:$0xff]   ;;  %v7289_v45 = vpack.c.bf16 %v270_v41, %v258_v40  ;;  %v264_v41 = vld [vmem:[%s7114_s26 + $0x58] sm:$0xff] }
  0x38   : > { %v7450_v46 = vpack.c.bf16 %v276_v42, %v264_v41  ;;  %v6264_v41 = vld [vmem:[%s9119_s1 + $0x480] ss:$8 sps:$4 sm:$0xff]  }
  0x39   : > { %1656 = vmatpush2.bf16.msra.mxu0 %v6052_v50  ;;  %v6128_v50 = vld [vmem:[%s9119_s1 + $0x2f4] ss:$8 sps:$4 sm:$0xff]   ;;  %v6267_v42 = vld [vmem:[%s9119_s1 + $0x580] ss:$8 sps:$4 sm:$0xff]  }
  0x3a   : > { %1699 = vmatpush2.bf16.msra.mxu1 %v6053_v51  ;;  %1657 = vmatprep.subr.bf16.mxu0 %v6054_v52  ;;  %v6131_v51 = vld [vmem:[%s9119_s1 + $0x3f4] ss:$8 sps:$4 sm:$0xff]   ;;  %v6126_v52 = vld [vmem:[%s9119_s1 + $0x2f0] ss:$8 sps:$4 sm:$0xff]  }
  0x3b   : > { %1700 = vmatprep.subr.bf16.mxu1 %v6056_v55  ;;  %v6129_v55 = vld [vmem:[%s9119_s1 + $0x3f0] ss:$8 sps:$4 sm:$0xff]  }
  0x3d   : > { %1658 = vmatpush2.bf16.msra.mxu0 %v6058_v56  ;;  %v6134_v56 = vld [vmem:[%s9119_s1 + $0x2e4] ss:$8 sps:$4 sm:$0xff]  }
  0x3e   : > { %1701 = vmatpush2.bf16.msra.mxu1 %v6059_v57  ;;  %1659 = vmatprep.subr.bf16.mxu0 %v6060_v58  ;;  %v6137_v57 = vld [vmem:[%s9119_s1 + $0x3e4] ss:$8 sps:$4 sm:$0xff]   ;;  %v6132_v58 = vld [vmem:[%s9119_s1 + $0x2e0] ss:$8 sps:$4 sm:$0xff]  }
  0x3f   : > { %1702 = vmatprep.subr.bf16.mxu1 %v6062_v59  ;;  %v6135_v59 = vld [vmem:[%s9119_s1 + $0x3e0] ss:$8 sps:$4 sm:$0xff]  }
  0x41   : > { %1660 = vmatpush2.bf16.msra.mxu0 %v6064_v60  ;;  %v6140_v60 = vld [vmem:[%s9119_s1 + $0x2d4] ss:$8 sps:$4 sm:$0xff]  }
  0x42   : > { %1703 = vmatpush2.bf16.msra.mxu1 %v6065_v61  ;;  %1661 = vmatprep.subr.bf16.mxu0 %v6066_v62  ;;  %v6143_v61 = vld [vmem:[%s9119_s1 + $0x3d4] ss:$8 sps:$4 sm:$0xff]   ;;  %v6138_v62 = vld [vmem:[%s9119_s1 + $0x2d0] ss:$8 sps:$4 sm:$0xff]  }
  0x43   : > { %1704 = vmatprep.subr.bf16.mxu1 %v6068_v63  ;;  %v6141_v63 = vld [vmem:[%s9119_s1 + $0x3d0] ss:$8 sps:$4 sm:$0xff]  }
  0x45   : > { %1662 = vmatpush2.bf16.msra.mxu0 %v6070_v0  ;;  %v6146_v0 = vld [vmem:[%s9119_s1 + $0x2c4] ss:$8 sps:$4 sm:$0xff]  }
  0x46   : > { %1705 = vmatpush2.bf16.msra.mxu1 %v6071_v1  ;;  %1663 = vmatprep.subr.bf16.mxu0 %v6072_v2  ;;  %v6149_v1 = vld [vmem:[%s9119_s1 + $0x3c4] ss:$8 sps:$4 sm:$0xff]   ;;  %v6144_v2 = vld [vmem:[%s9119_s1 + $0x2c0] ss:$8 sps:$4 sm:$0xff]  }
  0x47   : > { %1706 = vmatprep.subr.bf16.mxu1 %v6074_v3  ;;  %v6147_v3 = vld [vmem:[%s9119_s1 + $0x3c0] ss:$8 sps:$4 sm:$0xff]  }
  0x49   : > { %1664 = vmatpush2.bf16.msra.mxu0 %v6076_v4  ;;  %v6152_v4 = vld [vmem:[%s9119_s1 + $0x2b4] ss:$8 sps:$4 sm:$0xff]  }
  0x4a   : > { %1707 = vmatpush2.bf16.msra.mxu1 %v6077_v5  ;;  %1719 = vmatprep.subr.bf16.mxu0 %v6080_v10  ;;  %v6155_v5 = vld [vmem:[%s9119_s1 + $0x3b4] ss:$8 sps:$4 sm:$0xff]   ;;  %v6156_v10 = vld [vmem:[%s9119_s1 + $0x2a0] ss:$8 sps:$4 sm:$0xff]  }
  0x4b   : > { %1762 = vmatprep.subr.bf16.mxu1 %v6083_v11  ;;  %v6159_v11 = vld [vmem:[%s9119_s1 + $0x3a0] ss:$8 sps:$4 sm:$0xff]  }
  0x4c   : > { %1666 = vmatmul.mubr.bf16.vlgmr.msra.gmra.mxu0 %v7196_v12 }
  0x4d   : > { %1709 = vmatmul.mubr.bf16.vlgmr.msra.gmra.mxu1 %v7198_v13  ;;  %1720 = vmatpush1.bf16.msra.mxu0 %v6078_v14  ;;  %v6164_v14 = vld [vmem:[%s9119_s1 + $0x294] ss:$8 sps:$4 sm:$0xff]  }
  0x4e   : > { %1763 = vmatpush1.bf16.msra.mxu1 %v6081_v15  ;;  %1721 = vmatprep.subr.bf16.mxu0 %v6086_v16  ;;  %v6167_v15 = vld [vmem:[%s9119_s1 + $0x394] ss:$8 sps:$4 sm:$0xff]   ;;  %v6162_v16 = vld [vmem:[%s9119_s1 + $0x290] ss:$8 sps:$4 sm:$0xff]  }
  0x4f   : > { %1764 = vmatprep.subr.bf16.mxu1 %v6089_v17  ;;  %1751 = vmatprep.mubr.bf16.mxu0 %v7289_v45  ;;  %v6165_v17 = vld [vmem:[%s9119_s1 + $0x390] ss:$8 sps:$4 sm:$0xff]  }
  0x50   : > { %1794 = vmatprep.mubr.bf16.mxu1 %v7292_v47 }
  0x51   : > { %1722 = vmatpush1.bf16.msra.mxu0 %v6084_v18  ;;  %v6170_v18 = vld [vmem:[%s9119_s1 + $0x284] ss:$8 sps:$4 sm:$0xff]  }
  0x52   : > { %1765 = vmatpush1.bf16.msra.mxu1 %v6087_v19  ;;  %1723 = vmatprep.subr.bf16.mxu0 %v6092_v20  ;;  %v6173_v19 = vld [vmem:[%s9119_s1 + $0x384] ss:$8 sps:$4 sm:$0xff]   ;;  %v6168_v20 = vld [vmem:[%s9119_s1 + $0x280] ss:$8 sps:$4 sm:$0xff]  }
  0x53   : > { %1766 = vmatprep.subr.bf16.mxu1 %v6095_v21  ;;  %v6171_v21 = vld [vmem:[%s9119_s1 + $0x380] ss:$8 sps:$4 sm:$0xff]  }
  0x55   : > { %1724 = vmatpush1.bf16.msra.mxu0 %v6090_v22  ;;  %v257_v22 = vld [vmem:[%s7114_s26 + $0x20] sm:$0xff] }
  0x56   : > { %1767 = vmatpush1.bf16.msra.mxu1 %v6093_v23  ;;  %1725 = vmatprep.subr.bf16.mxu0 %v6098_v24  ;;  %v269_v23 = vld [vmem:[%s7114_s26 + $0x80] sm:$0xff]  ;;  %v259_v24 = vld [vmem:[%s7114_s26 + $0x30] sm:$0xff] }
  0x57   : > { %1768 = vmatprep.subr.bf16.mxu1 %v6101_v25  ;;  %v271_v25 = vld [vmem:[%s7114_s26 + $0x90] sm:$0xff] }
  0x59   : > { %1726 = vmatpush1.bf16.msra.mxu0 %v6096_v26  ;;  %v6176_v26 = vld [vmem:[%s9119_s1 + $0x474] ss:$8 sps:$4 sm:$0xff]  }
  0x5a   : > { %1769 = vmatpush1.bf16.msra.mxu1 %v6099_v27  ;;  %1727 = vmatprep.subr.bf16.mxu0 %v6104_v28  ;;  %v6179_v27 = vld [vmem:[%s9119_s1 + $0x574] ss:$8 sps:$4 sm:$0xff]   ;;  %v7408_v28 = vpack.c.bf16 %v269_v23, %v257_v22  ;;  %v6240_v22 = vld [vmem:[%s9119_s1 + $0x4c0] ss:$8 sps:$4 sm:$0xff]  }
  0x5b   : > { %1770 = vmatprep.subr.bf16.mxu1 %v6107_v29  ;;  %v7410_v29 = vpack.c.bf16 %v271_v25, %v259_v24  ;;  %v6243_v23 = vld [vmem:[%s9119_s1 + $0x5c0] ss:$8 sps:$4 sm:$0xff]   ;;  %v6248_v24 = vld [vmem:[%s9119_s1 + $0x4b4] ss:$8 sps:$4 sm:$0xff]  }
  0x5c   : > { %v6251_v25 = vld [vmem:[%s9119_s1 + $0x5b4] ss:$8 sps:$4 sm:$0xff]  }
  0x5d   : > { %1728 = vmatpush1.bf16.msra.mxu0 %v6102_v30  ;;  %v6174_v30 = vld [vmem:[%s9119_s1 + $0x470] ss:$8 sps:$4 sm:$0xff]  }
  0x5e   : > { %1771 = vmatpush1.bf16.msra.mxu1 %v6105_v31  ;;  %1729 = vmatprep.subr.bf16.mxu0 %v6110_v32  ;;  %v6177_v31 = vld [vmem:[%s9119_s1 + $0x570] ss:$8 sps:$4 sm:$0xff]   ;;  %v6182_v32 = vld [vmem:[%s9119_s1 + $0x464] ss:$8 sps:$4 sm:$0xff]  }
  0x5f   : > { %1772 = vmatprep.subr.bf16.mxu1 %v6113_v33  ;;  %v6185_v33 = vld [vmem:[%s9119_s1 + $0x564] ss:$8 sps:$4 sm:$0xff]  }
  0x61   : > { %1730 = vmatpush1.bf16.msra.mxu0 %v6108_v34  ;;  %v6180_v34 = vld [vmem:[%s9119_s1 + $0x460] ss:$8 sps:$4 sm:$0xff]  }
  0x62   : > { %1773 = vmatpush1.bf16.msra.mxu1 %v6111_v35  ;;  %1731 = vmatprep.subr.bf16.mxu0 %v6116_v36  ;;  %v6183_v35 = vld [vmem:[%s9119_s1 + $0x560] ss:$8 sps:$4 sm:$0xff]   ;;  %v6188_v36 = vld [vmem:[%s9119_s1 + $0x454] ss:$8 sps:$4 sm:$0xff]  }
  0x63   : > { %1774 = vmatprep.subr.bf16.mxu1 %v6119_v37  ;;  %v6191_v37 = vld [vmem:[%s9119_s1 + $0x554] ss:$8 sps:$4 sm:$0xff]  }
  0x65   : > { %1732 = vmatpush1.bf16.msra.mxu0 %v6114_v38  ;;  %v262_v38 = vld [vmem:[%s7114_s26 + $0x48] sm:$0xff] }
  0x66   : > { %1775 = vmatpush1.bf16.msra.mxu1 %v6117_v39  ;;  %1733 = vmatprep.subr.bf16.mxu0 %v6122_v43  ;;  %v274_v39 = vld [vmem:[%s7114_s26 + $0xa8] sm:$0xff]  ;;  %v6186_v43 = vld [vmem:[%s9119_s1 + $0x450] ss:$8 sps:$4 sm:$0xff]  }
  0x67   : > { %1776 = vmatprep.subr.bf16.mxu1 %v6125_v44  ;;  %v7440_v40 = vpack.c.bf16 %v274_v39, %v262_v38  ;;  %v6189_v44 = vld [vmem:[%s9119_s1 + $0x550] ss:$8 sps:$4 sm:$0xff]   ;;  %v6266_v38 = vld [vmem:[%s9119_s1 + $0x484] ss:$8 sps:$4 sm:$0xff]  }
  0x68   : > { %v6269_v39 = vld [vmem:[%s9119_s1 + $0x584] ss:$8 sps:$4 sm:$0xff]  }
  0x69   : > { %1734 = vmatpush1.bf16.msra.mxu0 %v6120_v48  ;;  %v6194_v48 = vld [vmem:[%s9119_s1 + $0x444] ss:$8 sps:$4 sm:$0xff]  }
  0x6a   : > { %1777 = vmatpush1.bf16.msra.mxu1 %v6123_v49  ;;  %1735 = vmatprep.subr.bf16.mxu0 %v6128_v50  ;;  %v6197_v49 = vld [vmem:[%s9119_s1 + $0x544] ss:$8 sps:$4 sm:$0xff]   ;;  %v6192_v50 = vld [vmem:[%s9119_s1 + $0x440] ss:$8 sps:$4 sm:$0xff]  }
  0x6b   : > { %1778 = vmatprep.subr.bf16.mxu1 %v6131_v51  ;;  %v6195_v51 = vld [vmem:[%s9119_s1 + $0x540] ss:$8 sps:$4 sm:$0xff]  }
  0x6d   : > { %1736 = vmatpush2.bf16.msra.mxu0 %v6126_v52  ;;  %v6200_v52 = vld [vmem:[%s9119_s1 + $0x434] ss:$8 sps:$4 sm:$0xff]  }
  0x6e   : > { %1779 = vmatpush2.bf16.msra.mxu1 %v6129_v55  ;;  %1737 = vmatprep.subr.bf16.mxu0 %v6134_v56  ;;  %v6203_v55 = vld [vmem:[%s9119_s1 + $0x534] ss:$8 sps:$4 sm:$0xff]   ;;  %v6198_v56 = vld [vmem:[%s9119_s1 + $0x430] ss:$8 sps:$4 sm:$0xff]  }
  0x6f   : > { %1780 = vmatprep.subr.bf16.mxu1 %v6137_v57  ;;  %v6201_v57 = vld [vmem:[%s9119_s1 + $0x530] ss:$8 sps:$4 sm:$0xff]  }
  0x71   : > { %1738 = vmatpush2.bf16.msra.mxu0 %v6132_v58  ;;  %v6206_v58 = vld [vmem:[%s9119_s1 + $0x424] ss:$8 sps:$4 sm:$0xff]  }
  0x72   : > { %1781 = vmatpush2.bf16.msra.mxu1 %v6135_v59  ;;  %1739 = vmatprep.subr.bf16.mxu0 %v6140_v60  ;;  %v6209_v59 = vld [vmem:[%s9119_s1 + $0x524] ss:$8 sps:$4 sm:$0xff]   ;;  %v6204_v60 = vld [vmem:[%s9119_s1 + $0x420] ss:$8 sps:$4 sm:$0xff]  }
  0x73   : > { %1782 = vmatprep.subr.bf16.mxu1 %v6143_v61  ;;  %v6207_v61 = vld [vmem:[%s9119_s1 + $0x520] ss:$8 sps:$4 sm:$0xff]  }
  0x75   : > { %1740 = vmatpush2.bf16.msra.mxu0 %v6138_v62  ;;  %v6212_v62 = vld [vmem:[%s9119_s1 + $0x414] ss:$8 sps:$4 sm:$0xff]  }
  0x76   : > { %1783 = vmatpush2.bf16.msra.mxu1 %v6141_v63  ;;  %1741 = vmatprep.subr.bf16.mxu0 %v6146_v0  ;;  %v6215_v63 = vld [vmem:[%s9119_s1 + $0x514] ss:$8 sps:$4 sm:$0xff]   ;;  %v6210_v0 = vld [vmem:[%s9119_s1 + $0x410] ss:$8 sps:$4 sm:$0xff]  }
  0x77   : > { %1784 = vmatprep.subr.bf16.mxu1 %v6149_v1  ;;  %v6213_v1 = vld [vmem:[%s9119_s1 + $0x510] ss:$8 sps:$4 sm:$0xff]  }
  0x79   : > { %1742 = vmatpush2.bf16.msra.mxu0 %v6144_v2  ;;  %v6218_v2 = vld [vmem:[%s9119_s1 + $0x404] ss:$8 sps:$4 sm:$0xff]  }
  0x7a   : > { %1785 = vmatpush2.bf16.msra.mxu1 %v6147_v3  ;;  %1743 = vmatprep.subr.bf16.mxu0 %v6152_v4  ;;  %v6221_v3 = vld [vmem:[%s9119_s1 + $0x504] ss:$8 sps:$4 sm:$0xff]   ;;  %v6216_v4 = vld [vmem:[%s9119_s1 + $0x400] ss:$8 sps:$4 sm:$0xff]  }
  0x7b   : > { %1786 = vmatprep.subr.bf16.mxu1 %v6155_v5  ;;  %v6219_v5 = vld [vmem:[%s9119_s1 + $0x500] ss:$8 sps:$4 sm:$0xff]  }
  0x7d   : > { %1744 = vmatpush2.bf16.msra.mxu0 %v6150_v6  ;;  %v6224_v6 = vld [vmem:[%s9119_s1 + $0x4f4] ss:$8 sps:$4 sm:$0xff]  }
  0x7e   : > { %1787 = vmatpush2.bf16.msra.mxu1 %v6153_v7  ;;  %1745 = vmatprep.subr.bf16.mxu0 %v6158_v8  ;;  %v6227_v7 = vld [vmem:[%s9119_s1 + $0x5f4] ss:$8 sps:$4 sm:$0xff]   ;;  %v6222_v8 = vld [vmem:[%s9119_s1 + $0x4f0] ss:$8 sps:$4 sm:$0xff]  }
  0x7f   : > { %1788 = vmatprep.subr.bf16.mxu1 %v6161_v9  ;;  %v6225_v9 = vld [vmem:[%s9119_s1 + $0x5f0] ss:$8 sps:$4 sm:$0xff]  }
  0x81   : > { %1746 = vmatpush2.bf16.msra.mxu0 %v6156_v10  ;;  %v6230_v10 = vld [vmem:[%s9119_s1 + $0x4e4] ss:$8 sps:$4 sm:$0xff]  }
  0x82   : > { %1789 = vmatpush2.bf16.msra.mxu1 %v6159_v11  ;;  %1747 = vmatprep.subr.bf16.mxu0 %v6164_v14  ;;  %v6233_v11 = vld [vmem:[%s9119_s1 + $0x5e4] ss:$8 sps:$4 sm:$0xff]   ;;  %v6228_v14 = vld [vmem:[%s9119_s1 + $0x4e0] ss:$8 sps:$4 sm:$0xff]  }
  0x83   : > { %1790 = vmatprep.subr.bf16.mxu1 %v6167_v15  ;;  %v6231_v15 = vld [vmem:[%s9119_s1 + $0x5e0] ss:$8 sps:$4 sm:$0xff]  }
  0x85   : > { %1748 = vmatpush2.bf16.msra.mxu0 %v6162_v16  ;;  %v6236_v16 = vld [vmem:[%s9119_s1 + $0x4d4] ss:$8 sps:$4 sm:$0xff]  }
  0x86   : > { %1791 = vmatpush2.bf16.msra.mxu1 %v6165_v17  ;;  %1749 = vmatprep.subr.bf16.mxu0 %v6170_v18  ;;  %v6239_v17 = vld [vmem:[%s9119_s1 + $0x5d4] ss:$8 sps:$4 sm:$0xff]   ;;  %v6234_v18 = vld [vmem:[%s9119_s1 + $0x4d0] ss:$8 sps:$4 sm:$0xff]  }
  0x87   : > { %1792 = vmatprep.subr.bf16.mxu1 %v6173_v19  ;;  %v6237_v19 = vld [vmem:[%s9119_s1 + $0x5d0] ss:$8 sps:$4 sm:$0xff]  }
  0x89   : > { %1750 = vmatpush2.bf16.msra.mxu0 %v6168_v20  ;;  %v6242_v20 = vld [vmem:[%s9119_s1 + $0x4c4] ss:$8 sps:$4 sm:$0xff]  }
  0x8a   : > { %1793 = vmatpush2.bf16.msra.mxu1 %v6171_v21  ;;  %1805 = vmatprep.subr.bf16.mxu0 %v6176_v26  ;;  %v6245_v21 = vld [vmem:[%s9119_s1 + $0x5c4] ss:$8 sps:$4 sm:$0xff]   ;;  %v6246_v26 = vld [vmem:[%s9119_s1 + $0x4b0] ss:$8 sps:$4 sm:$0xff]  }
  0x8b   : > { %1848 = vmatprep.subr.bf16.mxu1 %v6179_v27  ;;  %v6249_v27 = vld [vmem:[%s9119_s1 + $0x5b0] ss:$8 sps:$4 sm:$0xff]  }
  0x8c   : > { %1752 = vmatmul.mubr.bf16.vlgmr.msra.gmra.mxu0 %v7408_v28 }
  0x8d   : > { %1795 = vmatmul.mubr.bf16.vlgmr.msra.gmra.mxu1 %v7410_v29  ;;  %1806 = vmatpush1.bf16.msra.mxu0 %v6174_v30  ;;  %v6254_v30 = vld [vmem:[%s9119_s1 + $0x4a4] ss:$8 sps:$4 sm:$0xff]  }
  0x8e   : > { %1849 = vmatpush1.bf16.msra.mxu1 %v6177_v31  ;;  %1807 = vmatprep.subr.bf16.mxu0 %v6182_v32  ;;  %v6257_v31 = vld [vmem:[%s9119_s1 + $0x5a4] ss:$8 sps:$4 sm:$0xff]   ;;  %v6252_v32 = vld [vmem:[%s9119_s1 + $0x4a0] ss:$8 sps:$4 sm:$0xff]  }
  0x8f   : > { %1850 = vmatprep.subr.bf16.mxu1 %v6185_v33  ;;  %1837 = vmatprep.mubr.bf16.mxu0 %v7440_v40  ;;  %v6255_v33 = vld [vmem:[%s9119_s1 + $0x5a0] ss:$8 sps:$4 sm:$0xff]  }
  0x90   : > { %1880 = vmatprep.mubr.bf16.mxu1 %v7450_v46 }
  0x91   : > { %1808 = vmatpush1.bf16.msra.mxu0 %v6180_v34  ;;  %v6260_v34 = vld [vmem:[%s9119_s1 + $0x494] ss:$8 sps:$4 sm:$0xff]  }
  0x92   : > { %1851 = vmatpush1.bf16.msra.mxu1 %v6183_v35  ;;  %1809 = vmatprep.subr.bf16.mxu0 %v6188_v36  ;;  %v6263_v35 = vld [vmem:[%s9119_s1 + $0x594] ss:$8 sps:$4 sm:$0xff]   ;;  %v6258_v36 = vld [vmem:[%s9119_s1 + $0x490] ss:$8 sps:$4 sm:$0xff]  }
  0x93   : > { %1852 = vmatprep.subr.bf16.mxu1 %v6191_v37  ;;  %v6261_v37 = vld [vmem:[%s9119_s1 + $0x590] ss:$8 sps:$4 sm:$0xff]  }
  0x95   : > { %1810 = vmatpush1.bf16.msra.mxu0 %v6186_v43  ;;  %v261_v43 = vld [vmem:[%s7114_s26 + $0x40] sm:$0xff] }
  0x96   : > { %1853 = vmatpush1.bf16.msra.mxu1 %v6189_v44  ;;  %1811 = vmatprep.subr.bf16.mxu0 %v6194_v48  ;;  %v273_v44 = vld [vmem:[%s7114_s26 + $0xa0] sm:$0xff]  ;;  %v263_v48 = vld [vmem:[%s7114_s26 + $0x50] sm:$0xff] }
  0x97   : > { %1854 = vmatprep.subr.bf16.mxu1 %v6197_v49  ;;  %v275_v49 = vld [vmem:[%s7114_s26 + $0xb0] sm:$0xff] }
  0x99   : > { %1812 = vmatpush1.bf16.msra.mxu0 %v6192_v50  ;;  %v6272_v50 = vld [vmem:[%s9120_s2 + $0x74] ss:$8 sps:$4 sm:$0xff]  }
  0x9a   : > { %1855 = vmatpush1.bf16.msra.mxu1 %v6195_v51  ;;  %1813 = vmatprep.subr.bf16.mxu0 %v6200_v52  ;;  %v6275_v51 = vld [vmem:[%s9120_s2 + $0x174] ss:$8 sps:$4 sm:$0xff]   ;;  %v7620_v52 = vpack.c.bf16 %v273_v44, %v261_v43  ;;  %v6342_v43 = vld [vmem:[%s9120_s2 + $0xb0] ss:$8 sps:$4 sm:$0xff]  }
  0x9b   : > { %1856 = vmatprep.subr.bf16.mxu1 %v6203_v55  ;;  %v7622_v55 = vpack.c.bf16 %v275_v49, %v263_v48  ;;  %v6345_v44 = vld [vmem:[%s9120_s2 + $0x1b0] ss:$8 sps:$4 sm:$0xff]   ;;  %v6350_v48 = vld [vmem:[%s9120_s2 + $0xa4] ss:$8 sps:$4 sm:$0xff]  }
  0x9c   : > { %v6353_v49 = vld [vmem:[%s9120_s2 + $0x1a4] ss:$8 sps:$4 sm:$0xff]  }
  0x9d   : > { %1814 = vmatpush1.bf16.msra.mxu0 %v6198_v56  ;;  %v6270_v56 = vld [vmem:[%s9120_s2 + $0x70] ss:$8 sps:$4 sm:$0xff]  }
  0x9e   : > { %1857 = vmatpush1.bf16.msra.mxu1 %v6201_v57  ;;  %1815 = vmatprep.subr.bf16.mxu0 %v6206_v58  ;;  %v6273_v57 = vld [vmem:[%s9120_s2 + $0x170] ss:$8 sps:$4 sm:$0xff]   ;;  %v6278_v58 = vld [vmem:[%s9120_s2 + $0x64] ss:$8 sps:$4 sm:$0xff]  }
  0x9f   : > { %1858 = vmatprep.subr.bf16.mxu1 %v6209_v59  ;;  %v6281_v59 = vld [vmem:[%s9120_s2 + $0x164] ss:$8 sps:$4 sm:$0xff]  }
  0xa1   : > { %1816 = vmatpush1.bf16.msra.mxu0 %v6204_v60  ;;  %v6276_v60 = vld [vmem:[%s9120_s2 + $0x60] ss:$8 sps:$4 sm:$0xff]  }
  0xa2   : > { %1859 = vmatpush1.bf16.msra.mxu1 %v6207_v61  ;;  %1817 = vmatprep.subr.bf16.mxu0 %v6212_v62  ;;  %v6279_v61 = vld [vmem:[%s9120_s2 + $0x160] ss:$8 sps:$4 sm:$0xff]   ;;  %v6284_v62 = vld [vmem:[%s9120_s2 + $0x54] ss:$8 sps:$4 sm:$0xff]  }
  0xa3   : > { %1860 = vmatprep.subr.bf16.mxu1 %v6215_v63  ;;  %v6287_v63 = vld [vmem:[%s9120_s2 + $0x154] ss:$8 sps:$4 sm:$0xff]  }
  0xa5   : > { %1818 = vmatpush1.bf16.msra.mxu0 %v6210_v0  ;;  %v6282_v0 = vld [vmem:[%s9120_s2 + $0x50] ss:$8 sps:$4 sm:$0xff]  }
  0xa6   : > { %1861 = vmatpush1.bf16.msra.mxu1 %v6213_v1  ;;  %1819 = vmatprep.subr.bf16.mxu0 %v6218_v2  ;;  %v6285_v1 = vld [vmem:[%s9120_s2 + $0x150] ss:$8 sps:$4 sm:$0xff]   ;;  %v6290_v2 = vld [vmem:[%s9120_s2 + $0x44] ss:$8 sps:$4 sm:$0xff]  }
  0xa7   : > { %1862 = vmatprep.subr.bf16.mxu1 %v6221_v3  ;;  %v6291_v3 = vld [vmem:[%s9120_s2 + $0x140] ss:$8 sps:$4 sm:$0xff]  }
  0xa9   : > { %1820 = vmatpush1.bf16.msra.mxu0 %v6216_v4  ;;  %v6296_v4 = vld [vmem:[%s9120_s2 + $0x34] ss:$8 sps:$4 sm:$0xff]  }
  0xaa   : > { %1863 = vmatpush1.bf16.msra.mxu1 %v6219_v5  ;;  %1821 = vmatprep.subr.bf16.mxu0 %v6224_v6  ;;  %v6299_v5 = vld [vmem:[%s9120_s2 + $0x134] ss:$8 sps:$4 sm:$0xff]   ;;  %v6294_v6 = vld [vmem:[%s9120_s2 + $0x30] ss:$8 sps:$4 sm:$0xff]  }
  0xab   : > { %1864 = vmatprep.subr.bf16.mxu1 %v6227_v7  ;;  %v6297_v7 = vld [vmem:[%s9120_s2 + $0x130] ss:$8 sps:$4 sm:$0xff]  }
  0xad   : > { %1822 = vmatpush2.bf16.msra.mxu0 %v6222_v8  ;;  %v6302_v8 = vld [vmem:[%s9120_s2 + $0x24] ss:$8 sps:$4 sm:$0xff]  }
  0xae   : > { %1865 = vmatpush2.bf16.msra.mxu1 %v6225_v9  ;;  %1823 = vmatprep.subr.bf16.mxu0 %v6230_v10  ;;  %v6305_v9 = vld [vmem:[%s9120_s2 + $0x124] ss:$8 sps:$4 sm:$0xff]   ;;  %v6300_v10 = vld [vmem:[%s9120_s2 + $0x20] ss:$8 sps:$4 sm:$0xff]  }
  0xaf   : > { %1866 = vmatprep.subr.bf16.mxu1 %v6233_v11  ;;  %v6303_v11 = vld [vmem:[%s9120_s2 + $0x120] ss:$8 sps:$4 sm:$0xff]  }
  0xb1   : > { %1824 = vmatpush2.bf16.msra.mxu0 %v6228_v14  ;;  %v6308_v14 = vld [vmem:[%s9120_s2 + $0x14] ss:$8 sps:$4 sm:$0xff]  }
  0xb2   : > { %1867 = vmatpush2.bf16.msra.mxu1 %v6231_v15  ;;  %1825 = vmatprep.subr.bf16.mxu0 %v6236_v16  ;;  %v6311_v15 = vld [vmem:[%s9120_s2 + $0x114] ss:$8 sps:$4 sm:$0xff]   ;;  %v6306_v16 = vld [vmem:[%s9120_s2 + $0x10] ss:$8 sps:$4 sm:$0xff]  }
  0xb3   : > { %1868 = vmatprep.subr.bf16.mxu1 %v6239_v17  ;;  %v6309_v17 = vld [vmem:[%s9120_s2 + $0x110] ss:$8 sps:$4 sm:$0xff]  }
  0xb5   : > { %1826 = vmatpush2.bf16.msra.mxu0 %v6234_v18  ;;  %v6314_v18 = vld [vmem:[%s9120_s2 + $0x4] ss:$8 sps:$4 sm:$0xff]  }
  0xb6   : > { %1869 = vmatpush2.bf16.msra.mxu1 %v6237_v19  ;;  %1827 = vmatprep.subr.bf16.mxu0 %v6242_v20  ;;  %v6317_v19 = vld [vmem:[%s9120_s2 + $0x104] ss:$8 sps:$4 sm:$0xff]   ;;  %v6312_v20 = vld [vmem:[%s9120_s2] ss:$8 sps:$4 sm:$0xff]  }
  0xb7   : > { %1870 = vmatprep.subr.bf16.mxu1 %v6245_v21  ;;  %v6315_v21 = vld [vmem:[%s9120_s2 + $0x100] ss:$8 sps:$4 sm:$0xff]  }
  0xb9   : > { %1828 = vmatpush2.bf16.msra.mxu0 %v6240_v22  ;;  %v6320_v22 = vld [vmem:[%s9120_s2 + $0xf4] ss:$8 sps:$4 sm:$0xff]  }
  0xba   : > { %1871 = vmatpush2.bf16.msra.mxu1 %v6243_v23  ;;  %1829 = vmatprep.subr.bf16.mxu0 %v6248_v24  ;;  %v6323_v23 = vld [vmem:[%s9120_s2 + $0x1f4] ss:$8 sps:$4 sm:$0xff]   ;;  %v6318_v24 = vld [vmem:[%s9120_s2 + $0xf0] ss:$8 sps:$4 sm:$0xff]  }
  0xbb   : > { %1872 = vmatprep.subr.bf16.mxu1 %v6251_v25  ;;  %v6321_v25 = vld [vmem:[%s9120_s2 + $0x1f0] ss:$8 sps:$4 sm:$0xff]  }
  0xbd   : > { %1830 = vmatpush2.bf16.msra.mxu0 %v6246_v26  ;;  %v6326_v26 = vld [vmem:[%s9120_s2 + $0xe4] ss:$8 sps:$4 sm:$0xff]  }
  0xbe   : > { %1873 = vmatpush2.bf16.msra.mxu1 %v6249_v27  ;;  %1831 = vmatprep.subr.bf16.mxu0 %v6254_v30  ;;  %v6329_v27 = vld [vmem:[%s9120_s2 + $0x1e4] ss:$8 sps:$4 sm:$0xff]   ;;  %v6324_v30 = vld [vmem:[%s9120_s2 + $0xe0] ss:$8 sps:$4 sm:$0xff]  }
  0xbf   : > { %1874 = vmatprep.subr.bf16.mxu1 %v6257_v31  ;;  %v6327_v31 = vld [vmem:[%s9120_s2 + $0x1e0] ss:$8 sps:$4 sm:$0xff]  }
  0xc1   : > { %1832 = vmatpush2.bf16.msra.mxu0 %v6252_v32  ;;  %v6332_v32 = vld [vmem:[%s9120_s2 + $0xd4] ss:$8 sps:$4 sm:$0xff]  }
  0xc2   : > { %1875 = vmatpush2.bf16.msra.mxu1 %v6255_v33  ;;  %1833 = vmatprep.subr.bf16.mxu0 %v6260_v34  ;;  %v6335_v33 = vld [vmem:[%s9120_s2 + $0x1d4] ss:$8 sps:$4 sm:$0xff]   ;;  %v6330_v34 = vld [vmem:[%s9120_s2 + $0xd0] ss:$8 sps:$4 sm:$0xff]  }
  0xc3   : > { %1876 = vmatprep.subr.bf16.mxu1 %v6263_v35  ;;  %v6333_v35 = vld [vmem:[%s9120_s2 + $0x1d0] ss:$8 sps:$4 sm:$0xff]  }
  0xc5   : > { %1834 = vmatpush2.bf16.msra.mxu0 %v6258_v36  ;;  %v6338_v36 = vld [vmem:[%s9120_s2 + $0xc4] ss:$8 sps:$4 sm:$0xff]  }
  0xc6   : > { %1877 = vmatpush2.bf16.msra.mxu1 %v6261_v37  ;;  %1835 = vmatprep.subr.bf16.mxu0 %v6266_v38  ;;  %v6341_v37 = vld [vmem:[%s9120_s2 + $0x1c4] ss:$8 sps:$4 sm:$0xff]   ;;  %v6336_v38 = vld [vmem:[%s9120_s2 + $0xc0] ss:$8 sps:$4 sm:$0xff]  }
  0xc7   : > { %1878 = vmatprep.subr.bf16.mxu1 %v6269_v39  ;;  %v6339_v39 = vld [vmem:[%s9120_s2 + $0x1c0] ss:$8 sps:$4 sm:$0xff]  }
  0xc9   : > { %1836 = vmatpush2.bf16.msra.mxu0 %v6264_v41  ;;  %v6344_v41 = vld [vmem:[%s9120_s2 + $0xb4] ss:$8 sps:$4 sm:$0xff]  }
  0xca   : > { %1879 = vmatpush2.bf16.msra.mxu1 %v6267_v42  ;;  %2876 = vmatprep.subr.bf16.mxu0 %v6272_v50  ;;  %v6347_v42 = vld [vmem:[%s9120_s2 + $0x1b4] ss:$8 sps:$4 sm:$0xff]   ;;  %v6348_v50 = vld [vmem:[%s9120_s2 + $0xa0] ss:$8 sps:$4 sm:$0xff]  }
  0xcb   : > { %2919 = vmatprep.subr.bf16.mxu1 %v6275_v51  ;;  %v6351_v51 = vld [vmem:[%s9120_s2 + $0x1a0] ss:$8 sps:$4 sm:$0xff]  }
  0xcc   : > { %1838 = vmatmul.mubr.bf16.vlgmr.msra.gmra.mxu0 %v7620_v52 }
  0xcd   : > { %1881 = vmatmul.mubr.bf16.vlgmr.msra.gmra.mxu1 %v7622_v55  ;;  %2877 = vmatpush1.bf16.msra.mxu0 %v6270_v56  ;;  %v6356_v56 = vld [vmem:[%s9120_s2 + $0x94] ss:$8 sps:$4 sm:$0xff]  }
  0xce   : > { %2920 = vmatpush1.bf16.msra.mxu1 %v6273_v57  ;;  %2878 = vmatprep.subr.bf16.mxu0 %v6278_v58  ;;  %v6359_v57 = vld [vmem:[%s9120_s2 + $0x194] ss:$8 sps:$4 sm:$0xff]   ;;  %v6354_v58 = vld [vmem:[%s9120_s2 + $0x90] ss:$8 sps:$4 sm:$0xff]  }
  0xcf   : > { %2921 = vmatprep.subr.bf16.mxu1 %v6281_v59  ;;  %2908 = vmatprep.mubr.bf16.mxu0 %v7135_v53  ;;  %v6293_v53 = vld [vmem:[%s9120_s2 + $0x144] ss:$8 sps:$4 sm:$0xff]   ;;  %v6357_v59 = vld [vmem:[%s9120_s2 + $0x190] ss:$8 sps:$4 sm:$0xff]  }
  0xd0   : > { %2951 = vmatprep.mubr.bf16.mxu1 %v7137_v54  ;;  %v6288_v54 = vld [vmem:[%s9120_s2 + $0x40] ss:$8 sps:$4 sm:$0xff]  }
  0xd1   : > { %2879 = vmatpush1.bf16.msra.mxu0 %v6276_v60  ;;  %v6362_v60 = vld [vmem:[%s9120_s2 + $0x84] ss:$8 sps:$4 sm:$0xff]  }
  0xd2   : > { %2922 = vmatpush1.bf16.msra.mxu1 %v6279_v61  ;;  %2880 = vmatprep.subr.bf16.mxu0 %v6284_v62  ;;  %v6365_v61 = vld [vmem:[%s9120_s2 + $0x184] ss:$8 sps:$4 sm:$0xff]   ;;  %v6360_v62 = vld [vmem:[%s9120_s2 + $0x80] ss:$8 sps:$4 sm:$0xff]  }
  0xd3   : > { %2923 = vmatprep.subr.bf16.mxu1 %v6287_v63  ;;  %v6363_v63 = vld [vmem:[%s9120_s2 + $0x180] ss:$8 sps:$4 sm:$0xff]  }
  0xd5   : > { %2881 = vmatpush1.bf16.msra.mxu0 %v6282_v0  ;;  %v6368_v0 = vld [vmem:[%s9120_s2 + $0x274] ss:$8 sps:$4 sm:$0xff]  }
  0xd6   : > { %2924 = vmatpush1.bf16.msra.mxu1 %v6285_v1  ;;  %2882 = vmatprep.subr.bf16.mxu0 %v6290_v2  ;;  %v6371_v1 = vld [vmem:[%s9120_s2 + $0x374] ss:$8 sps:$4 sm:$0xff]   ;;  %v6366_v2 = vld [vmem:[%s9120_s2 + $0x270] ss:$8 sps:$4 sm:$0xff]  }
  0xd7   : > { %2925 = vmatprep.subr.bf16.mxu1 %v6293_v53  ;;  %v6369_v53 = vld [vmem:[%s9120_s2 + $0x370] ss:$8 sps:$4 sm:$0xff]  }
  0xd9   : > { %2883 = vmatpush1.bf16.msra.mxu0 %v6288_v54  ;;  %v6374_v54 = vld [vmem:[%s9120_s2 + $0x264] ss:$8 sps:$4 sm:$0xff]  }
  0xda   : > { %2926 = vmatpush1.bf16.msra.mxu1 %v6291_v3  ;;  %2884 = vmatprep.subr.bf16.mxu0 %v6296_v4  ;;  %v6377_v3 = vld [vmem:[%s9120_s2 + $0x364] ss:$8 sps:$4 sm:$0xff]   ;;  %v6372_v4 = vld [vmem:[%s9120_s2 + $0x260] ss:$8 sps:$4 sm:$0xff]  }
  0xdb   : > { %2927 = vmatprep.subr.bf16.mxu1 %v6299_v5  ;;  %v6375_v5 = vld [vmem:[%s9120_s2 + $0x360] ss:$8 sps:$4 sm:$0xff]  }
  0xdd   : > { %2885 = vmatpush1.bf16.msra.mxu0 %v6294_v6  ;;  %v6380_v6 = vld [vmem:[%s9120_s2 + $0x254] ss:$8 sps:$4 sm:$0xff]  }
  0xde   : > { %2928 = vmatpush1.bf16.msra.mxu1 %v6297_v7  ;;  %2886 = vmatprep.subr.bf16.mxu0 %v6302_v8  ;;  %v6381_v7 = vld [vmem:[%s9120_s2 + $0x350] ss:$8 sps:$4 sm:$0xff]   ;;  %v6386_v8 = vld [vmem:[%s9120_s2 + $0x244] ss:$8 sps:$4 sm:$0xff]  }
  0xdf   : > { %2929 = vmatprep.subr.bf16.mxu1 %v6305_v9  ;;  %v6389_v9 = vld [vmem:[%s9120_s2 + $0x344] ss:$8 sps:$4 sm:$0xff]  }
  0xe1   : > { %2887 = vmatpush1.bf16.msra.mxu0 %v6300_v10  ;;  %v6384_v10 = vld [vmem:[%s9120_s2 + $0x240] ss:$8 sps:$4 sm:$0xff]  }
  0xe2   : > { %2930 = vmatpush1.bf16.msra.mxu1 %v6303_v11  ;;  %2888 = vmatprep.subr.bf16.mxu0 %v6308_v14  ;;  %v6395_v11 = vld [vmem:[%s9120_s2 + $0x334] ss:$8 sps:$4 sm:$0xff]   ;;  %v6390_v14 = vld [vmem:[%s9120_s2 + $0x230] ss:$8 sps:$4 sm:$0xff]  }
  0xe3   : > { %2931 = vmatprep.subr.bf16.mxu1 %v6311_v15  ;;  %v6393_v15 = vld [vmem:[%s9120_s2 + $0x330] ss:$8 sps:$4 sm:$0xff]  }
  0xe5   : > { %2889 = vmatpush1.bf16.msra.mxu0 %v6306_v16  ;;  %v6398_v16 = vld [vmem:[%s9120_s2 + $0x224] ss:$8 sps:$4 sm:$0xff]  }
  0xe6   : > { %2932 = vmatpush1.bf16.msra.mxu1 %v6309_v17  ;;  %2890 = vmatprep.subr.bf16.mxu0 %v6314_v18  ;;  %v6401_v17 = vld [vmem:[%s9120_s2 + $0x324] ss:$8 sps:$4 sm:$0xff]   ;;  %v6396_v18 = vld [vmem:[%s9120_s2 + $0x220] ss:$8 sps:$4 sm:$0xff]  }
  0xe7   : > { %2933 = vmatprep.subr.bf16.mxu1 %v6317_v19  ;;  %v6399_v19 = vld [vmem:[%s9120_s2 + $0x320] ss:$8 sps:$4 sm:$0xff]  }
  0xe9   : > { %2891 = vmatpush1.bf16.msra.mxu0 %v6312_v20  ;;  %v6404_v20 = vld [vmem:[%s9120_s2 + $0x214] ss:$8 sps:$4 sm:$0xff]  }
  0xea   : > { %2934 = vmatpush1.bf16.msra.mxu1 %v6315_v21  ;;  %2892 = vmatprep.subr.bf16.mxu0 %v6320_v22  ;;  %v6407_v21 = vld [vmem:[%s9120_s2 + $0x314] ss:$8 sps:$4 sm:$0xff]   ;;  %v6402_v22 = vld [vmem:[%s9120_s2 + $0x210] ss:$8 sps:$4 sm:$0xff]  }
  0xeb   : > { %2935 = vmatprep.subr.bf16.mxu1 %v6323_v23  ;;  %v6405_v23 = vld [vmem:[%s9120_s2 + $0x310] ss:$8 sps:$4 sm:$0xff]  }
  0xed   : > { %2893 = vmatpush2.bf16.msra.mxu0 %v6318_v24  ;;  %v6410_v24 = vld [vmem:[%s9120_s2 + $0x204] ss:$8 sps:$4 sm:$0xff]  }
  0xee   : > { %2936 = vmatpush2.bf16.msra.mxu1 %v6321_v25  ;;  %2894 = vmatprep.subr.bf16.mxu0 %v6326_v26  ;;  %v6413_v25 = vld [vmem:[%s9120_s2 + $0x304] ss:$8 sps:$4 sm:$0xff]   ;;  %v6408_v26 = vld [vmem:[%s9120_s2 + $0x200] ss:$8 sps:$4 sm:$0xff]  }
  0xef   : > { %2937 = vmatprep.subr.bf16.mxu1 %v6329_v27  ;;  %v6411_v27 = vld [vmem:[%s9120_s2 + $0x300] ss:$8 sps:$4 sm:$0xff]  }
  0xf1   : > { %2895 = vmatpush2.bf16.msra.mxu0 %v6324_v30  ;;  %v6416_v30 = vld [vmem:[%s9120_s2 + $0x2f4] ss:$8 sps:$4 sm:$0xff]  }
  0xf2   : > { %2938 = vmatpush2.bf16.msra.mxu1 %v6327_v31  ;;  %2896 = vmatprep.subr.bf16.mxu0 %v6332_v32  ;;  %v6419_v31 = vld [vmem:[%s9120_s2 + $0x3f4] ss:$8 sps:$4 sm:$0xff]   ;;  %v6414_v32 = vld [vmem:[%s9120_s2 + $0x2f0] ss:$8 sps:$4 sm:$0xff]  }
  0xf3   : > { %2939 = vmatprep.subr.bf16.mxu1 %v6335_v33  ;;  %v6417_v33 = vld [vmem:[%s9120_s2 + $0x3f0] ss:$8 sps:$4 sm:$0xff]  }
  0xf5   : > { %2897 = vmatpush2.bf16.msra.mxu0 %v6330_v34  ;;  %v6422_v34 = vld [vmem:[%s9120_s2 + $0x2e4] ss:$8 sps:$4 sm:$0xff]  }
  0xf6   : > { %2940 = vmatpush2.bf16.msra.mxu1 %v6333_v35  ;;  %2898 = vmatprep.subr.bf16.mxu0 %v6338_v36  ;;  %v6425_v35 = vld [vmem:[%s9120_s2 + $0x3e4] ss:$8 sps:$4 sm:$0xff]   ;;  %v6420_v36 = vld [vmem:[%s9120_s2 + $0x2e0] ss:$8 sps:$4 sm:$0xff]  }
  0xf7   : > { %2941 = vmatprep.subr.bf16.mxu1 %v6341_v37  ;;  %v6423_v37 = vld [vmem:[%s9120_s2 + $0x3e0] ss:$8 sps:$4 sm:$0xff]  }
  0xf9   : > { %2899 = vmatpush2.bf16.msra.mxu0 %v6336_v38  ;;  %v6428_v38 = vld [vmem:[%s9120_s2 + $0x2d4] ss:$8 sps:$4 sm:$0xff]  }
  0xfa   : > { %2942 = vmatpush2.bf16.msra.mxu1 %v6339_v39  ;;  %2900 = vmatprep.subr.bf16.mxu0 %v6344_v41  ;;  %v6431_v39 = vld [vmem:[%s9120_s2 + $0x3d4] ss:$8 sps:$4 sm:$0xff]   ;;  %v6426_v41 = vld [vmem:[%s9120_s2 + $0x2d0] ss:$8 sps:$4 sm:$0xff]  }
  0xfb   : > { %2943 = vmatprep.subr.bf16.mxu1 %v6347_v42  ;;  %v6429_v42 = vld [vmem:[%s9120_s2 + $0x3d0] ss:$8 sps:$4 sm:$0xff]  }
  0xfd   : > { %2901 = vmatpush2.bf16.msra.mxu0 %v6342_v43  ;;  %v6434_v43 = vld [vmem:[%s9120_s2 + $0x2c4] ss:$8 sps:$4 sm:$0xff]  }
  0xfe   : > { %2944 = vmatpush2.bf16.msra.mxu1 %v6345_v44  ;;  %2902 = vmatprep.subr.bf16.mxu0 %v6350_v48  ;;  %v6437_v44 = vld [vmem:[%s9120_s2 + $0x3c4] ss:$8 sps:$4 sm:$0xff]   ;;  %v6432_v48 = vld [vmem:[%s9120_s2 + $0x2c0] ss:$8 sps:$4 sm:$0xff]  }
  0xff   : > { %2945 = vmatprep.subr.bf16.mxu1 %v6353_v49  ;;  %v6435_v49 = vld [vmem:[%s9120_s2 + $0x3c0] ss:$8 sps:$4 sm:$0xff]  }
 0x101   : > { %2903 = vmatpush2.bf16.msra.mxu0 %v6348_v50  ;;  %v6440_v50 = vld [vmem:[%s9120_s2 + $0x2b4] ss:$8 sps:$4 sm:$0xff]  }
 0x102   : > { %2946 = vmatpush2.bf16.msra.mxu1 %v6351_v51  ;;  %2904 = vmatprep.subr.bf16.mxu0 %v6356_v56  ;;  %v6443_v51 = vld [vmem:[%s9120_s2 + $0x3b4] ss:$8 sps:$4 sm:$0xff]   ;;  %v6438_v56 = vld [vmem:[%s9120_s2 + $0x2b0] ss:$8 sps:$4 sm:$0xff]  }
 0x103   : > { %2947 = vmatprep.subr.bf16.mxu1 %v6359_v57  ;;  %v6441_v57 = vld [vmem:[%s9120_s2 + $0x3b0] ss:$8 sps:$4 sm:$0xff]  }
 0x105   : > { %2905 = vmatpush2.bf16.msra.mxu0 %v6354_v58  ;;  %v6446_v58 = vld [vmem:[%s9120_s2 + $0x2a4] ss:$8 sps:$4 sm:$0xff]  }
 0x106   : > { %2948 = vmatpush2.bf16.msra.mxu1 %v6357_v59  ;;  %2906 = vmatprep.subr.bf16.mxu0 %v6362_v60  ;;  %v6449_v59 = vld [vmem:[%s9120_s2 + $0x3a4] ss:$8 sps:$4 sm:$0xff]   ;;  %v6444_v60 = vld [vmem:[%s9120_s2 + $0x2a0] ss:$8 sps:$4 sm:$0xff]  }
 0x107   : > { %2949 = vmatprep.subr.bf16.mxu1 %v6365_v61  ;;  %v6447_v61 = vld [vmem:[%s9120_s2 + $0x3a0] ss:$8 sps:$4 sm:$0xff]  }
 0x109   : > { %2907 = vmatpush2.bf16.msra.mxu0 %v6360_v62  ;;  %v6452_v62 = vld [vmem:[%s9120_s2 + $0x294] ss:$8 sps:$4 sm:$0xff]  }
 0x10a   : > { %2950 = vmatpush2.bf16.msra.mxu1 %v6363_v63  ;;  %2962 = vmatprep.subr.bf16.mxu0 %v6368_v0  ;;  %v6455_v63 = vld [vmem:[%s9120_s2 + $0x394] ss:$8 sps:$4 sm:$0xff]   ;;  %v6450_v0 = vld [vmem:[%s9120_s2 + $0x290] ss:$8 sps:$4 sm:$0xff]  }
 0x10b   : > { %3005 = vmatprep.subr.bf16.mxu1 %v6371_v1  ;;  %v6453_v1 = vld [vmem:[%s9120_s2 + $0x390] ss:$8 sps:$4 sm:$0xff]  }
 0x10c   : > { %2909 = vmatmul.mubr.bf16.vlgmr.msra.gmra.mxu0 %v7196_v12  ;;  %v6383_v12 = vld [vmem:[%s9120_s2 + $0x354] ss:$8 sps:$4 sm:$0xff]  }
 0x10d   : > { %2952 = vmatmul.mubr.bf16.vlgmr.msra.gmra.mxu1 %v7198_v13  ;;  %2963 = vmatpush1.bf16.msra.mxu0 %v6366_v2  ;;  %v6378_v13 = vld [vmem:[%s9120_s2 + $0x250] ss:$8 sps:$4 sm:$0xff]   ;;  %v6458_v2 = vld [vmem:[%s9120_s2 + $0x284] ss:$8 sps:$4 sm:$0xff]  }
 0x10e   : > { %3006 = vmatpush1.bf16.msra.mxu1 %v6369_v53  ;;  %2964 = vmatprep.subr.bf16.mxu0 %v6374_v54  ;;  %v6461_v53 = vld [vmem:[%s9120_s2 + $0x384] ss:$8 sps:$4 sm:$0xff]   ;;  %v6456_v54 = vld [vmem:[%s9120_s2 + $0x280] ss:$8 sps:$4 sm:$0xff]  }
 0x10f   : > { %3007 = vmatprep.subr.bf16.mxu1 %v6377_v3  ;;  %2994 = vmatprep.mubr.bf16.mxu0 %v7289_v45  ;;  %v6387_v45 = vld [vmem:[%s9120_s2 + $0x340] ss:$8 sps:$4 sm:$0xff]  }
 0x110   : > { %3037 = vmatprep.mubr.bf16.mxu1 %v7292_v47  ;;  %v6392_v47 = vld [vmem:[%s9120_s2 + $0x234] ss:$8 sps:$4 sm:$0xff]   ;;  %v6459_v3 = vld [vmem:[%s9120_s2 + $0x380] ss:$8 sps:$4 sm:$0xff]  }
 0x111   : > { %2965 = vmatpush1.bf16.msra.mxu0 %v6372_v4  ;;  %v6464_v4 = vld [vmem:[%s9120_s2 + $0x474] ss:$8 sps:$4 sm:$0xff]  }
 0x112   : > { %3008 = vmatpush1.bf16.msra.mxu1 %v6375_v5  ;;  %2966 = vmatprep.subr.bf16.mxu0 %v6380_v6  ;;  %v6467_v5 = vld [vmem:[%s9120_s2 + $0x574] ss:$8 sps:$4 sm:$0xff]   ;;  %v6462_v6 = vld [vmem:[%s9120_s2 + $0x470] ss:$8 sps:$4 sm:$0xff]  }
 0x113   : > { %3009 = vmatprep.subr.bf16.mxu1 %v6383_v12  ;;  %v6465_v12 = vld [vmem:[%s9120_s2 + $0x570] ss:$8 sps:$4 sm:$0xff]  }
 0x115   : > { %2967 = vmatpush1.bf16.msra.mxu0 %v6378_v13  ;;  %v6470_v13 = vld [vmem:[%s9120_s2 + $0x464] ss:$8 sps:$4 sm:$0xff]  }
 0x116   : > { %3010 = vmatpush1.bf16.msra.mxu1 %v6381_v7  ;;  %2968 = vmatprep.subr.bf16.mxu0 %v6386_v8  ;;  %v6473_v7 = vld [vmem:[%s9120_s2 + $0x564] ss:$8 sps:$4 sm:$0xff]   ;;  %v6468_v8 = vld [vmem:[%s9120_s2 + $0x460] ss:$8 sps:$4 sm:$0xff]  }
 0x117   : > { %3011 = vmatprep.subr.bf16.mxu1 %v6389_v9  ;;  %v6471_v9 = vld [vmem:[%s9120_s2 + $0x560] ss:$8 sps:$4 sm:$0xff]  }
 0x119   : > { %2969 = vmatpush1.bf16.msra.mxu0 %v6384_v10  ;;  %v6476_v10 = vld [vmem:[%s9120_s2 + $0x454] ss:$8 sps:$4 sm:$0xff]  }
 0x11a   : > { %3012 = vmatpush1.bf16.msra.mxu1 %v6387_v45  ;;  %2970 = vmatprep.subr.bf16.mxu0 %v6392_v47  ;;  %v6479_v45 = vld [vmem:[%s9120_s2 + $0x554] ss:$8 sps:$4 sm:$0xff]   ;;  %v6474_v47 = vld [vmem:[%s9120_s2 + $0x450] ss:$8 sps:$4 sm:$0xff]  }
 0x11b   : > { %3013 = vmatprep.subr.bf16.mxu1 %v6395_v11  ;;  %v6485_v11 = vld [vmem:[%s9120_s2 + $0x544] ss:$8 sps:$4 sm:$0xff]  }
 0x11d   : > { %2971 = vmatpush1.bf16.msra.mxu0 %v6390_v14  ;;  %v6480_v14 = vld [vmem:[%s9120_s2 + $0x440] ss:$8 sps:$4 sm:$0xff]  }
 0x11e   : > { %3014 = vmatpush1.bf16.msra.mxu1 %v6393_v15  ;;  %2972 = vmatprep.subr.bf16.mxu0 %v6398_v16  ;;  %v6491_v15 = vld [vmem:[%s9120_s2 + $0x534] ss:$8 sps:$4 sm:$0xff]   ;;  %v6486_v16 = vld [vmem:[%s9120_s2 + $0x430] ss:$8 sps:$4 sm:$0xff]  }
 0x11f   : > { %3015 = vmatprep.subr.bf16.mxu1 %v6401_v17  ;;  %v6489_v17 = vld [vmem:[%s9120_s2 + $0x530] ss:$8 sps:$4 sm:$0xff]  }
 0x121   : > { %2973 = vmatpush1.bf16.msra.mxu0 %v6396_v18  ;;  %v6494_v18 = vld [vmem:[%s9120_s2 + $0x424] ss:$8 sps:$4 sm:$0xff]  }
 0x122   : > { %3016 = vmatpush1.bf16.msra.mxu1 %v6399_v19  ;;  %2974 = vmatprep.subr.bf16.mxu0 %v6404_v20  ;;  %v6497_v19 = vld [vmem:[%s9120_s2 + $0x524] ss:$8 sps:$4 sm:$0xff]   ;;  %v6492_v20 = vld [vmem:[%s9120_s2 + $0x420] ss:$8 sps:$4 sm:$0xff]  }
 0x123   : > { %3017 = vmatprep.subr.bf16.mxu1 %v6407_v21  ;;  %v6495_v21 = vld [vmem:[%s9120_s2 + $0x520] ss:$8 sps:$4 sm:$0xff]  }
 0x125   : > { %2975 = vmatpush1.bf16.msra.mxu0 %v6402_v22  ;;  %v6500_v22 = vld [vmem:[%s9120_s2 + $0x414] ss:$8 sps:$4 sm:$0xff]  }
 0x126   : > { %3018 = vmatpush1.bf16.msra.mxu1 %v6405_v23  ;;  %2976 = vmatprep.subr.bf16.mxu0 %v6410_v24  ;;  %v6503_v23 = vld [vmem:[%s9120_s2 + $0x514] ss:$8 sps:$4 sm:$0xff]   ;;  %v6498_v24 = vld [vmem:[%s9120_s2 + $0x410] ss:$8 sps:$4 sm:$0xff]  }
 0x127   : > { %3019 = vmatprep.subr.bf16.mxu1 %v6413_v25  ;;  %v6501_v25 = vld [vmem:[%s9120_s2 + $0x510] ss:$8 sps:$4 sm:$0xff]  }
 0x129   : > { %2977 = vmatpush1.bf16.msra.mxu0 %v6408_v26  ;;  %v6506_v26 = vld [vmem:[%s9120_s2 + $0x404] ss:$8 sps:$4 sm:$0xff]  }
 0x12a   : > { %3020 = vmatpush1.bf16.msra.mxu1 %v6411_v27  ;;  %2978 = vmatprep.subr.bf16.mxu0 %v6416_v30  ;;  %v6509_v27 = vld [vmem:[%s9120_s2 + $0x504] ss:$8 sps:$4 sm:$0xff]   ;;  %v6504_v30 = vld [vmem:[%s9120_s2 + $0x400] ss:$8 sps:$4 sm:$0xff]  }
 0x12b   : > { %3021 = vmatprep.subr.bf16.mxu1 %v6419_v31  ;;  %v6507_v31 = vld [vmem:[%s9120_s2 + $0x500] ss:$8 sps:$4 sm:$0xff]  }
 0x12d   : > { %2979 = vmatpush2.bf16.msra.mxu0 %v6414_v32  ;;  %v6512_v32 = vld [vmem:[%s9120_s2 + $0x4f4] ss:$8 sps:$4 sm:$0xff]  }
 0x12e   : > { %3022 = vmatpush2.bf16.msra.mxu1 %v6417_v33  ;;  %2980 = vmatprep.subr.bf16.mxu0 %v6422_v34  ;;  %v6515_v33 = vld [vmem:[%s9120_s2 + $0x5f4] ss:$8 sps:$4 sm:$0xff]   ;;  %v6510_v34 = vld [vmem:[%s9120_s2 + $0x4f0] ss:$8 sps:$4 sm:$0xff]  }
 0x12f   : > { %3023 = vmatprep.subr.bf16.mxu1 %v6425_v35  ;;  %v6513_v35 = vld [vmem:[%s9120_s2 + $0x5f0] ss:$8 sps:$4 sm:$0xff]  }
 0x131   : > { %2981 = vmatpush2.bf16.msra.mxu0 %v6420_v36  ;;  %v6518_v36 = vld [vmem:[%s9120_s2 + $0x4e4] ss:$8 sps:$4 sm:$0xff]  }
 0x132   : > { %3024 = vmatpush2.bf16.msra.mxu1 %v6423_v37  ;;  %2982 = vmatprep.subr.bf16.mxu0 %v6428_v38  ;;  %v6521_v37 = vld [vmem:[%s9120_s2 + $0x5e4] ss:$8 sps:$4 sm:$0xff]   ;;  %v6516_v38 = vld [vmem:[%s9120_s2 + $0x4e0] ss:$8 sps:$4 sm:$0xff]  }
 0x133   : > { %3025 = vmatprep.subr.bf16.mxu1 %v6431_v39  ;;  %v6519_v39 = vld [vmem:[%s9120_s2 + $0x5e0] ss:$8 sps:$4 sm:$0xff]  }
 0x135   : > { %2983 = vmatpush2.bf16.msra.mxu0 %v6426_v41  ;;  %v6524_v41 = vld [vmem:[%s9120_s2 + $0x4d4] ss:$8 sps:$4 sm:$0xff]  }
 0x136   : > { %3026 = vmatpush2.bf16.msra.mxu1 %v6429_v42  ;;  %2984 = vmatprep.subr.bf16.mxu0 %v6434_v43  ;;  %v6527_v42 = vld [vmem:[%s9120_s2 + $0x5d4] ss:$8 sps:$4 sm:$0xff]   ;;  %v6522_v43 = vld [vmem:[%s9120_s2 + $0x4d0] ss:$8 sps:$4 sm:$0xff]  }
 0x137   : > { %3027 = vmatprep.subr.bf16.mxu1 %v6437_v44  ;;  %v6525_v44 = vld [vmem:[%s9120_s2 + $0x5d0] ss:$8 sps:$4 sm:$0xff]  }
 0x139   : > { %2985 = vmatpush2.bf16.msra.mxu0 %v6432_v48  ;;  %v6530_v48 = vld [vmem:[%s9120_s2 + $0x4c4] ss:$8 sps:$4 sm:$0xff]  }
 0x13a   : > { %3028 = vmatpush2.bf16.msra.mxu1 %v6435_v49  ;;  %2986 = vmatprep.subr.bf16.mxu0 %v6440_v50  ;;  %v6533_v49 = vld [vmem:[%s9120_s2 + $0x5c4] ss:$8 sps:$4 sm:$0xff]   ;;  %v6528_v50 = vld [vmem:[%s9120_s2 + $0x4c0] ss:$8 sps:$4 sm:$0xff]  }
 0x13b   : > { %3029 = vmatprep.subr.bf16.mxu1 %v6443_v51  ;;  %v6531_v51 = vld [vmem:[%s9120_s2 + $0x5c0] ss:$8 sps:$4 sm:$0xff]  }
 0x13d   : > { %2987 = vmatpush2.bf16.msra.mxu0 %v6438_v56  ;;  %v6536_v56 = vld [vmem:[%s9120_s2 + $0x4b4] ss:$8 sps:$4 sm:$0xff]  }
 0x13e   : > { %3030 = vmatpush2.bf16.msra.mxu1 %v6441_v57  ;;  %2988 = vmatprep.subr.bf16.mxu0 %v6446_v58  ;;  %v6539_v57 = vld [vmem:[%s9120_s2 + $0x5b4] ss:$8 sps:$4 sm:$0xff]   ;;  %v6534_v58 = vld [vmem:[%s9120_s2 + $0x4b0] ss:$8 sps:$4 sm:$0xff]  }
 0x13f   : > { %3031 = vmatprep.subr.bf16.mxu1 %v6449_v59  ;;  %v6537_v59 = vld [vmem:[%s9120_s2 + $0x5b0] ss:$8 sps:$4 sm:$0xff]  }
 0x141   : > { %2989 = vmatpush2.bf16.msra.mxu0 %v6444_v60  ;;  %v6542_v60 = vld [vmem:[%s9120_s2 + $0x4a4] ss:$8 sps:$4 sm:$0xff]  }
 0x142   : > { %3032 = vmatpush2.bf16.msra.mxu1 %v6447_v61  ;;  %2990 = vmatprep.subr.bf16.mxu0 %v6452_v62  ;;  %v6545_v61 = vld [vmem:[%s9120_s2 + $0x5a4] ss:$8 sps:$4 sm:$0xff]   ;;  %v6540_v62 = vld [vmem:[%s9120_s2 + $0x4a0] ss:$8 sps:$4 sm:$0xff]  }
 0x143   : > { %3033 = vmatprep.subr.bf16.mxu1 %v6455_v63  ;;  %v6543_v63 = vld [vmem:[%s9120_s2 + $0x5a0] ss:$8 sps:$4 sm:$0xff]  }
 0x145   : > { %2991 = vmatpush2.bf16.msra.mxu0 %v6450_v0  ;;  %v6548_v0 = vld [vmem:[%s9120_s2 + $0x494] ss:$8 sps:$4 sm:$0xff]  }
 0x146   : > { %3034 = vmatpush2.bf16.msra.mxu1 %v6453_v1  ;;  %2992 = vmatprep.subr.bf16.mxu0 %v6458_v2  ;;  %v6551_v1 = vld [vmem:[%s9120_s2 + $0x594] ss:$8 sps:$4 sm:$0xff]   ;;  %v6546_v2 = vld [vmem:[%s9120_s2 + $0x490] ss:$8 sps:$4 sm:$0xff]  }
 0x147   : > { %3035 = vmatprep.subr.bf16.mxu1 %v6461_v53  ;;  %v6549_v53 = vld [vmem:[%s9120_s2 + $0x590] ss:$8 sps:$4 sm:$0xff]  }
 0x149   : > { %2993 = vmatpush2.bf16.msra.mxu0 %v6456_v54  ;;  %v6554_v54 = vld [vmem:[%s9120_s2 + $0x484] ss:$8 sps:$4 sm:$0xff]  }
 0x14a   : > { %3036 = vmatpush2.bf16.msra.mxu1 %v6459_v3  ;;  %3048 = vmatprep.subr.bf16.mxu0 %v6464_v4  ;;  %v6557_v3 = vld [vmem:[%s9120_s2 + $0x584] ss:$8 sps:$4 sm:$0xff]   ;;  %v6552_v4 = vld [vmem:[%s9120_s2 + $0x480] ss:$8 sps:$4 sm:$0xff]  }
 0x14b   : > { %3091 = vmatprep.subr.bf16.mxu1 %v6467_v5  ;;  %v6555_v5 = vld [vmem:[%s9120_s2 + $0x580] ss:$8 sps:$4 sm:$0xff]  }
 0x14c   : > { %2995 = vmatmul.mubr.bf16.vlgmr.msra.gmra.mxu0 %v7408_v28  ;;  %v6477_v28 = vld [vmem:[%s9120_s2 + $0x550] ss:$8 sps:$4 sm:$0xff]  }
 0x14d   : > { %3038 = vmatmul.mubr.bf16.vlgmr.msra.gmra.mxu1 %v7410_v29  ;;  %3049 = vmatpush1.bf16.msra.mxu0 %v6462_v6  ;;  %v6482_v29 = vld [vmem:[%s9120_s2 + $0x444] ss:$8 sps:$4 sm:$0xff]   ;;  %v6558_v6 = vld [vmem:[%s9122_s4 + $0x2a0] ss:$48 sps:$4 sm:$0xff]  }
 0x14e   : > { %3092 = vmatpush1.bf16.msra.mxu1 %v6465_v12  ;;  %3050 = vmatprep.subr.bf16.mxu0 %v6470_v13  ;;  %v6560_v12 = vld [vmem:[%s9122_s4 + $0x2a4] ss:$48 sps:$4 sm:$0xff]   ;;  %v6561_v13 = vld [vmem:[%s9122_s4 + $0x2a8] ss:$48 sps:$4 sm:$0xff]  }
 0x14f   : > { %3093 = vmatprep.subr.bf16.mxu1 %v6473_v7  ;;  %3080 = vmatprep.mubr.bf16.mxu0 %v7440_v40  ;;  %v6483_v40 = vld [vmem:[%s9120_s2 + $0x540] ss:$8 sps:$4 sm:$0xff]   ;;  %v6563_v7 = vld [vmem:[%s9122_s4 + $0x2ac] ss:$48 sps:$4 sm:$0xff]  }
 0x150   : > { %3123 = vmatprep.mubr.bf16.mxu1 %v7450_v46  ;;  %v6488_v46 = vld [vmem:[%s9120_s2 + $0x434] ss:$8 sps:$4 sm:$0xff]  }
 0x151   : > { %3051 = vmatpush1.bf16.msra.mxu0 %v6468_v8  ;;  %v6569_v8 = vld [vmem:[%s9122_s4 + $0x24c] ss:$48 sps:$4 sm:$0xff]  }
 0x152   : > { %3094 = vmatpush1.bf16.msra.mxu1 %v6471_v9  ;;  %3052 = vmatprep.subr.bf16.mxu0 %v6476_v10  ;;  %v6567_v9 = vld [vmem:[%s9122_s4 + $0x248] ss:$48 sps:$4 sm:$0xff]   ;;  %v6572_v10 = vld [vmem:[%s9122_s4 + $0x1e4] ss:$48 sps:$4 sm:$0xff]  }
 0x153   : > { %3095 = vmatprep.subr.bf16.mxu1 %v6479_v45  ;;  %v6575_v45 = vld [vmem:[%s9122_s4 + $0x1ec] ss:$48 sps:$4 sm:$0xff]  }
 0x155   : > { %3053 = vmatpush1.bf16.msra.mxu0 %v6474_v47  ;;  %v6570_v47 = vld [vmem:[%s9122_s4 + $0x1e0] ss:$48 sps:$4 sm:$0xff]  }
 0x156   : > { %3096 = vmatpush1.bf16.msra.mxu1 %v6477_v28  ;;  %3054 = vmatprep.subr.bf16.mxu0 %v6482_v29  ;;  %v6573_v28 = vld [vmem:[%s9122_s4 + $0x1e8] ss:$48 sps:$4 sm:$0xff]   ;;  %v6578_v29 = vld [vmem:[%s9122_s4 + $0x184] ss:$48 sps:$4 sm:$0xff]  }
 0x157   : > { %3097 = vmatprep.subr.bf16.mxu1 %v6485_v11  ;;  %v6581_v11 = vld [vmem:[%s9122_s4 + $0x18c] ss:$48 sps:$4 sm:$0xff]  }
 0x159   : > { %3055 = vmatpush1.bf16.msra.mxu0 %v6480_v14  ;;  %v6576_v14 = vld [vmem:[%s9122_s4 + $0x180] ss:$48 sps:$4 sm:$0xff]  }
 0x15a   : > { %3098 = vmatpush1.bf16.msra.mxu1 %v6483_v40  ;;  %3056 = vmatprep.subr.bf16.mxu0 %v6488_v46  ;;  %v6579_v40 = vld [vmem:[%s9122_s4 + $0x188] ss:$48 sps:$4 sm:$0xff]   ;;  %v6584_v46 = vld [vmem:[%s9122_s4 + $0x124] ss:$48 sps:$4 sm:$0xff]  }
 0x15b   : > { %3099 = vmatprep.subr.bf16.mxu1 %v6491_v15  ;;  %v6587_v15 = vld [vmem:[%s9122_s4 + $0x12c] ss:$48 sps:$4 sm:$0xff]  }
 0x15d   : > { %3057 = vmatpush1.bf16.msra.mxu0 %v6486_v16  ;;  %v6582_v16 = vld [vmem:[%s9122_s4 + $0x120] ss:$48 sps:$4 sm:$0xff]  }
 0x15e   : > { %3100 = vmatpush1.bf16.msra.mxu1 %v6489_v17  ;;  %3058 = vmatprep.subr.bf16.mxu0 %v6494_v18  ;;  %v6585_v17 = vld [vmem:[%s9122_s4 + $0x128] ss:$48 sps:$4 sm:$0xff]   ;;  %v6590_v18 = vld [vmem:[%s9122_s4 + $0xc4] ss:$48 sps:$4 sm:$0xff]  }
 0x15f   : > { %3101 = vmatprep.subr.bf16.mxu1 %v6497_v19  ;;  %v6593_v19 = vld [vmem:[%s9122_s4 + $0xcc] ss:$48 sps:$4 sm:$0xff]  }
 0x161   : > { %3059 = vmatpush1.bf16.msra.mxu0 %v6492_v20  ;;  %v6588_v20 = vld [vmem:[%s9122_s4 + $0xc0] ss:$48 sps:$4 sm:$0xff]  }
 0x162   : > { %3102 = vmatpush1.bf16.msra.mxu1 %v6495_v21  ;;  %3060 = vmatprep.subr.bf16.mxu0 %v6500_v22  ;;  %v6591_v21 = vld [vmem:[%s9122_s4 + $0xc8] ss:$48 sps:$4 sm:$0xff]   ;;  %v6596_v22 = vld [vmem:[%s9122_s4 + $0x64] ss:$48 sps:$4 sm:$0xff]  }
 0x163   : > { %3103 = vmatprep.subr.bf16.mxu1 %v6503_v23  ;;  %v6599_v23 = vld [vmem:[%s9122_s4 + $0x6c] ss:$48 sps:$4 sm:$0xff]  }
 0x165   : > { %3061 = vmatpush1.bf16.msra.mxu0 %v6498_v24  ;;  %v6594_v24 = vld [vmem:[%s9122_s4 + $0x60] ss:$48 sps:$4 sm:$0xff]  }
 0x166   : > { %3104 = vmatpush1.bf16.msra.mxu1 %v6501_v25  ;;  %3062 = vmatprep.subr.bf16.mxu0 %v6506_v26  ;;  %v6597_v25 = vld [vmem:[%s9122_s4 + $0x68] ss:$48 sps:$4 sm:$0xff]   ;;  %v6602_v26 = vld [vmem:[%s9122_s4 + $0x4] ss:$48 sps:$4 sm:$0xff]  }
 0x167   : > { %3105 = vmatprep.subr.bf16.mxu1 %v6509_v27  ;;  %v6605_v27 = vld [vmem:[%s9122_s4 + $0xc] ss:$48 sps:$4 sm:$0xff]  }
 0x169   : > { %3063 = vmatpush1.bf16.msra.mxu0 %v6504_v30  ;;  %v6600_v30 = vld [vmem:[%s9122_s4] ss:$48 sps:$4 sm:$0xff]  }
 0x16a   : > { %3106 = vmatpush1.bf16.msra.mxu1 %v6507_v31  ;;  %3064 = vmatprep.subr.bf16.mxu0 %v6512_v32  ;;  %v6603_v31 = vld [vmem:[%s9122_s4 + $0x8] ss:$48 sps:$4 sm:$0xff]   ;;  %v6608_v32 = vld [vmem:[%s9122_s4 + $0x364] ss:$48 sps:$4 sm:$0xff]  }
 0x16b   : > { %3107 = vmatprep.subr.bf16.mxu1 %v6515_v33  ;;  %v6611_v33 = vld [vmem:[%s9122_s4 + $0x36c] ss:$48 sps:$4 sm:$0xff]  }
 0x16d   : > { %3065 = vmatpush2.bf16.msra.mxu0 %v6510_v34  ;;  %v6606_v34 = vld [vmem:[%s9122_s4 + $0x360] ss:$48 sps:$4 sm:$0xff]  }
 0x16e   : > { %3108 = vmatpush2.bf16.msra.mxu1 %v6513_v35  ;;  %3066 = vmatprep.subr.bf16.mxu0 %v6518_v36  ;;  %v6609_v35 = vld [vmem:[%s9122_s4 + $0x368] ss:$48 sps:$4 sm:$0xff]   ;;  %v6614_v36 = vld [vmem:[%s9122_s4 + $0x304] ss:$48 sps:$4 sm:$0xff]  }
 0x16f   : > { %3109 = vmatprep.subr.bf16.mxu1 %v6521_v37  ;;  %v6617_v37 = vld [vmem:[%s9122_s4 + $0x30c] ss:$48 sps:$4 sm:$0xff]  }
 0x171   : > { %3067 = vmatpush2.bf16.msra.mxu0 %v6516_v38  ;;  %v6612_v38 = vld [vmem:[%s9122_s4 + $0x300] ss:$48 sps:$4 sm:$0xff]  }
 0x172   : > { %3110 = vmatpush2.bf16.msra.mxu1 %v6519_v39  ;;  %3068 = vmatprep.subr.bf16.mxu0 %v6524_v41  ;;  %v6615_v39 = vld [vmem:[%s9122_s4 + $0x308] ss:$48 sps:$4 sm:$0xff]   ;;  %v6620_v41 = vld [vmem:[%s9122_s4 + $0x2b4] ss:$48 sps:$4 sm:$0xff]  }
 0x173   : > { %3111 = vmatprep.subr.bf16.mxu1 %v6527_v42  ;;  %v6623_v42 = vld [vmem:[%s9122_s4 + $0x2bc] ss:$48 sps:$4 sm:$0xff]  }
 0x175   : > { %3069 = vmatpush2.bf16.msra.mxu0 %v6522_v43  ;;  %v1667_v43 = vpop.f32.mrf.mxu0 }
 0x176   : > { %3112 = vmatpush2.bf16.msra.mxu1 %v6525_v44  ;;  %3070 = vmatprep.subr.bf16.mxu0 %v6530_v48  ;;  %v1710_v44 = vpop.f32.mrf.mxu1 }
 0x177   : > { %3113 = vmatprep.subr.bf16.mxu1 %v6533_v49  ;;  %v1669_v48 = vpop.f32.mrf.mxu0 }
 0x178   : > { %v1712_v49 = vpop.f32.mrf.mxu1 }
 0x179   : > { %3071 = vmatpush2.bf16.msra.mxu0 %v6528_v50  ;;  %v1671_v50 = vpop.f32.mrf.mxu0 }
 0x17a   : > { %3114 = vmatpush2.bf16.msra.mxu1 %v6531_v51  ;;  %3072 = vmatprep.subr.bf16.mxu0 %v6536_v56  ;;  %v1714_v51 = vpop.f32.mrf.mxu1 }
 0x17b   : > { %3115 = vmatprep.subr.bf16.mxu1 %v6539_v57  ;;  %v1673_v56 = vpop.f32.mrf.mxu0 }
 0x17c   : > { %v1716_v57 = vpop.f32.mrf.mxu1 }
 0x17d   : > { %3073 = vmatpush2.bf16.msra.mxu0 %v6534_v58  ;;  %v1753_v58 = vpop.f32.mrf.mxu0 }
 0x17e   : > { %3116 = vmatpush2.bf16.msra.mxu1 %v6537_v59  ;;  %3074 = vmatprep.subr.bf16.mxu0 %v6542_v60  ;;  %v1796_v59 = vpop.f32.mrf.mxu1 }
 0x17f   : > { %3117 = vmatprep.subr.bf16.mxu1 %v6545_v61  ;;  %v1755_v60 = vpop.f32.mrf.mxu0 }
 0x180   : > { %v1798_v61 = vpop.f32.mrf.mxu1 }
 0x181   : > { %3075 = vmatpush2.bf16.msra.mxu0 %v6540_v62  ;;  %v1757_v62 = vpop.f32.mrf.mxu0 }
 0x182   : > { %3118 = vmatpush2.bf16.msra.mxu1 %v6543_v63  ;;  %3076 = vmatprep.subr.bf16.mxu0 %v6548_v0  ;;  %v1800_v63 = vpop.f32.mrf.mxu1 }
 0x183   : > { %3119 = vmatprep.subr.bf16.mxu1 %v6551_v1  ;;  %v1759_v0 = vpop.f32.mrf.mxu0 }
 0x184   : > { %v1802_v1 = vpop.f32.mrf.mxu1 }
 0x185   : > { %3077 = vmatpush2.bf16.msra.mxu0 %v6546_v2 }
 0x186   : > { %3120 = vmatpush2.bf16.msra.mxu1 %v6549_v53  ;;  %3078 = vmatprep.subr.bf16.mxu0 %v6554_v54 }
 0x187   : > { %3121 = vmatprep.subr.bf16.mxu1 %v6557_v3 }
 0x189   : > { %3079 = vmatpush2.bf16.msra.mxu0 %v6552_v4 }
 0x18a   : > { %3122 = vmatpush2.bf16.msra.mxu1 %v6555_v5  ;;  %3999 = vmatprep.subr.bf16.mxu0 %v6560_v12  ;;  %v1713_v12 = vadd.f32 %v1712_v49, %v1669_v48 }
 0x18b   : > { %4042 = vmatprep.subr.bf16.mxu1 %v6563_v7 }
 0x18c   : > { %3081 = vmatmul.mubr.bf16.vlgmr.msra.gmra.mxu0 %v7620_v52  ;;  %v6566_v52 = vld [vmem:[%s9122_s4 + $0x244] ss:$48 sps:$4 sm:$0xff]   ;;  %v1839_v2 = vpop.f32.mrf.mxu0 }
 0x18d   : > { %3124 = vmatmul.mubr.bf16.vlgmr.msra.gmra.mxu1 %v7622_v55  ;;  %4000 = vmatpush1.bf16.msra.mxu0 %v6558_v6  ;;  %v6564_v55 = vld [vmem:[%s9122_s4 + $0x240] ss:$48 sps:$4 sm:$0xff]   ;;  %v1882_v53 = vpop.f32.mrf.mxu1  ;;  %v1711_v6 = vadd.f32 %v1710_v44, %v1667_v43 }
 0x18e   : > { %4043 = vmatpush1.bf16.msra.mxu1 %v6561_v13  ;;  %4001 = vmatprep.subr.bf16.mxu0 %v6566_v52  ;;  %v1841_v54 = vpop.f32.mrf.mxu0 }
 0x18f   : > { %4044 = vmatprep.subr.bf16.mxu1 %v6569_v8  ;;  %v1884_v3 = vpop.f32.mrf.mxu1  ;;  %v1754_v52 = vadd.f32 %v1753_v58, %v1711_v6  ;;  %v1756_v8 = vadd.f32 %v1755_v60, %v1713_v12 }
 0x190   : > { %v1843_v4 = vpop.f32.mrf.mxu0 }
 0x191   : > { %4002 = vmatpush1.bf16.msra.mxu0 %v6564_v55  ;;  %v1886_v5 = vpop.f32.mrf.mxu1  ;;  %v1715_v55 = vadd.f32 %v1714_v51, %v1671_v50 }
 0x192   : > { %4045 = vmatpush1.bf16.msra.mxu1 %v6567_v9  ;;  %4003 = vmatprep.subr.bf16.mxu0 %v6572_v10  ;;  %v1845_v13 = vpop.f32.mrf.mxu0 }
 0x193   : > { %4046 = vmatprep.subr.bf16.mxu1 %v6575_v45  ;;  %v1888_v7 = vpop.f32.mrf.mxu1  ;;  %v1891_v45 = vlaneseq }
 0x195   : > { %4004 = vmatpush1.bf16.msra.mxu0 %v6570_v47  ;;  %v1717_v47 = vadd.f32 %v1716_v57, %v1673_v56 }
 0x196   : > { %4047 = vmatpush1.bf16.msra.mxu1 %v6573_v28  ;;  %4005 = vmatprep.subr.bf16.mxu0 %v6578_v29  ;;  %v1758_v28 = vadd.f32 %v1757_v62, %v1715_v55  ;;  %v1797_v29 = vadd.f32 %v1796_v59, %v1754_v52 }
 0x197   : > { %4048 = vmatprep.subr.bf16.mxu1 %v6581_v11  ;;  %v1799_v11 = vadd.f32 %v1798_v61, %v1756_v8 }
 0x199   : > { %4006 = vmatpush1.bf16.msra.mxu0 %v6576_v14  ;;  %v1760_v14 = vadd.f32 %v1759_v0, %v1717_v47 }
 0x19a   : > { %4049 = vmatpush1.bf16.msra.mxu1 %v6579_v40  ;;  %4007 = vmatprep.subr.bf16.mxu0 %v6584_v46 }
 0x19b   : > { %4050 = vmatprep.subr.bf16.mxu1 %v6587_v15  ;;  %v1840_v15 = vadd.f32 %v1839_v2, %v1797_v29 }
 0x19d   : > { %4008 = vmatpush1.bf16.msra.mxu0 %v6582_v16  ;;  %v8334_v16 = vshrl.u32 %v1891_v45, 7 }
 0x19e   : > { %4051 = vmatpush1.bf16.msra.mxu1 %v6585_v17  ;;  %4009 = vmatprep.subr.bf16.mxu0 %v6590_v18  ;;  %v1801_v17 = vadd.f32 %v1800_v63, %v1758_v28  ;;  %v1842_v18 = vadd.f32 %v1841_v54, %v1799_v11 }
 0x19f   : > { %4052 = vmatprep.subr.bf16.mxu1 %v6593_v19  ;;  %v1803_v19 = vadd.f32 %v1802_v1, %v1760_v14 }
 0x1a1   : > { %4010 = vmatpush1.bf16.msra.mxu0 %v6588_v20  ;;  %v1844_v20 = vadd.f32 %v1843_v4, %v1801_v17 }
 0x1a2   : > { %4053 = vmatpush1.bf16.msra.mxu1 %v6591_v21  ;;  %4011 = vmatprep.subr.bf16.mxu0 %v6596_v22 }
 0x1a3   : > { %4054 = vmatprep.subr.bf16.mxu1 %v6599_v23  ;;  %v1883_v23 = vadd.f32 %v1882_v53, %v1840_v15 }
 0x1a5   : > { %4012 = vmatpush1.bf16.msra.mxu0 %v6594_v24  ;;  %v8337_v24 = vsub.s32 0, %v8334_v16 }
 0x1a6   : > { %4055 = vmatpush1.bf16.msra.mxu1 %v6597_v25  ;;  %4013 = vmatprep.subr.bf16.mxu0 %v6602_v26  ;;  %v1885_v25 = vadd.f32 %v1884_v3, %v1842_v18  ;;  %v1846_v26 = vadd.f32 %v1845_v13, %v1803_v19 }
 0x1a7   : > { %4056 = vmatprep.subr.bf16.mxu1 %v6605_v27  ;;  %v1887_v27 = vadd.f32 %v1886_v5, %v1844_v20 }
 0x1a9   : > { %4014 = vmatpush1.bf16.msra.mxu0 %v6600_v30 }
 0x1aa   : > { %4057 = vmatpush1.bf16.msra.mxu1 %v6603_v31  ;;  %4027 = vmatprep.subr.bf16.mxu0 %v6608_v32  ;;  %v1894_v32 = vrot.slane %v1883_v23, %v8337_v24 }
 0x1ab   : > { %4070 = vmatprep.subr.bf16.mxu1 %v6611_v33  ;;  %v1904_v33 = vrot.slane %v1883_v23, 5 }
 0x1ad   : > { %4028 = vmatpush2.bf16.msra.mxu0 %v6606_v34  ;;  %v1898_v34 = vrot.slane %v1885_v25, %v8337_v24 }
 0x1ae   : > { %4071 = vmatpush2.bf16.msra.mxu1 %v6609_v35  ;;  %4029 = vmatprep.subr.bf16.mxu0 %v6614_v36  ;;  %v1905_v35 = vrot.slane %v1885_v25, 5  ;;  %v1889_v36 = vadd.f32 %v1888_v7, %v1846_v26 }
 0x1af   : > { %4072 = vmatprep.subr.bf16.mxu1 %v6617_v37 }
 0x1b0   : > { %v1915_v44 = vsel %vm1903_vm0, %v1898_v34, %v1905_v35 }
 0x1b1   : > { %4030 = vmatpush2.bf16.msra.mxu0 %v6612_v38 }
 0x1b2   : > { %4073 = vmatpush2.bf16.msra.mxu1 %v6615_v39  ;;  %4085 = vmatprep.subr.bf16.mxu0 %v6620_v41  ;;  %v1906_v39 = vrot.slane %v1887_v27, 5  ;;  %v1914_v41 = vsel %vm1903_vm0, %v1894_v32, %v1904_v33  ;;  %v6621_v32 = vld [vmem:[%s9122_s4 + $0x2b8] ss:$48 sps:$4 sm:$0xff]  }
 0x1b3   : > { %4128 = vmatprep.subr.bf16.mxu1 %v6623_v42  ;;  %v1908_v42 = vrot.slane %v1889_v36, 5  ;;  %v6629_v36 = vld [vmem:[%s9122_s4 + $0x25c] ss:$48 sps:$4 sm:$0xff]  }
 0x1b4   : > { %v1907_v51 = vsel %vm1903_vm0, %v1904_v33, %v1906_v39  ;;  %v6632_v39 = vld [vmem:[%s9122_s4 + $0x1f4] ss:$48 sps:$4 sm:$0xff]   ;;  %v6755_v33 = vld [vmem:[%s9121_s3 + $0x1ec] ss:$48 sps:$4 sm:$0xff]  }
 0x1b5   : > { %v1909_v58 = vsel %vm1903_vm0, %v1905_v35, %v1908_v42  ;;  %v6626_v35 = vld [vmem:[%s9122_s4 + $0x254] ss:$48 sps:$4 sm:$0xff]   ;;  %v6630_v42 = vld [vmem:[%s9122_s4 + $0x1f0] ss:$48 sps:$4 sm:$0xff]  }
 0x1cc   : > { %v2910_v9 = vpop.f32.mrf.mxu0 }
 0x1cd   : > { %v2953_v10 = vpop.f32.mrf.mxu1  ;;  %v2911_v43 = vadd.f32 %v2910_v9, %v1914_v41  ;;  %v6635_v41 = vld [vmem:[%s9122_s4 + $0x1fc] ss:$48 sps:$4 sm:$0xff]  }
 0x1ce   : > { %v2912_v40 = vpop.f32.mrf.mxu0 }
 0x1cf   : > { %v2955_v46 = vpop.f32.mrf.mxu1  ;;  %v2913_v50 = vadd.f32 %v2912_v40, %v1915_v44  ;;  %v2954_v57 = vadd.f32 %v2953_v10, %v2911_v43  ;;  %v6633_v43 = vld [vmem:[%s9122_s4 + $0x1f8] ss:$48 sps:$4 sm:$0xff]   ;;  %v6638_v44 = vld [vmem:[%s9122_s4 + $0x194] ss:$48 sps:$4 sm:$0xff]  }
 0x1d0   : > { %v2914_v21 = vpop.f32.mrf.mxu0 }
 0x1d1   : > { %v2957_v22 = vpop.f32.mrf.mxu1  ;;  %v2915_v56 = vadd.f32 %v2914_v21, %v1907_v51  ;;  %v2956_v61 = vadd.f32 %v2955_v46, %v2913_v50  ;;  %v6639_v50 = vld [vmem:[%s9122_s4 + $0x198] ss:$48 sps:$4 sm:$0xff]   ;;  %v6644_v51 = vld [vmem:[%s9122_s4 + $0x134] ss:$48 sps:$4 sm:$0xff]  }
 0x1d2   : > { %v2916_v30 = vpop.f32.mrf.mxu0 }
 0x1d3   : > { %v2959_v31 = vpop.f32.mrf.mxu1  ;;  %v2917_v62 = vadd.f32 %v2916_v30, %v1909_v58  ;;  %v2958_v0 = vadd.f32 %v2957_v22, %v2915_v56  ;;  %v6647_v56 = vld [vmem:[%s9122_s4 + $0x13c] ss:$48 sps:$4 sm:$0xff]   ;;  %v6645_v58 = vld [vmem:[%s9122_s4 + $0x138] ss:$48 sps:$4 sm:$0xff]  }
 0x1d5   : > { %v2960_v54 = vadd.f32 %v2959_v31, %v2917_v62  ;;  %v6618_v31 = vld [vmem:[%s9122_s4 + $0x2b0] ss:$48 sps:$4 sm:$0xff]   ;;  %v6651_v62 = vld [vmem:[%s9122_s4 + $0xd8] ss:$48 sps:$4 sm:$0xff]  }
 0x20c   : > { %v2996_v37 = vpop.f32.mrf.mxu0 }
 0x20d   : > { %v3039_v38 = vpop.f32.mrf.mxu1  ;;  %v2997_v63 = vadd.f32 %v2996_v37, %v2954_v57  ;;  %v6624_v37 = vld [vmem:[%s9122_s4 + $0x250] ss:$48 sps:$4 sm:$0xff]  }
 0x20e   : > { %v2998_v48 = vpop.f32.mrf.mxu0  ;;  %v6642_v57 = vld [vmem:[%s9122_s4 + $0x130] ss:$48 sps:$4 sm:$0xff]  }
 0x20f   : > { %v3041_v49 = vpop.f32.mrf.mxu1  ;;  %v2999_v1 = vadd.f32 %v2998_v48, %v2956_v61  ;;  %v3040_v4 = vadd.f32 %v3039_v38, %v2997_v63  ;;  %v6627_v38 = vld [vmem:[%s9122_s4 + $0x258] ss:$48 sps:$4 sm:$0xff]   ;;  %v6641_v48 = vld [vmem:[%s9122_s4 + $0x19c] ss:$48 sps:$4 sm:$0xff]   ;;  %v6648_v61 = vld [vmem:[%s9122_s4 + $0xd0] ss:$48 sps:$4 sm:$0xff]  }
 0x210   : > { %v3000_v59 = vpop.f32.mrf.mxu0  ;;  %v6656_v63 = vld [vmem:[%s9122_s4 + $0x74] ss:$48 sps:$4 sm:$0xff]  }
 0x211   : > { %v3043_v60 = vpop.f32.mrf.mxu1  ;;  %v3001_v3 = vadd.f32 %v3000_v59, %v2958_v0  ;;  %v3042_v12 = vadd.f32 %v3041_v49, %v2999_v1  ;;  %v6636_v49 = vld [vmem:[%s9122_s4 + $0x190] ss:$48 sps:$4 sm:$0xff]   ;;  %v6650_v59 = vld [vmem:[%s9122_s4 + $0xd4] ss:$48 sps:$4 sm:$0xff]   ;;  %v6659_v0 = vld [vmem:[%s9122_s4 + $0x7c] ss:$48 sps:$4 sm:$0xff]  }
 0x212   : > { %v3002_v2 = vpop.f32.mrf.mxu0  ;;  %v6654_v1 = vld [vmem:[%s9122_s4 + $0x70] ss:$48 sps:$4 sm:$0xff]  }
 0x213   : > { %v3045_v53 = vpop.f32.mrf.mxu1  ;;  %v3003_v13 = vadd.f32 %v3002_v2, %v2960_v54  ;;  %v3044_v8 = vadd.f32 %v3043_v60, %v3001_v3  ;;  %v6653_v60 = vld [vmem:[%s9122_s4 + $0xdc] ss:$48 sps:$4 sm:$0xff]   ;;  %v6657_v2 = vld [vmem:[%s9122_s4 + $0x78] ss:$48 sps:$4 sm:$0xff]   ;;  %v6660_v3 = vld [vmem:[%s9122_s4 + $0x10] ss:$48 sps:$4 sm:$0xff]  }
 0x214   : > { %v6665_v54 = vld [vmem:[%s9122_s4 + $0x1c] ss:$48 sps:$4 sm:$0xff]  }
 0x215   : > { %v3046_v47 = vadd.f32 %v3045_v53, %v3003_v13  ;;  %v6662_v53 = vld [vmem:[%s9122_s4 + $0x14] ss:$48 sps:$4 sm:$0xff]   ;;  %v6669_v13 = vld [vmem:[%s9122_s4 + $0x378] ss:$48 sps:$4 sm:$0xff]  }
 0x24c   : > { %v3082_v5 = vpop.f32.mrf.mxu0 }
 0x24d   : > { %v3125_v6 = vpop.f32.mrf.mxu1  ;;  %v3083_v7 = vadd.f32 %v3082_v5, %v3040_v4  ;;  %v6663_v4 = vld [vmem:[%s9122_s4 + $0x18] ss:$48 sps:$4 sm:$0xff]   ;;  %v6668_v5 = vld [vmem:[%s9122_s4 + $0x374] ss:$48 sps:$4 sm:$0xff]  }
 0x24e   : > { %v3084_v52 = vpop.f32.mrf.mxu0 }
 0x24f   : > { %v3127_v55 = vpop.f32.mrf.mxu1  ;;  %v3085_v9 = vadd.f32 %v3084_v52, %v3042_v12  ;;  %v3126_v29 = vadd.f32 %v3125_v6, %v3083_v7  ;;  %v6671_v6 = vld [vmem:[%s9122_s4 + $0x37c] ss:$48 sps:$4 sm:$0xff]   ;;  %v6666_v12 = vld [vmem:[%s9122_s4 + $0x370] ss:$48 sps:$4 sm:$0xff]   ;;  %v6674_v7 = vld [vmem:[%s9122_s4 + $0x314] ss:$48 sps:$4 sm:$0xff]  }
 0x250   : > { %v3086_v10 = vpop.f32.mrf.mxu0  ;;  %v6677_v52 = vld [vmem:[%s9122_s4 + $0x31c] ss:$48 sps:$4 sm:$0xff]  }
 0x251   : > { %v3129_v45 = vpop.f32.mrf.mxu1  ;;  %v3087_v28 = vadd.f32 %v3086_v10, %v3044_v8  ;;  %v3128_v14 = vadd.f32 %v3127_v55, %v3085_v9  ;;  %v3261_v20 = vrot.slane %v3126_v29, 3  ;;  %v6672_v55 = vld [vmem:[%s9122_s4 + $0x310] ss:$48 sps:$4 sm:$0xff]   ;;  %v6675_v8 = vld [vmem:[%s9122_s4 + $0x318] ss:$48 sps:$4 sm:$0xff]  }
 0x252   : > { %v3088_v11 = vpop.f32.mrf.mxu0  ;;  %v6680_v9 = vld [vmem:[%s9122_s4 + $0x2c4] ss:$48 sps:$4 sm:$0xff]   ;;  %v6683_v10 = vld [vmem:[%s9122_s4 + $0x2cc] ss:$48 sps:$4 sm:$0xff]  }
 0x253   : > { %v3130_v40 = vadd.f32 %v3129_v45, %v3087_v28  ;;  %v3089_v46 = vadd.f32 %v3088_v11, %v3046_v47  ;;  %v3131_v15 = vpop.f32.mrf.mxu1  ;;  %v3264_v21 = vrot.slane %v3128_v14, 3  ;;  %v6678_v45 = vld [vmem:[%s9122_s4 + $0x2c0] ss:$48 sps:$4 sm:$0xff]   ;;  %v6681_v47 = vld [vmem:[%s9122_s4 + $0x2c8] ss:$48 sps:$4 sm:$0xff]  }
 0x254   : > { %v6686_v28 = vld [vmem:[%s9122_s4 + $0x264] ss:$48 sps:$4 sm:$0xff]   ;;  %v6684_v11 = vld [vmem:[%s9122_s4 + $0x260] ss:$48 sps:$4 sm:$0xff]  }
 0x255   : > { %v8341_v17 = vpack.c.bf16 %v3130_v40, %v3126_v29  ;;  %v3262_v18 = vrot.slane %v3130_v40, 3  ;;  %v3132_v19 = vadd.f32 %v3131_v15, %v3089_v46  ;;  %v6689_v29 = vld [vmem:[%s9122_s4 + $0x26c] ss:$48 sps:$4 sm:$0xff]   ;;  %v6692_v40 = vld [vmem:[%s9122_s4 + $0x204] ss:$48 sps:$4 sm:$0xff]  }
 0x256   : > { %v6695_v46 = vld [vmem:[%s9122_s4 + $0x20c] ss:$48 sps:$4 sm:$0xff]   ;;  %v6690_v15 = vld [vmem:[%s9122_s4 + $0x200] ss:$48 sps:$4 sm:$0xff]  }
 0x257   : > { %v8343_v22 = vpack.c.bf16 %v3132_v19, %v3128_v14  ;;  %v3265_v23 = vrot.slane %v3132_v19, 3  ;;  %v3263_v25 = vsel %vm3260_vm1, %v3261_v20, %v3262_v18  ;;  %v6687_v14 = vld [vmem:[%s9122_s4 + $0x268] ss:$48 sps:$4 sm:$0xff]   ;;  %v6698_v19 = vld [vmem:[%s9122_s4 + $0x1a4] ss:$48 sps:$4 sm:$0xff]  }
 0x258   : > { %v8361_v34 = vpack.c.bf16 %v3262_v18, %v3263_v25  ;;  %v6693_v18 = vld [vmem:[%s9122_s4 + $0x208] ss:$48 sps:$4 sm:$0xff]   ;;  %v6701_v20 = vld [vmem:[%s9122_s4 + $0x1ac] ss:$48 sps:$4 sm:$0xff]   ;;  %v6704_v25 = vld [vmem:[%s9122_s4 + $0x144] ss:$48 sps:$4 sm:$0xff]  }
 0x259   : > { %v3266_v26 = vsel %vm3260_vm1, %v3264_v21, %v3265_v23  ;;  %v3272_v27 = vsel %vm3260_vm1, %v3265_v23, 0.0  ;;  %v6696_v21 = vld [vmem:[%s9122_s4 + $0x1a0] ss:$48 sps:$4 sm:$0xff]   ;;  %v6699_v23 = vld [vmem:[%s9122_s4 + $0x1a8] ss:$48 sps:$4 sm:$0xff]  }
 0x25a   : > { %v8348_v30 = vpack.c.bf16 %v3272_v27, %v3266_v26  ;;  %v6707_v26 = vld [vmem:[%s9122_s4 + $0x14c] ss:$48 sps:$4 sm:$0xff]   ;;  %v6702_v27 = vld [vmem:[%s9122_s4 + $0x140] ss:$48 sps:$4 sm:$0xff]  }
 0x25c   : > { %5820 = vmatprep.mubr.msk.bf16.mxu0 %vm3995_vm2, %v8348_v30  ;;  %5824 = vmatprep.mubr.msk.bf16.mxu1 %vm3995_vm2, %v8348_v30 }
 0x25d   : > { %5823 = vmatmul.mubr.msk.bf16.vlgmr.msra.gmra.mxu0 %vm8357_vm4, %v8361_v34  ;;  %5827 = vmatmul.mubr.msk.bf16.vlgmr.msra.gmra.mxu1 %vm8357_vm4, %v8361_v34 }
 0x25e   : > { %4086 = vmatpush1.bf16.msra.mxu0 %v6618_v31  ;;  %4129 = vmatpush1.bf16.msra.mxu1 %v6621_v32  ;;  %v6710_v31 = vld [vmem:[%s9122_s4 + $0xe4] ss:$48 sps:$4 sm:$0xff]   ;;  %v6713_v32 = vld [vmem:[%s9122_s4 + $0xec] ss:$48 sps:$4 sm:$0xff]  }
 0x25f   : > { %5828 = vmatprep.mubr.msk.bf16.mxu0 %vm3995_vm2, %v8348_v30  ;;  %5832 = vmatprep.mubr.msk.bf16.mxu1 %vm3995_vm2, %v8348_v30 }
 0x260   : > { %4087 = vmatprep.subr.bf16.mxu0 %v6626_v35  ;;  %4130 = vmatprep.subr.bf16.mxu1 %v6629_v36  ;;  %v6708_v35 = vld [vmem:[%s9122_s4 + $0xe0] ss:$48 sps:$4 sm:$0xff]   ;;  %v6711_v36 = vld [vmem:[%s9122_s4 + $0xe8] ss:$48 sps:$4 sm:$0xff]  }
 0x262   : > { %4088 = vmatpush1.bf16.msra.mxu0 %v6624_v37  ;;  %4131 = vmatpush1.bf16.msra.mxu1 %v6627_v38  ;;  %v6716_v37 = vld [vmem:[%s9122_s4 + $0x84] ss:$48 sps:$4 sm:$0xff]   ;;  %v6719_v38 = vld [vmem:[%s9122_s4 + $0x8c] ss:$48 sps:$4 sm:$0xff]  }
 0x263   : > { %4089 = vmatprep.subr.bf16.mxu0 %v6632_v39  ;;  %4132 = vmatprep.subr.bf16.mxu1 %v6635_v41  ;;  %v6714_v39 = vld [vmem:[%s9122_s4 + $0x80] ss:$48 sps:$4 sm:$0xff]   ;;  %v6717_v41 = vld [vmem:[%s9122_s4 + $0x88] ss:$48 sps:$4 sm:$0xff]  }
 0x266   : > { %4090 = vmatpush1.bf16.msra.mxu0 %v6630_v42  ;;  %4133 = vmatpush1.bf16.msra.mxu1 %v6633_v43  ;;  %v6722_v42 = vld [vmem:[%s9122_s4 + $0x24] ss:$48 sps:$4 sm:$0xff]   ;;  %v6725_v43 = vld [vmem:[%s9122_s4 + $0x2c] ss:$48 sps:$4 sm:$0xff]  }
 0x267   : > { %4091 = vmatprep.subr.bf16.mxu0 %v6638_v44  ;;  %4134 = vmatprep.subr.bf16.mxu1 %v6641_v48  ;;  %v6720_v44 = vld [vmem:[%s9122_s4 + $0x20] ss:$48 sps:$4 sm:$0xff]   ;;  %v6723_v48 = vld [vmem:[%s9122_s4 + $0x28] ss:$48 sps:$4 sm:$0xff]  }
 0x26a   : > { %4092 = vmatpush1.bf16.msra.mxu0 %v6636_v49  ;;  %4135 = vmatpush1.bf16.msra.mxu1 %v6639_v50  ;;  %v6728_v49 = vld [vmem:[%s9122_s4 + $0x384] ss:$48 sps:$4 sm:$0xff]   ;;  %v6731_v50 = vld [vmem:[%s9122_s4 + $0x38c] ss:$48 sps:$4 sm:$0xff]  }
 0x26b   : > { %4093 = vmatprep.subr.bf16.mxu0 %v6644_v51  ;;  %4136 = vmatprep.subr.bf16.mxu1 %v6647_v56  ;;  %v6726_v51 = vld [vmem:[%s9122_s4 + $0x380] ss:$48 sps:$4 sm:$0xff]   ;;  %v6729_v56 = vld [vmem:[%s9122_s4 + $0x388] ss:$48 sps:$4 sm:$0xff]  }
 0x26e   : > { %4094 = vmatpush1.bf16.msra.mxu0 %v6642_v57  ;;  %4137 = vmatpush1.bf16.msra.mxu1 %v6645_v58  ;;  %v6734_v57 = vld [vmem:[%s9122_s4 + $0x324] ss:$48 sps:$4 sm:$0xff]   ;;  %v6737_v58 = vld [vmem:[%s9122_s4 + $0x32c] ss:$48 sps:$4 sm:$0xff]  }
 0x26f   : > { %4095 = vmatprep.subr.bf16.mxu0 %v6650_v59  ;;  %4138 = vmatprep.subr.bf16.mxu1 %v6653_v60  ;;  %v6732_v59 = vld [vmem:[%s9122_s4 + $0x320] ss:$48 sps:$4 sm:$0xff]   ;;  %v6735_v60 = vld [vmem:[%s9122_s4 + $0x328] ss:$48 sps:$4 sm:$0xff]  }
 0x272   : > { %4096 = vmatpush1.bf16.msra.mxu0 %v6648_v61  ;;  %4139 = vmatpush1.bf16.msra.mxu1 %v6651_v62  ;;  %v6740_v61 = vld [vmem:[%s9121_s3 + $0x2a4] ss:$48 sps:$4 sm:$0xff]   ;;  %v6743_v62 = vld [vmem:[%s9121_s3 + $0x2ac] ss:$48 sps:$4 sm:$0xff]  }
 0x273   : > { %4097 = vmatprep.subr.bf16.mxu0 %v6656_v63  ;;  %4140 = vmatprep.subr.bf16.mxu1 %v6659_v0  ;;  %v6738_v63 = vld [vmem:[%s9121_s3 + $0x2a0] ss:$48 sps:$4 sm:$0xff]   ;;  %v6741_v0 = vld [vmem:[%s9121_s3 + $0x2a8] ss:$48 sps:$4 sm:$0xff]  }
 0x276   : > { %4098 = vmatpush1.bf16.msra.mxu0 %v6654_v1  ;;  %4141 = vmatpush1.bf16.msra.mxu1 %v6657_v2  ;;  %v6746_v1 = vld [vmem:[%s9121_s3 + $0x244] ss:$48 sps:$4 sm:$0xff]   ;;  %v6749_v2 = vld [vmem:[%s9121_s3 + $0x24c] ss:$48 sps:$4 sm:$0xff]  }
 0x277   : > { %4099 = vmatprep.subr.bf16.mxu0 %v6662_v53  ;;  %4142 = vmatprep.subr.bf16.mxu1 %v6665_v54  ;;  %v6744_v53 = vld [vmem:[%s9121_s3 + $0x240] ss:$48 sps:$4 sm:$0xff]   ;;  %v6747_v54 = vld [vmem:[%s9121_s3 + $0x248] ss:$48 sps:$4 sm:$0xff]  }
 0x27a   : > { %4100 = vmatpush1.bf16.msra.mxu0 %v6660_v3  ;;  %4143 = vmatpush1.bf16.msra.mxu1 %v6663_v4  ;;  %v6752_v3 = vld [vmem:[%s9121_s3 + $0x1e4] ss:$48 sps:$4 sm:$0xff]   ;;  %v6753_v4 = vld [vmem:[%s9121_s3 + $0x1e8] ss:$48 sps:$4 sm:$0xff]  }
 0x27b   : > { %4113 = vmatprep.subr.bf16.mxu0 %v6668_v5  ;;  %4156 = vmatprep.subr.bf16.mxu1 %v6671_v6  ;;  %v6758_v5 = vld [vmem:[%s9121_s3 + $0x184] ss:$48 sps:$4 sm:$0xff]   ;;  %v6761_v6 = vld [vmem:[%s9121_s3 + $0x18c] ss:$48 sps:$4 sm:$0xff]  }
 0x27e   : > { %4114 = vmatpush2.bf16.msra.mxu0 %v6666_v12  ;;  %4157 = vmatpush2.bf16.msra.mxu1 %v6669_v13  ;;  %v6756_v12 = vld [vmem:[%s9121_s3 + $0x180] ss:$48 sps:$4 sm:$0xff]   ;;  %v6759_v13 = vld [vmem:[%s9121_s3 + $0x188] ss:$48 sps:$4 sm:$0xff]  }
 0x27f   : > { %4115 = vmatprep.subr.bf16.mxu0 %v6674_v7  ;;  %4158 = vmatprep.subr.bf16.mxu1 %v6677_v52  ;;  %v6764_v7 = vld [vmem:[%s9121_s3 + $0x124] ss:$48 sps:$4 sm:$0xff]   ;;  %v6767_v52 = vld [vmem:[%s9121_s3 + $0x12c] ss:$48 sps:$4 sm:$0xff]  }
 0x282   : > { %4116 = vmatpush2.bf16.msra.mxu0 %v6672_v55  ;;  %4159 = vmatpush2.bf16.msra.mxu1 %v6675_v8  ;;  %v6762_v55 = vld [vmem:[%s9121_s3 + $0x120] ss:$48 sps:$4 sm:$0xff]   ;;  %v6765_v8 = vld [vmem:[%s9121_s3 + $0x128] ss:$48 sps:$4 sm:$0xff]  }
 0x283   : > { %4171 = vmatprep.subr.bf16.mxu0 %v6680_v9  ;;  %4214 = vmatprep.subr.bf16.mxu1 %v6683_v10  ;;  %v6770_v9 = vld [vmem:[%s9121_s3 + $0xc4] ss:$48 sps:$4 sm:$0xff]   ;;  %v6773_v10 = vld [vmem:[%s9121_s3 + $0xcc] ss:$48 sps:$4 sm:$0xff]  }
 0x285   : > { %5831 = vmatmul.mubr.msk.bf16.vlgmr.msra.gmra.mxu0 %vm8357_vm4, %v8361_v34  ;;  %5835 = vmatmul.mubr.msk.bf16.vlgmr.msra.gmra.mxu1 %vm8357_vm4, %v8361_v34 }
 0x286   : > { %4172 = vmatpush1.bf16.msra.mxu0 %v6678_v45  ;;  %5836 = vmatprep.mubr.msk.bf16.mxu0 %vm3995_vm2, %v8348_v30  ;;  %v6768_v45 = vld [vmem:[%s9121_s3 + $0xc0] ss:$48 sps:$4 sm:$0xff]  }
 0x287   : > { %4215 = vmatpush1.bf16.msra.mxu1 %v6681_v47  ;;  %5840 = vmatprep.mubr.msk.bf16.mxu1 %vm3995_vm2, %v8348_v30  ;;  %v6705_v30 = vld [vmem:[%s9122_s4 + $0x148] ss:$48 sps:$4 sm:$0xff]  }
 0x288   : > { %4173 = vmatprep.subr.bf16.mxu0 %v6686_v28  ;;  %4216 = vmatprep.subr.bf16.mxu1 %v6689_v29  ;;  %v6771_v47 = vld [vmem:[%s9121_s3 + $0xc8] ss:$48 sps:$4 sm:$0xff]   ;;  %v6776_v28 = vld [vmem:[%s9121_s3 + $0x64] ss:$48 sps:$4 sm:$0xff]   ;;  %v6779_v29 = vld [vmem:[%s9121_s3 + $0x6c] ss:$48 sps:$4 sm:$0xff]  }
 0x28a   : > { %4174 = vmatpush1.bf16.msra.mxu0 %v6684_v11  ;;  %v6774_v11 = vld [vmem:[%s9121_s3 + $0x60] ss:$48 sps:$4 sm:$0xff]  }
 0x28b   : > { %4217 = vmatpush1.bf16.msra.mxu1 %v6687_v14  ;;  %4175 = vmatprep.subr.bf16.mxu0 %v6692_v40  ;;  %v6777_v14 = vld [vmem:[%s9121_s3 + $0x68] ss:$48 sps:$4 sm:$0xff]   ;;  %v6782_v40 = vld [vmem:[%s9121_s3 + $0x4] ss:$48 sps:$4 sm:$0xff]  }
 0x28c   : > { %4218 = vmatprep.subr.bf16.mxu1 %v6695_v46  ;;  %v6785_v46 = vld [vmem:[%s9121_s3 + $0xc] ss:$48 sps:$4 sm:$0xff]  }
 0x28e   : > { %4176 = vmatpush1.bf16.msra.mxu0 %v6690_v15  ;;  %v6780_v15 = vld [vmem:[%s9121_s3] ss:$48 sps:$4 sm:$0xff]  }
 0x28f   : > { %4219 = vmatpush1.bf16.msra.mxu1 %v6693_v18  ;;  %4177 = vmatprep.subr.bf16.mxu0 %v6698_v19  ;;  %v6783_v18 = vld [vmem:[%s9121_s3 + $0x8] ss:$48 sps:$4 sm:$0xff]   ;;  %v6788_v19 = vld [vmem:[%s9121_s3 + $0x364] ss:$48 sps:$4 sm:$0xff]  }
 0x290   : > { %4220 = vmatprep.subr.bf16.mxu1 %v6701_v20  ;;  %v6791_v20 = vld [vmem:[%s9121_s3 + $0x36c] ss:$48 sps:$4 sm:$0xff]  }
 0x292   : > { %4178 = vmatpush1.bf16.msra.mxu0 %v6696_v21  ;;  %v6786_v21 = vld [vmem:[%s9121_s3 + $0x360] ss:$48 sps:$4 sm:$0xff]  }
 0x293   : > { %4221 = vmatpush1.bf16.msra.mxu1 %v6699_v23  ;;  %4179 = vmatprep.subr.bf16.mxu0 %v6704_v25  ;;  %v6789_v23 = vld [vmem:[%s9121_s3 + $0x368] ss:$48 sps:$4 sm:$0xff]   ;;  %v6794_v25 = vld [vmem:[%s9121_s3 + $0x304] ss:$48 sps:$4 sm:$0xff]  }
 0x294   : > { %4222 = vmatprep.subr.bf16.mxu1 %v6707_v26  ;;  %v6797_v26 = vld [vmem:[%s9121_s3 + $0x30c] ss:$48 sps:$4 sm:$0xff]  }
 0x296   : > { %4180 = vmatpush1.bf16.msra.mxu0 %v6702_v27  ;;  %v6792_v27 = vld [vmem:[%s9121_s3 + $0x300] ss:$48 sps:$4 sm:$0xff]  }
 0x297   : > { %4223 = vmatpush1.bf16.msra.mxu1 %v6705_v30  ;;  %4181 = vmatprep.subr.bf16.mxu0 %v6710_v31  ;;  %v6795_v30 = vld [vmem:[%s9121_s3 + $0x308] ss:$48 sps:$4 sm:$0xff]   ;;  %v6800_v31 = vld [vmem:[%s9121_s3 + $0x2b4] ss:$48 sps:$4 sm:$0xff]  }
 0x298   : > { %4224 = vmatprep.subr.bf16.mxu1 %v6713_v32  ;;  %v6803_v32 = vld [vmem:[%s9121_s3 + $0x2bc] ss:$48 sps:$4 sm:$0xff]  }
 0x29a   : > { %4182 = vmatpush1.bf16.msra.mxu0 %v6708_v35  ;;  %v6798_v35 = vld [vmem:[%s9121_s3 + $0x2b0] ss:$48 sps:$4 sm:$0xff]  }
 0x29b   : > { %4225 = vmatpush1.bf16.msra.mxu1 %v6711_v36  ;;  %4183 = vmatprep.subr.bf16.mxu0 %v6716_v37  ;;  %v6801_v36 = vld [vmem:[%s9121_s3 + $0x2b8] ss:$48 sps:$4 sm:$0xff]   ;;  %v6806_v37 = vld [vmem:[%s9121_s3 + $0x254] ss:$48 sps:$4 sm:$0xff]  }
 0x29c   : > { %4226 = vmatprep.subr.bf16.mxu1 %v6719_v38  ;;  %v6809_v38 = vld [vmem:[%s9121_s3 + $0x25c] ss:$48 sps:$4 sm:$0xff]  }
 0x29e   : > { %4184 = vmatpush1.bf16.msra.mxu0 %v6714_v39  ;;  %v6804_v39 = vld [vmem:[%s9121_s3 + $0x250] ss:$48 sps:$4 sm:$0xff]  }
 0x29f   : > { %4227 = vmatpush1.bf16.msra.mxu1 %v6717_v41  ;;  %4185 = vmatprep.subr.bf16.mxu0 %v6722_v42  ;;  %v6807_v41 = vld [vmem:[%s9121_s3 + $0x258] ss:$48 sps:$4 sm:$0xff]   ;;  %v6812_v42 = vld [vmem:[%s9121_s3 + $0x1f4] ss:$48 sps:$4 sm:$0xff]  }
 0x2a0   : > { %4228 = vmatprep.subr.bf16.mxu1 %v6725_v43  ;;  %v6815_v43 = vld [vmem:[%s9121_s3 + $0x1fc] ss:$48 sps:$4 sm:$0xff]  }
 0x2a2   : > { %4186 = vmatpush1.bf16.msra.mxu0 %v6720_v44  ;;  %v6810_v44 = vld [vmem:[%s9121_s3 + $0x1f0] ss:$48 sps:$4 sm:$0xff]  }
 0x2a3   : > { %4229 = vmatpush1.bf16.msra.mxu1 %v6723_v48  ;;  %4199 = vmatprep.subr.bf16.mxu0 %v6728_v49  ;;  %v6813_v48 = vld [vmem:[%s9121_s3 + $0x1f8] ss:$48 sps:$4 sm:$0xff]   ;;  %v6818_v49 = vld [vmem:[%s9121_s3 + $0x194] ss:$48 sps:$4 sm:$0xff]  }
 0x2a4   : > { %4242 = vmatprep.subr.bf16.mxu1 %v6731_v50  ;;  %v6821_v50 = vld [vmem:[%s9121_s3 + $0x19c] ss:$48 sps:$4 sm:$0xff]  }
 0x2a6   : > { %4200 = vmatpush2.bf16.msra.mxu0 %v6726_v51  ;;  %v6816_v51 = vld [vmem:[%s9121_s3 + $0x190] ss:$48 sps:$4 sm:$0xff]  }
 0x2a7   : > { %4243 = vmatpush2.bf16.msra.mxu1 %v6729_v56  ;;  %4201 = vmatprep.subr.bf16.mxu0 %v6734_v57  ;;  %v6819_v56 = vld [vmem:[%s9121_s3 + $0x198] ss:$48 sps:$4 sm:$0xff]   ;;  %v6824_v57 = vld [vmem:[%s9121_s3 + $0x134] ss:$48 sps:$4 sm:$0xff]  }
 0x2a8   : > { %4244 = vmatprep.subr.bf16.mxu1 %v6737_v58  ;;  %v6827_v58 = vld [vmem:[%s9121_s3 + $0x13c] ss:$48 sps:$4 sm:$0xff]  }
 0x2aa   : > { %4202 = vmatpush2.bf16.msra.mxu0 %v6732_v59  ;;  %v6822_v59 = vld [vmem:[%s9121_s3 + $0x130] ss:$48 sps:$4 sm:$0xff]  }
 0x2ab   : > { %4245 = vmatpush2.bf16.msra.mxu1 %v6735_v60  ;;  %4860 = vmatprep.subr.bf16.mxu0 %v6740_v61  ;;  %v6825_v60 = vld [vmem:[%s9121_s3 + $0x138] ss:$48 sps:$4 sm:$0xff]   ;;  %v6830_v61 = vld [vmem:[%s9121_s3 + $0xd4] ss:$48 sps:$4 sm:$0xff]  }
 0x2ac   : > { %4903 = vmatprep.subr.bf16.mxu1 %v6743_v62  ;;  %v6833_v62 = vld [vmem:[%s9121_s3 + $0xdc] ss:$48 sps:$4 sm:$0xff]  }
 0x2ad   : > { %5839 = vmatmul.mubr.msk.bf16.vlgmr.msra.gmra.mxu0 %vm8357_vm4, %v8361_v34 }
 0x2ae   : > { %5843 = vmatmul.mubr.msk.bf16.vlgmr.msra.gmra.mxu1 %vm8357_vm4, %v8361_v34  ;;  %4861 = vmatpush1.bf16.msra.mxu0 %v6738_v63  ;;  %v6750_v34 = vld [vmem:[%s9121_s3 + $0x1e0] ss:$48 sps:$4 sm:$0xff]  }
 0x2af   : > { %5964 = vmatprep.mubr.msk.bf16.mxu0 %vm3995_vm2, %v8343_v22  ;;  %4904 = vmatpush1.bf16.msra.mxu1 %v6741_v0  ;;  %v6828_v63 = vld [vmem:[%s9121_s3 + $0xd0] ss:$48 sps:$4 sm:$0xff]   ;;  %v6831_v0 = vld [vmem:[%s9121_s3 + $0xd8] ss:$48 sps:$4 sm:$0xff]  }
 0x2b0   : > { %5965 = vmatprep.mubr.msk.bf16.mxu1 %vm3995_vm2, %v8343_v22  ;;  %4862 = vmatprep.subr.bf16.mxu0 %v6746_v1  ;;  %v6836_v1 = vld [vmem:[%s9121_s3 + $0x74] ss:$48 sps:$4 sm:$0xff]  }
 0x2b1   : > { %4905 = vmatprep.subr.bf16.mxu1 %v6749_v2  ;;  %v6839_v2 = vld [vmem:[%s9121_s3 + $0x7c] ss:$48 sps:$4 sm:$0xff]  }
 0x2b2   : > { %4863 = vmatpush1.bf16.msra.mxu0 %v6744_v53  ;;  %v6834_v53 = vld [vmem:[%s9121_s3 + $0x70] ss:$48 sps:$4 sm:$0xff]  }
 0x2b3   : > { %4906 = vmatpush1.bf16.msra.mxu1 %v6747_v54  ;;  %4864 = vmatprep.subr.bf16.mxu0 %v6752_v3  ;;  %v6837_v54 = vld [vmem:[%s9121_s3 + $0x78] ss:$48 sps:$4 sm:$0xff]   ;;  %v6842_v3 = vld [vmem:[%s9121_s3 + $0x14] ss:$48 sps:$4 sm:$0xff]  }
 0x2b4   : > { %4907 = vmatprep.subr.bf16.mxu1 %v6755_v33  ;;  %v6845_v33 = vld [vmem:[%s9121_s3 + $0x1c] ss:$48 sps:$4 sm:$0xff]  }
 0x2b6   : > { %4865 = vmatpush1.bf16.msra.mxu0 %v6750_v34  ;;  %v6840_v34 = vld [vmem:[%s9121_s3 + $0x10] ss:$48 sps:$4 sm:$0xff]  }
 0x2b7   : > { %4908 = vmatpush1.bf16.msra.mxu1 %v6753_v4  ;;  %4866 = vmatprep.subr.bf16.mxu0 %v6758_v5  ;;  %v6843_v4 = vld [vmem:[%s9121_s3 + $0x18] ss:$48 sps:$4 sm:$0xff]   ;;  %v6848_v5 = vld [vmem:[%s9121_s3 + $0x374] ss:$48 sps:$4 sm:$0xff]  }
 0x2b8   : > { %4909 = vmatprep.subr.bf16.mxu1 %v6761_v6  ;;  %v6851_v6 = vld [vmem:[%s9121_s3 + $0x37c] ss:$48 sps:$4 sm:$0xff]  }
 0x2ba   : > { %4867 = vmatpush1.bf16.msra.mxu0 %v6756_v12  ;;  %v6846_v12 = vld [vmem:[%s9121_s3 + $0x370] ss:$48 sps:$4 sm:$0xff]  }
 0x2bb   : > { %4910 = vmatpush1.bf16.msra.mxu1 %v6759_v13  ;;  %4868 = vmatprep.subr.bf16.mxu0 %v6764_v7  ;;  %v6849_v13 = vld [vmem:[%s9121_s3 + $0x378] ss:$48 sps:$4 sm:$0xff]   ;;  %v6854_v7 = vld [vmem:[%s9121_s3 + $0x314] ss:$48 sps:$4 sm:$0xff]  }
 0x2bc   : > { %4911 = vmatprep.subr.bf16.mxu1 %v6767_v52  ;;  %v6857_v52 = vld [vmem:[%s9121_s3 + $0x31c] ss:$48 sps:$4 sm:$0xff]  }
 0x2be   : > { %4869 = vmatpush1.bf16.msra.mxu0 %v6762_v55  ;;  %v6852_v55 = vld [vmem:[%s9121_s3 + $0x310] ss:$48 sps:$4 sm:$0xff]  }
 0x2bf   : > { %4912 = vmatpush1.bf16.msra.mxu1 %v6765_v8  ;;  %4870 = vmatprep.subr.bf16.mxu0 %v6770_v9  ;;  %v6855_v8 = vld [vmem:[%s9121_s3 + $0x318] ss:$48 sps:$4 sm:$0xff]   ;;  %v6860_v9 = vld [vmem:[%s9121_s3 + $0x2c4] ss:$48 sps:$4 sm:$0xff]  }
 0x2c0   : > { %4913 = vmatprep.subr.bf16.mxu1 %v6773_v10  ;;  %v6863_v10 = vld [vmem:[%s9121_s3 + $0x2cc] ss:$48 sps:$4 sm:$0xff]  }
 0x2c2   : > { %4871 = vmatpush1.bf16.msra.mxu0 %v6768_v45  ;;  %v6858_v45 = vld [vmem:[%s9121_s3 + $0x2c0] ss:$48 sps:$4 sm:$0xff]  }
 0x2c3   : > { %4914 = vmatpush1.bf16.msra.mxu1 %v6771_v47  ;;  %4872 = vmatprep.subr.bf16.mxu0 %v6776_v28  ;;  %v6861_v47 = vld [vmem:[%s9121_s3 + $0x2c8] ss:$48 sps:$4 sm:$0xff]   ;;  %v6866_v28 = vld [vmem:[%s9121_s3 + $0x264] ss:$48 sps:$4 sm:$0xff]  }
 0x2c4   : > { %4915 = vmatprep.subr.bf16.mxu1 %v6779_v29  ;;  %v6869_v29 = vld [vmem:[%s9121_s3 + $0x26c] ss:$48 sps:$4 sm:$0xff]  }
 0x2c6   : > { %4873 = vmatpush1.bf16.msra.mxu0 %v6774_v11  ;;  %v6864_v11 = vld [vmem:[%s9121_s3 + $0x260] ss:$48 sps:$4 sm:$0xff]  }
 0x2c7   : > { %4916 = vmatpush1.bf16.msra.mxu1 %v6777_v14  ;;  %4874 = vmatprep.subr.bf16.mxu0 %v6782_v40  ;;  %v6867_v14 = vld [vmem:[%s9121_s3 + $0x268] ss:$48 sps:$4 sm:$0xff]   ;;  %v6872_v40 = vld [vmem:[%s9121_s3 + $0x204] ss:$48 sps:$4 sm:$0xff]  }
 0x2c8   : > { %4917 = vmatprep.subr.bf16.mxu1 %v6785_v46  ;;  %v6875_v46 = vld [vmem:[%s9121_s3 + $0x20c] ss:$48 sps:$4 sm:$0xff]  }
 0x2ca   : > { %4875 = vmatpush1.bf16.msra.mxu0 %v6780_v15  ;;  %v6870_v15 = vld [vmem:[%s9121_s3 + $0x200] ss:$48 sps:$4 sm:$0xff]  }
 0x2cb   : > { %4918 = vmatpush1.bf16.msra.mxu1 %v6783_v18  ;;  %4888 = vmatprep.subr.bf16.mxu0 %v6788_v19  ;;  %v6873_v18 = vld [vmem:[%s9121_s3 + $0x208] ss:$48 sps:$4 sm:$0xff]   ;;  %v6881_v19 = vld [vmem:[%s9121_s3 + $0x1ac] ss:$48 sps:$4 sm:$0xff]  }
 0x2cc   : > { %4931 = vmatprep.subr.bf16.mxu1 %v6791_v20  ;;  %v6876_v20 = vld [vmem:[%s9121_s3 + $0x1a0] ss:$48 sps:$4 sm:$0xff]  }
 0x2ce   : > { %4889 = vmatpush2.bf16.msra.mxu0 %v6786_v21  ;;  %v6879_v21 = vld [vmem:[%s9121_s3 + $0x1a8] ss:$48 sps:$4 sm:$0xff]  }
 0x2cf   : > { %4932 = vmatpush2.bf16.msra.mxu1 %v6789_v23  ;;  %4890 = vmatprep.subr.bf16.mxu0 %v6794_v25  ;;  %v6884_v23 = vld [vmem:[%s9121_s3 + $0x144] ss:$48 sps:$4 sm:$0xff]   ;;  %v6887_v25 = vld [vmem:[%s9121_s3 + $0x14c] ss:$48 sps:$4 sm:$0xff]  }
 0x2d0   : > { %4933 = vmatprep.subr.bf16.mxu1 %v6797_v26  ;;  %v6882_v26 = vld [vmem:[%s9121_s3 + $0x140] ss:$48 sps:$4 sm:$0xff]  }
 0x2d2   : > { %4891 = vmatpush2.bf16.msra.mxu0 %v6792_v27  ;;  %v6885_v27 = vld [vmem:[%s9121_s3 + $0x148] ss:$48 sps:$4 sm:$0xff]  }
 0x2d3   : > { %4934 = vmatpush2.bf16.msra.mxu1 %v6795_v30  ;;  %4946 = vmatprep.subr.bf16.mxu0 %v6800_v31  ;;  %v6890_v30 = vld [vmem:[%s9121_s3 + $0xe4] ss:$48 sps:$4 sm:$0xff]   ;;  %v6893_v31 = vld [vmem:[%s9121_s3 + $0xec] ss:$48 sps:$4 sm:$0xff]  }
 0x2d4   : > { %4989 = vmatprep.subr.bf16.mxu1 %v6803_v32  ;;  %v6888_v32 = vld [vmem:[%s9121_s3 + $0xe0] ss:$48 sps:$4 sm:$0xff]  }
 0x2d5   : > { %4893 = vmatmul.mubr.bf16.vlgmr.msra.gmra.mxu0 %v8341_v17 }
 0x2d6   : > { %4936 = vmatmul.mubr.bf16.vlgmr.msra.gmra.mxu1 %v8341_v17  ;;  %4947 = vmatpush1.bf16.msra.mxu0 %v6798_v35  ;;  %v6891_v35 = vld [vmem:[%s9121_s3 + $0xe8] ss:$48 sps:$4 sm:$0xff]  }
 0x2d7   : > { %5966 = vmatprep.mubr.msk.bf16.mxu0 %vm3995_vm2, %v8343_v22  ;;  %4990 = vmatpush1.bf16.msra.mxu1 %v6801_v36  ;;  %v6896_v36 = vld [vmem:[%s9121_s3 + $0x84] ss:$48 sps:$4 sm:$0xff]  }
 0x2d8   : > { %5967 = vmatprep.mubr.msk.bf16.mxu1 %vm3995_vm2, %v8343_v22  ;;  %4948 = vmatprep.subr.bf16.mxu0 %v6806_v37  ;;  %v6899_v37 = vld [vmem:[%s9121_s3 + $0x8c] ss:$48 sps:$4 sm:$0xff]  }
 0x2d9   : > { %4991 = vmatprep.subr.bf16.mxu1 %v6809_v38  ;;  %v6894_v38 = vld [vmem:[%s9121_s3 + $0x80] ss:$48 sps:$4 sm:$0xff]  }
 0x2da   : > { %4949 = vmatpush1.bf16.msra.mxu0 %v6804_v39  ;;  %v6897_v39 = vld [vmem:[%s9121_s3 + $0x88] ss:$48 sps:$4 sm:$0xff]  }
 0x2db   : > { %4992 = vmatpush1.bf16.msra.mxu1 %v6807_v41  ;;  %4950 = vmatprep.subr.bf16.mxu0 %v6812_v42  ;;  %v6902_v41 = vld [vmem:[%s9121_s3 + $0x24] ss:$48 sps:$4 sm:$0xff]   ;;  %v6905_v42 = vld [vmem:[%s9121_s3 + $0x2c] ss:$48 sps:$4 sm:$0xff]  }
 0x2dc   : > { %4993 = vmatprep.subr.bf16.mxu1 %v6815_v43  ;;  %v6900_v43 = vld [vmem:[%s9121_s3 + $0x20] ss:$48 sps:$4 sm:$0xff]  }
 0x2de   : > { %4951 = vmatpush1.bf16.msra.mxu0 %v6810_v44  ;;  %v6903_v44 = vld [vmem:[%s9121_s3 + $0x28] ss:$48 sps:$4 sm:$0xff]  }
 0x2df   : > { %4994 = vmatpush1.bf16.msra.mxu1 %v6813_v48  ;;  %4952 = vmatprep.subr.bf16.mxu0 %v6818_v49  ;;  %v6908_v48 = vld [vmem:[%s9121_s3 + $0x384] ss:$48 sps:$4 sm:$0xff]   ;;  %v6911_v49 = vld [vmem:[%s9121_s3 + $0x38c] ss:$48 sps:$4 sm:$0xff]  }
 0x2e0   : > { %4995 = vmatprep.subr.bf16.mxu1 %v6821_v50  ;;  %v6906_v50 = vld [vmem:[%s9121_s3 + $0x380] ss:$48 sps:$4 sm:$0xff]  }
 0x2e2   : > { %4953 = vmatpush1.bf16.msra.mxu0 %v6816_v51  ;;  %v6909_v51 = vld [vmem:[%s9121_s3 + $0x388] ss:$48 sps:$4 sm:$0xff]  }
 0x2e3   : > { %4996 = vmatpush1.bf16.msra.mxu1 %v6819_v56  ;;  %4954 = vmatprep.subr.bf16.mxu0 %v6824_v57  ;;  %v6914_v56 = vld [vmem:[%s9121_s3 + $0x324] ss:$48 sps:$4 sm:$0xff]   ;;  %v6917_v57 = vld [vmem:[%s9121_s3 + $0x32c] ss:$48 sps:$4 sm:$0xff]  }
 0x2e4   : > { %4997 = vmatprep.subr.bf16.mxu1 %v6827_v58  ;;  %v6912_v58 = vld [vmem:[%s9121_s3 + $0x320] ss:$48 sps:$4 sm:$0xff]  }
 0x2e6   : > { %4955 = vmatpush1.bf16.msra.mxu0 %v6822_v59  ;;  %v6915_v59 = vld [vmem:[%s9121_s3 + $0x328] ss:$48 sps:$4 sm:$0xff]  }
 0x2e7   : > { %4998 = vmatpush1.bf16.msra.mxu1 %v6825_v60  ;;  %4956 = vmatprep.subr.bf16.mxu0 %v6830_v61 }
 0x2e8   : > { %4999 = vmatprep.subr.bf16.mxu1 %v6833_v62 }
 0x2ea   : > { %4957 = vmatpush1.bf16.msra.mxu0 %v6828_v63 }
 0x2eb   : > { %5000 = vmatpush1.bf16.msra.mxu1 %v6831_v0  ;;  %4958 = vmatprep.subr.bf16.mxu0 %v6836_v1 }
 0x2ec   : > { %5001 = vmatprep.subr.bf16.mxu1 %v6839_v2 }
 0x2ee   : > { %4959 = vmatpush1.bf16.msra.mxu0 %v6834_v53 }
 0x2ef   : > { %5002 = vmatpush1.bf16.msra.mxu1 %v6837_v54  ;;  %4960 = vmatprep.subr.bf16.mxu0 %v6842_v3 }
 0x2f0   : > { %5003 = vmatprep.subr.bf16.mxu1 %v6845_v33 }
 0x2f2   : > { %4961 = vmatpush1.bf16.msra.mxu0 %v6840_v34 }
 0x2f3   : > { %5004 = vmatpush1.bf16.msra.mxu1 %v6843_v4  ;;  %4974 = vmatprep.subr.bf16.mxu0 %v6848_v5 }
 0x2f4   : > { %5017 = vmatprep.subr.bf16.mxu1 %v6851_v6 }
 0x2f6   : > { %4975 = vmatpush2.bf16.msra.mxu0 %v6846_v12 }
 0x2f7   : > { %5018 = vmatpush2.bf16.msra.mxu1 %v6849_v13  ;;  %4976 = vmatprep.subr.bf16.mxu0 %v6854_v7 }
 0x2f8   : > { %5019 = vmatprep.subr.bf16.mxu1 %v6857_v52 }
 0x2fa   : > { %4977 = vmatpush2.bf16.msra.mxu0 %v6852_v55 }
 0x2fb   : > { %5020 = vmatpush2.bf16.msra.mxu1 %v6855_v8  ;;  %5032 = vmatprep.subr.bf16.mxu0 %v6860_v9  ;;  %v9030_v9 = vld [vmem:[%s9123_s5] sm:$0xff] }
 0x2fc   : > { %5075 = vmatprep.subr.bf16.mxu1 %v6863_v10  ;;  %v5132_v10 = vsub.s32 2, %v8334_v16 }
 0x2fd   : > { %4979 = vmatmul.mubr.bf16.vlgmr.msra.gmra.mxu0 %v8341_v17 }
 0x2fe   : > { %5022 = vmatmul.mubr.bf16.vlgmr.msra.gmra.mxu1 %v8341_v17  ;;  %5033 = vmatpush1.bf16.msra.mxu0 %v6858_v45  ;;  %v5128_v45 = vsub.s32 1, %v8334_v16 }
 0x2ff   : > { %5968 = vmatprep.mubr.msk.bf16.mxu0 %vm3995_vm2, %v8343_v22  ;;  %5076 = vmatpush1.bf16.msra.mxu1 %v6861_v47 }
 0x300   : > { %5969 = vmatprep.mubr.msk.bf16.mxu1 %vm3995_vm2, %v8343_v22  ;;  %5034 = vmatprep.subr.bf16.mxu0 %v6866_v28  ;;  %v6878_v22 = vld [vmem:[%s9121_s3 + $0x1a4] ss:$48 sps:$4 sm:$0xff]   ;;  %v5136_v28 = vsub.s32 3, %v8334_v16 }
 0x301   : > { %5077 = vmatprep.subr.bf16.mxu1 %v6869_v29 }
 0x302   : > { %5035 = vmatpush1.bf16.msra.mxu0 %v6864_v11  ;;  %v5125_v11 = vrot.slane %v9030_v9, %v8337_v24 }
 0x303   : > { %5078 = vmatpush1.bf16.msra.mxu1 %v6867_v14  ;;  %5036 = vmatprep.subr.bf16.mxu0 %v6872_v40  ;;  %v5133_v40 = vrot.slane %v9030_v9, %v5132_v10 }
 0x304   : > { %5079 = vmatprep.subr.bf16.mxu1 %v6875_v46 }
 0x306   : > { %5037 = vmatpush1.bf16.msra.mxu0 %v6870_v15 }
 0x307   : > { %5080 = vmatpush1.bf16.msra.mxu1 %v6873_v18  ;;  %5038 = vmatprep.subr.bf16.mxu0 %v6878_v22  ;;  %v5129_v18 = vrot.slane %v9030_v9, %v5128_v45 }
 0x308   : > { %5081 = vmatprep.subr.bf16.mxu1 %v6881_v19 }
 0x30a   : > { %5039 = vmatpush1.bf16.msra.mxu0 %v6876_v20  ;;  %v5137_v20 = vrot.slane %v9030_v9, %v5136_v28 }
 0x30b   : > { %5082 = vmatpush1.bf16.msra.mxu1 %v6879_v21  ;;  %5040 = vmatprep.subr.bf16.mxu0 %v6884_v23 }
 0x30c   : > { %5083 = vmatprep.subr.bf16.mxu1 %v6887_v25 }
 0x30e   : > { %5041 = vmatpush1.bf16.msra.mxu0 %v6882_v26 }
 0x30f   : > { %5084 = vmatpush1.bf16.msra.mxu1 %v6885_v27  ;;  %5042 = vmatprep.subr.bf16.mxu0 %v6890_v30 }
 0x310   : > { %5085 = vmatprep.subr.bf16.mxu1 %v6893_v31 }
 0x312   : > { %5043 = vmatpush1.bf16.msra.mxu0 %v6888_v32 }
 0x313   : > { %5086 = vmatpush1.bf16.msra.mxu1 %v6891_v35  ;;  %5044 = vmatprep.subr.bf16.mxu0 %v6896_v36 }
 0x314   : > { %5087 = vmatprep.subr.bf16.mxu1 %v6899_v37 }
 0x316   : > { %5045 = vmatpush1.bf16.msra.mxu0 %v6894_v38 }
 0x317   : > { %5088 = vmatpush1.bf16.msra.mxu1 %v6897_v39  ;;  %5046 = vmatprep.subr.bf16.mxu0 %v6902_v41 }
 0x318   : > { %5089 = vmatprep.subr.bf16.mxu1 %v6905_v42 }
 0x31a   : > { %5047 = vmatpush1.bf16.msra.mxu0 %v6900_v43 }
 0x31b   : > { %5090 = vmatpush1.bf16.msra.mxu1 %v6903_v44  ;;  %5060 = vmatprep.subr.bf16.mxu0 %v6908_v48 }
 0x31c   : > { %5103 = vmatprep.subr.bf16.mxu1 %v6911_v49 }
 0x31d   : > { %v4033_v60 = vpop.f32.mrf.mxu0  ;;  %v4076_v61 = vpop.f32.mrf.mxu1 }
 0x31e   : > { %5061 = vmatpush2.bf16.msra.mxu0 %v6906_v50 }
 0x31f   : > { %5104 = vmatpush2.bf16.msra.mxu1 %v6909_v51  ;;  %5062 = vmatprep.subr.bf16.mxu0 %v6914_v56  ;;  %v4035_v62 = vpop.f32.mrf.mxu0  ;;  %v4078_v63 = vpop.f32.mrf.mxu1 }
 0x320   : > { %5105 = vmatprep.subr.bf16.mxu1 %v6917_v57 }
 0x321   : > { %v4037_v0 = vpop.f32.mrf.mxu0  ;;  %v4080_v1 = vpop.f32.mrf.mxu1 }
 0x322   : > { %5063 = vmatpush2.bf16.msra.mxu0 %v6912_v58 }
 0x323   : > { %5106 = vmatpush2.bf16.msra.mxu1 %v6915_v59  ;;  %v4039_v2 = vpop.f32.mrf.mxu0  ;;  %v4082_v53 = vpop.f32.mrf.mxu1 }
 0x325   : > { %5065 = vmatmul.mubr.bf16.vlgmr.msra.gmra.mxu0 %v8341_v17 }
 0x326   : > { %5108 = vmatmul.mubr.bf16.vlgmr.msra.gmra.mxu1 %v8341_v17 }
 0x345   : > { %v8999_v54 = vpop.f32.mrf.mxu0  ;;  %v9001_v3 = vpop.f32.mrf.mxu1 }
 0x347   : > { %v9003_v33 = vpop.f32.mrf.mxu0  ;;  %v9005_v34 = vpop.f32.mrf.mxu1 }
 0x349   : > { %v9007_v4 = vpop.f32.mrf.mxu0  ;;  %v9009_v5 = vpop.f32.mrf.mxu1 }
 0x34b   : > { %v9011_v17 = vpop.f32.mrf.mxu0  ;;  %v9013_v6 = vpop.f32.mrf.mxu1 }
 0x36d   : > { %v9015_v12 = vpop.f32.mrf.mxu0 }
 0x36e   : > { %v9017_v13 = vpop.f32.mrf.mxu1 }
 0x36f   : > { %v9019_v7 = vpop.f32.mrf.mxu0 }
 0x370   : > { %v9021_v52 = vpop.f32.mrf.mxu1 }
 0x371   : > { %v9023_v55 = vpop.f32.mrf.mxu0 }
 0x372   : > { %v9025_v8 = vpop.f32.mrf.mxu1 }
 0x373   : > { %v9034_v47 = vpop.f32.mrf.mxu0 }
 0x374   : > { %v9037_v29 = vpop.f32.mrf.mxu1 }
 0x395   : > { %v4894_v14 = vpop.f32.mrf.mxu0 }
 0x396   : > { %v4895_v46 = vadd.f32 %v4894_v14, %v4033_v60  ;;  %v4937_v15 = vpop.f32.mrf.mxu1 }
 0x397   : > { %v4938_v22 = vadd.f32 %v4937_v15, %v4076_v61  ;;  %v4896_v19 = vpop.f32.mrf.mxu0 }
 0x398   : > { %v5182_v21 = vadd.f32 %v5125_v11, %v4895_v46  ;;  %v4897_v23 = vadd.f32 %v4896_v19, %v4035_v62  ;;  %v4939_v25 = vpop.f32.mrf.mxu1  ;;  %v5140_v62 = vsub.s32 4, %v8334_v16 }
 0x399   : > { %v5184_v26 = vadd.f32 %v5133_v40, %v4938_v22  ;;  %v4940_v27 = vadd.f32 %v4939_v25, %v4078_v63  ;;  %v4898_v30 = vpop.f32.mrf.mxu0  ;;  %v5148_v63 = vsub.s32 6, %v8334_v16 }
 0x39a   : > { %v5206_v31 = vmax.f32 %v5182_v21, 0.0  ;;  %v5183_v32 = vadd.f32 %v5129_v18, %v4897_v23  ;;  %v4899_v35 = vadd.f32 %v4898_v30, %v4037_v0  ;;  %v4941_v36 = vpop.f32.mrf.mxu1  ;;  %v5144_v0 = vsub.s32 5, %v8334_v16 }
 0x39b   : > { %v5208_v37 = vmax.f32 %v5184_v26, 0.0  ;;  %v5185_v38 = vadd.f32 %v5137_v20, %v4940_v27  ;;  %v4942_v39 = vadd.f32 %v4941_v36, %v4080_v1  ;;  %v4900_v41 = vpop.f32.mrf.mxu0  ;;  %v5152_v1 = vsub.s32 7, %v8334_v16 }
 0x39c   : > { %5230 = vst [vmem:[%s9055_s29] sm:$0xff] %v5206_v31  ;;  %v5207_v42 = vmax.f32 %v5183_v32, 0.0  ;;  %v5194_v43 = vadd.f32 %v5125_v11, %v4899_v35  ;;  %v4901_v44 = vadd.f32 %v4900_v41, %v4039_v2  ;;  %v4943_v48 = vpop.f32.mrf.mxu1  ;;  %v5141_v2 = vrot.slane %v9030_v9, %v5140_v62 }
 0x39d   : > { %5232 = vst [vmem:[%s9055_s29 + $0x10] sm:$0xff] %v5208_v37  ;;  %v5209_v49 = vmax.f32 %v5185_v38, 0.0  ;;  %v5196_v50 = vadd.f32 %v5133_v40, %v4942_v39  ;;  %v4944_v51 = vadd.f32 %v4943_v48, %v4082_v53  ;;  %v5149_v11 = vrot.slane %v9030_v9, %v5148_v63 }
 0x39e   : > { %5231 = vst [vmem:[%s9055_s29 + $0x8] sm:$0xff] %v5207_v42  ;;  %v5218_v56 = vmax.f32 %v5194_v43, 0.0  ;;  %v5195_v57 = vadd.f32 %v5129_v18, %v4901_v44  ;;  %v5145_v46 = vrot.slane %v9030_v9, %v5144_v0  ;;  %v5153_v22 = vrot.slane %v9030_v9, %v5152_v1 }
 0x39f   : > { %5233 = vst [vmem:[%s9055_s29 + $0x18] sm:$0xff] %v5209_v49  ;;  %v5220_v58 = vmax.f32 %v5196_v50, 0.0  ;;  %v5197_v59 = vadd.f32 %v5137_v20, %v4944_v51 }
 0x3a0   : > { %5242 = vst [vmem:[%s9055_s29 + $0x60] sm:$0xff] %v5218_v56  ;;  %v5219_v60 = vmax.f32 %v5195_v57, 0.0 }
 0x3a1   : > { %5244 = vst [vmem:[%s9055_s29 + $0x70] sm:$0xff] %v5220_v58  ;;  %v5221_v61 = vmax.f32 %v5197_v59, 0.0 }
 0x3a2   : > { %5243 = vst [vmem:[%s9055_s29 + $0x68] sm:$0xff] %v5219_v60 }
 0x3a3   : > { %5245 = vst [vmem:[%s9055_s29 + $0x78] sm:$0xff] %v5221_v61 }
 0x3bd   : > { %v4980_v53 = vpop.f32.mrf.mxu0 }
 0x3be   : > { %v4981_v14 = vadd.f32 %v4980_v53, %v8999_v54  ;;  %v5023_v40 = vpop.f32.mrf.mxu1 }
 0x3bf   : > { %v5024_v15 = vadd.f32 %v5023_v40, %v9001_v3  ;;  %v4982_v18 = vpop.f32.mrf.mxu0 }
 0x3c0   : > { %v5186_v19 = vadd.f32 %v5141_v2, %v4981_v14  ;;  %v4983_v20 = vadd.f32 %v4982_v18, %v9003_v33  ;;  %v5025_v21 = vpop.f32.mrf.mxu1 }
 0x3c1   : > { %v5188_v23 = vadd.f32 %v5149_v11, %v5024_v15  ;;  %v5026_v25 = vadd.f32 %v5025_v21, %v9005_v34  ;;  %v4984_v26 = vpop.f32.mrf.mxu0 }
 0x3c2   : > { %v5210_v27 = vmax.f32 %v5186_v19, 0.0  ;;  %v5187_v54 = vadd.f32 %v5145_v46, %v4983_v20  ;;  %v4985_v30 = vadd.f32 %v4984_v26, %v9007_v4  ;;  %v5027_v31 = vpop.f32.mrf.mxu1 }
 0x3c3   : > { %v5212_v3 = vmax.f32 %v5188_v23, 0.0  ;;  %v5189_v32 = vadd.f32 %v5153_v22, %v5026_v25  ;;  %v5028_v9 = vadd.f32 %v5027_v31, %v9009_v5  ;;  %v4986_v35 = vpop.f32.mrf.mxu0 }
 0x3c4   : > { %5234 = vst [vmem:[%s9055_s29 + $0x20] sm:$0xff] %v5210_v27  ;;  %v5211_v33 = vmax.f32 %v5187_v54, 0.0  ;;  %v5198_v36 = vadd.f32 %v5141_v2, %v4985_v30  ;;  %v4987_v34 = vadd.f32 %v4986_v35, %v9011_v17  ;;  %v5029_v37 = vpop.f32.mrf.mxu1  ;;  %v5119_v17 = vld [vmem:[%s9123_s5 + $0x8] sm:$0xf] }
 0x3c5   : > { %5236 = vst [vmem:[%s9055_s29 + $0x30] sm:$0xff] %v5212_v3  ;;  %v5213_v38 = vmax.f32 %v5189_v32, 0.0  ;;  %v5200_v4 = vadd.f32 %v5149_v11, %v5028_v9  ;;  %v5030_v39 = vadd.f32 %v5029_v37, %v9013_v6  ;;  %v5157_v49 = vrot.slane %v5119_v17, %v8337_v24 }
 0x3c6   : > { %5235 = vst [vmem:[%s9055_s29 + $0x28] sm:$0xff] %v5211_v33  ;;  %v5222_v41 = vmax.f32 %v5198_v36, 0.0  ;;  %v5199_v42 = vadd.f32 %v5145_v46, %v4987_v34  ;;  %v5165_v6 = vrot.slane %v5119_v17, %v5132_v10  ;;  %v5161_v57 = vrot.slane %v5119_v17, %v5128_v45 }
 0x3c7   : > { %5237 = vst [vmem:[%s9055_s29 + $0x38] sm:$0xff] %v5213_v38  ;;  %v5224_v5 = vmax.f32 %v5200_v4, 0.0  ;;  %v5201_v43 = vadd.f32 %v5153_v22, %v5030_v39  ;;  %v5169_v60 = vrot.slane %v5119_v17, %v5136_v28 }
 0x3c8   : > { %5246 = vst [vmem:[%s9055_s29 + $0x80] sm:$0xff] %v5222_v41  ;;  %v5223_v44 = vmax.f32 %v5199_v42, 0.0 }
 0x3c9   : > { %5248 = vst [vmem:[%s9055_s29 + $0x90] sm:$0xff] %v5224_v5  ;;  %v5225_v48 = vmax.f32 %v5201_v43, 0.0 }
 0x3ca   : > { %5247 = vst [vmem:[%s9055_s29 + $0x88] sm:$0xff] %v5223_v44 }
 0x3cb   : > { %5249 = vst [vmem:[%s9055_s29 + $0x98] sm:$0xff] %v5225_v48 }
 0x3e5   : > { %v5066_v50 = vpop.f32.mrf.mxu0 }
 0x3e6   : > { %v5067_v51 = vadd.f32 %v5066_v50, %v9015_v12  ;;  %v5109_v56 = vpop.f32.mrf.mxu1 }
 0x3e7   : > { %v5110_v58 = vadd.f32 %v5109_v56, %v9017_v13  ;;  %v5068_v59 = vpop.f32.mrf.mxu0 }
 0x3e8   : > { %v5190_v61 = vadd.f32 %v5157_v49, %v5067_v51  ;;  %v5069_v24 = vadd.f32 %v5068_v59, %v9019_v7  ;;  %v5111_v62 = vpop.f32.mrf.mxu1 }
 0x3e9   : > { %v5192_v63 = vadd.f32 %v5165_v6, %v5110_v58  ;;  %v5112_v10 = vadd.f32 %v5111_v62, %v9021_v52  ;;  %v5070_v12 = vpop.f32.mrf.mxu0 }
 0x3ea   : > { %v5214_v0 = vmax.f32 %v5190_v61, 0.0  ;;  %v5191_v1 = vadd.f32 %v5161_v57, %v5069_v24  ;;  %v5071_v45 = vadd.f32 %v5070_v12, %v9023_v55  ;;  %v5113_v13 = vpop.f32.mrf.mxu1 }
 0x3eb   : > { %v5216_v2 = vmax.f32 %v5192_v63, 0.0  ;;  %v5193_v16 = vadd.f32 %v5169_v60, %v5112_v10  ;;  %v5114_v28 = vadd.f32 %v5113_v13, %v9025_v8  ;;  %v5072_v53 = vpop.f32.mrf.mxu0 }
 0x3ec   : > { %5238 = vst [vmem:[%s9055_s29 + $0x40] sm:$0xff] %v5214_v0  ;;  %v5215_v7 = vmax.f32 %v5191_v1, 0.0  ;;  %v5202_v11 = vadd.f32 %v5157_v49, %v5071_v45  ;;  %v5073_v52 = vadd.f32 %v5072_v53, %v9034_v47  ;;  %v5115_v14 = vpop.f32.mrf.mxu1 }
 0x3ed   : > { %5240 = vst [vmem:[%s9055_s29 + $0x50] sm:$0xff] %v5216_v2  ;;  %v5217_v40 = vmax.f32 %v5193_v16, 0.0  ;;  %v5204_v55 = vadd.f32 %v5165_v6, %v5114_v28  ;;  %v5116_v46 = vadd.f32 %v5115_v14, %v9037_v29 }
 0x3ee   : > { %5239 = vst [vmem:[%s9055_s29 + $0x48] sm:$0xff] %v5215_v7  ;;  %v5226_v15 = vmax.f32 %v5202_v11, 0.0  ;;  %v5203_v18 = vadd.f32 %v5161_v57, %v5073_v52 }
 0x3ef   : > { %5241 = vst [vmem:[%s9055_s29 + $0x58] sm:$0xff] %v5217_v40  ;;  %v5228_v8 = vmax.f32 %v5204_v55, 0.0  ;;  %v5205_v22 = vadd.f32 %v5169_v60, %v5116_v46 }
 0x3f0   : > { %5250 = vst [vmem:[%s9055_s29 + $0xa0] sm:$0xff] %v5226_v15  ;;  %v5227_v19 = vmax.f32 %v5203_v18, 0.0 }
 0x3f1   : > { %5252 = vst [vmem:[%s9055_s29 + $0xb0] sm:$0xff] %v5228_v8  ;;  %v5229_v20 = vmax.f32 %v5205_v22, 0.0 }
 0x3f2   : > { %5251 = vst [vmem:[%s9055_s29 + $0xa8] sm:$0xff] %v5227_v19 }
 0x3f3   : > { %5253 = vst [vmem:[%s9055_s29 + $0xb8] sm:$0xff] %v5229_v20 }
 0x3f4 PF: > { %s16_s21 = sadd.s32 1, %s6924_s21  }
 0x3f5   : > { %p13_p4 = scmp.ge.s32.totalorder %s16_s21, 4  }
 0x3f7   :  { %15 = sbr.rel (!%p13_p4) target bundleno = 1 (0x1), region = 74 }

</bundles_post_ra>
